<compile_context>
chip_gen: v7x
topology: tpu7x:2x2x1
jax: 0.10.0
libtpu: 0.0.40
codegen_flags: <defaults>
</compile_context>

<pallas_src>
import functools

import jax
import jax.numpy as jnp
import numpy as np
from jax import lax
from jax.experimental import pallas as pl
from jax.experimental.pallas import tpu as pltpu


def _round_up(x, m):
    return ((x + m - 1) // m) * m


@functools.lru_cache(maxsize=None)
def _prefer_narrow_tn():
    """tn=128 on v5e (128x128 MXU); tn=256 elsewhere."""
    try:
        kind = jax.devices()[0].device_kind.lower()
    except Exception:
        return False
    return ("v5 lite" in kind) or ("v5e" in kind) or ("v5lite" in kind)


def _pick_tn(coutp):
    tn = 128 if (_prefer_narrow_tn() or coutp % 256 != 0) else 256
    return min(tn, coutp)


def _pick_tm(M, K):
    """Largest M tile with a <=4 MiB bf16 patches buffer and >=2 row blocks."""
    mp8 = _round_up(max(M, 8), 8)
    if mp8 <= 256:
        return mp8
    for tm in (1024, 512, 256):
        if tm * K * 2 <= 4 * 1024 * 1024 and M >= 2 * tm:
            return tm
    return 256


# ---------------------------------------------------------------------------
# Pallas kernel: fused  (patches @ W_folded) + shift  ->  ReLU | none
# ---------------------------------------------------------------------------
def _matmul_bias_act_kernel(p_ref, w_ref, b_ref, o_ref, *, act):
    acc = jnp.dot(p_ref[...], w_ref[...], preferred_element_type=jnp.float32)
    y = acc + b_ref[...]                      # folded-BN shift (or zeros)
    if act == "relu":
        y = jnp.maximum(y, 0.0)
    o_ref[...] = y.astype(o_ref.dtype)


def fused_matmul(patches, w2d, shift, *, act="none", out_dtype=jnp.bfloat16):
    """patches:(M,K) bf16, w2d:(K,Cout) bf16, shift:(Cout,) f32 -> (M,Cout)."""
    M, K = patches.shape
    Kw, Cout = w2d.shape
    assert Kw == K
    Coutp = _round_up(Cout, 128)              # lane-dense output
    tn = _pick_tn(Coutp)
    tm = _pick_tm(M, K)
    Mp = _round_up(M, tm)

    if Mp != M:
        patches = jnp.pad(patches, ((0, Mp - M), (0, 0)))
    if Coutp != Cout:
        w2d = jnp.pad(w2d, ((0, 0), (0, Coutp - Cout)))
    shift2d = jnp.pad(shift.astype(jnp.float32).reshape(1, Cout),
                      ((0, 0), (0, Coutp - Cout)))

    grid = (Mp // tm, Coutp // tn)            # M leading & parallel (megacore)
    out_bytes = jnp.dtype(out_dtype).itemsize
    cost = pl.CostEstimate(
        flops=2 * Mp * K * Coutp,
        transcendentals=0,
        bytes_accessed=Mp * K * 2 + K * Coutp * 2 + Coutp * 4
        + Mp * Coutp * out_bytes)

    out = pl.pallas_call(
        functools.partial(_matmul_bias_act_kernel, act=act),
        out_shape=jax.ShapeDtypeStruct((Mp, Coutp), out_dtype),
        grid_spec=pltpu.PrefetchScalarGridSpec(
            num_scalar_prefetch=0,
            grid=grid,
            in_specs=[
                pl.BlockSpec((tm, K), lambda i, j: (i, 0)),   # patches tile
                pl.BlockSpec((K, tn), lambda i, j: (0, j)),   # weight slab
                pl.BlockSpec((1, tn), lambda i, j: (0, j)),   # shift / bias
            ],
            out_specs=pl.BlockSpec((tm, tn), lambda i, j: (i, j)),
        ),
        compiler_params=pltpu.CompilerParams(
            dimension_semantics=("parallel", "parallel"),
            vmem_limit_bytes=32 * 1024 * 1024),
        cost_estimate=cost,
    )(patches, w2d, shift2d)
    return out[:M, :Cout]


# ---------------------------------------------------------------------------
# Deconv layer: sub-pixel phase decomposition (one Pallas matmul per layer)
# ---------------------------------------------------------------------------
def subpixel_deconv_bn_relu(x_main, skip, layer):
    """ConvTranspose2d(k=4, s=2, p=1) + folded BN + ReLU.

    o[2i+ph, 2j+pw, :] = sum_{dy,dx in {0,1}} x[i+ph+dy-1, j+pw+dx-1, :] @
                         w'[ph+2dy, pw+2dx, :, :]
    computed as Yq[r, s, phase] over the (H+1)x(W+1) anchor grid (xpad = pad 1)
    with all 4 phases packed along the matmul output dim.
    """
    N, H, W, _ = x_main.shape
    pm = jnp.pad(x_main, ((0, 0), (1, 1), (1, 1), (0, 0)))
    ps = jnp.pad(skip, ((0, 0), (1, 1), (1, 1), (0, 0))) if skip is not None else None

    # 2x2-tap patch matrix; skip channels sliced in directly (no concatenated
    # NHWC intermediate).  K order = (tap dy,dx)-major x (main ch, skip ch).
    pieces = []
    for dy in (0, 1):
        for dx in (0, 1):
            pieces.append(pm[:, dy:dy + H + 1, dx:dx + W + 1, :])
            if ps is not None:
                pieces.append(ps[:, dy:dy + H + 1, dx:dx + W + 1, :])
    patches = jnp.concatenate(pieces, axis=-1)
    K = patches.shape[-1]
    patches = patches.reshape(N * (H + 1) * (W + 1), K)

    cout = layer["w4"].shape[1] // 4
    y = fused_matmul(patches, layer["w4"], layer["shift4"], act="relu")
    yq = y.reshape(N, H + 1, W + 1, 4, cout)

    # phase assembly: o[2i+ph, 2j+pw] = Yq[i+ph, j+pw, phase(ph,pw)]
    p00 = yq[:, 0:H,     0:W,     0]
    p01 = yq[:, 0:H,     1:W + 1, 1]
    p10 = yq[:, 1:H + 1, 0:W,     2]
    p11 = yq[:, 1:H + 1, 1:W + 1, 3]
    row0 = jnp.stack([p00, p01], axis=3)          # (N,H,W,2,C)
    row1 = jnp.stack([p10, p11], axis=3)
    out = jnp.stack([row0, row1], axis=2)         # (N,H,2,W,2,C)
    return out.reshape(N, 2 * H, 2 * W, cout)


# ---------------------------------------------------------------------------
# Final conv: tap-major matmul (K=Cin, N=25*Cout) + 25-way shift-add + tanh
# ---------------------------------------------------------------------------
def conv_final_tanh(x, layer, k=5):
    N, H, W, cin = x.shape
    cout = layer["bias"].shape[0]
    pad = k // 2
    y = fused_matmul(x.reshape(N * H * W, cin), layer["wtap"],
                     jnp.zeros((k * k * cout,), jnp.float32),
                     act="none", out_dtype=jnp.float32)        # (M, 25*Cout)
    yr = y.reshape(N, H, W, k, k, cout)
    ypad = jnp.pad(yr, ((0, 0), (pad, pad), (pad, pad), (0, 0), (0, 0), (0, 0)))
    o = jnp.zeros((N, H, W, cout), jnp.float32)
    for kh in range(k):
        for kw in range(k):
            o = o + ypad[:, kh:kh + H, kw:kw + W, kh, kw, :]
    return jnp.tanh(o + layer["bias"])


# ---------------------------------------------------------------------------
# decoder forward (mode handled as a static Python flag, like self.mode)
# ---------------------------------------------------------------------------
def decoder_forward(x1, x2, x3, x4, x5, x, params, mode=0):
    to_nhwc = lambda t: jnp.transpose(t, (0, 2, 3, 1)).astype(jnp.bfloat16)
    x1, x2, x3, x4, x5, x = map(to_nhwc, (x1, x2, x3, x4, x5, x))

    # dconv0 (padding=(2,1), output_padding=(1,0)) == standard p=1 deconv
    # output with the first row dropped.
    x_d1 = subpixel_deconv_bn_relu(x, None, params["d0"])[:, 1:, :, :]
    x_d2 = subpixel_deconv_bn_relu(x_d1, x5, params["d1"])
    x_d3 = subpixel_deconv_bn_relu(x_d2, x4, params["d2"])
    x_d4 = subpixel_deconv_bn_relu(x_d3, x3, params["d3"])
    x_d5 = subpixel_deconv_bn_relu(x_d4, x2, params["d4"])
    x_d6 = subpixel_deconv_bn_relu(x_d5, x1, params["d5"])
    x_orig = conv_final_tanh(x_d6, params["final"])            # (N,H,W,3) f32

    if mode == 0:
        x_out = x_orig
    elif mode == 1:
        # NOTE: no epsilon, matching the PyTorch module (NaN on zero vectors).
        norm = jnp.sqrt(jnp.sum(x_orig * x_orig, axis=-1, keepdims=True))
        x_out = x_orig / norm
    else:  # mode 2 or 3
        x_out = jnp.mean(x_orig, axis=-1, keepdims=True)
    return jnp.transpose(x_out, (0, 3, 1, 2))                  # back to NCHW


# ---------------------------------------------------------------------------
# Deterministic parameter init mirroring the PyTorch layer shapes
# ---------------------------------------------------------------------------
def _fold_deconv_bn(key, cin, cout, k=4):
    kw_, kg, kb, km, kv = jax.random.split(key, 5)
    # torch ConvTranspose2d weight: (cin, cout, k, k), bias=False
    w_pt = jax.random.normal(kw_, (cin, cout, k, k), jnp.float32) / np.sqrt(cin * k * k)
    # equivalent regular-conv kernel: flip spatially, reorder to HWIO
    w_hwio = jnp.transpose(jnp.flip(w_pt, axis=(2, 3)), (2, 3, 0, 1))  # (k,k,cin,cout)
    gamma = 1.0 + 0.1 * jax.random.normal(kg, (cout,), jnp.float32)
    beta = 0.1 * jax.random.normal(kb, (cout,), jnp.float32)
    rmean = 0.1 * jax.random.normal(km, (cout,), jnp.float32)
    rvar = 1.0 + 0.1 * jax.random.uniform(kv, (cout,), jnp.float32)
    scale = gamma / jnp.sqrt(rvar + 1e-5)
    shift = beta - rmean * scale
    w_folded = (w_hwio * scale).astype(jnp.bfloat16)          # BN scale folded in
    # sub-pixel phase-packed weight (4*cin, 4*cout):
    #   row = (dy*2+dx)*cin + ci ; col = (ph*2+pw)*cout + co ; value w'[ph+2dy, pw+2dx]
    wq = w_folded.reshape(2, 2, 2, 2, cin, cout)               # [dy,ph,dx,pw,ci,co]
    w4 = jnp.transpose(wq, (0, 2, 4, 1, 3, 5)).reshape(4 * cin, 4 * cout)
    return {"w_hwio": w_folded,                                # for lax.conv reference
            "w4": w4,
            "shift": shift,
            "shift4": jnp.tile(shift, 4)}


def _final_conv(key, cin, cout, k=5):
    kw_, kb = jax.random.split(key)
    # torch Conv2d weight: (cout, cin, k, k), bias=True
    w_pt = jax.random.normal(kw_, (cout, cin, k, k), jnp.float32) / np.sqrt(cin * k * k)
    b = 0.1 * jax.random.normal(kb, (cout,), jnp.float32)
    w_hwio = jnp.transpose(w_pt, (2, 3, 1, 0)).astype(jnp.bfloat16)   # (k,k,cin,cout)
    # tap-major matmul weight: (cin, k*k*cout); col = (kh*k + kw)*cout + co
    wtap = jnp.transpose(w_hwio, (2, 0, 1, 3)).reshape(cin, k * k * cout)
    return {"w_hwio": w_hwio, "wtap": wtap, "bias": b}


def init_params(key):
    ks = jax.random.split(key, 7)
    return {
        "d0": _fold_deconv_bn(ks[0], 512, 256),
        "d1": _fold_deconv_bn(ks[1], 256 + 256, 256),
        "d2": _fold_deconv_bn(ks[2], 256 + 256, 128),
        "d3": _fold_deconv_bn(ks[3], 128 + 128, 64),
        "d4": _fold_deconv_bn(ks[4], 64 + 64, 32),
        "d5": _fold_deconv_bn(ks[5], 32 + 32, 64),
        "final": _final_conv(ks[6], 64, 3),
    }


# ---------------------------------------------------------------------------
# Reference path (lax.conv with lhs_dilation == transposed conv) — same bf16
# weight folding / activation casting discipline, independent conv codepath.
# ---------------------------------------------------------------------------
def _ref_deconv_bn_relu(x, layer, pads, k=4):
    pt, pb, plft, prt = pads
    y = lax.conv_general_dilated(
        x, layer["w_hwio"], window_strides=(1, 1),
        padding=((pt, pb), (plft, prt)), lhs_dilation=(2, 2),
        dimension_numbers=("NHWC", "HWIO", "NHWC"),
        preferred_element_type=jnp.float32)
    return jnp.maximum(y + layer["shift"], 0.0).astype(jnp.bfloat16)


def _ref_conv_bias_tanh(x, layer, pad=2):
    y = lax.conv_general_dilated(
        x, layer["w_hwio"], window_strides=(1, 1),
        padding=((pad, pad), (pad, pad)),
        dimension_numbers=("NHWC", "HWIO", "NHWC"),
        preferred_element_type=jnp.float32)
    return jnp.tanh(y + layer["bias"])


def reference(x1, x2, x3, x4, x5, x, params, mode=0):
    to_nhwc = lambda t: jnp.transpose(t, (0, 2, 3, 1)).astype(jnp.bfloat16)
    x1, x2, x3, x4, x5, x = map(to_nhwc, (x1, x2, x3, x4, x5, x))
    x_d1 = _ref_deconv_bn_relu(x, params["d0"], (1, 2, 2, 2))
    x_d2 = _ref_deconv_bn_relu(jnp.concatenate([x_d1, x5], -1), params["d1"], (2, 2, 2, 2))
    x_d3 = _ref_deconv_bn_relu(jnp.concatenate([x_d2, x4], -1), params["d2"], (2, 2, 2, 2))
    x_d4 = _ref_deconv_bn_relu(jnp.concatenate([x_d3, x3], -1), params["d3"], (2, 2, 2, 2))
    x_d5 = _ref_deconv_bn_relu(jnp.concatenate([x_d4, x2], -1), params["d4"], (2, 2, 2, 2))
    x_d6 = _ref_deconv_bn_relu(jnp.concatenate([x_d5, x1], -1), params["d5"], (2, 2, 2, 2))
    x_orig = _ref_conv_bias_tanh(x_d6, params["final"])
    if mode == 0:
        out = x_orig
    elif mode == 1:
        out = x_orig / jnp.sqrt(jnp.sum(x_orig * x_orig, -1, keepdims=True))
    else:
        out = jnp.mean(x_orig, -1, keepdims=True)
    return jnp.transpose(out, (0, 3, 1, 2))


# ---------------------------------------------------------------------------
if __name__ == "__main__":
    key = jax.random.PRNGKey(0)
    kx, kp = jax.random.split(key)
    k1, k2, k3, k4, k5, kx0 = jax.random.split(kx, 6)

    # smallest consistent shapes: bottleneck x is (1, 512, 2, 2); skip tensors
    # must match the decoder's spatial chain (3,4)->(6,8)->(12,16)->(24,32)->(48,64)
    N, H0, W0 = 1, 2, 2
    x = jax.random.normal(kx0, (N, 512, H0, W0), jnp.float32)
    x5 = jax.random.normal(k5, (N, 256, 2 * H0 - 1, 2 * W0), jnp.float32)
    x4 = jax.random.normal(k4, (N, 256, 2 * (2 * H0 - 1), 4 * W0), jnp.float32)
    x3 = jax.random.normal(k3, (N, 128, 4 * (2 * H0 - 1), 8 * W0), jnp.float32)
    x2 = jax.random.normal(k2, (N, 64, 8 * (2 * H0 - 1), 16 * W0), jnp.float32)
    x1 = jax.random.normal(k1, (N, 32, 16 * (2 * H0 - 1), 32 * W0), jnp.float32)
    params = init_params(kp)

    fwd = jax.jit(functools.partial(decoder_forward, mode=0))
    out = fwd(x1, x2, x3, x4, x5, x, params)
    jax.block_until_ready(out)

    H6, W6 = 32 * (2 * H0 - 1), 64 * W0
    assert out.shape == (N, 3, H6, W6), out.shape

    ref = reference(x1, x2, x3, x4, x5, x, params, mode=0)
    np.testing.assert_allclose(np.asarray(out), np.asarray(ref),
                               rtol=2e-2, atol=2e-2)

    print("KERNEL_OK")
</pallas_src>

<mosaic_0001>
module attributes {stable_mosaic.version = 11 : i64} {
  func.func @_matmul_bias_act_kernel(%arg0: i32, %arg1: i32, %arg2: memref<16x2048xbf16, #tpu.memory_space<vmem>>, %arg3: memref<2048x256xbf16, #tpu.memory_space<vmem>>, %arg4: memref<1x256xf32, #tpu.memory_space<vmem>>, %arg5: memref<16x256xbf16, #tpu.memory_space<vmem>>) attributes {dimension_semantics = [#tpu.dimension_semantics<parallel>, #tpu.dimension_semantics<parallel>], iteration_bounds = array<i64: 1, 4>, scalar_prefetch = 0 : i64, scratch_operands = 0 : i64, tpu.core_type = #tpu.core_type<tc>, window_params = [{transform_indices = @transform_0, window_bounds = array<i64: 16, 2048>}, {transform_indices = @transform_1, window_bounds = array<i64: 2048, 256>}, {transform_indices = @transform_2, window_bounds = array<i64: 1, 256>}, {transform_indices = @transform_3, window_bounds = array<i64: 16, 256>}]} {
    %c0 = arith.constant 0 : index
    %c0_0 = arith.constant 0 : index
    %0 = vector.load %arg2[%c0, %c0_0] : memref<16x2048xbf16, #tpu.memory_space<vmem>>, vector<16x2048xbf16>
    %c0_1 = arith.constant 0 : index
    %c0_2 = arith.constant 0 : index
    %1 = vector.load %arg3[%c0_1, %c0_2] : memref<2048x256xbf16, #tpu.memory_space<vmem>>, vector<2048x256xbf16>
    %cst = arith.constant dense<0.000000e+00> : vector<16x256xf32>
    %2 = tpu.matmul %0, %1, %cst {dimension_numbers = #tpu.dot_dimension_numbers<[1], [0], [0], [1], [0, 0, 1, 1], [], []>} : vector<16x2048xbf16>, vector<2048x256xbf16>, vector<16x256xf32> -> vector<16x256xf32>
    %c0_3 = arith.constant 0 : index
    %c0_4 = arith.constant 0 : index
    %3 = vector.load %arg4[%c0_3, %c0_4] : memref<1x256xf32, #tpu.memory_space<vmem>>, vector<1x256xf32>
    %4 = vector.broadcast %3 : vector<1x256xf32> to vector<16x256xf32>
    %5 = arith.addf %2, %4 : vector<16x256xf32>
    %cst_5 = arith.constant 0.000000e+00 : f32
    %6 = vector.broadcast %cst_5 : f32 to vector<16x256xf32>
    %7 = arith.maximumf %5, %6 : vector<16x256xf32>
    %8 = arith.truncf %7 : vector<16x256xf32> to vector<16x256xbf16>
    %c0_6 = arith.constant 0 : index
    %c0_7 = arith.constant 0 : index
    %9 = vector.load %arg5[%c0_6, %c0_7] : memref<16x256xbf16, #tpu.memory_space<vmem>>, vector<16x256xbf16>
    tpu.vector_store %arg5[%c0_6, %c0_7], %8 {strides = array<i32>} : memref<16x256xbf16, #tpu.memory_space<vmem>>, vector<16x256xbf16>,
    return
  }
  func.func @transform_0(%arg0: i32, %arg1: i32) -> (i32, i32) {
    %c0_i32 = arith.constant 0 : i32
    %c0_i32_0 = arith.constant 0 : i32
    return %arg0, %c0_i32 : i32, i32
  }
  func.func @transform_1(%arg0: i32, %arg1: i32) -> (i32, i32) {
    %c0_i32 = arith.constant 0 : i32
    %c0_i32_0 = arith.constant 0 : i32
    return %c0_i32, %arg1 : i32, i32
  }
  func.func @transform_2(%arg0: i32, %arg1: i32) -> (i32, i32) {
    %c0_i32 = arith.constant 0 : i32
    %c0_i32_0 = arith.constant 0 : i32
    return %c0_i32, %arg1 : i32, i32
  }
  func.func @transform_3(%arg0: i32, %arg1: i32) -> (i32, i32) {
    %c0_i32 = arith.constant 0 : i32
    return %arg0, %arg1 : i32, i32
  }
}

module attributes {stable_mosaic.version = 11 : i64} {
  func.func @_matmul_bias_act_kernel(%arg0: i32, %arg1: i32, %arg2: memref<24x2048xbf16, #tpu.memory_space<vmem>>, %arg3: memref<2048x256xbf16, #tpu.memory_space<vmem>>, %arg4: memref<1x256xf32, #tpu.memory_space<vmem>>, %arg5: memref<24x256xbf16, #tpu.memory_space<vmem>>) attributes {dimension_semantics = [#tpu.dimension_semantics<parallel>, #tpu.dimension_semantics<parallel>], iteration_bounds = array<i64: 1, 4>, scalar_prefetch = 0 : i64, scratch_operands = 0 : i64, tpu.core_type = #tpu.core_type<tc>, window_params = [{transform_indices = @transform_0, window_bounds = array<i64: 24, 2048>}, {transform_indices = @transform_1, window_bounds = array<i64: 2048, 256>}, {transform_indices = @transform_2, window_bounds = array<i64: 1, 256>}, {transform_indices = @transform_3, window_bounds = array<i64: 24, 256>}]} {
    %c0 = arith.constant 0 : index
    %c0_0 = arith.constant 0 : index
    %0 = vector.load %arg2[%c0, %c0_0] : memref<24x2048xbf16, #tpu.memory_space<vmem>>, vector<24x2048xbf16>
    %c0_1 = arith.constant 0 : index
    %c0_2 = arith.constant 0 : index
    %1 = vector.load %arg3[%c0_1, %c0_2] : memref<2048x256xbf16, #tpu.memory_space<vmem>>, vector<2048x256xbf16>
    %cst = arith.constant dense<0.000000e+00> : vector<24x256xf32>
    %2 = tpu.matmul %0, %1, %cst {dimension_numbers = #tpu.dot_dimension_numbers<[1], [0], [0], [1], [0, 0, 1, 1], [], []>} : vector<24x2048xbf16>, vector<2048x256xbf16>, vector<24x256xf32> -> vector<24x256xf32>
    %c0_3 = arith.constant 0 : index
    %c0_4 = arith.constant 0 : index
    %3 = vector.load %arg4[%c0_3, %c0_4] : memref<1x256xf32, #tpu.memory_space<vmem>>, vector<1x256xf32>
    %4 = vector.broadcast %3 : vector<1x256xf32> to vector<24x256xf32>
    %5 = arith.addf %2, %4 : vector<24x256xf32>
    %cst_5 = arith.constant 0.000000e+00 : f32
    %6 = vector.broadcast %cst_5 : f32 to vector<24x256xf32>
    %7 = arith.maximumf %5, %6 : vector<24x256xf32>
    %8 = arith.truncf %7 : vector<24x256xf32> to vector<24x256xbf16>
    %c0_6 = arith.constant 0 : index
    %c0_7 = arith.constant 0 : index
    %9 = vector.load %arg5[%c0_6, %c0_7] : memref<24x256xbf16, #tpu.memory_space<vmem>>, vector<24x256xbf16>
    tpu.vector_store %arg5[%c0_6, %c0_7], %8 {strides = array<i32>} : memref<24x256xbf16, #tpu.memory_space<vmem>>, vector<24x256xbf16>,
    return
  }
  func.func @transform_0(%arg0: i32, %arg1: i32) -> (i32, i32) {
    %c0_i32 = arith.constant 0 : i32
    %c0_i32_0 = arith.constant 0 : i32
    return %arg0, %c0_i32 : i32, i32
  }
  func.func @transform_1(%arg0: i32, %arg1: i32) -> (i32, i32) {
    %c0_i32 = arith.constant 0 : i32
    %c0_i32_0 = arith.constant 0 : i32
    return %c0_i32, %arg1 : i32, i32
  }
  func.func @transform_2(%arg0: i32, %arg1: i32) -> (i32, i32) {
    %c0_i32 = arith.constant 0 : i32
    %c0_i32_0 = arith.constant 0 : i32
    return %c0_i32, %arg1 : i32, i32
  }
  func.func @transform_3(%arg0: i32, %arg1: i32) -> (i32, i32) {
    %c0_i32 = arith.constant 0 : i32
    return %arg0, %arg1 : i32, i32
  }
}

module attributes {stable_mosaic.version = 11 : i64} {
  func.func @_matmul_bias_act_kernel(%arg0: i32, %arg1: i32, %arg2: memref<64x2048xbf16, #tpu.memory_space<vmem>>, %arg3: memref<2048x256xbf16, #tpu.memory_space<vmem>>, %arg4: memref<1x256xf32, #tpu.memory_space<vmem>>, %arg5: memref<64x256xbf16, #tpu.memory_space<vmem>>) attributes {dimension_semantics = [#tpu.dimension_semantics<parallel>, #tpu.dimension_semantics<parallel>], iteration_bounds = array<i64: 1, 2>, scalar_prefetch = 0 : i64, scratch_operands = 0 : i64, tpu.core_type = #tpu.core_type<tc>, window_params = [{transform_indices = @transform_0, window_bounds = array<i64: 64, 2048>}, {transform_indices = @transform_1, window_bounds = array<i64: 2048, 256>}, {transform_indices = @transform_2, window_bounds = array<i64: 1, 256>}, {transform_indices = @transform_3, window_bounds = array<i64: 64, 256>}]} {
    %c0 = arith.constant 0 : index
    %c0_0 = arith.constant 0 : index
    %0 = vector.load %arg2[%c0, %c0_0] : memref<64x2048xbf16, #tpu.memory_space<vmem>>, vector<64x2048xbf16>
    %c0_1 = arith.constant 0 : index
    %c0_2 = arith.constant 0 : index
    %1 = vector.load %arg3[%c0_1, %c0_2] : memref<2048x256xbf16, #tpu.memory_space<vmem>>, vector<2048x256xbf16>
    %cst = arith.constant dense<0.000000e+00> : vector<64x256xf32>
    %2 = tpu.matmul %0, %1, %cst {dimension_numbers = #tpu.dot_dimension_numbers<[1], [0], [0], [1], [0, 0, 1, 1], [], []>} : vector<64x2048xbf16>, vector<2048x256xbf16>, vector<64x256xf32> -> vector<64x256xf32>
    %c0_3 = arith.constant 0 : index
    %c0_4 = arith.constant 0 : index
    %3 = vector.load %arg4[%c0_3, %c0_4] : memref<1x256xf32, #tpu.memory_space<vmem>>, vector<1x256xf32>
    %4 = vector.broadcast %3 : vector<1x256xf32> to vector<64x256xf32>
    %5 = arith.addf %2, %4 : vector<64x256xf32>
    %cst_5 = arith.constant 0.000000e+00 : f32
    %6 = vector.broadcast %cst_5 : f32 to vector<64x256xf32>
    %7 = arith.maximumf %5, %6 : vector<64x256xf32>
    %8 = arith.truncf %7 : vector<64x256xf32> to vector<64x256xbf16>
    %c0_6 = arith.constant 0 : index
    %c0_7 = arith.constant 0 : index
    %9 = vector.load %arg5[%c0_6, %c0_7] : memref<64x256xbf16, #tpu.memory_space<vmem>>, vector<64x256xbf16>
    tpu.vector_store %arg5[%c0_6, %c0_7], %8 {strides = array<i32>} : memref<64x256xbf16, #tpu.memory_space<vmem>>, vector<64x256xbf16>,
    return
  }
  func.func @transform_0(%arg0: i32, %arg1: i32) -> (i32, i32) {
    %c0_i32 = arith.constant 0 : i32
    %c0_i32_0 = arith.constant 0 : i32
    return %arg0, %c0_i32 : i32, i32
  }
  func.func @transform_1(%arg0: i32, %arg1: i32) -> (i32, i32) {
    %c0_i32 = arith.constant 0 : i32
    %c0_i32_0 = arith.constant 0 : i32
    return %c0_i32, %arg1 : i32, i32
  }
  func.func @transform_2(%arg0: i32, %arg1: i32) -> (i32, i32) {
    %c0_i32 = arith.constant 0 : i32
    %c0_i32_0 = arith.constant 0 : i32
    return %c0_i32, %arg1 : i32, i32
  }
  func.func @transform_3(%arg0: i32, %arg1: i32) -> (i32, i32) {
    %c0_i32 = arith.constant 0 : i32
    return %arg0, %arg1 : i32, i32
  }
}

module attributes {stable_mosaic.version = 11 : i64} {
  func.func @_matmul_bias_act_kernel(%arg0: i32, %arg1: i32, %arg2: memref<224x1024xbf16, #tpu.memory_space<vmem>>, %arg3: memref<1024x256xbf16, #tpu.memory_space<vmem>>, %arg4: memref<1x256xf32, #tpu.memory_space<vmem>>, %arg5: memref<224x256xbf16, #tpu.memory_space<vmem>>) attributes {dimension_semantics = [#tpu.dimension_semantics<parallel>, #tpu.dimension_semantics<parallel>], iteration_bounds = array<i64: 1, 1>, scalar_prefetch = 0 : i64, scratch_operands = 0 : i64, tpu.core_type = #tpu.core_type<tc>, window_params = [{transform_indices = @transform_0, window_bounds = array<i64: 224, 1024>}, {transform_indices = @transform_1, window_bounds = array<i64: 1024, 256>}, {transform_indices = @transform_2, window_bounds = array<i64: 1, 256>}, {transform_indices = @transform_3, window_bounds = array<i64: 224, 256>}]} {
    %c0 = arith.constant 0 : index
    %c0_0 = arith.constant 0 : index
    %0 = vector.load %arg2[%c0, %c0_0] : memref<224x1024xbf16, #tpu.memory_space<vmem>>, vector<224x1024xbf16>
    %c0_1 = arith.constant 0 : index
    %c0_2 = arith.constant 0 : index
    %1 = vector.load %arg3[%c0_1, %c0_2] : memref<1024x256xbf16, #tpu.memory_space<vmem>>, vector<1024x256xbf16>
    %cst = arith.constant dense<0.000000e+00> : vector<224x256xf32>
    %2 = tpu.matmul %0, %1, %cst {dimension_numbers = #tpu.dot_dimension_numbers<[1], [0], [0], [1], [0, 0, 1, 1], [], []>} : vector<224x1024xbf16>, vector<1024x256xbf16>, vector<224x256xf32> -> vector<224x256xf32>
    %c0_3 = arith.constant 0 : index
    %c0_4 = arith.constant 0 : index
    %3 = vector.load %arg4[%c0_3, %c0_4] : memref<1x256xf32, #tpu.memory_space<vmem>>, vector<1x256xf32>
    %4 = vector.broadcast %3 : vector<1x256xf32> to vector<224x256xf32>
    %5 = arith.addf %2, %4 : vector<224x256xf32>
    %cst_5 = arith.constant 0.000000e+00 : f32
    %6 = vector.broadcast %cst_5 : f32 to vector<224x256xf32>
    %7 = arith.maximumf %5, %6 : vector<224x256xf32>
    %8 = arith.truncf %7 : vector<224x256xf32> to vector<224x256xbf16>
    %c0_6 = arith.constant 0 : index
    %c0_7 = arith.constant 0 : index
    %9 = vector.load %arg5[%c0_6, %c0_7] : memref<224x256xbf16, #tpu.memory_space<vmem>>, vector<224x256xbf16>
    tpu.vector_store %arg5[%c0_6, %c0_7], %8 {strides = array<i32>} : memref<224x256xbf16, #tpu.memory_space<vmem>>, vector<224x256xbf16>,
    return
  }
  func.func @transform_0(%arg0: i32, %arg1: i32) -> (i32, i32) {
    %c0_i32 = arith.constant 0 : i32
    %c0_i32_0 = arith.constant 0 : i32
    return %arg0, %c0_i32 : i32, i32
  }
  func.func @transform_1(%arg0: i32, %arg1: i32) -> (i32, i32) {
    %c0_i32 = arith.constant 0 : i32
    %c0_i32_0 = arith.constant 0 : i32
    return %c0_i32, %arg1 : i32, i32
  }
  func.func @transform_2(%arg0: i32, %arg1: i32) -> (i32, i32) {
    %c0_i32 = arith.constant 0 : i32
    %c0_i32_0 = arith.constant 0 : i32
    return %c0_i32, %arg1 : i32, i32
  }
  func.func @transform_3(%arg0: i32, %arg1: i32) -> (i32, i32) {
    %c0_i32 = arith.constant 0 : i32
    return %arg0, %arg1 : i32, i32
  }
}

module attributes {stable_mosaic.version = 11 : i64} {
  func.func @_matmul_bias_act_kernel(%arg0: i32, %arg1: i32, %arg2: memref<256x512xbf16, #tpu.memory_space<vmem>>, %arg3: memref<512x128xbf16, #tpu.memory_space<vmem>>, %arg4: memref<1x128xf32, #tpu.memory_space<vmem>>, %arg5: memref<256x128xbf16, #tpu.memory_space<vmem>>) attributes {dimension_semantics = [#tpu.dimension_semantics<parallel>, #tpu.dimension_semantics<parallel>], iteration_bounds = array<i64: 4, 1>, scalar_prefetch = 0 : i64, scratch_operands = 0 : i64, tpu.core_type = #tpu.core_type<tc>, window_params = [{transform_indices = @transform_0, window_bounds = array<i64: 256, 512>}, {transform_indices = @transform_1, window_bounds = array<i64: 512, 128>}, {transform_indices = @transform_2, window_bounds = array<i64: 1, 128>}, {transform_indices = @transform_3, window_bounds = array<i64: 256, 128>}]} {
    %c0 = arith.constant 0 : index
    %c0_0 = arith.constant 0 : index
    %0 = vector.load %arg2[%c0, %c0_0] : memref<256x512xbf16, #tpu.memory_space<vmem>>, vector<256x512xbf16>
    %c0_1 = arith.constant 0 : index
    %c0_2 = arith.constant 0 : index
    %1 = vector.load %arg3[%c0_1, %c0_2] : memref<512x128xbf16, #tpu.memory_space<vmem>>, vector<512x128xbf16>
    %cst = arith.constant dense<0.000000e+00> : vector<256x128xf32>
    %2 = tpu.matmul %0, %1, %cst {dimension_numbers = #tpu.dot_dimension_numbers<[1], [0], [0], [1], [0, 0, 1, 1], [], []>} : vector<256x512xbf16>, vector<512x128xbf16>, vector<256x128xf32> -> vector<256x128xf32>
    %c0_3 = arith.constant 0 : index
    %c0_4 = arith.constant 0 : index
    %3 = vector.load %arg4[%c0_3, %c0_4] : memref<1x128xf32, #tpu.memory_space<vmem>>, vector<1x128xf32>
    %4 = vector.broadcast %3 : vector<1x128xf32> to vector<256x128xf32>
    %5 = arith.addf %2, %4 : vector<256x128xf32>
    %cst_5 = arith.constant 0.000000e+00 : f32
    %6 = vector.broadcast %cst_5 : f32 to vector<256x128xf32>
    %7 = arith.maximumf %5, %6 : vector<256x128xf32>
    %8 = arith.truncf %7 : vector<256x128xf32> to vector<256x128xbf16>
    %c0_6 = arith.constant 0 : index
    %c0_7 = arith.constant 0 : index
    %9 = vector.load %arg5[%c0_6, %c0_7] : memref<256x128xbf16, #tpu.memory_space<vmem>>, vector<256x128xbf16>
    tpu.vector_store %arg5[%c0_6, %c0_7], %8 {strides = array<i32>} : memref<256x128xbf16, #tpu.memory_space<vmem>>, vector<256x128xbf16>,
    return
  }
  func.func @transform_0(%arg0: i32, %arg1: i32) -> (i32, i32) {
    %c0_i32 = arith.constant 0 : i32
    %c0_i32_0 = arith.constant 0 : i32
    return %arg0, %c0_i32 : i32, i32
  }
  func.func @transform_1(%arg0: i32, %arg1: i32) -> (i32, i32) {
    %c0_i32 = arith.constant 0 : i32
    %c0_i32_0 = arith.constant 0 : i32
    return %c0_i32, %arg1 : i32, i32
  }
  func.func @transform_2(%arg0: i32, %arg1: i32) -> (i32, i32) {
    %c0_i32 = arith.constant 0 : i32
    %c0_i32_0 = arith.constant 0 : i32
    return %c0_i32, %arg1 : i32, i32
  }
  func.func @transform_3(%arg0: i32, %arg1: i32) -> (i32, i32) {
    %c0_i32 = arith.constant 0 : i32
    return %arg0, %arg1 : i32, i32
  }
}

module attributes {stable_mosaic.version = 11 : i64} {
  func.func @_matmul_bias_act_kernel(%arg0: i32, %arg1: i32, %arg2: memref<1024x256xbf16, #tpu.memory_space<vmem>>, %arg3: memref<256x256xbf16, #tpu.memory_space<vmem>>, %arg4: memref<1x256xf32, #tpu.memory_space<vmem>>, %arg5: memref<1024x256xbf16, #tpu.memory_space<vmem>>) attributes {dimension_semantics = [#tpu.dimension_semantics<parallel>, #tpu.dimension_semantics<parallel>], iteration_bounds = array<i64: 4, 1>, scalar_prefetch = 0 : i64, scratch_operands = 0 : i64, tpu.core_type = #tpu.core_type<tc>, window_params = [{transform_indices = @transform_0, window_bounds = array<i64: 1024, 256>}, {transform_indices = @transform_1, window_bounds = array<i64: 256, 256>}, {transform_indices = @transform_2, window_bounds = array<i64: 1, 256>}, {transform_indices = @transform_3, window_bounds = array<i64: 1024, 256>}]} {
    %c0 = arith.constant 0 : index
    %c0_0 = arith.constant 0 : index
    %0 = vector.load %arg2[%c0, %c0_0] : memref<1024x256xbf16, #tpu.memory_space<vmem>>, vector<1024x256xbf16>
    %c0_1 = arith.constant 0 : index
    %c0_2 = arith.constant 0 : index
    %1 = vector.load %arg3[%c0_1, %c0_2] : memref<256x256xbf16, #tpu.memory_space<vmem>>, vector<256x256xbf16>
    %cst = arith.constant dense<0.000000e+00> : vector<1024x256xf32>
    %2 = tpu.matmul %0, %1, %cst {dimension_numbers = #tpu.dot_dimension_numbers<[1], [0], [0], [1], [0, 0, 1, 1], [], []>} : vector<1024x256xbf16>, vector<256x256xbf16>, vector<1024x256xf32> -> vector<1024x256xf32>
    %c0_3 = arith.constant 0 : index
    %c0_4 = arith.constant 0 : index
    %3 = vector.load %arg4[%c0_3, %c0_4] : memref<1x256xf32, #tpu.memory_space<vmem>>, vector<1x256xf32>
    %4 = vector.broadcast %3 : vector<1x256xf32> to vector<1024x256xf32>
    %5 = arith.addf %2, %4 : vector<1024x256xf32>
    %cst_5 = arith.constant 0.000000e+00 : f32
    %6 = vector.broadcast %cst_5 : f32 to vector<1024x256xf32>
    %7 = arith.maximumf %5, %6 : vector<1024x256xf32>
    %8 = arith.truncf %7 : vector<1024x256xf32> to vector<1024x256xbf16>
    %c0_6 = arith.constant 0 : index
    %c0_7 = arith.constant 0 : index
    %9 = vector.load %arg5[%c0_6, %c0_7] : memref<1024x256xbf16, #tpu.memory_space<vmem>>, vector<1024x256xbf16>
    tpu.vector_store %arg5[%c0_6, %c0_7], %8 {strides = array<i32>} : memref<1024x256xbf16, #tpu.memory_space<vmem>>, vector<1024x256xbf16>,
    return
  }
  func.func @transform_0(%arg0: i32, %arg1: i32) -> (i32, i32) {
    %c0_i32 = arith.constant 0 : i32
    %c0_i32_0 = arith.constant 0 : i32
    return %arg0, %c0_i32 : i32, i32
  }
  func.func @transform_1(%arg0: i32, %arg1: i32) -> (i32, i32) {
    %c0_i32 = arith.constant 0 : i32
    %c0_i32_0 = arith.constant 0 : i32
    return %c0_i32, %arg1 : i32, i32
  }
  func.func @transform_2(%arg0: i32, %arg1: i32) -> (i32, i32) {
    %c0_i32 = arith.constant 0 : i32
    %c0_i32_0 = arith.constant 0 : i32
    return %c0_i32, %arg1 : i32, i32
  }
  func.func @transform_3(%arg0: i32, %arg1: i32) -> (i32, i32) {
    %c0_i32 = arith.constant 0 : i32
    return %arg0, %arg1 : i32, i32
  }
}

module attributes {stable_mosaic.version = 11 : i64} {
  func.func @_matmul_bias_act_kernel(%arg0: i32, %arg1: i32, %arg2: memref<1024x64xbf16, #tpu.memory_space<vmem>>, %arg3: memref<64x128xbf16, #tpu.memory_space<vmem>>, %arg4: memref<1x128xf32, #tpu.memory_space<vmem>>, %arg5: memref<1024x128xf32, #tpu.memory_space<vmem>>) attributes {dimension_semantics = [#tpu.dimension_semantics<parallel>, #tpu.dimension_semantics<parallel>], iteration_bounds = array<i64: 12, 1>, scalar_prefetch = 0 : i64, scratch_operands = 0 : i64, tpu.core_type = #tpu.core_type<tc>, window_params = [{transform_indices = @transform_0, window_bounds = array<i64: 1024, 64>}, {transform_indices = @transform_1, window_bounds = array<i64: 64, 128>}, {transform_indices = @transform_2, window_bounds = array<i64: 1, 128>}, {transform_indices = @transform_3, window_bounds = array<i64: 1024, 128>}]} {
    %c0 = arith.constant 0 : index
    %c0_0 = arith.constant 0 : index
    %0 = vector.load %arg2[%c0, %c0_0] : memref<1024x64xbf16, #tpu.memory_space<vmem>>, vector<1024x64xbf16>
    %c0_1 = arith.constant 0 : index
    %c0_2 = arith.constant 0 : index
    %1 = vector.load %arg3[%c0_1, %c0_2] : memref<64x128xbf16, #tpu.memory_space<vmem>>, vector<64x128xbf16>
    %cst = arith.constant dense<0.000000e+00> : vector<1024x128xf32>
    %2 = tpu.matmul %0, %1, %cst {dimension_numbers = #tpu.dot_dimension_numbers<[1], [0], [0], [1], [0, 0, 1, 1], [], []>} : vector<1024x64xbf16>, vector<64x128xbf16>, vector<1024x128xf32> -> vector<1024x128xf32>
    %c0_3 = arith.constant 0 : index
    %c0_4 = arith.constant 0 : index
    %3 = vector.load %arg4[%c0_3, %c0_4] : memref<1x128xf32, #tpu.memory_space<vmem>>, vector<1x128xf32>
    %4 = vector.broadcast %3 : vector<1x128xf32> to vector<1024x128xf32>
    %5 = arith.addf %2, %4 : vector<1024x128xf32>
    %c0_5 = arith.constant 0 : index
    %c0_6 = arith.constant 0 : index
    %6 = vector.load %arg5[%c0_5, %c0_6] : memref<1024x128xf32, #tpu.memory_space<vmem>>, vector<1024x128xf32>
    tpu.vector_store %arg5[%c0_5, %c0_6], %5 {strides = array<i32>} : memref<1024x128xf32, #tpu.memory_space<vmem>>, vector<1024x128xf32>,
    return
  }
  func.func @transform_0(%arg0: i32, %arg1: i32) -> (i32, i32) {
    %c0_i32 = arith.constant 0 : i32
    %c0_i32_0 = arith.constant 0 : i32
    return %arg0, %c0_i32 : i32, i32
  }
  func.func @transform_1(%arg0: i32, %arg1: i32) -> (i32, i32) {
    %c0_i32 = arith.constant 0 : i32
    %c0_i32_0 = arith.constant 0 : i32
    return %c0_i32, %arg1 : i32, i32
  }
  func.func @transform_2(%arg0: i32, %arg1: i32) -> (i32, i32) {
    %c0_i32 = arith.constant 0 : i32
    %c0_i32_0 = arith.constant 0 : i32
    return %c0_i32, %arg1 : i32, i32
  }
  func.func @transform_3(%arg0: i32, %arg1: i32) -> (i32, i32) {
    %c0_i32 = arith.constant 0 : i32
    return %arg0, %arg1 : i32, i32
  }
}

</mosaic_0001>

<bundles_post_ra>
// kernel: decoder_forward.7
= control target key start
LH: loop header
LB: loop body
LE: loop exit
PB: predicated region body
PF: predicated region fallthrough
CT: control target
= control target key end

     0   :  { %8 = vsyncpa [#allocation3], 0  ;;  %s3886_s0 = inlined_call_operand.vmem [shape: bf16[16,2048], index: 0, kind: input, shape index: {}]   ;;  %s3887_s1 = inlined_call_operand.hbm [shape: bf16[2048,1024], index: 1, kind: input, shape index: {}]   ;;  %s3888_s2 = inlined_call_operand.hbm [shape: f32[1,1024], index: 2, kind: input, shape index: {}]   ;;  %s3889_s3 = inlined_call_operand.vmem [shape: bf16[16,1024], index: 3, kind: output, shape index: {}]  }
   0x1   :  { %10 = vsyncpa [#allocation3 + $0x1], 0 }
   0x2   :  { %11 = vsyncpa [#allocation5], 0 }
   0x3   :  { %13 = vsyncpa [#allocation5 + $0x1], 0  ;;  %s3351_s12 = smov 0   ;;  %s3353_s13 = smov 0  }
   0x4   :  { %s3355_s14 = smov 0   ;;  %s3357_s15 = smov 0  }
   0x5   :  { %s3359_s16 = smov 0   ;;  %s3361_s17 = smov 0  }
   0x6 LB: > { %s2432_s18 = sadd.s32 4294967295, %s3324_s17   ;;  %s28_s19 = sadd.s32 1, %s3320_s16  ;;  %s3324_s17 = sphi %s3361_s17, %s19_s17   ;;  %s3320_s16 = sphi %s3359_s16, %s3904_s16   ;;  %s3316_s15 = sphi %s3357_s15, %s3903_s15   ;;  %s3312_s14 = sphi %s3355_s14, %s3902_s14   ;;  %s3308_s13 = sphi %s3353_s13, %s3901_s13   ;;  %s3304_s12 = sphi %s3351_s12, %s3900_s12  }
   0x7   : > { %p29_p0 = scmp.ge.s32.totalorder %s28_s19, 4  ;;  %s64_s20 = sadd.s32 1, %s3312_s14 }
   0x8   : > { %p71_p1 = scmp.ne.s32.totalorder %s3312_s14, %s3308_s13  ;;  %p72_p2 = scmp.eq.s32.totalorder %s3324_s17, 0 }
   0x9   : > { %s3906_s19 = smov (%p29_p0, %s28_s19), 0  ;;  %p77_p4 = scmp.ne.s32.totalorder %s3308_s13, %s3304_s12 }
   0xa   : > { %p3387_p3 = por %p72_p2, %p71_p1  ;;  %s61_s22 = ssub.s32 %s3320_s16, %s3906_s19 }
   0xb   : > { %p78_p5 = scmp.eq.s32.totalorder %s2432_s18, 0  ;;  %p62_p6 = scmp.eq.s32.totalorder %s61_s22, 0 }
   0xc   : > { %p129_p7 = scmp.eq.s32.totalorder %s2432_s18, 3  ;;  %p2774_p10 = scmp.lt.s32.totalorder %s3324_s17, 4 }
   0xd   : > { %p3394_p8 = por %p78_p5, %p77_p4  ;;  %s3407_s26 = sand.u32 1, %s3312_s14  }
   0xe   : > { %s3399_s24 = scalar_select %p62_p6, %s3312_s14, %s64_s20  }
   0xf   : > { %s3892_s23 = scalar_select %p3394_p8, 1, 0 }
  0x10   : > { %p3401_p9 = por %p129_p7, %p71_p1  ;;  %s2726_s27 = sshll.u32 %s3320_s16, 7 }
  0x11   : > { %s2437_s28 = sshll.u32 %s3407_s26, 11  ;;  %s3414_s4 = scalar_lea.hbm %s3887_s1, %s2726_s27 }
  0x12   : > { %s3893_s25 = scalar_select %p3401_p9, 1, 0 }
  0x13   : > { %s169_s5 = scalar_lea.vmem [#allocation2], %s2437_s28  ;;  %p3418_p11 = pnand %p2774_p10, %p3387_p3 }
  0x14   : > { %s176_s6 = sshll.u32 %s169_s5, 4  ;;  %s166_s8 = scalar_lea.sflag [#allocation3], %s3407_s26  ;;  %s3422_s6 = int_to_ptr.vmem [resolvable:$true] %s176_s6 }
  0x15   : > { %s3210_s9 = scalar_lea.hbm %s3414_s4, 32768  ;;  %p3212_p0 = pneg %p3418_p11 }
  0x16   : > { %p3211_p13 = scmp.ne.s32.totalorder %s3414_s4, %s3210_s9  ;;  %s3215_s12 = scalar_lea.hbm %s3887_s1, 131072 }
  0x17   : > { %p3216_p3 = scmp.lt.u32.totalorder %s3414_s4, %s3887_s1  ;;  %p3217_p4 = scmp.lt.u32.totalorder %s3215_s12, %s3210_s9 }
  0x18   : > { %p3213_p1 = pnand %p3212_p0, %p3211_p13  ;;  %p3219_p6 = scmp.lt.u32.totalorder %s3210_s9, %s3414_s4 }
  0x19   : > { %p3218_p5 = por %p3217_p4, %p3216_p3 }
  0x1a   : > { %p3214_p2 = pneg %p3213_p1 }
  0x1b   : > { %p3220_p7 = por %p3219_p6, %p3218_p5 }
  0x1d   : > { %p3221_p10 = pnand %p3220_p7, %p3214_p2 }
  0x1f   : > { %3224 = shalt.err (!%p3221_p10)
}
  0x20   : > { %s3225_s21 = scalar_lea.vmem %s3422_s6, 32768  ;;  %s3326_s22 = smov [#allocation2]  }
  0x21   : > { %p3226_p13 = scmp.ne.s32.totalorder %s3422_s6, %s3225_s21  ;;  %s3230_s27 = sshll.u32 %s3326_s22, 4  ;;  %s3231_s27 = int_to_ptr.vmem [resolvable:$false] %s3230_s27 }
  0x22   : > { %s3232_s28 = scalar_lea.vmem %s3231_s27, 65536  ;;  %p3233_p9 = scmp.lt.s32.totalorder %s3422_s6, %s3231_s27 }
  0x23   : > { %p3228_p1 = pnand %p3226_p13, %p3212_p0  ;;  %p3234_p3 = scmp.lt.s32.totalorder %s3232_s28, %s3225_s21 }
  0x25   : > { %p3229_p12 = pneg %p3228_p1  ;;  %p3235_p4 = por %p3234_p3, %p3233_p9 }
  0x27   : > { %p3236_p5 = pnand %p3235_p4, %p3229_p12 }
  0x29   : > { %3239 = shalt.err (!%p3236_p5)
}
  0x2a   : > { %s3327_s29 = smov 512   ;;  %s3328_s30 = smov 128  }
  0x2b   : > { %s3329_s5 = smov 8   ;;  %p203_p2 = scmp.lt.s32.totalorder %s3324_s17, 5 }
  0x2c   : > { %2770 = dma.hbm_to_vmem [thread:$0]  (!%p3418_p11), %s3414_s4, 32768, %s3422_s6, %s166_s8, %s3327_s29, %s3328_s30, %s3329_s5  }
  0x2d   : > { %s2440_s9 = sshll.u32 %s3407_s26, 1  ;;  %s2727_s10 = sshll.u32 %s3320_s16, 5 }
  0x2e   : > { %p3895_p9 = scmp.ge.s32.totalorder %s3324_s17, 1  ;;  %s3465_s20 = scalar_lea.hbm %s3888_s2, %s2727_s10 }
  0x2f   : > { %s190_s21 = scalar_lea.vmem [#allocation4], %s2440_s9  ;;  %s187_s4 = scalar_lea.sflag [#allocation5], %s3407_s26 }
  0x30   : > { %p3458_p12 = pnand %p3895_p9, %p203_p2  ;;  %s198_s22 = sshll.u32 %s190_s21, 4  ;;  %s199_s22 = int_to_ptr.vmem [resolvable:$true] %s198_s22 }
  0x31   : > { %s3240_s6 = scalar_lea.hbm %s3465_s20, 32  ;;  %s3245_s28 = scalar_lea.hbm %s3888_s2, 128 }
  0x32   : > { %s3896_s11 = scalar_select %p3458_p12, 1, 0 }
  0x33   : > { %p3241_p6 = scmp.ne.s32.totalorder %s3465_s20, %s3240_s6  ;;  %p3246_p13 = scmp.lt.u32.totalorder %s3465_s20, %s3888_s2 }
  0x34   : > { %p3247_p1 = scmp.lt.u32.totalorder %s3245_s28, %s3240_s6  ;;  %p3249_p4 = scmp.lt.u32.totalorder %s3240_s6, %s3465_s20 }
  0x35   : > { %p3243_p7 = pnand %p3241_p6, %p3212_p0 }
  0x36   : > { %p3248_p3 = por %p3247_p1, %p3246_p13 }
  0x37   : > { %p3244_p10 = pneg %p3243_p7 }
  0x38   : > { %p3250_p5 = por %p3249_p4, %p3248_p3 }
  0x3a   : > { %p3251_p2 = pnand %p3250_p5, %p3244_p10 }
  0x3c   : > { %3254 = shalt.err (!%p3251_p2)
}
  0x3d   : > { %s3255_s26 = scalar_lea.vmem %s199_s22, 32  ;;  %s3330_s5 = smov [#allocation4]  }
  0x3e   : > { %p3256_p9 = scmp.ne.s32.totalorder %s199_s22, %s3255_s26  ;;  %s3260_s9 = sshll.u32 %s3330_s5, 4  ;;  %s3261_s9 = int_to_ptr.vmem [resolvable:$false] %s3260_s9 }
  0x3f   : > { %s3262_s10 = scalar_lea.vmem %s3261_s9, 64  ;;  %p3263_p8 = scmp.lt.s32.totalorder %s199_s22, %s3261_s9 }
  0x40   : > { %p3258_p6 = pnand %p3256_p9, %p3212_p0  ;;  %p3264_p12 = scmp.lt.s32.totalorder %s3262_s10, %s3255_s26 }
  0x42   : > { %p3259_p7 = pneg %p3258_p6  ;;  %p3265_p1 = por %p3264_p12, %p3263_p8 }
  0x44   : > { %p3266_p13 = pnand %p3265_p1, %p3259_p7 }
  0x46   : > { %3269 = shalt.err (!%p3266_p13)
}
  0x47   : > { %2773 = dma.hbm_to_vmem [thread:$0]  (!%p3418_p11), %s3465_s20, 32, %s199_s22, %s187_s4  }
  0x48   : > { %p3897_p10 = scmp.ne.s32.totalorder %s3896_s11, 0 }
  0x49   : > { %s3490_s12 = sand.u32 (!%p3897_p10), 1, %s3308_s13   ;;  %p3898_p8 = scmp.ne.s32.totalorder (!%p3897_p10), %s3892_s23, 0 }
  0x4a   : > { %207 = sbr.rel (%p3897_p10) target bundleno = 574 (0x23e), region = 32  ;;  %s2444_s18 = sshll.u32 (!%p3897_p10), %s3490_s12, 11 }
  0x4b   : > { %s210_s21 = scalar_lea.sflag (!%p3897_p10), [#allocation3], %s3490_s12  ;;  %s3494_s6 = scalar_lea.vmem (!%p3897_p10), [#allocation2], %s2444_s18 }
  0x51   : > { %3295 = dma.done.wait (%p3898_p8), %s210_s21, 32768  }
  0x52   : > { %3297 = vsyncadd (%p3898_p8), %s210_s21, 4294934528  ;;  %s2445_s7 = sshll.u32 %s3490_s12, 1  ;;  %s219_s11 = scalar_lea.sflag [#allocation5], %s3490_s12 }
  0x53   : > { %s3502_s20 = scalar_lea.vmem [#allocation4], %s2445_s7 }
  0x54   : > { %3299 = dma.done.wait (%p3898_p8), %s219_s11, 32  }
  0x55   : > { %3301 = vsyncadd (%p3898_p8), %s219_s11, 4294967264  ;;  %v2826_v0 = vld [vmem:[%s3494_s6 + $0x4] ss:$8 sps:$4 sm:$0xff]   ;;  %v2830_v2 = vld [vmem:[%s3494_s6] ss:$8 sps:$4 sm:$0xff]   ;;  %p3899_p11 = scmp.ne.s32.totalorder %s3893_s25, 0 }
  0x56   : > { %v2828_v1 = vld [vmem:[%s3494_s6 + $0x404] ss:$8 sps:$4 sm:$0xff]   ;;  %1910 = vmatprep.subr.bf16.mxu1 %v2826_v0  ;;  %v2831_v3 = vld [vmem:[%s3494_s6 + $0x400] ss:$8 sps:$4 sm:$0xff]   ;;  %v2832_v4 = vld [vmem:[%s3494_s6 + $0x14] ss:$8 sps:$4 sm:$0xff]  }
  0x57   : > { %2082 = vmatprep.subr.bf16.mxu0 %v2828_v1  ;;  %1911 = vmatpush1.bf16.msra.mxu1 %v2830_v2  ;;  %v2834_v5 = vld [vmem:[%s3494_s6 + $0x414] ss:$8 sps:$4 sm:$0xff]   ;;  %v2836_v6 = vld [vmem:[%s3494_s6 + $0x10] ss:$8 sps:$4 sm:$0xff]   ;;  %v2838_v8 = vld [vmem:[%s3494_s6 + $0x24] ss:$8 sps:$4 sm:$0xff]  }
  0x58   : > { %2083 = vmatpush1.bf16.msra.mxu0 %v2831_v3  ;;  %1912 = vmatprep.subr.bf16.mxu1 %v2832_v4  ;;  %v2837_v7 = vld [vmem:[%s3494_s6 + $0x410] ss:$8 sps:$4 sm:$0xff]   ;;  %v2840_v9 = vld [vmem:[%s3494_s6 + $0x424] ss:$8 sps:$4 sm:$0xff]   ;;  %v2842_v10 = vld [vmem:[%s3494_s6 + $0x20] ss:$8 sps:$4 sm:$0xff]  }
  0x59   : > { %2084 = vmatprep.subr.bf16.mxu0 %v2834_v5  ;;  %v2843_v11 = vld [vmem:[%s3494_s6 + $0x420] ss:$8 sps:$4 sm:$0xff]   ;;  %v2844_v12 = vld [vmem:[%s3494_s6 + $0x34] ss:$8 sps:$4 sm:$0xff]   ;;  %v2848_v14 = vld [vmem:[%s3494_s6 + $0x30] ss:$8 sps:$4 sm:$0xff]  }
  0x5a   : > { %v2846_v13 = vld [vmem:[%s3494_s6 + $0x434] ss:$8 sps:$4 sm:$0xff]   ;;  %v2849_v15 = vld [vmem:[%s3494_s6 + $0x430] ss:$8 sps:$4 sm:$0xff]   ;;  %v2850_v16 = vld [vmem:[%s3494_s6 + $0x44] ss:$8 sps:$4 sm:$0xff]  }
  0x5b   : > { %1913 = vmatpush1.bf16.msra.mxu1 %v2836_v6  ;;  %v2852_v17 = vld [vmem:[%s3494_s6 + $0x444] ss:$8 sps:$4 sm:$0xff]   ;;  %v2854_v18 = vld [vmem:[%s3494_s6 + $0x40] ss:$8 sps:$4 sm:$0xff]   ;;  %v2856_v20 = vld [vmem:[%s3494_s6 + $0x54] ss:$8 sps:$4 sm:$0xff]  }
  0x5c   : > { %2085 = vmatpush1.bf16.msra.mxu0 %v2837_v7  ;;  %1914 = vmatprep.subr.bf16.mxu1 %v2838_v8  ;;  %v2855_v19 = vld [vmem:[%s3494_s6 + $0x440] ss:$8 sps:$4 sm:$0xff]   ;;  %v2858_v21 = vld [vmem:[%s3494_s6 + $0x454] ss:$8 sps:$4 sm:$0xff]   ;;  %v2860_v22 = vld [vmem:[%s3494_s6 + $0x50] ss:$8 sps:$4 sm:$0xff]  }
  0x5d   : > { %2086 = vmatprep.subr.bf16.mxu0 %v2840_v9  ;;  %v2861_v23 = vld [vmem:[%s3494_s6 + $0x450] ss:$8 sps:$4 sm:$0xff]   ;;  %v2862_v24 = vld [vmem:[%s3494_s6 + $0x64] ss:$8 sps:$4 sm:$0xff]   ;;  %v2866_v26 = vld [vmem:[%s3494_s6 + $0x60] ss:$8 sps:$4 sm:$0xff]  }
  0x5e   : > { %v2864_v25 = vld [vmem:[%s3494_s6 + $0x464] ss:$8 sps:$4 sm:$0xff]   ;;  %v2867_v27 = vld [vmem:[%s3494_s6 + $0x460] ss:$8 sps:$4 sm:$0xff]   ;;  %v2868_v28 = vld [vmem:[%s3494_s6 + $0x74] ss:$8 sps:$4 sm:$0xff]  }
  0x5f   : > { %1915 = vmatpush1.bf16.msra.mxu1 %v2842_v10  ;;  %v2870_v29 = vld [vmem:[%s3494_s6 + $0x474] ss:$8 sps:$4 sm:$0xff]   ;;  %v2872_v30 = vld [vmem:[%s3494_s6 + $0x70] ss:$8 sps:$4 sm:$0xff]   ;;  %v2874_v32 = vld [vmem:[%s3494_s6 + $0x84] ss:$8 sps:$4 sm:$0xff]  }
  0x60   : > { %2087 = vmatpush1.bf16.msra.mxu0 %v2843_v11  ;;  %1916 = vmatprep.subr.bf16.mxu1 %v2844_v12  ;;  %v2873_v31 = vld [vmem:[%s3494_s6 + $0x470] ss:$8 sps:$4 sm:$0xff]   ;;  %v2876_v33 = vld [vmem:[%s3494_s6 + $0x484] ss:$8 sps:$4 sm:$0xff]   ;;  %v2878_v34 = vld [vmem:[%s3494_s6 + $0x80] ss:$8 sps:$4 sm:$0xff]  }
  0x61   : > { %2088 = vmatprep.subr.bf16.mxu0 %v2846_v13  ;;  %v2879_v35 = vld [vmem:[%s3494_s6 + $0x480] ss:$8 sps:$4 sm:$0xff]   ;;  %v2880_v36 = vld [vmem:[%s3494_s6 + $0x94] ss:$8 sps:$4 sm:$0xff]   ;;  %v2884_v38 = vld [vmem:[%s3494_s6 + $0x90] ss:$8 sps:$4 sm:$0xff]  }
  0x62   : > { %v2882_v37 = vld [vmem:[%s3494_s6 + $0x494] ss:$8 sps:$4 sm:$0xff]   ;;  %v2885_v39 = vld [vmem:[%s3494_s6 + $0x490] ss:$8 sps:$4 sm:$0xff]   ;;  %v2886_v40 = vld [vmem:[%s3494_s6 + $0xa4] ss:$8 sps:$4 sm:$0xff]  }
  0x63   : > { %1917 = vmatpush1.bf16.msra.mxu1 %v2848_v14  ;;  %v2888_v41 = vld [vmem:[%s3494_s6 + $0x4a4] ss:$8 sps:$4 sm:$0xff]   ;;  %v2890_v42 = vld [vmem:[%s3494_s6 + $0xa0] ss:$8 sps:$4 sm:$0xff]   ;;  %v2892_v44 = vld [vmem:[%s3494_s6 + $0xb4] ss:$8 sps:$4 sm:$0xff]  }
  0x64   : > { %2089 = vmatpush1.bf16.msra.mxu0 %v2849_v15  ;;  %1918 = vmatprep.subr.bf16.mxu1 %v2850_v16  ;;  %v2891_v43 = vld [vmem:[%s3494_s6 + $0x4a0] ss:$8 sps:$4 sm:$0xff]   ;;  %v2894_v45 = vld [vmem:[%s3494_s6 + $0x4b4] ss:$8 sps:$4 sm:$0xff]   ;;  %v2896_v46 = vld [vmem:[%s3494_s6 + $0xb0] ss:$8 sps:$4 sm:$0xff]  }
  0x65   : > { %2090 = vmatprep.subr.bf16.mxu0 %v2852_v17  ;;  %v2897_v47 = vld [vmem:[%s3494_s6 + $0x4b0] ss:$8 sps:$4 sm:$0xff]   ;;  %v266_v48 = vld [vmem:[%s3886_s0] sm:$0xff]  ;;  %v2904_v58 = vld [vmem:[%s3494_s6 + $0xd4] ss:$8 sps:$4 sm:$0xff]   ;;  %s2730_s23 = sshll.u32 (%p3899_p11), %s3316_s15, 3 }
  0x66   : > { %v274_v49 = vld [vmem:[%s3886_s0 + $0x40] sm:$0xff]  ;;  %v2906_v59 = vld [vmem:[%s3494_s6 + $0x4d4] ss:$8 sps:$4 sm:$0xff]   ;;  %v2908_v60 = vld [vmem:[%s3494_s6 + $0xd0] ss:$8 sps:$4 sm:$0xff]   ;;  %s2284_s4 = scalar_lea.vmem (%p3899_p11), %s3889_s3, %s2730_s23 }
  0x67   : > { %1919 = vmatpush1.bf16.msra.mxu1 %v2854_v18  ;;  %v2898_v50 = vld [vmem:[%s3494_s6 + $0xc4] ss:$8 sps:$4 sm:$0xff]   ;;  %v2448_v52 = vcombine.high %v266_v48, %v274_v49  ;;  %v2902_v56 = vld [vmem:[%s3494_s6 + $0xc0] ss:$8 sps:$4 sm:$0xff]   ;;  %v2909_v61 = vld [vmem:[%s3494_s6 + $0x4d0] ss:$8 sps:$4 sm:$0xff]   ;;  %v2447_v8 = vcombine.low %v266_v48, %v274_v49 }
  0x68   : > { %2091 = vmatpush1.bf16.msra.mxu0 %v2855_v19  ;;  %1920 = vmatprep.subr.bf16.mxu1 %v2856_v20  ;;  %v2900_v51 = vld [vmem:[%s3494_s6 + $0x4c4] ss:$8 sps:$4 sm:$0xff]   ;;  %v2903_v57 = vld [vmem:[%s3494_s6 + $0x4c0] ss:$8 sps:$4 sm:$0xff]   ;;  %v2916_v2 = vld [vmem:[%s3494_s6 + $0xf4] ss:$8 sps:$4 sm:$0xff]  }
  0x69   : > { %2092 = vmatprep.subr.bf16.mxu0 %v2858_v21  ;;  %v270_v53 = vld [vmem:[%s3886_s0 + $0x20] sm:$0xff]  ;;  %1942 = vmatprep.mubr.bf16.mxu1 %v2448_v52  ;;  %v2918_v3 = vld [vmem:[%s3494_s6 + $0x4f4] ss:$8 sps:$4 sm:$0xff]   ;;  %v2920_v4 = vld [vmem:[%s3494_s6 + $0xf0] ss:$8 sps:$4 sm:$0xff]  }
  0x6a   : > { %v278_v54 = vld [vmem:[%s3886_s0 + $0x60] sm:$0xff]  ;;  %v2921_v5 = vld [vmem:[%s3494_s6 + $0x4f0] ss:$8 sps:$4 sm:$0xff]   ;;  %v2930_v12 = vld [vmem:[%s3494_s6 + $0x114] ss:$8 sps:$4 sm:$0xff]  }
  0x6b   : > { %1921 = vmatpush1.bf16.msra.mxu1 %v2860_v22  ;;  %v2456_v55 = vcombine.high %v270_v53, %v278_v54  ;;  %v2910_v62 = vld [vmem:[%s3494_s6 + $0xe4] ss:$8 sps:$4 sm:$0xff]   ;;  %v2914_v0 = vld [vmem:[%s3494_s6 + $0xe0] ss:$8 sps:$4 sm:$0xff]   ;;  %v2455_v10 = vcombine.low %v270_v53, %v278_v54  ;;  %v2933_v13 = vld [vmem:[%s3494_s6 + $0x514] ss:$8 sps:$4 sm:$0xff]  }
  0x6c   : > { %2093 = vmatpush1.bf16.msra.mxu0 %v2861_v23  ;;  %1922 = vmatprep.subr.bf16.mxu1 %v2862_v24  ;;  %v2912_v63 = vld [vmem:[%s3494_s6 + $0x4e4] ss:$8 sps:$4 sm:$0xff]   ;;  %v2915_v1 = vld [vmem:[%s3494_s6 + $0x4e0] ss:$8 sps:$4 sm:$0xff]   ;;  %v2928_v14 = vld [vmem:[%s3494_s6 + $0x110] ss:$8 sps:$4 sm:$0xff]  }
  0x6d   : > { %2094 = vmatprep.subr.bf16.mxu0 %v2864_v25  ;;  %2114 = vmatprep.mubr.bf16.mxu0 %v2456_v55  ;;  %v2924_v6 = vld [vmem:[%s3494_s6 + $0x104] ss:$8 sps:$4 sm:$0xff]   ;;  %v2922_v9 = vld [vmem:[%s3494_s6 + $0x100] ss:$8 sps:$4 sm:$0xff]   ;;  %v2931_v15 = vld [vmem:[%s3494_s6 + $0x510] ss:$8 sps:$4 sm:$0xff]  }
  0x6e   : > { %v2927_v7 = vld [vmem:[%s3494_s6 + $0x504] ss:$8 sps:$4 sm:$0xff]   ;;  %v2925_v11 = vld [vmem:[%s3494_s6 + $0x500] ss:$8 sps:$4 sm:$0xff]   ;;  %v2942_v20 = vld [vmem:[%s3494_s6 + $0x134] ss:$8 sps:$4 sm:$0xff]  }
  0x6f   : > { %1923 = vmatpush1.bf16.msra.mxu1 %v2866_v26  ;;  %v2936_v16 = vld [vmem:[%s3494_s6 + $0x124] ss:$8 sps:$4 sm:$0xff]   ;;  %v2934_v18 = vld [vmem:[%s3494_s6 + $0x120] ss:$8 sps:$4 sm:$0xff]   ;;  %v2945_v21 = vld [vmem:[%s3494_s6 + $0x534] ss:$8 sps:$4 sm:$0xff]  }
  0x70   : > { %2095 = vmatpush1.bf16.msra.mxu0 %v2867_v27  ;;  %1924 = vmatprep.subr.bf16.mxu1 %v2868_v28  ;;  %v2939_v17 = vld [vmem:[%s3494_s6 + $0x524] ss:$8 sps:$4 sm:$0xff]   ;;  %v2937_v19 = vld [vmem:[%s3494_s6 + $0x520] ss:$8 sps:$4 sm:$0xff]   ;;  %v2940_v22 = vld [vmem:[%s3494_s6 + $0x130] ss:$8 sps:$4 sm:$0xff]  }
  0x71   : > { %2096 = vmatprep.subr.bf16.mxu0 %v2870_v29  ;;  %v2943_v23 = vld [vmem:[%s3494_s6 + $0x530] ss:$8 sps:$4 sm:$0xff]   ;;  %v2948_v24 = vld [vmem:[%s3494_s6 + $0x144] ss:$8 sps:$4 sm:$0xff]   ;;  %v2946_v26 = vld [vmem:[%s3494_s6 + $0x140] ss:$8 sps:$4 sm:$0xff]  }
  0x72   : > { %v2951_v25 = vld [vmem:[%s3494_s6 + $0x544] ss:$8 sps:$4 sm:$0xff]   ;;  %v2949_v27 = vld [vmem:[%s3494_s6 + $0x540] ss:$8 sps:$4 sm:$0xff]   ;;  %v2954_v28 = vld [vmem:[%s3494_s6 + $0x154] ss:$8 sps:$4 sm:$0xff]  }
  0x73   : > { %1925 = vmatpush1.bf16.msra.mxu1 %v2872_v30  ;;  %v2957_v29 = vld [vmem:[%s3494_s6 + $0x554] ss:$8 sps:$4 sm:$0xff]   ;;  %v2952_v30 = vld [vmem:[%s3494_s6 + $0x150] ss:$8 sps:$4 sm:$0xff]   ;;  %v2970_v48 = vld [vmem:[%s3494_s6 + $0x180] ss:$8 sps:$4 sm:$0xff]  }
  0x74   : > { %2097 = vmatpush1.bf16.msra.mxu0 %v2873_v31  ;;  %1926 = vmatprep.subr.bf16.mxu1 %v2874_v32  ;;  %v2955_v31 = vld [vmem:[%s3494_s6 + $0x550] ss:$8 sps:$4 sm:$0xff]   ;;  %v2960_v32 = vld [vmem:[%s3494_s6 + $0x164] ss:$8 sps:$4 sm:$0xff]   ;;  %v2973_v49 = vld [vmem:[%s3494_s6 + $0x580] ss:$8 sps:$4 sm:$0xff]  }
  0x75   : > { %2098 = vmatprep.subr.bf16.mxu0 %v2876_v33  ;;  %v2963_v33 = vld [vmem:[%s3494_s6 + $0x564] ss:$8 sps:$4 sm:$0xff]   ;;  %v2976_v52 = vld [vmem:[%s3494_s6 + $0x190] ss:$8 sps:$4 sm:$0xff]  }
  0x76   : > { %v2979_v53 = vld [vmem:[%s3494_s6 + $0x590] ss:$8 sps:$4 sm:$0xff]   ;;  %v2984_v54 = vld [vmem:[%s3494_s6 + $0x1a4] ss:$8 sps:$4 sm:$0xff]  }
  0x77   : > { %1927 = vmatpush1.bf16.msra.mxu1 %v2878_v34  ;;  %v2958_v34 = vld [vmem:[%s3494_s6 + $0x160] ss:$8 sps:$4 sm:$0xff]   ;;  %v2987_v55 = vld [vmem:[%s3494_s6 + $0x5a4] ss:$8 sps:$4 sm:$0xff]  }
  0x78   : > { %2099 = vmatpush1.bf16.msra.mxu0 %v2879_v35  ;;  %1928 = vmatprep.subr.bf16.mxu1 %v2880_v36  ;;  %v2961_v35 = vld [vmem:[%s3494_s6 + $0x560] ss:$8 sps:$4 sm:$0xff]  }
  0x79   : > { %2100 = vmatprep.subr.bf16.mxu0 %v2882_v37  ;;  %v3615_v36 = vld [vmem:[%s3886_s0 + $0x8] sm:$0xff] }
  0x7a   : > { %v3620_v37 = vld [vmem:[%s3886_s0 + $0x48] sm:$0xff] }
  0x7b   : > { %1929 = vmatpush1.bf16.msra.mxu1 %v2884_v38  ;;  %v2966_v38 = vld [vmem:[%s3494_s6 + $0x174] ss:$8 sps:$4 sm:$0xff]  }
  0x7c   : > { %2101 = vmatpush1.bf16.msra.mxu0 %v2885_v39  ;;  %1930 = vmatprep.subr.bf16.mxu1 %v2886_v40  ;;  %v2969_v39 = vld [vmem:[%s3494_s6 + $0x574] ss:$8 sps:$4 sm:$0xff]   ;;  %v2450_v40 = vcombine.high %v3615_v36, %v3620_v37 }
  0x7d   : > { %2102 = vmatprep.subr.bf16.mxu0 %v2888_v41  ;;  %v3629_v41 = vld [vmem:[%s3886_s0 + $0x28] sm:$0xff] }
  0x7f   : > { %1931 = vmatpush1.bf16.msra.mxu1 %v2890_v42  ;;  %v3634_v42 = vld [vmem:[%s3886_s0 + $0x68] sm:$0xff] }
  0x80   : > { %2103 = vmatpush1.bf16.msra.mxu0 %v2891_v43  ;;  %1932 = vmatprep.subr.bf16.mxu1 %v2892_v44  ;;  %v2458_v43 = vcombine.high %v3629_v41, %v3634_v42  ;;  %v2964_v44 = vld [vmem:[%s3494_s6 + $0x170] ss:$8 sps:$4 sm:$0xff]  }
  0x81   : > { %2104 = vmatprep.subr.bf16.mxu0 %v2894_v45  ;;  %v2967_v45 = vld [vmem:[%s3494_s6 + $0x570] ss:$8 sps:$4 sm:$0xff]  }
  0x83   : > { %1933 = vmatpush1.bf16.msra.mxu1 %v2896_v46  ;;  %v2972_v46 = vld [vmem:[%s3494_s6 + $0x184] ss:$8 sps:$4 sm:$0xff]  }
  0x84   : > { %2105 = vmatpush1.bf16.msra.mxu0 %v2897_v47  ;;  %1934 = vmatprep.subr.bf16.mxu1 %v2898_v50  ;;  %v2975_v47 = vld [vmem:[%s3494_s6 + $0x584] ss:$8 sps:$4 sm:$0xff]   ;;  %v2978_v50 = vld [vmem:[%s3494_s6 + $0x194] ss:$8 sps:$4 sm:$0xff]  }
  0x85   : > { %2106 = vmatprep.subr.bf16.mxu0 %v2900_v51  ;;  %v2981_v51 = vld [vmem:[%s3494_s6 + $0x594] ss:$8 sps:$4 sm:$0xff]  }
  0x87   : > { %1935 = vmatpush1.bf16.msra.mxu1 %v2902_v56  ;;  %v2982_v56 = vld [vmem:[%s3494_s6 + $0x1a0] ss:$8 sps:$4 sm:$0xff]  }
  0x88   : > { %2107 = vmatpush1.bf16.msra.mxu0 %v2903_v57  ;;  %1936 = vmatprep.subr.bf16.mxu1 %v2904_v58  ;;  %v2985_v57 = vld [vmem:[%s3494_s6 + $0x5a0] ss:$8 sps:$4 sm:$0xff]   ;;  %v2990_v58 = vld [vmem:[%s3494_s6 + $0x1b4] ss:$8 sps:$4 sm:$0xff]  }
  0x89   : > { %2108 = vmatprep.subr.bf16.mxu0 %v2906_v59  ;;  %v2993_v59 = vld [vmem:[%s3494_s6 + $0x5b4] ss:$8 sps:$4 sm:$0xff]  }
  0x8b   : > { %1937 = vmatpush1.bf16.msra.mxu1 %v2908_v60  ;;  %v2988_v60 = vld [vmem:[%s3494_s6 + $0x1b0] ss:$8 sps:$4 sm:$0xff]  }
  0x8c   : > { %2109 = vmatpush1.bf16.msra.mxu0 %v2909_v61  ;;  %1938 = vmatprep.subr.bf16.mxu1 %v2910_v62  ;;  %v2991_v61 = vld [vmem:[%s3494_s6 + $0x5b0] ss:$8 sps:$4 sm:$0xff]   ;;  %v2996_v62 = vld [vmem:[%s3494_s6 + $0x1c4] ss:$8 sps:$4 sm:$0xff]  }
  0x8d   : > { %2110 = vmatprep.subr.bf16.mxu0 %v2912_v63  ;;  %v2999_v63 = vld [vmem:[%s3494_s6 + $0x5c4] ss:$8 sps:$4 sm:$0xff]  }
  0x8f   : > { %1939 = vmatpush1.bf16.msra.mxu1 %v2914_v0  ;;  %v2994_v0 = vld [vmem:[%s3494_s6 + $0x1c0] ss:$8 sps:$4 sm:$0xff]  }
  0x90   : > { %2111 = vmatpush1.bf16.msra.mxu0 %v2915_v1  ;;  %1940 = vmatprep.subr.bf16.mxu1 %v2916_v2  ;;  %v2997_v1 = vld [vmem:[%s3494_s6 + $0x5c0] ss:$8 sps:$4 sm:$0xff]   ;;  %v3002_v2 = vld [vmem:[%s3494_s6 + $0x1d4] ss:$8 sps:$4 sm:$0xff]  }
  0x91   : > { %2112 = vmatprep.subr.bf16.mxu0 %v2918_v3  ;;  %v3005_v3 = vld [vmem:[%s3494_s6 + $0x5d4] ss:$8 sps:$4 sm:$0xff]  }
  0x93   : > { %1941 = vmatpush1.bf16.msra.mxu1 %v2920_v4  ;;  %v3000_v4 = vld [vmem:[%s3494_s6 + $0x1d0] ss:$8 sps:$4 sm:$0xff]  }
  0x94   : > { %2113 = vmatpush1.bf16.msra.mxu0 %v2921_v5  ;;  %1953 = vmatprep.subr.bf16.mxu1 %v2924_v6  ;;  %v3003_v5 = vld [vmem:[%s3494_s6 + $0x5d0] ss:$8 sps:$4 sm:$0xff]   ;;  %v3008_v6 = vld [vmem:[%s3494_s6 + $0x1e4] ss:$8 sps:$4 sm:$0xff]  }
  0x95   : > { %2125 = vmatprep.subr.bf16.mxu0 %v2927_v7  ;;  %v3011_v7 = vld [vmem:[%s3494_s6 + $0x5e4] ss:$8 sps:$4 sm:$0xff]  }
  0x96   : > { %1943 = vmatmul.mubr.bf16.vlgmr.msra.gmra.mrb[0].mxu1 %v2447_v8  ;;  %v3006_v8 = vld [vmem:[%s3494_s6 + $0x1e0] ss:$8 sps:$4 sm:$0xff]  }
  0x97   : > { %2115 = vmatmul.mubr.bf16.vlgmr.msra.gmra.mrb[0].mxu0 %v2455_v10  ;;  %1954 = vmatpush1.bf16.msra.mxu1 %v2922_v9  ;;  %v3009_v9 = vld [vmem:[%s3494_s6 + $0x5e0] ss:$8 sps:$4 sm:$0xff]   ;;  %v3014_v10 = vld [vmem:[%s3494_s6 + $0x1f4] ss:$8 sps:$4 sm:$0xff]  }
  0x98   : > { %2126 = vmatpush1.bf16.msra.mxu0 %v2925_v11  ;;  %1955 = vmatprep.subr.bf16.mxu1 %v2930_v12  ;;  %v3017_v11 = vld [vmem:[%s3494_s6 + $0x5f4] ss:$8 sps:$4 sm:$0xff]   ;;  %v3012_v12 = vld [vmem:[%s3494_s6 + $0x1f0] ss:$8 sps:$4 sm:$0xff]  }
  0x99   : > { %2127 = vmatprep.subr.bf16.mxu0 %v2933_v13  ;;  %1985 = vmatprep.mubr.bf16.mxu1 %v2450_v40  ;;  %v3015_v13 = vld [vmem:[%s3494_s6 + $0x5f0] ss:$8 sps:$4 sm:$0xff]   ;;  %v3042_v40 = vld [vmem:[%s3494_s6 + $0x240] ss:$8 sps:$4 sm:$0xff]  }
  0x9a   : > { %2157 = vmatprep.mubr.bf16.mxu0 %v2458_v43  ;;  %v3053_v43 = vld [vmem:[%s3494_s6 + $0x654] ss:$8 sps:$4 sm:$0xff]  }
  0x9b   : > { %1956 = vmatpush1.bf16.msra.mxu1 %v2928_v14  ;;  %v3020_v14 = vld [vmem:[%s3494_s6 + $0x204] ss:$8 sps:$4 sm:$0xff]  }
  0x9c   : > { %2128 = vmatpush1.bf16.msra.mxu0 %v2931_v15  ;;  %1957 = vmatprep.subr.bf16.mxu1 %v2936_v16  ;;  %v3023_v15 = vld [vmem:[%s3494_s6 + $0x604] ss:$8 sps:$4 sm:$0xff]   ;;  %v2449_v16 = vcombine.low %v3615_v36, %v3620_v37  ;;  %v3036_v36 = vld [vmem:[%s3494_s6 + $0x230] ss:$8 sps:$4 sm:$0xff]  }
  0x9d   : > { %2129 = vmatprep.subr.bf16.mxu0 %v2939_v17  ;;  %v3018_v17 = vld [vmem:[%s3494_s6 + $0x200] ss:$8 sps:$4 sm:$0xff]   ;;  %v3039_v37 = vld [vmem:[%s3494_s6 + $0x630] ss:$8 sps:$4 sm:$0xff]  }
  0x9f   : > { %1958 = vmatpush1.bf16.msra.mxu1 %v2934_v18  ;;  %v2457_v18 = vcombine.low %v3629_v41, %v3634_v42  ;;  %v3045_v41 = vld [vmem:[%s3494_s6 + $0x640] ss:$8 sps:$4 sm:$0xff]   ;;  %v3050_v42 = vld [vmem:[%s3494_s6 + $0x254] ss:$8 sps:$4 sm:$0xff]  }
  0xa0   : > { %2130 = vmatpush1.bf16.msra.mxu0 %v2937_v19  ;;  %1959 = vmatprep.subr.bf16.mxu1 %v2942_v20  ;;  %v3021_v19 = vld [vmem:[%s3494_s6 + $0x600] ss:$8 sps:$4 sm:$0xff]   ;;  %v3026_v20 = vld [vmem:[%s3494_s6 + $0x214] ss:$8 sps:$4 sm:$0xff]  }
  0xa1   : > { %2131 = vmatprep.subr.bf16.mxu0 %v2945_v21  ;;  %v3029_v21 = vld [vmem:[%s3494_s6 + $0x614] ss:$8 sps:$4 sm:$0xff]  }
  0xa3   : > { %1960 = vmatpush1.bf16.msra.mxu1 %v2940_v22  ;;  %v3024_v22 = vld [vmem:[%s3494_s6 + $0x210] ss:$8 sps:$4 sm:$0xff]  }
  0xa4   : > { %2132 = vmatpush1.bf16.msra.mxu0 %v2943_v23  ;;  %1961 = vmatprep.subr.bf16.mxu1 %v2948_v24  ;;  %v3027_v23 = vld [vmem:[%s3494_s6 + $0x610] ss:$8 sps:$4 sm:$0xff]  }
  0xa5   : > { %2133 = vmatprep.subr.bf16.mxu0 %v2951_v25  ;;  %v3687_v24 = vld [vmem:[%s3886_s0 + $0x10] sm:$0xff] }
  0xa6   : > { %v3692_v25 = vld [vmem:[%s3886_s0 + $0x50] sm:$0xff] }
  0xa7   : > { %1962 = vmatpush1.bf16.msra.mxu1 %v2946_v26  ;;  %v3032_v26 = vld [vmem:[%s3494_s6 + $0x224] ss:$8 sps:$4 sm:$0xff]  }
  0xa8   : > { %2134 = vmatpush1.bf16.msra.mxu0 %v2949_v27  ;;  %1963 = vmatprep.subr.bf16.mxu1 %v2954_v28  ;;  %v3035_v27 = vld [vmem:[%s3494_s6 + $0x624] ss:$8 sps:$4 sm:$0xff]   ;;  %v2452_v28 = vcombine.high %v3687_v24, %v3692_v25 }
  0xa9   : > { %2135 = vmatprep.subr.bf16.mxu0 %v2957_v29  ;;  %v3701_v29 = vld [vmem:[%s3886_s0 + $0x30] sm:$0xff] }
  0xab   : > { %1964 = vmatpush1.bf16.msra.mxu1 %v2952_v30  ;;  %v3706_v30 = vld [vmem:[%s3886_s0 + $0x70] sm:$0xff] }
  0xac   : > { %2136 = vmatpush1.bf16.msra.mxu0 %v2955_v31  ;;  %1965 = vmatprep.subr.bf16.mxu1 %v2960_v32  ;;  %v2460_v31 = vcombine.high %v3701_v29, %v3706_v30  ;;  %v3030_v32 = vld [vmem:[%s3494_s6 + $0x220] ss:$8 sps:$4 sm:$0xff]  }
  0xad   : > { %2137 = vmatprep.subr.bf16.mxu0 %v2963_v33  ;;  %v3033_v33 = vld [vmem:[%s3494_s6 + $0x620] ss:$8 sps:$4 sm:$0xff]  }
  0xaf   : > { %1966 = vmatpush1.bf16.msra.mxu1 %v2958_v34  ;;  %v3038_v34 = vld [vmem:[%s3494_s6 + $0x234] ss:$8 sps:$4 sm:$0xff]  }
  0xb0   : > { %2138 = vmatpush1.bf16.msra.mxu0 %v2961_v35  ;;  %1967 = vmatprep.subr.bf16.mxu1 %v2966_v38  ;;  %v3041_v35 = vld [vmem:[%s3494_s6 + $0x634] ss:$8 sps:$4 sm:$0xff]   ;;  %v3044_v38 = vld [vmem:[%s3494_s6 + $0x244] ss:$8 sps:$4 sm:$0xff]  }
  0xb1   : > { %2139 = vmatprep.subr.bf16.mxu0 %v2969_v39  ;;  %v3047_v39 = vld [vmem:[%s3494_s6 + $0x644] ss:$8 sps:$4 sm:$0xff]  }
  0xb3   : > { %1968 = vmatpush1.bf16.msra.mxu1 %v2964_v44  ;;  %v3048_v44 = vld [vmem:[%s3494_s6 + $0x250] ss:$8 sps:$4 sm:$0xff]  }
  0xb4   : > { %2140 = vmatpush1.bf16.msra.mxu0 %v2967_v45  ;;  %1969 = vmatprep.subr.bf16.mxu1 %v2972_v46  ;;  %v3051_v45 = vld [vmem:[%s3494_s6 + $0x650] ss:$8 sps:$4 sm:$0xff]   ;;  %v3056_v46 = vld [vmem:[%s3494_s6 + $0x264] ss:$8 sps:$4 sm:$0xff]  }
  0xb5   : > { %2141 = vmatprep.subr.bf16.mxu0 %v2975_v47  ;;  %v3059_v47 = vld [vmem:[%s3494_s6 + $0x664] ss:$8 sps:$4 sm:$0xff]  }
  0xb7   : > { %1970 = vmatpush1.bf16.msra.mxu1 %v2970_v48  ;;  %v3054_v48 = vld [vmem:[%s3494_s6 + $0x260] ss:$8 sps:$4 sm:$0xff]  }
  0xb8   : > { %2142 = vmatpush1.bf16.msra.mxu0 %v2973_v49  ;;  %1971 = vmatprep.subr.bf16.mxu1 %v2978_v50  ;;  %v3057_v49 = vld [vmem:[%s3494_s6 + $0x660] ss:$8 sps:$4 sm:$0xff]   ;;  %v3062_v50 = vld [vmem:[%s3494_s6 + $0x274] ss:$8 sps:$4 sm:$0xff]  }
  0xb9   : > { %2143 = vmatprep.subr.bf16.mxu0 %v2981_v51  ;;  %v3065_v51 = vld [vmem:[%s3494_s6 + $0x674] ss:$8 sps:$4 sm:$0xff]  }
  0xbb   : > { %1972 = vmatpush1.bf16.msra.mxu1 %v2976_v52  ;;  %v3060_v52 = vld [vmem:[%s3494_s6 + $0x270] ss:$8 sps:$4 sm:$0xff]  }
  0xbc   : > { %2144 = vmatpush1.bf16.msra.mxu0 %v2979_v53  ;;  %1973 = vmatprep.subr.bf16.mxu1 %v2984_v54  ;;  %v3063_v53 = vld [vmem:[%s3494_s6 + $0x670] ss:$8 sps:$4 sm:$0xff]   ;;  %v3068_v54 = vld [vmem:[%s3494_s6 + $0x284] ss:$8 sps:$4 sm:$0xff]  }
  0xbd   : > { %2145 = vmatprep.subr.bf16.mxu0 %v2987_v55  ;;  %v3071_v55 = vld [vmem:[%s3494_s6 + $0x684] ss:$8 sps:$4 sm:$0xff]  }
  0xbf   : > { %1974 = vmatpush1.bf16.msra.mxu1 %v2982_v56  ;;  %v3066_v56 = vld [vmem:[%s3494_s6 + $0x280] ss:$8 sps:$4 sm:$0xff]  }
  0xc0   : > { %2146 = vmatpush1.bf16.msra.mxu0 %v2985_v57  ;;  %1975 = vmatprep.subr.bf16.mxu1 %v2990_v58  ;;  %v3069_v57 = vld [vmem:[%s3494_s6 + $0x680] ss:$8 sps:$4 sm:$0xff]   ;;  %v3074_v58 = vld [vmem:[%s3494_s6 + $0x294] ss:$8 sps:$4 sm:$0xff]  }
  0xc1   : > { %2147 = vmatprep.subr.bf16.mxu0 %v2993_v59  ;;  %v3077_v59 = vld [vmem:[%s3494_s6 + $0x694] ss:$8 sps:$4 sm:$0xff]  }
  0xc3   : > { %1976 = vmatpush1.bf16.msra.mxu1 %v2988_v60  ;;  %v3072_v60 = vld [vmem:[%s3494_s6 + $0x290] ss:$8 sps:$4 sm:$0xff]  }
  0xc4   : > { %2148 = vmatpush1.bf16.msra.mxu0 %v2991_v61  ;;  %1977 = vmatprep.subr.bf16.mxu1 %v2996_v62  ;;  %v3075_v61 = vld [vmem:[%s3494_s6 + $0x690] ss:$8 sps:$4 sm:$0xff]   ;;  %v3080_v62 = vld [vmem:[%s3494_s6 + $0x2a4] ss:$8 sps:$4 sm:$0xff]  }
  0xc5   : > { %2149 = vmatprep.subr.bf16.mxu0 %v2999_v63  ;;  %v3083_v63 = vld [vmem:[%s3494_s6 + $0x6a4] ss:$8 sps:$4 sm:$0xff]  }
  0xc7   : > { %1978 = vmatpush1.bf16.msra.mxu1 %v2994_v0  ;;  %v3078_v0 = vld [vmem:[%s3494_s6 + $0x2a0] ss:$8 sps:$4 sm:$0xff]  }
  0xc8   : > { %2150 = vmatpush1.bf16.msra.mxu0 %v2997_v1  ;;  %1979 = vmatprep.subr.bf16.mxu1 %v3002_v2  ;;  %v3081_v1 = vld [vmem:[%s3494_s6 + $0x6a0] ss:$8 sps:$4 sm:$0xff]   ;;  %v3086_v2 = vld [vmem:[%s3494_s6 + $0x2b4] ss:$8 sps:$4 sm:$0xff]  }
  0xc9   : > { %2151 = vmatprep.subr.bf16.mxu0 %v3005_v3  ;;  %v3089_v3 = vld [vmem:[%s3494_s6 + $0x6b4] ss:$8 sps:$4 sm:$0xff]  }
  0xcb   : > { %1980 = vmatpush1.bf16.msra.mxu1 %v3000_v4  ;;  %v3084_v4 = vld [vmem:[%s3494_s6 + $0x2b0] ss:$8 sps:$4 sm:$0xff]  }
  0xcc   : > { %2152 = vmatpush1.bf16.msra.mxu0 %v3003_v5  ;;  %1981 = vmatprep.subr.bf16.mxu1 %v3008_v6  ;;  %v3087_v5 = vld [vmem:[%s3494_s6 + $0x6b0] ss:$8 sps:$4 sm:$0xff]   ;;  %v3092_v6 = vld [vmem:[%s3494_s6 + $0x2c4] ss:$8 sps:$4 sm:$0xff]  }
  0xcd   : > { %2153 = vmatprep.subr.bf16.mxu0 %v3011_v7  ;;  %v3095_v7 = vld [vmem:[%s3494_s6 + $0x6c4] ss:$8 sps:$4 sm:$0xff]  }
  0xcf   : > { %1982 = vmatpush1.bf16.msra.mxu1 %v3006_v8  ;;  %v3090_v8 = vld [vmem:[%s3494_s6 + $0x2c0] ss:$8 sps:$4 sm:$0xff]  }
  0xd0   : > { %2154 = vmatpush1.bf16.msra.mxu0 %v3009_v9  ;;  %1983 = vmatprep.subr.bf16.mxu1 %v3014_v10  ;;  %v3093_v9 = vld [vmem:[%s3494_s6 + $0x6c0] ss:$8 sps:$4 sm:$0xff]   ;;  %v3098_v10 = vld [vmem:[%s3494_s6 + $0x2d4] ss:$8 sps:$4 sm:$0xff]  }
  0xd1   : > { %2155 = vmatprep.subr.bf16.mxu0 %v3017_v11  ;;  %v3101_v11 = vld [vmem:[%s3494_s6 + $0x6d4] ss:$8 sps:$4 sm:$0xff]  }
  0xd3   : > { %1984 = vmatpush1.bf16.msra.mxu1 %v3012_v12  ;;  %v3096_v12 = vld [vmem:[%s3494_s6 + $0x2d0] ss:$8 sps:$4 sm:$0xff]  }
  0xd4   : > { %2156 = vmatpush1.bf16.msra.mxu0 %v3015_v13  ;;  %1996 = vmatprep.subr.bf16.mxu1 %v3020_v14  ;;  %v3099_v13 = vld [vmem:[%s3494_s6 + $0x6d0] ss:$8 sps:$4 sm:$0xff]   ;;  %v3104_v14 = vld [vmem:[%s3494_s6 + $0x2e4] ss:$8 sps:$4 sm:$0xff]  }
  0xd5   : > { %2168 = vmatprep.subr.bf16.mxu0 %v3023_v15  ;;  %v3107_v15 = vld [vmem:[%s3494_s6 + $0x6e4] ss:$8 sps:$4 sm:$0xff]  }
  0xd6   : > { %1986 = vmatmul.mubr.bf16.vlgmr.msra.gmra.mrb[0].mxu1 %v2449_v16  ;;  %v3102_v16 = vld [vmem:[%s3494_s6 + $0x2e0] ss:$8 sps:$4 sm:$0xff]  }
  0xd7   : > { %2158 = vmatmul.mubr.bf16.vlgmr.msra.gmra.mrb[0].mxu0 %v2457_v18  ;;  %1997 = vmatpush1.bf16.msra.mxu1 %v3018_v17  ;;  %v3105_v17 = vld [vmem:[%s3494_s6 + $0x6e0] ss:$8 sps:$4 sm:$0xff]   ;;  %v3110_v18 = vld [vmem:[%s3494_s6 + $0x2f4] ss:$8 sps:$4 sm:$0xff]  }
  0xd8   : > { %2169 = vmatpush1.bf16.msra.mxu0 %v3021_v19  ;;  %1998 = vmatprep.subr.bf16.mxu1 %v3026_v20  ;;  %v3113_v19 = vld [vmem:[%s3494_s6 + $0x6f4] ss:$8 sps:$4 sm:$0xff]   ;;  %v3108_v20 = vld [vmem:[%s3494_s6 + $0x2f0] ss:$8 sps:$4 sm:$0xff]  }
  0xd9   : > { %2170 = vmatprep.subr.bf16.mxu0 %v3029_v21  ;;  %2028 = vmatprep.mubr.bf16.mxu1 %v2452_v28  ;;  %v3111_v21 = vld [vmem:[%s3494_s6 + $0x6f0] ss:$8 sps:$4 sm:$0xff]   ;;  %v2459_v28 = vcombine.low %v3701_v29, %v3706_v30  ;;  %v3122_v29 = vld [vmem:[%s3494_s6 + $0x314] ss:$8 sps:$4 sm:$0xff]  }
  0xda   : > { %2200 = vmatprep.mubr.bf16.mxu0 %v2460_v31  ;;  %v3778_v31 = vld [vmem:[%s3886_s0 + $0x58] sm:$0xff] }
  0xdb   : > { %1999 = vmatpush1.bf16.msra.mxu1 %v3024_v22  ;;  %v3116_v22 = vld [vmem:[%s3494_s6 + $0x304] ss:$8 sps:$4 sm:$0xff]   ;;  %v3125_v30 = vld [vmem:[%s3494_s6 + $0x714] ss:$8 sps:$4 sm:$0xff]  }
  0xdc   : > { %2171 = vmatpush1.bf16.msra.mxu0 %v3027_v23  ;;  %2000 = vmatprep.subr.bf16.mxu1 %v3032_v26  ;;  %v3119_v23 = vld [vmem:[%s3494_s6 + $0x704] ss:$8 sps:$4 sm:$0xff]   ;;  %v3769_v26 = vld [vmem:[%s3886_s0 + $0x18] sm:$0xff] }
  0xdd   : > { %2172 = vmatprep.subr.bf16.mxu0 %v3035_v27  ;;  %v2451_v27 = vcombine.low %v3687_v24, %v3692_v25  ;;  %v3114_v24 = vld [vmem:[%s3494_s6 + $0x300] ss:$8 sps:$4 sm:$0xff]  }
  0xde   : > { %v3117_v25 = vld [vmem:[%s3494_s6 + $0x700] ss:$8 sps:$4 sm:$0xff]  }
  0xdf   : > { %2001 = vmatpush1.bf16.msra.mxu1 %v3030_v32  ;;  %v3783_v32 = vld [vmem:[%s3886_s0 + $0x38] sm:$0xff] }
  0xe0   : > { %2173 = vmatpush1.bf16.msra.mxu0 %v3033_v33  ;;  %2002 = vmatprep.subr.bf16.mxu1 %v3038_v34  ;;  %v3788_v33 = vld [vmem:[%s3886_s0 + $0x78] sm:$0xff]  ;;  %v2454_v34 = vcombine.high %v3769_v26, %v3778_v31 }
  0xe1   : > { %2174 = vmatprep.subr.bf16.mxu0 %v3041_v35  ;;  %v2462_v35 = vcombine.high %v3783_v32, %v3788_v33 }
  0xe3   : > { %2003 = vmatpush1.bf16.msra.mxu1 %v3036_v36  ;;  %v3120_v36 = vld [vmem:[%s3494_s6 + $0x310] ss:$8 sps:$4 sm:$0xff]  }
  0xe4   : > { %2175 = vmatpush1.bf16.msra.mxu0 %v3039_v37  ;;  %2004 = vmatprep.subr.bf16.mxu1 %v3044_v38  ;;  %v3123_v37 = vld [vmem:[%s3494_s6 + $0x710] ss:$8 sps:$4 sm:$0xff]   ;;  %v3128_v38 = vld [vmem:[%s3494_s6 + $0x324] ss:$8 sps:$4 sm:$0xff]  }
  0xe5   : > { %2176 = vmatprep.subr.bf16.mxu0 %v3047_v39  ;;  %v3131_v39 = vld [vmem:[%s3494_s6 + $0x724] ss:$8 sps:$4 sm:$0xff]  }
  0xe7   : > { %2005 = vmatpush1.bf16.msra.mxu1 %v3042_v40  ;;  %v3126_v40 = vld [vmem:[%s3494_s6 + $0x320] ss:$8 sps:$4 sm:$0xff]  }
  0xe8   : > { %2177 = vmatpush1.bf16.msra.mxu0 %v3045_v41  ;;  %2006 = vmatprep.subr.bf16.mxu1 %v3050_v42  ;;  %v3129_v41 = vld [vmem:[%s3494_s6 + $0x720] ss:$8 sps:$4 sm:$0xff]   ;;  %v3134_v42 = vld [vmem:[%s3494_s6 + $0x334] ss:$8 sps:$4 sm:$0xff]  }
  0xe9   : > { %2178 = vmatprep.subr.bf16.mxu0 %v3053_v43  ;;  %v3137_v43 = vld [vmem:[%s3494_s6 + $0x734] ss:$8 sps:$4 sm:$0xff]  }
  0xeb   : > { %2007 = vmatpush1.bf16.msra.mxu1 %v3048_v44  ;;  %v3132_v44 = vld [vmem:[%s3494_s6 + $0x330] ss:$8 sps:$4 sm:$0xff]  }
  0xec   : > { %2179 = vmatpush1.bf16.msra.mxu0 %v3051_v45  ;;  %2008 = vmatprep.subr.bf16.mxu1 %v3056_v46  ;;  %v3135_v45 = vld [vmem:[%s3494_s6 + $0x730] ss:$8 sps:$4 sm:$0xff]   ;;  %v3140_v46 = vld [vmem:[%s3494_s6 + $0x344] ss:$8 sps:$4 sm:$0xff]  }
  0xed   : > { %2180 = vmatprep.subr.bf16.mxu0 %v3059_v47  ;;  %v3143_v47 = vld [vmem:[%s3494_s6 + $0x744] ss:$8 sps:$4 sm:$0xff]  }
  0xef   : > { %2009 = vmatpush1.bf16.msra.mxu1 %v3054_v48  ;;  %v3138_v48 = vld [vmem:[%s3494_s6 + $0x340] ss:$8 sps:$4 sm:$0xff]  }
  0xf0   : > { %2181 = vmatpush1.bf16.msra.mxu0 %v3057_v49  ;;  %2010 = vmatprep.subr.bf16.mxu1 %v3062_v50  ;;  %v3141_v49 = vld [vmem:[%s3494_s6 + $0x740] ss:$8 sps:$4 sm:$0xff]   ;;  %v3146_v50 = vld [vmem:[%s3494_s6 + $0x354] ss:$8 sps:$4 sm:$0xff]  }
  0xf1   : > { %2182 = vmatprep.subr.bf16.mxu0 %v3065_v51  ;;  %v3149_v51 = vld [vmem:[%s3494_s6 + $0x754] ss:$8 sps:$4 sm:$0xff]  }
  0xf3   : > { %2011 = vmatpush1.bf16.msra.mxu1 %v3060_v52  ;;  %v3144_v52 = vld [vmem:[%s3494_s6 + $0x350] ss:$8 sps:$4 sm:$0xff]  }
  0xf4   : > { %2183 = vmatpush1.bf16.msra.mxu0 %v3063_v53  ;;  %2012 = vmatprep.subr.bf16.mxu1 %v3068_v54  ;;  %v3147_v53 = vld [vmem:[%s3494_s6 + $0x750] ss:$8 sps:$4 sm:$0xff]   ;;  %v3152_v54 = vld [vmem:[%s3494_s6 + $0x364] ss:$8 sps:$4 sm:$0xff]  }
  0xf5   : > { %2184 = vmatprep.subr.bf16.mxu0 %v3071_v55  ;;  %v3155_v55 = vld [vmem:[%s3494_s6 + $0x764] ss:$8 sps:$4 sm:$0xff]  }
  0xf7   : > { %2013 = vmatpush1.bf16.msra.mxu1 %v3066_v56  ;;  %v3150_v56 = vld [vmem:[%s3494_s6 + $0x360] ss:$8 sps:$4 sm:$0xff]  }
  0xf8   : > { %2185 = vmatpush1.bf16.msra.mxu0 %v3069_v57  ;;  %2014 = vmatprep.subr.bf16.mxu1 %v3074_v58  ;;  %v3153_v57 = vld [vmem:[%s3494_s6 + $0x760] ss:$8 sps:$4 sm:$0xff]   ;;  %v3158_v58 = vld [vmem:[%s3494_s6 + $0x374] ss:$8 sps:$4 sm:$0xff]  }
  0xf9   : > { %2186 = vmatprep.subr.bf16.mxu0 %v3077_v59  ;;  %v3161_v59 = vld [vmem:[%s3494_s6 + $0x774] ss:$8 sps:$4 sm:$0xff]  }
  0xfb   : > { %2015 = vmatpush1.bf16.msra.mxu1 %v3072_v60  ;;  %v3156_v60 = vld [vmem:[%s3494_s6 + $0x370] ss:$8 sps:$4 sm:$0xff]  }
  0xfc   : > { %2187 = vmatpush1.bf16.msra.mxu0 %v3075_v61  ;;  %2016 = vmatprep.subr.bf16.mxu1 %v3080_v62  ;;  %v3159_v61 = vld [vmem:[%s3494_s6 + $0x770] ss:$8 sps:$4 sm:$0xff]   ;;  %v3164_v62 = vld [vmem:[%s3494_s6 + $0x384] ss:$8 sps:$4 sm:$0xff]  }
  0xfd   : > { %2188 = vmatprep.subr.bf16.mxu0 %v3083_v63  ;;  %v3167_v63 = vld [vmem:[%s3494_s6 + $0x784] ss:$8 sps:$4 sm:$0xff]  }
  0xff   : > { %2017 = vmatpush1.bf16.msra.mxu1 %v3078_v0  ;;  %v3162_v0 = vld [vmem:[%s3494_s6 + $0x380] ss:$8 sps:$4 sm:$0xff]  }
 0x100   : > { %2189 = vmatpush1.bf16.msra.mxu0 %v3081_v1  ;;  %2018 = vmatprep.subr.bf16.mxu1 %v3086_v2  ;;  %v3165_v1 = vld [vmem:[%s3494_s6 + $0x780] ss:$8 sps:$4 sm:$0xff]   ;;  %v3170_v2 = vld [vmem:[%s3494_s6 + $0x394] ss:$8 sps:$4 sm:$0xff]  }
 0x101   : > { %2190 = vmatprep.subr.bf16.mxu0 %v3089_v3  ;;  %v3173_v3 = vld [vmem:[%s3494_s6 + $0x794] ss:$8 sps:$4 sm:$0xff]  }
 0x103   : > { %2019 = vmatpush1.bf16.msra.mxu1 %v3084_v4  ;;  %v3168_v4 = vld [vmem:[%s3494_s6 + $0x390] ss:$8 sps:$4 sm:$0xff]  }
 0x104   : > { %2191 = vmatpush1.bf16.msra.mxu0 %v3087_v5  ;;  %2020 = vmatprep.subr.bf16.mxu1 %v3092_v6  ;;  %v3171_v5 = vld [vmem:[%s3494_s6 + $0x790] ss:$8 sps:$4 sm:$0xff]   ;;  %v3176_v6 = vld [vmem:[%s3494_s6 + $0x3a4] ss:$8 sps:$4 sm:$0xff]  }
 0x105   : > { %2192 = vmatprep.subr.bf16.mxu0 %v3095_v7  ;;  %v3179_v7 = vld [vmem:[%s3494_s6 + $0x7a4] ss:$8 sps:$4 sm:$0xff]  }
 0x107   : > { %2021 = vmatpush1.bf16.msra.mxu1 %v3090_v8  ;;  %v3174_v8 = vld [vmem:[%s3494_s6 + $0x3a0] ss:$8 sps:$4 sm:$0xff]  }
 0x108   : > { %2193 = vmatpush1.bf16.msra.mxu0 %v3093_v9  ;;  %2022 = vmatprep.subr.bf16.mxu1 %v3098_v10  ;;  %v3177_v9 = vld [vmem:[%s3494_s6 + $0x7a0] ss:$8 sps:$4 sm:$0xff]   ;;  %v3182_v10 = vld [vmem:[%s3494_s6 + $0x3b4] ss:$8 sps:$4 sm:$0xff]  }
 0x109   : > { %2194 = vmatprep.subr.bf16.mxu0 %v3101_v11  ;;  %v3185_v11 = vld [vmem:[%s3494_s6 + $0x7b4] ss:$8 sps:$4 sm:$0xff]  }
 0x10b   : > { %2023 = vmatpush1.bf16.msra.mxu1 %v3096_v12  ;;  %v3180_v12 = vld [vmem:[%s3494_s6 + $0x3b0] ss:$8 sps:$4 sm:$0xff]  }
 0x10c   : > { %2195 = vmatpush1.bf16.msra.mxu0 %v3099_v13  ;;  %2024 = vmatprep.subr.bf16.mxu1 %v3104_v14  ;;  %v3183_v13 = vld [vmem:[%s3494_s6 + $0x7b0] ss:$8 sps:$4 sm:$0xff]   ;;  %v3188_v14 = vld [vmem:[%s3494_s6 + $0x3c4] ss:$8 sps:$4 sm:$0xff]  }
 0x10d   : > { %2196 = vmatprep.subr.bf16.mxu0 %v3107_v15  ;;  %v3191_v15 = vld [vmem:[%s3494_s6 + $0x7c4] ss:$8 sps:$4 sm:$0xff]  }
 0x10f   : > { %2025 = vmatpush1.bf16.msra.mxu1 %v3102_v16  ;;  %v3186_v16 = vld [vmem:[%s3494_s6 + $0x3c0] ss:$8 sps:$4 sm:$0xff]  }
 0x110   : > { %2197 = vmatpush1.bf16.msra.mxu0 %v3105_v17  ;;  %2026 = vmatprep.subr.bf16.mxu1 %v3110_v18  ;;  %v3189_v17 = vld [vmem:[%s3494_s6 + $0x7c0] ss:$8 sps:$4 sm:$0xff]   ;;  %v3194_v18 = vld [vmem:[%s3494_s6 + $0x3d4] ss:$8 sps:$4 sm:$0xff]  }
 0x111   : > { %2198 = vmatprep.subr.bf16.mxu0 %v3113_v19  ;;  %v3197_v19 = vld [vmem:[%s3494_s6 + $0x7d4] ss:$8 sps:$4 sm:$0xff]  }
 0x113   : > { %2027 = vmatpush1.bf16.msra.mxu1 %v3108_v20  ;;  %v3192_v20 = vld [vmem:[%s3494_s6 + $0x3d0] ss:$8 sps:$4 sm:$0xff]  }
 0x114   : > { %2199 = vmatpush1.bf16.msra.mxu0 %v3111_v21  ;;  %2039 = vmatprep.subr.bf16.mxu1 %v3116_v22  ;;  %v3195_v21 = vld [vmem:[%s3494_s6 + $0x7d0] ss:$8 sps:$4 sm:$0xff]   ;;  %v3200_v22 = vld [vmem:[%s3494_s6 + $0x3e4] ss:$8 sps:$4 sm:$0xff]  }
 0x115   : > { %2211 = vmatprep.subr.bf16.mxu0 %v3119_v23  ;;  %v3203_v23 = vld [vmem:[%s3494_s6 + $0x7e4] ss:$8 sps:$4 sm:$0xff]  }
 0x116   : > { %2029 = vmatmul.mubr.bf16.vlgmr.msra.gmra.mrb[0].mxu1 %v2451_v27  ;;  %v3198_v27 = vld [vmem:[%s3494_s6 + $0x3e0] ss:$8 sps:$4 sm:$0xff]  }
 0x117   : > { %2201 = vmatmul.mubr.bf16.vlgmr.msra.gmra.mrb[0].mxu0 %v2459_v28  ;;  %2040 = vmatpush1.bf16.msra.mxu1 %v3114_v24  ;;  %v3201_v28 = vld [vmem:[%s3494_s6 + $0x7e0] ss:$8 sps:$4 sm:$0xff]   ;;  %v3206_v24 = vld [vmem:[%s3494_s6 + $0x3f4] ss:$8 sps:$4 sm:$0xff]  }
 0x118   : > { %2212 = vmatpush1.bf16.msra.mxu0 %v3117_v25  ;;  %2041 = vmatprep.subr.bf16.mxu1 %v3122_v29  ;;  %v3209_v25 = vld [vmem:[%s3494_s6 + $0x7f4] ss:$8 sps:$4 sm:$0xff]   ;;  %v3204_v29 = vld [vmem:[%s3494_s6 + $0x3f0] ss:$8 sps:$4 sm:$0xff]  }
 0x119   : > { %2213 = vmatprep.subr.bf16.mxu0 %v3125_v30  ;;  %2071 = vmatprep.mubr.bf16.mxu1 %v2454_v34  ;;  %v3207_v30 = vld [vmem:[%s3494_s6 + $0x7f0] ss:$8 sps:$4 sm:$0xff]   ;;  %v2453_v34 = vcombine.low %v3769_v26, %v3778_v31  ;;  %s2446_s6 = sshll.u32 %s3490_s12, 4 }
 0x11a   : > { %2243 = vmatprep.mubr.bf16.mxu0 %v2462_v35  ;;  %v2461_v35 = vcombine.low %v3783_v32, %v3788_v33 }
 0x11b   : > { %2042 = vmatpush1.bf16.msra.mxu1 %v3120_v36  ;;  %v540_v36 = vlaneseq }
 0x11c   : > { %2214 = vmatpush1.bf16.msra.mxu0 %v3123_v37  ;;  %2043 = vmatprep.subr.bf16.mxu1 %v3128_v38 }
 0x11d   : > { %2215 = vmatprep.subr.bf16.mxu0 %v3131_v39  ;;  %v541_v37 = vshrl.u32 %v540_v36, 7  ;;  %v538_v39 = vld [vmem:[%s3502_s20] sm:$0x3]  ;;  %s254_s20 = scalar_lea.vmem [#allocation6], %s2446_s6 }
 0x11f   : > { %2044 = vmatpush1.bf16.msra.mxu1 %v3126_v40  ;;  %v542_v38 = vsub.s32 0, %v541_v37  ;;  %v546_v40 = vsub.s32 1, %v541_v37 }
 0x120   : > { %2216 = vmatpush1.bf16.msra.mxu0 %v3129_v41  ;;  %2045 = vmatprep.subr.bf16.mxu1 %v3134_v42 }
 0x121   : > { %2217 = vmatprep.subr.bf16.mxu0 %v3137_v43  ;;  %v543_v41 = vrot.slane %v538_v39, %v542_v38  ;;  %v547_v42 = vrot.slane %v538_v39, %v546_v40 }
 0x123   : > { %2046 = vmatpush1.bf16.msra.mxu1 %v3132_v44 }
 0x124   : > { %2218 = vmatpush1.bf16.msra.mxu0 %v3135_v45  ;;  %2047 = vmatprep.subr.bf16.mxu1 %v3140_v46 }
 0x125   : > { %2219 = vmatprep.subr.bf16.mxu0 %v3143_v47 }
 0x127   : > { %2048 = vmatpush1.bf16.msra.mxu1 %v3138_v48 }
 0x128   : > { %2220 = vmatpush1.bf16.msra.mxu0 %v3141_v49  ;;  %2049 = vmatprep.subr.bf16.mxu1 %v3146_v50 }
 0x129   : > { %2221 = vmatprep.subr.bf16.mxu0 %v3149_v51 }
 0x12b   : > { %2050 = vmatpush1.bf16.msra.mxu1 %v3144_v52 }
 0x12c   : > { %2222 = vmatpush1.bf16.msra.mxu0 %v3147_v53  ;;  %2051 = vmatprep.subr.bf16.mxu1 %v3152_v54 }
 0x12d   : > { %2223 = vmatprep.subr.bf16.mxu0 %v3155_v55 }
 0x12f   : > { %2052 = vmatpush1.bf16.msra.mxu1 %v3150_v56 }
 0x130   : > { %2224 = vmatpush1.bf16.msra.mxu0 %v3153_v57  ;;  %2053 = vmatprep.subr.bf16.mxu1 %v3158_v58 }
 0x131   : > { %2225 = vmatprep.subr.bf16.mxu0 %v3161_v59 }
 0x133   : > { %2054 = vmatpush1.bf16.msra.mxu1 %v3156_v60 }
 0x134   : > { %2226 = vmatpush1.bf16.msra.mxu0 %v3159_v61  ;;  %2055 = vmatprep.subr.bf16.mxu1 %v3164_v62 }
 0x135   : > { %2227 = vmatprep.subr.bf16.mxu0 %v3167_v63 }
 0x137   : > { %2056 = vmatpush1.bf16.msra.mxu1 %v3162_v0 }
 0x138   : > { %2228 = vmatpush1.bf16.msra.mxu0 %v3165_v1  ;;  %2057 = vmatprep.subr.bf16.mxu1 %v3170_v2 }
 0x139   : > { %2229 = vmatprep.subr.bf16.mxu0 %v3173_v3 }
 0x13b   : > { %2058 = vmatpush1.bf16.msra.mxu1 %v3168_v4 }
 0x13c   : > { %2230 = vmatpush1.bf16.msra.mxu0 %v3171_v5  ;;  %2059 = vmatprep.subr.bf16.mxu1 %v3176_v6 }
 0x13d   : > { %2231 = vmatprep.subr.bf16.mxu0 %v3179_v7 }
 0x13f   : > { %2060 = vmatpush1.bf16.msra.mxu1 %v3174_v8 }
 0x140   : > { %2232 = vmatpush1.bf16.msra.mxu0 %v3177_v9  ;;  %2061 = vmatprep.subr.bf16.mxu1 %v3182_v10 }
 0x141   : > { %2233 = vmatprep.subr.bf16.mxu0 %v3185_v11 }
 0x143   : > { %2062 = vmatpush1.bf16.msra.mxu1 %v3180_v12 }
 0x144   : > { %2234 = vmatpush1.bf16.msra.mxu0 %v3183_v13  ;;  %2063 = vmatprep.subr.bf16.mxu1 %v3188_v14 }
 0x145   : > { %2235 = vmatprep.subr.bf16.mxu0 %v3191_v15 }
 0x147   : > { %2064 = vmatpush1.bf16.msra.mxu1 %v3186_v16 }
 0x148   : > { %2236 = vmatpush1.bf16.msra.mxu0 %v3189_v17  ;;  %2065 = vmatprep.subr.bf16.mxu1 %v3194_v18 }
 0x149   : > { %2237 = vmatprep.subr.bf16.mxu0 %v3197_v19 }
 0x14b   : > { %2066 = vmatpush1.bf16.msra.mxu1 %v3192_v20 }
 0x14c   : > { %2238 = vmatpush1.bf16.msra.mxu0 %v3195_v21  ;;  %2067 = vmatprep.subr.bf16.mxu1 %v3200_v22 }
 0x14d   : > { %2239 = vmatprep.subr.bf16.mxu0 %v3203_v23 }
 0x14f   : > { %2068 = vmatpush1.bf16.msra.mxu1 %v3198_v27 }
 0x150   : > { %2240 = vmatpush1.bf16.msra.mxu0 %v3201_v28  ;;  %2069 = vmatprep.subr.bf16.mxu1 %v3206_v24 }
 0x151   : > { %2241 = vmatprep.subr.bf16.mxu0 %v3209_v25 }
 0x153   : > { %2070 = vmatpush1.bf16.msra.mxu1 %v3204_v29 }
 0x154   : > { %2242 = vmatpush1.bf16.msra.mxu0 %v3207_v30 }
 0x156   : > { %2072 = vmatmul.mubr.bf16.vlgmr.msra.gmra.mrb[0].mxu1 %v2453_v34 }
 0x157   : > { %2244 = vmatmul.mubr.bf16.vlgmr.msra.gmra.mrb[0].mxu0 %v2461_v35 }
 0x229   : > { %v2073_v43 = vpop.f32.mrb[0].mxu1 }
 0x22a   : > { %v2245_v44 = vpop.f32.mrb[0].mxu0  ;;  %v2731_v45 = vadd.f32 %v2073_v43, %v543_v41  ;;  %v2075_v46 = vpop.f32.mrb[1].mxu1 }
 0x22b   : > { %v2247_v26 = vpop.f32.mrb[1].mxu0  ;;  %v2733_v31 = vadd.f32 %v2075_v46, %v547_v42  ;;  %v2077_v47 = vpop.f32.mrb[2].mxu1 }
 0x22c   : > { %v2249_v32 = vpop.f32.mrb[2].mxu0  ;;  %v2732_v33 = vadd.f32 %v2731_v45, %v2245_v44  ;;  %v2735_v48 = vadd.f32 %v2077_v47, %v543_v41  ;;  %v2079_v49 = vpop.f32.mrb[3].mxu1 }
 0x22d   : > { %v2251_v50 = vpop.f32.mrb[3].mxu0  ;;  %v2734_v51 = vadd.f32 %v2733_v31, %v2247_v26  ;;  %v2737_v52 = vadd.f32 %v2079_v49, %v547_v42 }
 0x22e   : > { %v2254_v53 = vmax.f32 %v2732_v33, 0.0  ;;  %v2736_v54 = vadd.f32 %v2735_v48, %v2249_v32 }
 0x22f   : > { %v2255_v55 = vmax.f32 %v2734_v51, 0.0  ;;  %v2738_v56 = vadd.f32 %v2737_v52, %v2251_v50  ;;  %2278 = sbr.rel (!%p3899_p11) target bundleno = 574 (0x23e), region = 44 }
 0x230   : > { %v2256_v57 = vmax.f32 %v2736_v54, 0.0 }
 0x231   : > { %v2728_v58 = vpack.c.bf16 %v2255_v55, %v2254_v53  ;;  %v2257_v59 = vmax.f32 %v2738_v56, 0.0 }
 0x233   : > { %2270 = vst [vmem:[%s254_s20] sm:$0xff] %v2728_v58  ;;  %v2729_v60 = vpack.c.bf16 %v2257_v59, %v2256_v57 }
 0x235   : > { %2271 = vst [vmem:[%s254_s20 + $0x8] sm:$0xff] %v2729_v60 }
 0x23a   : > { %v2314_v61 = vld [vmem:[%s254_s20] sm:$0xff] }
 0x23b   : > { %2315 = vst [vmem:[%s2284_s4] sm:$0xff] %v2314_v61 }
 0x23c   : > { %v2316_v62 = vld [vmem:[%s254_s20 + $0x8] sm:$0xff] }
 0x23d   : > { %2317 = vst [vmem:[%s2284_s4 + $0x20] sm:$0xff] %v2316_v62 }
 0x23e PF: > { %s19_s17 = sadd.s32 1, %s3324_s17   ;;  %s3900_s12 = smov %s3308_s13 }
 0x23f   : > { %p16_p0 = scmp.ge.s32.totalorder %s19_s17, 6   ;;  %s3901_s13 = smov %s3312_s14 }
 0x240   : > { %s3902_s14 = smov %s3399_s24  ;;  %s3903_s15 = smov %s3320_s16 }
 0x241   : > { %s3904_s16 = smov %s3906_s19  ;;  %18 = sbr.rel (!%p16_p0) target bundleno = 6 (0x6), region = 126 }
 0x248   :  { %2333 = vsyncpa [#allocation3], 1 }
 0x249   :  { %2335 = vsyncpa [#allocation3 + $0x1], 1 }
 0x24a   :  { %2336 = vsyncpa [#allocation5], 1 }
 0x24b   :  { %2338 = vsyncpa [#allocation5 + $0x1], 1 }

// kernel: decoder_forward.8
= control target key start
LH: loop header
LB: loop body
LE: loop exit
PB: predicated region body
PF: predicated region fallthrough
CT: control target
= control target key end

     0   :  { %s4443_s12 = smov 0   ;;  %s4445_s13 = smov 0   ;;  %s5439_s0 = inlined_call_operand.vmem [shape: bf16[24,2048], index: 0, kind: input, shape index: {}]   ;;  %s5440_s1 = inlined_call_operand.vmem [shape: bf16[2048,1024], index: 1, kind: input, shape index: {}]   ;;  %s5441_s2 = inlined_call_operand.vmem [shape: f32[1,1024], index: 2, kind: input, shape index: {}]   ;;  %s5442_s3 = inlined_call_operand.vmem [shape: bf16[24,1024], index: 3, kind: output, shape index: {}]  }
   0x1   :  { %s4447_s14 = smov 0   ;;  %s4449_s15 = smov 0  }
   0x2   :  { %s4451_s16 = smov 0  }
   0x3 LB: > { %s22_s17 = sadd.s32 1, %s4417_s15  ;;  %s3571_s18 = sadd.s32 4294967295, %s4421_s16   ;;  %s4421_s16 = sphi %s4451_s16, %s13_s16   ;;  %s4417_s15 = sphi %s4449_s15, %s5447_s15   ;;  %s4413_s14 = sphi %s4447_s14, %s5446_s14   ;;  %s4409_s13 = sphi %s4445_s13, %s5445_s13   ;;  %s4405_s12 = sphi %s4443_s12, %s5444_s12  }
   0x4   : > { %p23_p0 = scmp.ge.s32.totalorder %s22_s17, 4  ;;  %p65_p1 = scmp.ne.s32.totalorder %s4409_s13, %s4405_s12 }
   0x5   : > { %p66_p2 = scmp.eq.s32.totalorder %s4421_s16, 0  ;;  %p123_p4 = scmp.eq.s32.totalorder %s3571_s18, 3 }
   0x6   : > { %s5449_s17 = smov (%p23_p0, %s22_s17), 0  ;;  %s58_s20 = sadd.s32 1, %s4409_s13 }
   0x7   : > { %p67_p3 = por %p66_p2, %p65_p1  ;;  %s55_s19 = ssub.s32 %s4417_s15, %s5449_s17 }
   0x8   : > { %p56_p5 = scmp.eq.s32.totalorder %s55_s19, 0  ;;  %p4478_p6 = por %p123_p4, %p65_p1 }
   0x9   : > { %p3575_p7 = scmp.ge.s32.totalorder %s4421_s16, 4 }
   0xa   : > { %s4483_s22 = scalar_select %p56_p5, %s4409_s13, %s58_s20  }
   0xb   : > { %155 = sbr.rel (%p3575_p7) target bundleno = 278 (0x116), region = 20 }
  0x12   : > { %158 = sbr.rel (!%p67_p3) target bundleno = 278 (0x116), region = 24  ;;  %s160_s23 = sand.u32 (%p67_p3), 1, %s4409_s13  }
  0x13   : > { %s3877_s24 = sshll.u32 (%p67_p3), %s4417_s15, 3  ;;  %s3576_s25 = sshll.u32 (%p67_p3), %s160_s23, 11 }
  0x14   : > { %s4491_s28 = scalar_lea.vmem (%p67_p3), %s5440_s1, %s3877_s24  ;;  %s4496_s29 = scalar_lea.vmem (%p67_p3), [#allocation2], %s3576_s25 }
  0x15   : > { %v703_v0 = vld [vmem:[%s4491_s28] sm:$0xff] (%p67_p3) }
  0x16   : > { %v705_v1 = vld [vmem:[%s4491_s28 + $0x20] sm:$0xff] (%p67_p3)  ;;  %704 = vst [vmem:[%s4496_s29] sm:$0xff] (%p67_p3), %v703_v0 }
  0x17   : > { %v707_v2 = vld [vmem:[%s4491_s28 + $0x40] sm:$0xff] (%p67_p3)  ;;  %706 = vst [vmem:[%s4496_s29 + $0x8] sm:$0xff] (%p67_p3), %v705_v1 }
  0x18   : > { %708 = vst [vmem:[%s4496_s29 + $0x10] sm:$0xff] (%p67_p3), %v707_v2  ;;  %v709_v3 = vld [vmem:[%s4491_s28 + $0x60] sm:$0xff] (%p67_p3) }
  0x19   : > { %v711_v4 = vld [vmem:[%s4491_s28 + $0x80] sm:$0xff]  ;;  %710 = vst [vmem:[%s4496_s29 + $0x18] sm:$0xff] %v709_v3 }
  0x1a   : > { %v713_v5 = vld [vmem:[%s4491_s28 + $0xa0] sm:$0xff]  ;;  %712 = vst [vmem:[%s4496_s29 + $0x20] sm:$0xff] %v711_v4 }
  0x1b   : > { %714 = vst [vmem:[%s4496_s29 + $0x28] sm:$0xff] %v713_v5  ;;  %v715_v6 = vld [vmem:[%s4491_s28 + $0xc0] sm:$0xff] }
  0x1c   : > { %v717_v7 = vld [vmem:[%s4491_s28 + $0xe0] sm:$0xff]  ;;  %716 = vst [vmem:[%s4496_s29 + $0x30] sm:$0xff] %v715_v6 }
  0x1d   : > { %v719_v8 = vld [vmem:[%s4491_s28 + $0x100] sm:$0xff]  ;;  %718 = vst [vmem:[%s4496_s29 + $0x38] sm:$0xff] %v717_v7 }
  0x1e   : > { %720 = vst [vmem:[%s4496_s29 + $0x40] sm:$0xff] %v719_v8  ;;  %v721_v9 = vld [vmem:[%s4491_s28 + $0x120] sm:$0xff] }
  0x1f   : > { %v723_v10 = vld [vmem:[%s4491_s28 + $0x140] sm:$0xff]  ;;  %722 = vst [vmem:[%s4496_s29 + $0x48] sm:$0xff] %v721_v9 }
  0x20   : > { %v725_v11 = vld [vmem:[%s4491_s28 + $0x160] sm:$0xff]  ;;  %724 = vst [vmem:[%s4496_s29 + $0x50] sm:$0xff] %v723_v10 }
  0x21   : > { %726 = vst [vmem:[%s4496_s29 + $0x58] sm:$0xff] %v725_v11  ;;  %v727_v12 = vld [vmem:[%s4491_s28 + $0x180] sm:$0xff] }
  0x22   : > { %v729_v13 = vld [vmem:[%s4491_s28 + $0x1a0] sm:$0xff]  ;;  %728 = vst [vmem:[%s4496_s29 + $0x60] sm:$0xff] %v727_v12 }
  0x23   : > { %v731_v14 = vld [vmem:[%s4491_s28 + $0x1c0] sm:$0xff]  ;;  %730 = vst [vmem:[%s4496_s29 + $0x68] sm:$0xff] %v729_v13 }
  0x24   : > { %732 = vst [vmem:[%s4496_s29 + $0x70] sm:$0xff] %v731_v14  ;;  %v733_v15 = vld [vmem:[%s4491_s28 + $0x1e0] sm:$0xff] }
  0x25   : > { %v735_v16 = vld [vmem:[%s4491_s28 + $0x200] sm:$0xff]  ;;  %734 = vst [vmem:[%s4496_s29 + $0x78] sm:$0xff] %v733_v15 }
  0x26   : > { %v737_v17 = vld [vmem:[%s4491_s28 + $0x220] sm:$0xff]  ;;  %736 = vst [vmem:[%s4496_s29 + $0x80] sm:$0xff] %v735_v16 }
  0x27   : > { %738 = vst [vmem:[%s4496_s29 + $0x88] sm:$0xff] %v737_v17  ;;  %v739_v18 = vld [vmem:[%s4491_s28 + $0x240] sm:$0xff] }
  0x28   : > { %v741_v19 = vld [vmem:[%s4491_s28 + $0x260] sm:$0xff]  ;;  %740 = vst [vmem:[%s4496_s29 + $0x90] sm:$0xff] %v739_v18 }
  0x29   : > { %v743_v20 = vld [vmem:[%s4491_s28 + $0x280] sm:$0xff]  ;;  %742 = vst [vmem:[%s4496_s29 + $0x98] sm:$0xff] %v741_v19 }
  0x2a   : > { %744 = vst [vmem:[%s4496_s29 + $0xa0] sm:$0xff] %v743_v20  ;;  %v745_v21 = vld [vmem:[%s4491_s28 + $0x2a0] sm:$0xff] }
  0x2b   : > { %v747_v22 = vld [vmem:[%s4491_s28 + $0x2c0] sm:$0xff]  ;;  %746 = vst [vmem:[%s4496_s29 + $0xa8] sm:$0xff] %v745_v21 }
  0x2c   : > { %v749_v23 = vld [vmem:[%s4491_s28 + $0x2e0] sm:$0xff]  ;;  %748 = vst [vmem:[%s4496_s29 + $0xb0] sm:$0xff] %v747_v22 }
  0x2d   : > { %750 = vst [vmem:[%s4496_s29 + $0xb8] sm:$0xff] %v749_v23  ;;  %v751_v24 = vld [vmem:[%s4491_s28 + $0x300] sm:$0xff] }
  0x2e   : > { %v753_v25 = vld [vmem:[%s4491_s28 + $0x320] sm:$0xff]  ;;  %752 = vst [vmem:[%s4496_s29 + $0xc0] sm:$0xff] %v751_v24 }
  0x2f   : > { %v755_v26 = vld [vmem:[%s4491_s28 + $0x340] sm:$0xff]  ;;  %754 = vst [vmem:[%s4496_s29 + $0xc8] sm:$0xff] %v753_v25 }
  0x30   : > { %756 = vst [vmem:[%s4496_s29 + $0xd0] sm:$0xff] %v755_v26  ;;  %v757_v27 = vld [vmem:[%s4491_s28 + $0x360] sm:$0xff] }
  0x31   : > { %v759_v28 = vld [vmem:[%s4491_s28 + $0x380] sm:$0xff]  ;;  %758 = vst [vmem:[%s4496_s29 + $0xd8] sm:$0xff] %v757_v27 }
  0x32   : > { %v761_v29 = vld [vmem:[%s4491_s28 + $0x3a0] sm:$0xff]  ;;  %760 = vst [vmem:[%s4496_s29 + $0xe0] sm:$0xff] %v759_v28 }
  0x33   : > { %762 = vst [vmem:[%s4496_s29 + $0xe8] sm:$0xff] %v761_v29  ;;  %v763_v30 = vld [vmem:[%s4491_s28 + $0x3c0] sm:$0xff] }
  0x34   : > { %v765_v31 = vld [vmem:[%s4491_s28 + $0x3e0] sm:$0xff]  ;;  %764 = vst [vmem:[%s4496_s29 + $0xf0] sm:$0xff] %v763_v30 }
  0x35   : > { %v767_v32 = vld [vmem:[%s4491_s28 + $0x400] sm:$0xff]  ;;  %766 = vst [vmem:[%s4496_s29 + $0xf8] sm:$0xff] %v765_v31 }
  0x36   : > { %768 = vst [vmem:[%s4496_s29 + $0x100] sm:$0xff] %v767_v32  ;;  %v769_v33 = vld [vmem:[%s4491_s28 + $0x420] sm:$0xff] }
  0x37   : > { %v771_v34 = vld [vmem:[%s4491_s28 + $0x440] sm:$0xff]  ;;  %770 = vst [vmem:[%s4496_s29 + $0x108] sm:$0xff] %v769_v33 }
  0x38   : > { %v773_v35 = vld [vmem:[%s4491_s28 + $0x460] sm:$0xff]  ;;  %772 = vst [vmem:[%s4496_s29 + $0x110] sm:$0xff] %v771_v34 }
  0x39   : > { %774 = vst [vmem:[%s4496_s29 + $0x118] sm:$0xff] %v773_v35  ;;  %v775_v36 = vld [vmem:[%s4491_s28 + $0x480] sm:$0xff] }
  0x3a   : > { %v777_v37 = vld [vmem:[%s4491_s28 + $0x4a0] sm:$0xff]  ;;  %776 = vst [vmem:[%s4496_s29 + $0x120] sm:$0xff] %v775_v36 }
  0x3b   : > { %v779_v38 = vld [vmem:[%s4491_s28 + $0x4c0] sm:$0xff]  ;;  %778 = vst [vmem:[%s4496_s29 + $0x128] sm:$0xff] %v777_v37 }
  0x3c   : > { %780 = vst [vmem:[%s4496_s29 + $0x130] sm:$0xff] %v779_v38  ;;  %v781_v39 = vld [vmem:[%s4491_s28 + $0x4e0] sm:$0xff] }
  0x3d   : > { %v783_v40 = vld [vmem:[%s4491_s28 + $0x500] sm:$0xff]  ;;  %782 = vst [vmem:[%s4496_s29 + $0x138] sm:$0xff] %v781_v39 }
  0x3e   : > { %v785_v41 = vld [vmem:[%s4491_s28 + $0x520] sm:$0xff]  ;;  %784 = vst [vmem:[%s4496_s29 + $0x140] sm:$0xff] %v783_v40 }
  0x3f   : > { %786 = vst [vmem:[%s4496_s29 + $0x148] sm:$0xff] %v785_v41  ;;  %v787_v42 = vld [vmem:[%s4491_s28 + $0x540] sm:$0xff] }
  0x40   : > { %v789_v43 = vld [vmem:[%s4491_s28 + $0x560] sm:$0xff]  ;;  %788 = vst [vmem:[%s4496_s29 + $0x150] sm:$0xff] %v787_v42 }
  0x41   : > { %v791_v44 = vld [vmem:[%s4491_s28 + $0x580] sm:$0xff]  ;;  %790 = vst [vmem:[%s4496_s29 + $0x158] sm:$0xff] %v789_v43 }
  0x42   : > { %792 = vst [vmem:[%s4496_s29 + $0x160] sm:$0xff] %v791_v44  ;;  %v793_v45 = vld [vmem:[%s4491_s28 + $0x5a0] sm:$0xff] }
  0x43   : > { %v795_v46 = vld [vmem:[%s4491_s28 + $0x5c0] sm:$0xff]  ;;  %794 = vst [vmem:[%s4496_s29 + $0x168] sm:$0xff] %v793_v45 }
  0x44   : > { %v797_v47 = vld [vmem:[%s4491_s28 + $0x5e0] sm:$0xff]  ;;  %796 = vst [vmem:[%s4496_s29 + $0x170] sm:$0xff] %v795_v46 }
  0x45   : > { %798 = vst [vmem:[%s4496_s29 + $0x178] sm:$0xff] %v797_v47  ;;  %v799_v48 = vld [vmem:[%s4491_s28 + $0x600] sm:$0xff] }
  0x46   : > { %v801_v49 = vld [vmem:[%s4491_s28 + $0x620] sm:$0xff]  ;;  %800 = vst [vmem:[%s4496_s29 + $0x180] sm:$0xff] %v799_v48 }
  0x47   : > { %v803_v50 = vld [vmem:[%s4491_s28 + $0x640] sm:$0xff]  ;;  %802 = vst [vmem:[%s4496_s29 + $0x188] sm:$0xff] %v801_v49 }
  0x48   : > { %804 = vst [vmem:[%s4496_s29 + $0x190] sm:$0xff] %v803_v50  ;;  %v805_v51 = vld [vmem:[%s4491_s28 + $0x660] sm:$0xff] }
  0x49   : > { %v807_v52 = vld [vmem:[%s4491_s28 + $0x680] sm:$0xff]  ;;  %806 = vst [vmem:[%s4496_s29 + $0x198] sm:$0xff] %v805_v51 }
  0x4a   : > { %v809_v53 = vld [vmem:[%s4491_s28 + $0x6a0] sm:$0xff]  ;;  %808 = vst [vmem:[%s4496_s29 + $0x1a0] sm:$0xff] %v807_v52 }
  0x4b   : > { %810 = vst [vmem:[%s4496_s29 + $0x1a8] sm:$0xff] %v809_v53  ;;  %v811_v54 = vld [vmem:[%s4491_s28 + $0x6c0] sm:$0xff] }
  0x4c   : > { %v813_v55 = vld [vmem:[%s4491_s28 + $0x6e0] sm:$0xff]  ;;  %812 = vst [vmem:[%s4496_s29 + $0x1b0] sm:$0xff] %v811_v54 }
  0x4d   : > { %v815_v56 = vld [vmem:[%s4491_s28 + $0x700] sm:$0xff]  ;;  %814 = vst [vmem:[%s4496_s29 + $0x1b8] sm:$0xff] %v813_v55 }
  0x4e   : > { %816 = vst [vmem:[%s4496_s29 + $0x1c0] sm:$0xff] %v815_v56  ;;  %v817_v57 = vld [vmem:[%s4491_s28 + $0x720] sm:$0xff] }
  0x4f   : > { %v819_v58 = vld [vmem:[%s4491_s28 + $0x740] sm:$0xff]  ;;  %818 = vst [vmem:[%s4496_s29 + $0x1c8] sm:$0xff] %v817_v57 }
  0x50   : > { %v821_v59 = vld [vmem:[%s4491_s28 + $0x760] sm:$0xff]  ;;  %820 = vst [vmem:[%s4496_s29 + $0x1d0] sm:$0xff] %v819_v58 }
  0x51   : > { %822 = vst [vmem:[%s4496_s29 + $0x1d8] sm:$0xff] %v821_v59  ;;  %v823_v60 = vld [vmem:[%s4491_s28 + $0x780] sm:$0xff] }
  0x52   : > { %v825_v61 = vld [vmem:[%s4491_s28 + $0x7a0] sm:$0xff]  ;;  %824 = vst [vmem:[%s4496_s29 + $0x1e0] sm:$0xff] %v823_v60 }
  0x53   : > { %v827_v62 = vld [vmem:[%s4491_s28 + $0x7c0] sm:$0xff]  ;;  %826 = vst [vmem:[%s4496_s29 + $0x1e8] sm:$0xff] %v825_v61 }
  0x54   : > { %828 = vst [vmem:[%s4496_s29 + $0x1f0] sm:$0xff] %v827_v62  ;;  %v829_v63 = vld [vmem:[%s4491_s28 + $0x7e0] sm:$0xff] }
  0x55   : > { %v831_v0 = vld [vmem:[%s4491_s28 + $0x800] sm:$0xff]  ;;  %830 = vst [vmem:[%s4496_s29 + $0x1f8] sm:$0xff] %v829_v63 }
  0x56   : > { %v833_v1 = vld [vmem:[%s4491_s28 + $0x820] sm:$0xff]  ;;  %832 = vst [vmem:[%s4496_s29 + $0x200] sm:$0xff] %v831_v0 }
  0x57   : > { %834 = vst [vmem:[%s4496_s29 + $0x208] sm:$0xff] %v833_v1  ;;  %v835_v2 = vld [vmem:[%s4491_s28 + $0x840] sm:$0xff] }
  0x58   : > { %v837_v3 = vld [vmem:[%s4491_s28 + $0x860] sm:$0xff]  ;;  %836 = vst [vmem:[%s4496_s29 + $0x210] sm:$0xff] %v835_v2 }
  0x59   : > { %v839_v4 = vld [vmem:[%s4491_s28 + $0x880] sm:$0xff]  ;;  %838 = vst [vmem:[%s4496_s29 + $0x218] sm:$0xff] %v837_v3 }
  0x5a   : > { %840 = vst [vmem:[%s4496_s29 + $0x220] sm:$0xff] %v839_v4  ;;  %v841_v5 = vld [vmem:[%s4491_s28 + $0x8a0] sm:$0xff] }
  0x5b   : > { %v843_v6 = vld [vmem:[%s4491_s28 + $0x8c0] sm:$0xff]  ;;  %842 = vst [vmem:[%s4496_s29 + $0x228] sm:$0xff] %v841_v5 }
  0x5c   : > { %v845_v7 = vld [vmem:[%s4491_s28 + $0x8e0] sm:$0xff]  ;;  %844 = vst [vmem:[%s4496_s29 + $0x230] sm:$0xff] %v843_v6 }
  0x5d   : > { %846 = vst [vmem:[%s4496_s29 + $0x238] sm:$0xff] %v845_v7  ;;  %v847_v8 = vld [vmem:[%s4491_s28 + $0x900] sm:$0xff] }
  0x5e   : > { %v849_v9 = vld [vmem:[%s4491_s28 + $0x920] sm:$0xff]  ;;  %848 = vst [vmem:[%s4496_s29 + $0x240] sm:$0xff] %v847_v8 }
  0x5f   : > { %v851_v10 = vld [vmem:[%s4491_s28 + $0x940] sm:$0xff]  ;;  %850 = vst [vmem:[%s4496_s29 + $0x248] sm:$0xff] %v849_v9 }
  0x60   : > { %852 = vst [vmem:[%s4496_s29 + $0x250] sm:$0xff] %v851_v10  ;;  %v853_v11 = vld [vmem:[%s4491_s28 + $0x960] sm:$0xff] }
  0x61   : > { %v855_v12 = vld [vmem:[%s4491_s28 + $0x980] sm:$0xff]  ;;  %854 = vst [vmem:[%s4496_s29 + $0x258] sm:$0xff] %v853_v11 }
  0x62   : > { %v857_v13 = vld [vmem:[%s4491_s28 + $0x9a0] sm:$0xff]  ;;  %856 = vst [vmem:[%s4496_s29 + $0x260] sm:$0xff] %v855_v12 }
  0x63   : > { %858 = vst [vmem:[%s4496_s29 + $0x268] sm:$0xff] %v857_v13  ;;  %v859_v14 = vld [vmem:[%s4491_s28 + $0x9c0] sm:$0xff] }
  0x64   : > { %v861_v15 = vld [vmem:[%s4491_s28 + $0x9e0] sm:$0xff]  ;;  %860 = vst [vmem:[%s4496_s29 + $0x270] sm:$0xff] %v859_v14 }
  0x65   : > { %v863_v16 = vld [vmem:[%s4491_s28 + $0xa00] sm:$0xff]  ;;  %862 = vst [vmem:[%s4496_s29 + $0x278] sm:$0xff] %v861_v15 }
  0x66   : > { %864 = vst [vmem:[%s4496_s29 + $0x280] sm:$0xff] %v863_v16  ;;  %v865_v17 = vld [vmem:[%s4491_s28 + $0xa20] sm:$0xff] }
  0x67   : > { %v867_v18 = vld [vmem:[%s4491_s28 + $0xa40] sm:$0xff]  ;;  %866 = vst [vmem:[%s4496_s29 + $0x288] sm:$0xff] %v865_v17 }
  0x68   : > { %v869_v19 = vld [vmem:[%s4491_s28 + $0xa60] sm:$0xff]  ;;  %868 = vst [vmem:[%s4496_s29 + $0x290] sm:$0xff] %v867_v18 }
  0x69   : > { %870 = vst [vmem:[%s4496_s29 + $0x298] sm:$0xff] %v869_v19  ;;  %v871_v20 = vld [vmem:[%s4491_s28 + $0xa80] sm:$0xff] }
  0x6a   : > { %v873_v21 = vld [vmem:[%s4491_s28 + $0xaa0] sm:$0xff]  ;;  %872 = vst [vmem:[%s4496_s29 + $0x2a0] sm:$0xff] %v871_v20 }
  0x6b   : > { %v875_v22 = vld [vmem:[%s4491_s28 + $0xac0] sm:$0xff]  ;;  %874 = vst [vmem:[%s4496_s29 + $0x2a8] sm:$0xff] %v873_v21 }
  0x6c   : > { %876 = vst [vmem:[%s4496_s29 + $0x2b0] sm:$0xff] %v875_v22  ;;  %v877_v23 = vld [vmem:[%s4491_s28 + $0xae0] sm:$0xff] }
  0x6d   : > { %v879_v24 = vld [vmem:[%s4491_s28 + $0xb00] sm:$0xff]  ;;  %878 = vst [vmem:[%s4496_s29 + $0x2b8] sm:$0xff] %v877_v23 }
  0x6e   : > { %v881_v25 = vld [vmem:[%s4491_s28 + $0xb20] sm:$0xff]  ;;  %880 = vst [vmem:[%s4496_s29 + $0x2c0] sm:$0xff] %v879_v24 }
  0x6f   : > { %882 = vst [vmem:[%s4496_s29 + $0x2c8] sm:$0xff] %v881_v25  ;;  %v883_v26 = vld [vmem:[%s4491_s28 + $0xb40] sm:$0xff] }
  0x70   : > { %v885_v27 = vld [vmem:[%s4491_s28 + $0xb60] sm:$0xff]  ;;  %884 = vst [vmem:[%s4496_s29 + $0x2d0] sm:$0xff] %v883_v26 }
  0x71   : > { %v887_v28 = vld [vmem:[%s4491_s28 + $0xb80] sm:$0xff]  ;;  %886 = vst [vmem:[%s4496_s29 + $0x2d8] sm:$0xff] %v885_v27 }
  0x72   : > { %888 = vst [vmem:[%s4496_s29 + $0x2e0] sm:$0xff] %v887_v28  ;;  %v889_v29 = vld [vmem:[%s4491_s28 + $0xba0] sm:$0xff] }
  0x73   : > { %v891_v30 = vld [vmem:[%s4491_s28 + $0xbc0] sm:$0xff]  ;;  %890 = vst [vmem:[%s4496_s29 + $0x2e8] sm:$0xff] %v889_v29 }
  0x74   : > { %v893_v31 = vld [vmem:[%s4491_s28 + $0xbe0] sm:$0xff]  ;;  %892 = vst [vmem:[%s4496_s29 + $0x2f0] sm:$0xff] %v891_v30 }
  0x75   : > { %894 = vst [vmem:[%s4496_s29 + $0x2f8] sm:$0xff] %v893_v31  ;;  %v895_v32 = vld [vmem:[%s4491_s28 + $0xc00] sm:$0xff] }
  0x76   : > { %v897_v33 = vld [vmem:[%s4491_s28 + $0xc20] sm:$0xff]  ;;  %896 = vst [vmem:[%s4496_s29 + $0x300] sm:$0xff] %v895_v32 }
  0x77   : > { %v899_v34 = vld [vmem:[%s4491_s28 + $0xc40] sm:$0xff]  ;;  %898 = vst [vmem:[%s4496_s29 + $0x308] sm:$0xff] %v897_v33 }
  0x78   : > { %900 = vst [vmem:[%s4496_s29 + $0x310] sm:$0xff] %v899_v34  ;;  %v901_v35 = vld [vmem:[%s4491_s28 + $0xc60] sm:$0xff] }
  0x79   : > { %v903_v36 = vld [vmem:[%s4491_s28 + $0xc80] sm:$0xff]  ;;  %902 = vst [vmem:[%s4496_s29 + $0x318] sm:$0xff] %v901_v35 }
  0x7a   : > { %v905_v37 = vld [vmem:[%s4491_s28 + $0xca0] sm:$0xff]  ;;  %904 = vst [vmem:[%s4496_s29 + $0x320] sm:$0xff] %v903_v36 }
  0x7b   : > { %906 = vst [vmem:[%s4496_s29 + $0x328] sm:$0xff] %v905_v37  ;;  %v907_v38 = vld [vmem:[%s4491_s28 + $0xcc0] sm:$0xff] }
  0x7c   : > { %v909_v39 = vld [vmem:[%s4491_s28 + $0xce0] sm:$0xff]  ;;  %908 = vst [vmem:[%s4496_s29 + $0x330] sm:$0xff] %v907_v38 }
  0x7d   : > { %v911_v40 = vld [vmem:[%s4491_s28 + $0xd00] sm:$0xff]  ;;  %910 = vst [vmem:[%s4496_s29 + $0x338] sm:$0xff] %v909_v39 }
  0x7e   : > { %912 = vst [vmem:[%s4496_s29 + $0x340] sm:$0xff] %v911_v40  ;;  %v913_v41 = vld [vmem:[%s4491_s28 + $0xd20] sm:$0xff] }
  0x7f   : > { %v915_v42 = vld [vmem:[%s4491_s28 + $0xd40] sm:$0xff]  ;;  %914 = vst [vmem:[%s4496_s29 + $0x348] sm:$0xff] %v913_v41 }
  0x80   : > { %v917_v43 = vld [vmem:[%s4491_s28 + $0xd60] sm:$0xff]  ;;  %916 = vst [vmem:[%s4496_s29 + $0x350] sm:$0xff] %v915_v42 }
  0x81   : > { %918 = vst [vmem:[%s4496_s29 + $0x358] sm:$0xff] %v917_v43  ;;  %v919_v44 = vld [vmem:[%s4491_s28 + $0xd80] sm:$0xff] }
  0x82   : > { %v921_v45 = vld [vmem:[%s4491_s28 + $0xda0] sm:$0xff]  ;;  %920 = vst [vmem:[%s4496_s29 + $0x360] sm:$0xff] %v919_v44 }
  0x83   : > { %v923_v46 = vld [vmem:[%s4491_s28 + $0xdc0] sm:$0xff]  ;;  %922 = vst [vmem:[%s4496_s29 + $0x368] sm:$0xff] %v921_v45 }
  0x84   : > { %924 = vst [vmem:[%s4496_s29 + $0x370] sm:$0xff] %v923_v46  ;;  %v925_v47 = vld [vmem:[%s4491_s28 + $0xde0] sm:$0xff] }
  0x85   : > { %v927_v48 = vld [vmem:[%s4491_s28 + $0xe00] sm:$0xff]  ;;  %926 = vst [vmem:[%s4496_s29 + $0x378] sm:$0xff] %v925_v47 }
  0x86   : > { %v929_v49 = vld [vmem:[%s4491_s28 + $0xe20] sm:$0xff]  ;;  %928 = vst [vmem:[%s4496_s29 + $0x380] sm:$0xff] %v927_v48 }
  0x87   : > { %930 = vst [vmem:[%s4496_s29 + $0x388] sm:$0xff] %v929_v49  ;;  %v931_v50 = vld [vmem:[%s4491_s28 + $0xe40] sm:$0xff] }
  0x88   : > { %v933_v51 = vld [vmem:[%s4491_s28 + $0xe60] sm:$0xff]  ;;  %932 = vst [vmem:[%s4496_s29 + $0x390] sm:$0xff] %v931_v50 }
  0x89   : > { %v935_v52 = vld [vmem:[%s4491_s28 + $0xe80] sm:$0xff]  ;;  %934 = vst [vmem:[%s4496_s29 + $0x398] sm:$0xff] %v933_v51 }
  0x8a   : > { %936 = vst [vmem:[%s4496_s29 + $0x3a0] sm:$0xff] %v935_v52  ;;  %v937_v53 = vld [vmem:[%s4491_s28 + $0xea0] sm:$0xff] }
  0x8b   : > { %v939_v54 = vld [vmem:[%s4491_s28 + $0xec0] sm:$0xff]  ;;  %938 = vst [vmem:[%s4496_s29 + $0x3a8] sm:$0xff] %v937_v53 }
  0x8c   : > { %v941_v55 = vld [vmem:[%s4491_s28 + $0xee0] sm:$0xff]  ;;  %940 = vst [vmem:[%s4496_s29 + $0x3b0] sm:$0xff] %v939_v54 }
  0x8d   : > { %942 = vst [vmem:[%s4496_s29 + $0x3b8] sm:$0xff] %v941_v55  ;;  %v943_v56 = vld [vmem:[%s4491_s28 + $0xf00] sm:$0xff] }
  0x8e   : > { %v945_v57 = vld [vmem:[%s4491_s28 + $0xf20] sm:$0xff]  ;;  %944 = vst [vmem:[%s4496_s29 + $0x3c0] sm:$0xff] %v943_v56 }
  0x8f   : > { %v947_v58 = vld [vmem:[%s4491_s28 + $0xf40] sm:$0xff]  ;;  %946 = vst [vmem:[%s4496_s29 + $0x3c8] sm:$0xff] %v945_v57 }
  0x90   : > { %948 = vst [vmem:[%s4496_s29 + $0x3d0] sm:$0xff] %v947_v58  ;;  %v949_v59 = vld [vmem:[%s4491_s28 + $0xf60] sm:$0xff] }
  0x91   : > { %v951_v60 = vld [vmem:[%s4491_s28 + $0xf80] sm:$0xff]  ;;  %950 = vst [vmem:[%s4496_s29 + $0x3d8] sm:$0xff] %v949_v59 }
  0x92   : > { %v953_v61 = vld [vmem:[%s4491_s28 + $0xfa0] sm:$0xff]  ;;  %952 = vst [vmem:[%s4496_s29 + $0x3e0] sm:$0xff] %v951_v60 }
  0x93   : > { %954 = vst [vmem:[%s4496_s29 + $0x3e8] sm:$0xff] %v953_v61  ;;  %v955_v62 = vld [vmem:[%s4491_s28 + $0xfc0] sm:$0xff] }
  0x94   : > { %v957_v63 = vld [vmem:[%s4491_s28 + $0xfe0] sm:$0xff]  ;;  %956 = vst [vmem:[%s4496_s29 + $0x3f0] sm:$0xff] %v955_v62 }
  0x95   : > { %v959_v0 = vld [vmem:[%s4491_s28 + $0x1000] sm:$0xff]  ;;  %958 = vst [vmem:[%s4496_s29 + $0x3f8] sm:$0xff] %v957_v63 }
  0x96   : > { %960 = vst [vmem:[%s4496_s29 + $0x400] sm:$0xff] %v959_v0  ;;  %v961_v1 = vld [vmem:[%s4491_s28 + $0x1020] sm:$0xff] }
  0x97   : > { %v963_v2 = vld [vmem:[%s4491_s28 + $0x1040] sm:$0xff]  ;;  %962 = vst [vmem:[%s4496_s29 + $0x408] sm:$0xff] %v961_v1 }
  0x98   : > { %v965_v3 = vld [vmem:[%s4491_s28 + $0x1060] sm:$0xff]  ;;  %964 = vst [vmem:[%s4496_s29 + $0x410] sm:$0xff] %v963_v2 }
  0x99   : > { %966 = vst [vmem:[%s4496_s29 + $0x418] sm:$0xff] %v965_v3  ;;  %v967_v4 = vld [vmem:[%s4491_s28 + $0x1080] sm:$0xff] }
  0x9a   : > { %v969_v5 = vld [vmem:[%s4491_s28 + $0x10a0] sm:$0xff]  ;;  %968 = vst [vmem:[%s4496_s29 + $0x420] sm:$0xff] %v967_v4 }
  0x9b   : > { %v971_v6 = vld [vmem:[%s4491_s28 + $0x10c0] sm:$0xff]  ;;  %970 = vst [vmem:[%s4496_s29 + $0x428] sm:$0xff] %v969_v5 }
  0x9c   : > { %972 = vst [vmem:[%s4496_s29 + $0x430] sm:$0xff] %v971_v6  ;;  %v973_v7 = vld [vmem:[%s4491_s28 + $0x10e0] sm:$0xff] }
  0x9d   : > { %v975_v8 = vld [vmem:[%s4491_s28 + $0x1100] sm:$0xff]  ;;  %974 = vst [vmem:[%s4496_s29 + $0x438] sm:$0xff] %v973_v7 }
  0x9e   : > { %v977_v9 = vld [vmem:[%s4491_s28 + $0x1120] sm:$0xff]  ;;  %976 = vst [vmem:[%s4496_s29 + $0x440] sm:$0xff] %v975_v8 }
  0x9f   : > { %978 = vst [vmem:[%s4496_s29 + $0x448] sm:$0xff] %v977_v9  ;;  %v979_v10 = vld [vmem:[%s4491_s28 + $0x1140] sm:$0xff] }
  0xa0   : > { %v981_v11 = vld [vmem:[%s4491_s28 + $0x1160] sm:$0xff]  ;;  %980 = vst [vmem:[%s4496_s29 + $0x450] sm:$0xff] %v979_v10 }
  0xa1   : > { %v983_v12 = vld [vmem:[%s4491_s28 + $0x1180] sm:$0xff]  ;;  %982 = vst [vmem:[%s4496_s29 + $0x458] sm:$0xff] %v981_v11 }
  0xa2   : > { %984 = vst [vmem:[%s4496_s29 + $0x460] sm:$0xff] %v983_v12  ;;  %v985_v13 = vld [vmem:[%s4491_s28 + $0x11a0] sm:$0xff] }
  0xa3   : > { %v987_v14 = vld [vmem:[%s4491_s28 + $0x11c0] sm:$0xff]  ;;  %986 = vst [vmem:[%s4496_s29 + $0x468] sm:$0xff] %v985_v13 }
  0xa4   : > { %v989_v15 = vld [vmem:[%s4491_s28 + $0x11e0] sm:$0xff]  ;;  %988 = vst [vmem:[%s4496_s29 + $0x470] sm:$0xff] %v987_v14 }
  0xa5   : > { %990 = vst [vmem:[%s4496_s29 + $0x478] sm:$0xff] %v989_v15  ;;  %v991_v16 = vld [vmem:[%s4491_s28 + $0x1200] sm:$0xff] }
  0xa6   : > { %v993_v17 = vld [vmem:[%s4491_s28 + $0x1220] sm:$0xff]  ;;  %992 = vst [vmem:[%s4496_s29 + $0x480] sm:$0xff] %v991_v16 }
  0xa7   : > { %v995_v18 = vld [vmem:[%s4491_s28 + $0x1240] sm:$0xff]  ;;  %994 = vst [vmem:[%s4496_s29 + $0x488] sm:$0xff] %v993_v17 }
  0xa8   : > { %996 = vst [vmem:[%s4496_s29 + $0x490] sm:$0xff] %v995_v18  ;;  %v997_v19 = vld [vmem:[%s4491_s28 + $0x1260] sm:$0xff] }
  0xa9   : > { %v999_v20 = vld [vmem:[%s4491_s28 + $0x1280] sm:$0xff]  ;;  %998 = vst [vmem:[%s4496_s29 + $0x498] sm:$0xff] %v997_v19 }
  0xaa   : > { %v1001_v21 = vld [vmem:[%s4491_s28 + $0x12a0] sm:$0xff]  ;;  %1000 = vst [vmem:[%s4496_s29 + $0x4a0] sm:$0xff] %v999_v20 }
  0xab   : > { %1002 = vst [vmem:[%s4496_s29 + $0x4a8] sm:$0xff] %v1001_v21  ;;  %v1003_v22 = vld [vmem:[%s4491_s28 + $0x12c0] sm:$0xff] }
  0xac   : > { %v1005_v23 = vld [vmem:[%s4491_s28 + $0x12e0] sm:$0xff]  ;;  %1004 = vst [vmem:[%s4496_s29 + $0x4b0] sm:$0xff] %v1003_v22 }
  0xad   : > { %v1007_v24 = vld [vmem:[%s4491_s28 + $0x1300] sm:$0xff]  ;;  %1006 = vst [vmem:[%s4496_s29 + $0x4b8] sm:$0xff] %v1005_v23 }
  0xae   : > { %1008 = vst [vmem:[%s4496_s29 + $0x4c0] sm:$0xff] %v1007_v24  ;;  %v1009_v25 = vld [vmem:[%s4491_s28 + $0x1320] sm:$0xff] }
  0xaf   : > { %v1011_v26 = vld [vmem:[%s4491_s28 + $0x1340] sm:$0xff]  ;;  %1010 = vst [vmem:[%s4496_s29 + $0x4c8] sm:$0xff] %v1009_v25 }
  0xb0   : > { %v1013_v27 = vld [vmem:[%s4491_s28 + $0x1360] sm:$0xff]  ;;  %1012 = vst [vmem:[%s4496_s29 + $0x4d0] sm:$0xff] %v1011_v26 }
  0xb1   : > { %1014 = vst [vmem:[%s4496_s29 + $0x4d8] sm:$0xff] %v1013_v27  ;;  %v1015_v28 = vld [vmem:[%s4491_s28 + $0x1380] sm:$0xff] }
  0xb2   : > { %v1017_v29 = vld [vmem:[%s4491_s28 + $0x13a0] sm:$0xff]  ;;  %1016 = vst [vmem:[%s4496_s29 + $0x4e0] sm:$0xff] %v1015_v28 }
  0xb3   : > { %v1019_v30 = vld [vmem:[%s4491_s28 + $0x13c0] sm:$0xff]  ;;  %1018 = vst [vmem:[%s4496_s29 + $0x4e8] sm:$0xff] %v1017_v29 }
  0xb4   : > { %1020 = vst [vmem:[%s4496_s29 + $0x4f0] sm:$0xff] %v1019_v30  ;;  %v1021_v31 = vld [vmem:[%s4491_s28 + $0x13e0] sm:$0xff] }
  0xb5   : > { %v1023_v32 = vld [vmem:[%s4491_s28 + $0x1400] sm:$0xff]  ;;  %1022 = vst [vmem:[%s4496_s29 + $0x4f8] sm:$0xff] %v1021_v31 }
  0xb6   : > { %v1025_v33 = vld [vmem:[%s4491_s28 + $0x1420] sm:$0xff]  ;;  %1024 = vst [vmem:[%s4496_s29 + $0x500] sm:$0xff] %v1023_v32 }
  0xb7   : > { %1026 = vst [vmem:[%s4496_s29 + $0x508] sm:$0xff] %v1025_v33  ;;  %v1027_v34 = vld [vmem:[%s4491_s28 + $0x1440] sm:$0xff] }
  0xb8   : > { %v1029_v35 = vld [vmem:[%s4491_s28 + $0x1460] sm:$0xff]  ;;  %1028 = vst [vmem:[%s4496_s29 + $0x510] sm:$0xff] %v1027_v34 }
  0xb9   : > { %v1031_v36 = vld [vmem:[%s4491_s28 + $0x1480] sm:$0xff]  ;;  %1030 = vst [vmem:[%s4496_s29 + $0x518] sm:$0xff] %v1029_v35 }
  0xba   : > { %1032 = vst [vmem:[%s4496_s29 + $0x520] sm:$0xff] %v1031_v36  ;;  %v1033_v37 = vld [vmem:[%s4491_s28 + $0x14a0] sm:$0xff] }
  0xbb   : > { %v1035_v38 = vld [vmem:[%s4491_s28 + $0x14c0] sm:$0xff]  ;;  %1034 = vst [vmem:[%s4496_s29 + $0x528] sm:$0xff] %v1033_v37 }
  0xbc   : > { %v1037_v39 = vld [vmem:[%s4491_s28 + $0x14e0] sm:$0xff]  ;;  %1036 = vst [vmem:[%s4496_s29 + $0x530] sm:$0xff] %v1035_v38 }
  0xbd   : > { %1038 = vst [vmem:[%s4496_s29 + $0x538] sm:$0xff] %v1037_v39  ;;  %v1039_v40 = vld [vmem:[%s4491_s28 + $0x1500] sm:$0xff] }
  0xbe   : > { %v1041_v41 = vld [vmem:[%s4491_s28 + $0x1520] sm:$0xff]  ;;  %1040 = vst [vmem:[%s4496_s29 + $0x540] sm:$0xff] %v1039_v40 }
  0xbf   : > { %v1043_v42 = vld [vmem:[%s4491_s28 + $0x1540] sm:$0xff]  ;;  %1042 = vst [vmem:[%s4496_s29 + $0x548] sm:$0xff] %v1041_v41 }
  0xc0   : > { %1044 = vst [vmem:[%s4496_s29 + $0x550] sm:$0xff] %v1043_v42  ;;  %v1045_v43 = vld [vmem:[%s4491_s28 + $0x1560] sm:$0xff] }
  0xc1   : > { %v1047_v44 = vld [vmem:[%s4491_s28 + $0x1580] sm:$0xff]  ;;  %1046 = vst [vmem:[%s4496_s29 + $0x558] sm:$0xff] %v1045_v43 }
  0xc2   : > { %v1049_v45 = vld [vmem:[%s4491_s28 + $0x15a0] sm:$0xff]  ;;  %1048 = vst [vmem:[%s4496_s29 + $0x560] sm:$0xff] %v1047_v44 }
  0xc3   : > { %1050 = vst [vmem:[%s4496_s29 + $0x568] sm:$0xff] %v1049_v45  ;;  %v1051_v46 = vld [vmem:[%s4491_s28 + $0x15c0] sm:$0xff] }
  0xc4   : > { %v1053_v47 = vld [vmem:[%s4491_s28 + $0x15e0] sm:$0xff]  ;;  %1052 = vst [vmem:[%s4496_s29 + $0x570] sm:$0xff] %v1051_v46 }
  0xc5   : > { %v1055_v48 = vld [vmem:[%s4491_s28 + $0x1600] sm:$0xff]  ;;  %1054 = vst [vmem:[%s4496_s29 + $0x578] sm:$0xff] %v1053_v47 }
  0xc6   : > { %1056 = vst [vmem:[%s4496_s29 + $0x580] sm:$0xff] %v1055_v48  ;;  %v1057_v49 = vld [vmem:[%s4491_s28 + $0x1620] sm:$0xff] }
  0xc7   : > { %v1059_v50 = vld [vmem:[%s4491_s28 + $0x1640] sm:$0xff]  ;;  %1058 = vst [vmem:[%s4496_s29 + $0x588] sm:$0xff] %v1057_v49 }
  0xc8   : > { %v1061_v51 = vld [vmem:[%s4491_s28 + $0x1660] sm:$0xff]  ;;  %1060 = vst [vmem:[%s4496_s29 + $0x590] sm:$0xff] %v1059_v50 }
  0xc9   : > { %1062 = vst [vmem:[%s4496_s29 + $0x598] sm:$0xff] %v1061_v51  ;;  %v1063_v52 = vld [vmem:[%s4491_s28 + $0x1680] sm:$0xff] }
  0xca   : > { %v1065_v53 = vld [vmem:[%s4491_s28 + $0x16a0] sm:$0xff]  ;;  %1064 = vst [vmem:[%s4496_s29 + $0x5a0] sm:$0xff] %v1063_v52 }
  0xcb   : > { %v1067_v54 = vld [vmem:[%s4491_s28 + $0x16c0] sm:$0xff]  ;;  %1066 = vst [vmem:[%s4496_s29 + $0x5a8] sm:$0xff] %v1065_v53 }
  0xcc   : > { %1068 = vst [vmem:[%s4496_s29 + $0x5b0] sm:$0xff] %v1067_v54  ;;  %v1069_v55 = vld [vmem:[%s4491_s28 + $0x16e0] sm:$0xff] }
  0xcd   : > { %v1071_v56 = vld [vmem:[%s4491_s28 + $0x1700] sm:$0xff]  ;;  %1070 = vst [vmem:[%s4496_s29 + $0x5b8] sm:$0xff] %v1069_v55 }
  0xce   : > { %v1073_v57 = vld [vmem:[%s4491_s28 + $0x1720] sm:$0xff]  ;;  %1072 = vst [vmem:[%s4496_s29 + $0x5c0] sm:$0xff] %v1071_v56 }
  0xcf   : > { %1074 = vst [vmem:[%s4496_s29 + $0x5c8] sm:$0xff] %v1073_v57  ;;  %v1075_v58 = vld [vmem:[%s4491_s28 + $0x1740] sm:$0xff] }
  0xd0   : > { %v1077_v59 = vld [vmem:[%s4491_s28 + $0x1760] sm:$0xff]  ;;  %1076 = vst [vmem:[%s4496_s29 + $0x5d0] sm:$0xff] %v1075_v58 }
  0xd1   : > { %v1079_v60 = vld [vmem:[%s4491_s28 + $0x1780] sm:$0xff]  ;;  %1078 = vst [vmem:[%s4496_s29 + $0x5d8] sm:$0xff] %v1077_v59 }
  0xd2   : > { %1080 = vst [vmem:[%s4496_s29 + $0x5e0] sm:$0xff] %v1079_v60  ;;  %v1081_v61 = vld [vmem:[%s4491_s28 + $0x17a0] sm:$0xff] }
  0xd3   : > { %v1083_v62 = vld [vmem:[%s4491_s28 + $0x17c0] sm:$0xff]  ;;  %1082 = vst [vmem:[%s4496_s29 + $0x5e8] sm:$0xff] %v1081_v61 }
  0xd4   : > { %v1085_v63 = vld [vmem:[%s4491_s28 + $0x17e0] sm:$0xff]  ;;  %1084 = vst [vmem:[%s4496_s29 + $0x5f0] sm:$0xff] %v1083_v62 }
  0xd5   : > { %1086 = vst [vmem:[%s4496_s29 + $0x5f8] sm:$0xff] %v1085_v63  ;;  %v1087_v0 = vld [vmem:[%s4491_s28 + $0x1800] sm:$0xff] }
  0xd6   : > { %v1089_v1 = vld [vmem:[%s4491_s28 + $0x1820] sm:$0xff]  ;;  %1088 = vst [vmem:[%s4496_s29 + $0x600] sm:$0xff] %v1087_v0 }
  0xd7   : > { %v1091_v2 = vld [vmem:[%s4491_s28 + $0x1840] sm:$0xff]  ;;  %1090 = vst [vmem:[%s4496_s29 + $0x608] sm:$0xff] %v1089_v1 }
  0xd8   : > { %1092 = vst [vmem:[%s4496_s29 + $0x610] sm:$0xff] %v1091_v2  ;;  %v1093_v3 = vld [vmem:[%s4491_s28 + $0x1860] sm:$0xff] }
  0xd9   : > { %v1095_v4 = vld [vmem:[%s4491_s28 + $0x1880] sm:$0xff]  ;;  %1094 = vst [vmem:[%s4496_s29 + $0x618] sm:$0xff] %v1093_v3 }
  0xda   : > { %v1097_v5 = vld [vmem:[%s4491_s28 + $0x18a0] sm:$0xff]  ;;  %1096 = vst [vmem:[%s4496_s29 + $0x620] sm:$0xff] %v1095_v4 }
  0xdb   : > { %1098 = vst [vmem:[%s4496_s29 + $0x628] sm:$0xff] %v1097_v5  ;;  %v1099_v6 = vld [vmem:[%s4491_s28 + $0x18c0] sm:$0xff] }
  0xdc   : > { %v1101_v7 = vld [vmem:[%s4491_s28 + $0x18e0] sm:$0xff]  ;;  %1100 = vst [vmem:[%s4496_s29 + $0x630] sm:$0xff] %v1099_v6 }
  0xdd   : > { %v1103_v8 = vld [vmem:[%s4491_s28 + $0x1900] sm:$0xff]  ;;  %1102 = vst [vmem:[%s4496_s29 + $0x638] sm:$0xff] %v1101_v7 }
  0xde   : > { %1104 = vst [vmem:[%s4496_s29 + $0x640] sm:$0xff] %v1103_v8  ;;  %v1105_v9 = vld [vmem:[%s4491_s28 + $0x1920] sm:$0xff] }
  0xdf   : > { %v1107_v10 = vld [vmem:[%s4491_s28 + $0x1940] sm:$0xff]  ;;  %1106 = vst [vmem:[%s4496_s29 + $0x648] sm:$0xff] %v1105_v9 }
  0xe0   : > { %v1109_v11 = vld [vmem:[%s4491_s28 + $0x1960] sm:$0xff]  ;;  %1108 = vst [vmem:[%s4496_s29 + $0x650] sm:$0xff] %v1107_v10 }
  0xe1   : > { %1110 = vst [vmem:[%s4496_s29 + $0x658] sm:$0xff] %v1109_v11  ;;  %v1111_v12 = vld [vmem:[%s4491_s28 + $0x1980] sm:$0xff] }
  0xe2   : > { %v1113_v13 = vld [vmem:[%s4491_s28 + $0x19a0] sm:$0xff]  ;;  %1112 = vst [vmem:[%s4496_s29 + $0x660] sm:$0xff] %v1111_v12 }
  0xe3   : > { %v1115_v14 = vld [vmem:[%s4491_s28 + $0x19c0] sm:$0xff]  ;;  %1114 = vst [vmem:[%s4496_s29 + $0x668] sm:$0xff] %v1113_v13 }
  0xe4   : > { %1116 = vst [vmem:[%s4496_s29 + $0x670] sm:$0xff] %v1115_v14  ;;  %v1117_v15 = vld [vmem:[%s4491_s28 + $0x19e0] sm:$0xff] }
  0xe5   : > { %v1119_v16 = vld [vmem:[%s4491_s28 + $0x1a00] sm:$0xff]  ;;  %1118 = vst [vmem:[%s4496_s29 + $0x678] sm:$0xff] %v1117_v15 }
  0xe6   : > { %v1121_v17 = vld [vmem:[%s4491_s28 + $0x1a20] sm:$0xff]  ;;  %1120 = vst [vmem:[%s4496_s29 + $0x680] sm:$0xff] %v1119_v16 }
  0xe7   : > { %1122 = vst [vmem:[%s4496_s29 + $0x688] sm:$0xff] %v1121_v17  ;;  %v1123_v18 = vld [vmem:[%s4491_s28 + $0x1a40] sm:$0xff] }
  0xe8   : > { %v1125_v19 = vld [vmem:[%s4491_s28 + $0x1a60] sm:$0xff]  ;;  %1124 = vst [vmem:[%s4496_s29 + $0x690] sm:$0xff] %v1123_v18 }
  0xe9   : > { %v1127_v20 = vld [vmem:[%s4491_s28 + $0x1a80] sm:$0xff]  ;;  %1126 = vst [vmem:[%s4496_s29 + $0x698] sm:$0xff] %v1125_v19 }
  0xea   : > { %1128 = vst [vmem:[%s4496_s29 + $0x6a0] sm:$0xff] %v1127_v20  ;;  %v1129_v21 = vld [vmem:[%s4491_s28 + $0x1aa0] sm:$0xff] }
  0xeb   : > { %v1131_v22 = vld [vmem:[%s4491_s28 + $0x1ac0] sm:$0xff]  ;;  %1130 = vst [vmem:[%s4496_s29 + $0x6a8] sm:$0xff] %v1129_v21 }
  0xec   : > { %v1133_v23 = vld [vmem:[%s4491_s28 + $0x1ae0] sm:$0xff]  ;;  %1132 = vst [vmem:[%s4496_s29 + $0x6b0] sm:$0xff] %v1131_v22 }
  0xed   : > { %1134 = vst [vmem:[%s4496_s29 + $0x6b8] sm:$0xff] %v1133_v23  ;;  %v1135_v24 = vld [vmem:[%s4491_s28 + $0x1b00] sm:$0xff] }
  0xee   : > { %v1137_v25 = vld [vmem:[%s4491_s28 + $0x1b20] sm:$0xff]  ;;  %1136 = vst [vmem:[%s4496_s29 + $0x6c0] sm:$0xff] %v1135_v24 }
  0xef   : > { %v1139_v26 = vld [vmem:[%s4491_s28 + $0x1b40] sm:$0xff]  ;;  %1138 = vst [vmem:[%s4496_s29 + $0x6c8] sm:$0xff] %v1137_v25 }
  0xf0   : > { %1140 = vst [vmem:[%s4496_s29 + $0x6d0] sm:$0xff] %v1139_v26  ;;  %v1141_v27 = vld [vmem:[%s4491_s28 + $0x1b60] sm:$0xff] }
  0xf1   : > { %v1143_v28 = vld [vmem:[%s4491_s28 + $0x1b80] sm:$0xff]  ;;  %1142 = vst [vmem:[%s4496_s29 + $0x6d8] sm:$0xff] %v1141_v27 }
  0xf2   : > { %v1145_v29 = vld [vmem:[%s4491_s28 + $0x1ba0] sm:$0xff]  ;;  %1144 = vst [vmem:[%s4496_s29 + $0x6e0] sm:$0xff] %v1143_v28 }
  0xf3   : > { %1146 = vst [vmem:[%s4496_s29 + $0x6e8] sm:$0xff] %v1145_v29  ;;  %v1147_v30 = vld [vmem:[%s4491_s28 + $0x1bc0] sm:$0xff] }
  0xf4   : > { %v1149_v31 = vld [vmem:[%s4491_s28 + $0x1be0] sm:$0xff]  ;;  %1148 = vst [vmem:[%s4496_s29 + $0x6f0] sm:$0xff] %v1147_v30 }
  0xf5   : > { %v1151_v32 = vld [vmem:[%s4491_s28 + $0x1c00] sm:$0xff]  ;;  %1150 = vst [vmem:[%s4496_s29 + $0x6f8] sm:$0xff] %v1149_v31 }
  0xf6   : > { %1152 = vst [vmem:[%s4496_s29 + $0x700] sm:$0xff] %v1151_v32  ;;  %v1153_v33 = vld [vmem:[%s4491_s28 + $0x1c20] sm:$0xff] }
  0xf7   : > { %v1155_v34 = vld [vmem:[%s4491_s28 + $0x1c40] sm:$0xff]  ;;  %1154 = vst [vmem:[%s4496_s29 + $0x708] sm:$0xff] %v1153_v33 }
  0xf8   : > { %v1157_v35 = vld [vmem:[%s4491_s28 + $0x1c60] sm:$0xff]  ;;  %1156 = vst [vmem:[%s4496_s29 + $0x710] sm:$0xff] %v1155_v34 }
  0xf9   : > { %1158 = vst [vmem:[%s4496_s29 + $0x718] sm:$0xff] %v1157_v35  ;;  %v1159_v36 = vld [vmem:[%s4491_s28 + $0x1c80] sm:$0xff] }
  0xfa   : > { %v1161_v37 = vld [vmem:[%s4491_s28 + $0x1ca0] sm:$0xff]  ;;  %1160 = vst [vmem:[%s4496_s29 + $0x720] sm:$0xff] %v1159_v36 }
  0xfb   : > { %v1163_v38 = vld [vmem:[%s4491_s28 + $0x1cc0] sm:$0xff]  ;;  %1162 = vst [vmem:[%s4496_s29 + $0x728] sm:$0xff] %v1161_v37 }
  0xfc   : > { %1164 = vst [vmem:[%s4496_s29 + $0x730] sm:$0xff] %v1163_v38  ;;  %v1165_v39 = vld [vmem:[%s4491_s28 + $0x1ce0] sm:$0xff] }
  0xfd   : > { %v1167_v40 = vld [vmem:[%s4491_s28 + $0x1d00] sm:$0xff]  ;;  %1166 = vst [vmem:[%s4496_s29 + $0x738] sm:$0xff] %v1165_v39 }
  0xfe   : > { %v1169_v41 = vld [vmem:[%s4491_s28 + $0x1d20] sm:$0xff]  ;;  %1168 = vst [vmem:[%s4496_s29 + $0x740] sm:$0xff] %v1167_v40 }
  0xff   : > { %1170 = vst [vmem:[%s4496_s29 + $0x748] sm:$0xff] %v1169_v41  ;;  %v1171_v42 = vld [vmem:[%s4491_s28 + $0x1d40] sm:$0xff] }
 0x100   : > { %v1173_v43 = vld [vmem:[%s4491_s28 + $0x1d60] sm:$0xff]  ;;  %1172 = vst [vmem:[%s4496_s29 + $0x750] sm:$0xff] %v1171_v42 }
 0x101   : > { %v1175_v44 = vld [vmem:[%s4491_s28 + $0x1d80] sm:$0xff]  ;;  %1174 = vst [vmem:[%s4496_s29 + $0x758] sm:$0xff] %v1173_v43 }
 0x102   : > { %1176 = vst [vmem:[%s4496_s29 + $0x760] sm:$0xff] %v1175_v44  ;;  %v1177_v45 = vld [vmem:[%s4491_s28 + $0x1da0] sm:$0xff] }
 0x103   : > { %v1179_v46 = vld [vmem:[%s4491_s28 + $0x1dc0] sm:$0xff]  ;;  %1178 = vst [vmem:[%s4496_s29 + $0x768] sm:$0xff] %v1177_v45 }
 0x104   : > { %v1181_v47 = vld [vmem:[%s4491_s28 + $0x1de0] sm:$0xff]  ;;  %1180 = vst [vmem:[%s4496_s29 + $0x770] sm:$0xff] %v1179_v46 }
 0x105   : > { %1182 = vst [vmem:[%s4496_s29 + $0x778] sm:$0xff] %v1181_v47  ;;  %v1183_v48 = vld [vmem:[%s4491_s28 + $0x1e00] sm:$0xff] }
 0x106   : > { %v1185_v49 = vld [vmem:[%s4491_s28 + $0x1e20] sm:$0xff]  ;;  %1184 = vst [vmem:[%s4496_s29 + $0x780] sm:$0xff] %v1183_v48 }
 0x107   : > { %v1187_v50 = vld [vmem:[%s4491_s28 + $0x1e40] sm:$0xff]  ;;  %1186 = vst [vmem:[%s4496_s29 + $0x788] sm:$0xff] %v1185_v49 }
 0x108   : > { %1188 = vst [vmem:[%s4496_s29 + $0x790] sm:$0xff] %v1187_v50  ;;  %v1189_v51 = vld [vmem:[%s4491_s28 + $0x1e60] sm:$0xff] }
 0x109   : > { %v1191_v52 = vld [vmem:[%s4491_s28 + $0x1e80] sm:$0xff]  ;;  %1190 = vst [vmem:[%s4496_s29 + $0x798] sm:$0xff] %v1189_v51 }
 0x10a   : > { %v1193_v53 = vld [vmem:[%s4491_s28 + $0x1ea0] sm:$0xff]  ;;  %1192 = vst [vmem:[%s4496_s29 + $0x7a0] sm:$0xff] %v1191_v52 }
 0x10b   : > { %1194 = vst [vmem:[%s4496_s29 + $0x7a8] sm:$0xff] %v1193_v53  ;;  %v1195_v54 = vld [vmem:[%s4491_s28 + $0x1ec0] sm:$0xff] }
 0x10c   : > { %v1197_v55 = vld [vmem:[%s4491_s28 + $0x1ee0] sm:$0xff]  ;;  %1196 = vst [vmem:[%s4496_s29 + $0x7b0] sm:$0xff] %v1195_v54 }
 0x10d   : > { %v1199_v56 = vld [vmem:[%s4491_s28 + $0x1f00] sm:$0xff]  ;;  %1198 = vst [vmem:[%s4496_s29 + $0x7b8] sm:$0xff] %v1197_v55 }
 0x10e   : > { %1200 = vst [vmem:[%s4496_s29 + $0x7c0] sm:$0xff] %v1199_v56  ;;  %v1201_v57 = vld [vmem:[%s4491_s28 + $0x1f20] sm:$0xff] }
 0x10f   : > { %v1203_v58 = vld [vmem:[%s4491_s28 + $0x1f40] sm:$0xff]  ;;  %1202 = vst [vmem:[%s4496_s29 + $0x7c8] sm:$0xff] %v1201_v57 }
 0x110   : > { %v1205_v59 = vld [vmem:[%s4491_s28 + $0x1f60] sm:$0xff]  ;;  %1204 = vst [vmem:[%s4496_s29 + $0x7d0] sm:$0xff] %v1203_v58 }
 0x111   : > { %1206 = vst [vmem:[%s4496_s29 + $0x7d8] sm:$0xff] %v1205_v59  ;;  %v1207_v60 = vld [vmem:[%s4491_s28 + $0x1f80] sm:$0xff] }
 0x112   : > { %v1209_v61 = vld [vmem:[%s4491_s28 + $0x1fa0] sm:$0xff]  ;;  %1208 = vst [vmem:[%s4496_s29 + $0x7e0] sm:$0xff] %v1207_v60 }
 0x113   : > { %v1211_v62 = vld [vmem:[%s4491_s28 + $0x1fc0] sm:$0xff]  ;;  %1210 = vst [vmem:[%s4496_s29 + $0x7e8] sm:$0xff] %v1209_v61 }
 0x114   : > { %1212 = vst [vmem:[%s4496_s29 + $0x7f0] sm:$0xff] %v1211_v62  ;;  %v1213_v63 = vld [vmem:[%s4491_s28 + $0x1fe0] sm:$0xff] }
 0x115   : > { %1214 = vst [vmem:[%s4496_s29 + $0x7f8] sm:$0xff] %v1213_v63 }
 0x116 PF: > { %p3579_p8 = scmp.ge.s32.totalorder %s4421_s16, 1  ;;  %p1227_p9 = scmp.lt.s32.totalorder %s4421_s16, 5 }
 0x118   : > { %p1228_p10 = pnand %p3579_p8, %p1227_p9 }
 0x119   : > { %s1234_s30 = sand.u32 (!%p1228_p10), 1, %s4405_s12   ;;  %v5013_v0 = vld [vmem:[%s5439_s0] sm:$0xff] (!%p1228_p10) }
 0x11a   : > { %1231 = sbr.rel (%p1228_p10) target bundleno = 781 (0x30d), region = 66  ;;  %v5018_v1 = vld [vmem:[%s5439_s0 + $0x40] sm:$0xff] (!%p1228_p10)  ;;  %s3580_s10 = sshll.u32 (!%p1228_p10), %s1234_s30, 11 }
 0x11b   : > { %v5023_v2 = vld [vmem:[%s5439_s0 + $0x20] sm:$0xff] (!%p1228_p10)  ;;  %v3582_v3 = vcombine.low (!%p1228_p10), %v5013_v0, %v5018_v1  ;;  %v3583_v4 = vcombine.high (!%p1228_p10), %v5013_v0, %v5018_v1  ;;  %s5040_s19 = scalar_lea.vmem (!%p1228_p10), [#allocation2], %s3580_s10  ;;  %s3942_s5 = smul.u32 (!%p1228_p10), 24, %s1234_s30 }
 0x11c   : > { %v5034_v5 = vld [vmem:[%s5439_s0 + $0x60] sm:$0xff] (!%p1228_p10)  ;;  %v3989_v12 = vld [vmem:[%s5040_s19 + $0x14] ss:$8 sps:$4 sm:$0xff] (!%p1228_p10)   ;;  %v3993_v14 = vld [vmem:[%s5040_s19 + $0x10] ss:$8 sps:$4 sm:$0xff] (!%p1228_p10)  }
 0x11d   : > { %v3590_v6 = vcombine.low (!%p1228_p10), %v5023_v2, %v5034_v5  ;;  %v3591_v7 = vcombine.high (!%p1228_p10), %v5023_v2, %v5034_v5  ;;  %v3983_v8 = vld [vmem:[%s5040_s19 + $0x4] ss:$8 sps:$4 sm:$0xff] (!%p1228_p10)   ;;  %3021 = vmatprep.mubr.bf16.mxu1 (!%p1228_p10), %v3583_v4  ;;  %v3987_v10 = vld [vmem:[%s5040_s19] ss:$8 sps:$4 sm:$0xff] (!%p1228_p10)   ;;  %v3991_v13 = vld [vmem:[%s5040_s19 + $0x414] ss:$8 sps:$4 sm:$0xff] (!%p1228_p10)  }
 0x11e   : > { %v3985_v9 = vld [vmem:[%s5040_s19 + $0x404] ss:$8 sps:$4 sm:$0xff] (!%p1228_p10)   ;;  %2989 = vmatprep.subr.bf16.mxu1 (!%p1228_p10), %v3983_v8  ;;  %v3988_v11 = vld [vmem:[%s5040_s19 + $0x400] ss:$8 sps:$4 sm:$0xff] (!%p1228_p10)   ;;  %v3994_v15 = vld [vmem:[%s5040_s19 + $0x410] ss:$8 sps:$4 sm:$0xff] (!%p1228_p10)  }
 0x11f   : > { %3225 = vmatprep.mubr.bf16.mxu0 (!%p1228_p10), %v3591_v7  ;;  %3193 = vmatprep.subr.bf16.mxu0 (!%p1228_p10), %v3985_v9  ;;  %v3995_v16 = vld [vmem:[%s5040_s19 + $0x24] ss:$8 sps:$4 sm:$0xff] (!%p1228_p10)   ;;  %v3999_v18 = vld [vmem:[%s5040_s19 + $0x20] ss:$8 sps:$4 sm:$0xff] (!%p1228_p10)   ;;  %v4001_v20 = vld [vmem:[%s5040_s19 + $0x34] ss:$8 sps:$4 sm:$0xff] (!%p1228_p10)  }
 0x120   : > { %2990 = vmatpush1.bf16.msra.mxu1 (!%p1228_p10), %v3987_v10  ;;  %3194 = vmatpush1.bf16.msra.mxu0 (!%p1228_p10), %v3988_v11  ;;  %v3997_v17 = vld [vmem:[%s5040_s19 + $0x424] ss:$8 sps:$4 sm:$0xff] (!%p1228_p10)   ;;  %v4000_v19 = vld [vmem:[%s5040_s19 + $0x420] ss:$8 sps:$4 sm:$0xff] (!%p1228_p10)   ;;  %v4003_v21 = vld [vmem:[%s5040_s19 + $0x434] ss:$8 sps:$4 sm:$0xff] (!%p1228_p10)  }
 0x121   : > { %2991 = vmatprep.subr.bf16.mxu1 %v3989_v12  ;;  %3195 = vmatprep.subr.bf16.mxu0 %v3991_v13  ;;  %v4005_v22 = vld [vmem:[%s5040_s19 + $0x30] ss:$8 sps:$4 sm:$0xff]   ;;  %v4007_v24 = vld [vmem:[%s5040_s19 + $0x44] ss:$8 sps:$4 sm:$0xff]   ;;  %v4011_v26 = vld [vmem:[%s5040_s19 + $0x40] ss:$8 sps:$4 sm:$0xff]  }
 0x122   : > { %v4006_v23 = vld [vmem:[%s5040_s19 + $0x430] ss:$8 sps:$4 sm:$0xff]   ;;  %v4009_v25 = vld [vmem:[%s5040_s19 + $0x444] ss:$8 sps:$4 sm:$0xff]   ;;  %v4012_v27 = vld [vmem:[%s5040_s19 + $0x440] ss:$8 sps:$4 sm:$0xff]  }
 0x123   : > { %v4013_v28 = vld [vmem:[%s5040_s19 + $0x54] ss:$8 sps:$4 sm:$0xff]   ;;  %v4017_v30 = vld [vmem:[%s5040_s19 + $0x50] ss:$8 sps:$4 sm:$0xff]   ;;  %v4019_v32 = vld [vmem:[%s5040_s19 + $0x64] ss:$8 sps:$4 sm:$0xff]  }
 0x124   : > { %2992 = vmatpush1.bf16.msra.mxu1 %v3993_v14  ;;  %3196 = vmatpush1.bf16.msra.mxu0 %v3994_v15  ;;  %v4015_v29 = vld [vmem:[%s5040_s19 + $0x454] ss:$8 sps:$4 sm:$0xff]   ;;  %v4018_v31 = vld [vmem:[%s5040_s19 + $0x450] ss:$8 sps:$4 sm:$0xff]   ;;  %v4021_v33 = vld [vmem:[%s5040_s19 + $0x464] ss:$8 sps:$4 sm:$0xff]  }
 0x125   : > { %2993 = vmatprep.subr.bf16.mxu1 %v3995_v16  ;;  %3197 = vmatprep.subr.bf16.mxu0 %v3997_v17  ;;  %v4023_v34 = vld [vmem:[%s5040_s19 + $0x60] ss:$8 sps:$4 sm:$0xff]   ;;  %v4025_v36 = vld [vmem:[%s5040_s19 + $0x74] ss:$8 sps:$4 sm:$0xff]   ;;  %v4029_v38 = vld [vmem:[%s5040_s19 + $0x70] ss:$8 sps:$4 sm:$0xff]  }
 0x126   : > { %v4024_v35 = vld [vmem:[%s5040_s19 + $0x460] ss:$8 sps:$4 sm:$0xff]   ;;  %v4027_v37 = vld [vmem:[%s5040_s19 + $0x474] ss:$8 sps:$4 sm:$0xff]   ;;  %v4030_v39 = vld [vmem:[%s5040_s19 + $0x470] ss:$8 sps:$4 sm:$0xff]  }
 0x127   : > { %v4031_v40 = vld [vmem:[%s5040_s19 + $0x84] ss:$8 sps:$4 sm:$0xff]   ;;  %v4035_v42 = vld [vmem:[%s5040_s19 + $0x80] ss:$8 sps:$4 sm:$0xff]   ;;  %v4037_v44 = vld [vmem:[%s5040_s19 + $0x94] ss:$8 sps:$4 sm:$0xff]  }
 0x128   : > { %2994 = vmatpush1.bf16.msra.mxu1 %v3999_v18  ;;  %3198 = vmatpush1.bf16.msra.mxu0 %v4000_v19  ;;  %v4033_v41 = vld [vmem:[%s5040_s19 + $0x484] ss:$8 sps:$4 sm:$0xff]   ;;  %v4036_v43 = vld [vmem:[%s5040_s19 + $0x480] ss:$8 sps:$4 sm:$0xff]   ;;  %v4039_v45 = vld [vmem:[%s5040_s19 + $0x494] ss:$8 sps:$4 sm:$0xff]  }
 0x129   : > { %2995 = vmatprep.subr.bf16.mxu1 %v4001_v20  ;;  %3199 = vmatprep.subr.bf16.mxu0 %v4003_v21  ;;  %v4041_v46 = vld [vmem:[%s5040_s19 + $0x90] ss:$8 sps:$4 sm:$0xff]   ;;  %v4043_v48 = vld [vmem:[%s5040_s19 + $0xa4] ss:$8 sps:$4 sm:$0xff]   ;;  %v4047_v50 = vld [vmem:[%s5040_s19 + $0xa0] ss:$8 sps:$4 sm:$0xff]  }
 0x12a   : > { %v4042_v47 = vld [vmem:[%s5040_s19 + $0x490] ss:$8 sps:$4 sm:$0xff]   ;;  %v4045_v49 = vld [vmem:[%s5040_s19 + $0x4a4] ss:$8 sps:$4 sm:$0xff]   ;;  %v4048_v51 = vld [vmem:[%s5040_s19 + $0x4a0] ss:$8 sps:$4 sm:$0xff]  }
 0x12b   : > { %v4049_v52 = vld [vmem:[%s5040_s19 + $0xb4] ss:$8 sps:$4 sm:$0xff]   ;;  %v4053_v54 = vld [vmem:[%s5040_s19 + $0xb0] ss:$8 sps:$4 sm:$0xff]   ;;  %v4055_v56 = vld [vmem:[%s5040_s19 + $0xc4] ss:$8 sps:$4 sm:$0xff]  }
 0x12c   : > { %2996 = vmatpush1.bf16.msra.mxu1 %v4005_v22  ;;  %3200 = vmatpush1.bf16.msra.mxu0 %v4006_v23  ;;  %v4051_v53 = vld [vmem:[%s5040_s19 + $0x4b4] ss:$8 sps:$4 sm:$0xff]   ;;  %v4054_v55 = vld [vmem:[%s5040_s19 + $0x4b0] ss:$8 sps:$4 sm:$0xff]   ;;  %v4057_v57 = vld [vmem:[%s5040_s19 + $0x4c4] ss:$8 sps:$4 sm:$0xff]  }
 0x12d   : > { %2997 = vmatprep.subr.bf16.mxu1 %v4007_v24  ;;  %3201 = vmatprep.subr.bf16.mxu0 %v4009_v25  ;;  %v4059_v58 = vld [vmem:[%s5040_s19 + $0xc0] ss:$8 sps:$4 sm:$0xff]   ;;  %v4061_v60 = vld [vmem:[%s5040_s19 + $0xd4] ss:$8 sps:$4 sm:$0xff]   ;;  %v4065_v62 = vld [vmem:[%s5040_s19 + $0xd0] ss:$8 sps:$4 sm:$0xff]  }
 0x12e   : > { %v4060_v59 = vld [vmem:[%s5040_s19 + $0x4c0] ss:$8 sps:$4 sm:$0xff]   ;;  %v4063_v61 = vld [vmem:[%s5040_s19 + $0x4d4] ss:$8 sps:$4 sm:$0xff]   ;;  %v4066_v63 = vld [vmem:[%s5040_s19 + $0x4d0] ss:$8 sps:$4 sm:$0xff]  }
 0x12f   : > { %v4067_v4 = vld [vmem:[%s5040_s19 + $0xe4] ss:$8 sps:$4 sm:$0xff]   ;;  %v4071_v8 = vld [vmem:[%s5040_s19 + $0xe0] ss:$8 sps:$4 sm:$0xff]   ;;  %v4073_v10 = vld [vmem:[%s5040_s19 + $0xf4] ss:$8 sps:$4 sm:$0xff]  }
 0x130   : > { %2998 = vmatpush1.bf16.msra.mxu1 %v4011_v26  ;;  %3202 = vmatpush1.bf16.msra.mxu0 %v4012_v27  ;;  %v4069_v7 = vld [vmem:[%s5040_s19 + $0x4e4] ss:$8 sps:$4 sm:$0xff]   ;;  %v4072_v9 = vld [vmem:[%s5040_s19 + $0x4e0] ss:$8 sps:$4 sm:$0xff]   ;;  %v4075_v11 = vld [vmem:[%s5040_s19 + $0x4f4] ss:$8 sps:$4 sm:$0xff]  }
 0x131   : > { %2999 = vmatprep.subr.bf16.mxu1 %v4013_v28  ;;  %3203 = vmatprep.subr.bf16.mxu0 %v4015_v29  ;;  %v4077_v12 = vld [vmem:[%s5040_s19 + $0xf0] ss:$8 sps:$4 sm:$0xff]   ;;  %v4081_v14 = vld [vmem:[%s5040_s19 + $0x104] ss:$8 sps:$4 sm:$0xff]   ;;  %v4079_v18 = vld [vmem:[%s5040_s19 + $0x100] ss:$8 sps:$4 sm:$0xff]  }
 0x132   : > { %v4078_v13 = vld [vmem:[%s5040_s19 + $0x4f0] ss:$8 sps:$4 sm:$0xff]   ;;  %v4084_v15 = vld [vmem:[%s5040_s19 + $0x504] ss:$8 sps:$4 sm:$0xff]   ;;  %v4082_v19 = vld [vmem:[%s5040_s19 + $0x500] ss:$8 sps:$4 sm:$0xff]  }
 0x133   : > { %v1297_v16 = vld [vmem:[%s5439_s0 + $0x80] sm:$0xff]  ;;  %v4087_v20 = vld [vmem:[%s5040_s19 + $0x114] ss:$8 sps:$4 sm:$0xff]   ;;  %v4085_v24 = vld [vmem:[%s5040_s19 + $0x110] ss:$8 sps:$4 sm:$0xff]   ;;  %s1265_s6 = scalar_lea.vmem [#allocation3], %s3942_s5 }
 0x134   : > { %3000 = vmatpush1.bf16.msra.mxu1 %v4017_v30  ;;  %3204 = vmatpush1.bf16.msra.mxu0 %v4018_v31  ;;  %v1301_v17 = vld [vmem:[%s5439_s0 + $0xa0] sm:$0xff]  ;;  %v4090_v21 = vld [vmem:[%s5040_s19 + $0x514] ss:$8 sps:$4 sm:$0xff]   ;;  %v3599_v22 = vcombine.high %v1297_v16, %v1297_v16  ;;  %v4088_v25 = vld [vmem:[%s5040_s19 + $0x510] ss:$8 sps:$4 sm:$0xff]   ;;  %s3881_s12 = sshll.u32 (%p4478_p6), %s4413_s14, 3 }
 0x135   : > { %3001 = vmatprep.subr.bf16.mxu1 %v4019_v32  ;;  %3205 = vmatprep.subr.bf16.mxu0 %v4021_v33  ;;  %v3607_v23 = vcombine.high %v1301_v17, %v1301_v17  ;;  %v4093_v26 = vld [vmem:[%s5040_s19 + $0x124] ss:$8 sps:$4 sm:$0xff]   ;;  %v4091_v0 = vld [vmem:[%s5040_s19 + $0x120] ss:$8 sps:$4 sm:$0xff]   ;;  %v3606_v2 = vcombine.low %v1301_v17, %v1301_v17  ;;  %v4099_v5 = vld [vmem:[%s5040_s19 + $0x134] ss:$8 sps:$4 sm:$0xff]   ;;  %s3438_s8 = scalar_lea.vmem (%p4478_p6), %s5442_s3, %s3881_s12 }
 0x136   : > { %v4096_v27 = vld [vmem:[%s5040_s19 + $0x524] ss:$8 sps:$4 sm:$0xff]   ;;  %v4094_v1 = vld [vmem:[%s5040_s19 + $0x520] ss:$8 sps:$4 sm:$0xff]   ;;  %v4097_v28 = vld [vmem:[%s5040_s19 + $0x130] ss:$8 sps:$4 sm:$0xff]  }
 0x137   : > { %v4100_v29 = vld [vmem:[%s5040_s19 + $0x530] ss:$8 sps:$4 sm:$0xff]   ;;  %v4105_v30 = vld [vmem:[%s5040_s19 + $0x144] ss:$8 sps:$4 sm:$0xff]   ;;  %v4103_v32 = vld [vmem:[%s5040_s19 + $0x140] ss:$8 sps:$4 sm:$0xff]  }
 0x138   : > { %3002 = vmatpush1.bf16.msra.mxu1 %v4023_v34  ;;  %3206 = vmatpush1.bf16.msra.mxu0 %v4024_v35  ;;  %v4108_v31 = vld [vmem:[%s5040_s19 + $0x544] ss:$8 sps:$4 sm:$0xff]   ;;  %v4106_v33 = vld [vmem:[%s5040_s19 + $0x540] ss:$8 sps:$4 sm:$0xff]   ;;  %v4111_v34 = vld [vmem:[%s5040_s19 + $0x154] ss:$8 sps:$4 sm:$0xff]  }
 0x139   : > { %3003 = vmatprep.subr.bf16.mxu1 %v4025_v36  ;;  %3207 = vmatprep.subr.bf16.mxu0 %v4027_v37  ;;  %v4114_v35 = vld [vmem:[%s5040_s19 + $0x554] ss:$8 sps:$4 sm:$0xff]   ;;  %v4109_v36 = vld [vmem:[%s5040_s19 + $0x150] ss:$8 sps:$4 sm:$0xff]  }
 0x13a   : > { %v4112_v37 = vld [vmem:[%s5040_s19 + $0x550] ss:$8 sps:$4 sm:$0xff]  }
 0x13b   : > { %v4160_v17 = vld [vmem:[%s5040_s19 + $0x5d0] ss:$8 sps:$4 sm:$0xff]  }
 0x13c   : > { %3004 = vmatpush1.bf16.msra.mxu1 %v4029_v38  ;;  %3208 = vmatpush1.bf16.msra.mxu0 %v4030_v39  ;;  %v4117_v38 = vld [vmem:[%s5040_s19 + $0x164] ss:$8 sps:$4 sm:$0xff]  }
 0x13d   : > { %3005 = vmatprep.subr.bf16.mxu1 %v4031_v40  ;;  %3209 = vmatprep.subr.bf16.mxu0 %v4033_v41  ;;  %v4120_v39 = vld [vmem:[%s5040_s19 + $0x564] ss:$8 sps:$4 sm:$0xff]  }
 0x13e   : > { %v5147_v40 = vld [vmem:[%s5439_s0 + $0x8] sm:$0xff] }
 0x13f   : > { %v5152_v41 = vld [vmem:[%s5439_s0 + $0x48] sm:$0xff] }
 0x140   : > { %3006 = vmatpush1.bf16.msra.mxu1 %v4035_v42  ;;  %3210 = vmatpush1.bf16.msra.mxu0 %v4036_v43  ;;  %v4115_v42 = vld [vmem:[%s5040_s19 + $0x160] ss:$8 sps:$4 sm:$0xff]   ;;  %v3585_v43 = vcombine.high %v5147_v40, %v5152_v41 }
 0x141   : > { %3007 = vmatprep.subr.bf16.mxu1 %v4037_v44  ;;  %3211 = vmatprep.subr.bf16.mxu0 %v4039_v45  ;;  %v4118_v44 = vld [vmem:[%s5040_s19 + $0x560] ss:$8 sps:$4 sm:$0xff]  }
 0x142   : > { %v5161_v45 = vld [vmem:[%s5439_s0 + $0x28] sm:$0xff] }
 0x144   : > { %3008 = vmatpush1.bf16.msra.mxu1 %v4041_v46  ;;  %3212 = vmatpush1.bf16.msra.mxu0 %v4042_v47  ;;  %v5166_v46 = vld [vmem:[%s5439_s0 + $0x68] sm:$0xff]  ;;  %v4123_v47 = vld [vmem:[%s5040_s19 + $0x174] ss:$8 sps:$4 sm:$0xff]  }
 0x145   : > { %3009 = vmatprep.subr.bf16.mxu1 %v4043_v48  ;;  %3213 = vmatprep.subr.bf16.mxu0 %v4045_v49  ;;  %v3593_v48 = vcombine.high %v5161_v45, %v5166_v46  ;;  %v4126_v49 = vld [vmem:[%s5040_s19 + $0x574] ss:$8 sps:$4 sm:$0xff]  }
 0x148   : > { %3010 = vmatpush1.bf16.msra.mxu1 %v4047_v50  ;;  %3214 = vmatpush1.bf16.msra.mxu0 %v4048_v51  ;;  %v4121_v50 = vld [vmem:[%s5040_s19 + $0x170] ss:$8 sps:$4 sm:$0xff]  }
 0x149   : > { %3011 = vmatprep.subr.bf16.mxu1 %v4049_v52  ;;  %3215 = vmatprep.subr.bf16.mxu0 %v4051_v53  ;;  %v4124_v51 = vld [vmem:[%s5040_s19 + $0x570] ss:$8 sps:$4 sm:$0xff]   ;;  %v4129_v52 = vld [vmem:[%s5040_s19 + $0x184] ss:$8 sps:$4 sm:$0xff]  }
 0x14a   : > { %v4132_v53 = vld [vmem:[%s5040_s19 + $0x584] ss:$8 sps:$4 sm:$0xff]  }
 0x14c   : > { %3012 = vmatpush1.bf16.msra.mxu1 %v4053_v54  ;;  %3216 = vmatpush1.bf16.msra.mxu0 %v4054_v55  ;;  %v4127_v54 = vld [vmem:[%s5040_s19 + $0x180] ss:$8 sps:$4 sm:$0xff]  }
 0x14d   : > { %3013 = vmatprep.subr.bf16.mxu1 %v4055_v56  ;;  %3217 = vmatprep.subr.bf16.mxu0 %v4057_v57  ;;  %v4130_v55 = vld [vmem:[%s5040_s19 + $0x580] ss:$8 sps:$4 sm:$0xff]   ;;  %v4135_v56 = vld [vmem:[%s5040_s19 + $0x194] ss:$8 sps:$4 sm:$0xff]  }
 0x14e   : > { %v4138_v57 = vld [vmem:[%s5040_s19 + $0x594] ss:$8 sps:$4 sm:$0xff]  }
 0x150   : > { %3014 = vmatpush1.bf16.msra.mxu1 %v4059_v58  ;;  %3218 = vmatpush1.bf16.msra.mxu0 %v4060_v59  ;;  %v4133_v58 = vld [vmem:[%s5040_s19 + $0x190] ss:$8 sps:$4 sm:$0xff]  }
 0x151   : > { %3015 = vmatprep.subr.bf16.mxu1 %v4061_v60  ;;  %3219 = vmatprep.subr.bf16.mxu0 %v4063_v61  ;;  %v4136_v59 = vld [vmem:[%s5040_s19 + $0x590] ss:$8 sps:$4 sm:$0xff]   ;;  %v4141_v60 = vld [vmem:[%s5040_s19 + $0x1a4] ss:$8 sps:$4 sm:$0xff]  }
 0x152   : > { %v4144_v61 = vld [vmem:[%s5040_s19 + $0x5a4] ss:$8 sps:$4 sm:$0xff]  }
 0x154   : > { %3016 = vmatpush1.bf16.msra.mxu1 %v4065_v62  ;;  %3220 = vmatpush1.bf16.msra.mxu0 %v4066_v63  ;;  %v4139_v62 = vld [vmem:[%s5040_s19 + $0x1a0] ss:$8 sps:$4 sm:$0xff]  }
 0x155   : > { %3017 = vmatprep.subr.bf16.mxu1 %v4067_v4  ;;  %3221 = vmatprep.subr.bf16.mxu0 %v4069_v7  ;;  %v4142_v63 = vld [vmem:[%s5040_s19 + $0x5a0] ss:$8 sps:$4 sm:$0xff]   ;;  %v4147_v4 = vld [vmem:[%s5040_s19 + $0x1b4] ss:$8 sps:$4 sm:$0xff]  }
 0x156   : > { %v4150_v7 = vld [vmem:[%s5040_s19 + $0x5b4] ss:$8 sps:$4 sm:$0xff]  }
 0x158   : > { %3018 = vmatpush1.bf16.msra.mxu1 %v4071_v8  ;;  %3222 = vmatpush1.bf16.msra.mxu0 %v4072_v9  ;;  %v4145_v8 = vld [vmem:[%s5040_s19 + $0x1b0] ss:$8 sps:$4 sm:$0xff]  }
 0x159   : > { %3019 = vmatprep.subr.bf16.mxu1 %v4073_v10  ;;  %3223 = vmatprep.subr.bf16.mxu0 %v4075_v11  ;;  %v4148_v9 = vld [vmem:[%s5040_s19 + $0x5b0] ss:$8 sps:$4 sm:$0xff]   ;;  %v4153_v10 = vld [vmem:[%s5040_s19 + $0x1c4] ss:$8 sps:$4 sm:$0xff]  }
 0x15a   : > { %v4156_v11 = vld [vmem:[%s5040_s19 + $0x5c4] ss:$8 sps:$4 sm:$0xff]  }
 0x15c   : > { %3020 = vmatpush1.bf16.msra.mxu1 %v4077_v12  ;;  %3224 = vmatpush1.bf16.msra.mxu0 %v4078_v13  ;;  %v4151_v12 = vld [vmem:[%s5040_s19 + $0x1c0] ss:$8 sps:$4 sm:$0xff]  }
 0x15d   : > { %3040 = vmatprep.subr.bf16.mxu1 %v4081_v14  ;;  %3244 = vmatprep.subr.bf16.mxu0 %v4084_v15  ;;  %v4154_v13 = vld [vmem:[%s5040_s19 + $0x5c0] ss:$8 sps:$4 sm:$0xff]   ;;  %v4159_v14 = vld [vmem:[%s5040_s19 + $0x1d4] ss:$8 sps:$4 sm:$0xff]  }
 0x15e   : > { %v4162_v15 = vld [vmem:[%s5040_s19 + $0x5d4] ss:$8 sps:$4 sm:$0xff]  }
 0x15f   : > { %3022 = vmatmul.mubr.bf16.vlgmr.msra.gmra.mrb[0].mxu1 %v3582_v3  ;;  %3226 = vmatmul.mubr.bf16.vlgmr.msra.gmra.mrb[0].mxu0 %v3590_v6  ;;  %v3598_v3 = vcombine.low %v1297_v16, %v1297_v16  ;;  %v4102_v6 = vld [vmem:[%s5040_s19 + $0x534] ss:$8 sps:$4 sm:$0xff]   ;;  %v4157_v16 = vld [vmem:[%s5040_s19 + $0x1d0] ss:$8 sps:$4 sm:$0xff]  }
 0x160   : > { %3041 = vmatpush1.bf16.msra.mxu1 %v4079_v18  ;;  %3245 = vmatpush1.bf16.msra.mxu0 %v4082_v19  ;;  %v4166_v18 = vld [vmem:[%s5040_s19 + $0x1e4] ss:$8 sps:$4 sm:$0xff]  }
 0x161   : > { %3042 = vmatprep.subr.bf16.mxu1 %v4087_v20  ;;  %3246 = vmatprep.subr.bf16.mxu0 %v4090_v21  ;;  %v4170_v19 = vld [vmem:[%s5040_s19 + $0x5e4] ss:$8 sps:$4 sm:$0xff]   ;;  %v4164_v20 = vld [vmem:[%s5040_s19 + $0x1e0] ss:$8 sps:$4 sm:$0xff]  }
 0x162   : > { %3031 = vmatprep.mubr.bf16.mxu1 %v3599_v22  ;;  %3235 = vmatprep.mubr.bf16.mxu0 %v3607_v23  ;;  %v4168_v21 = vld [vmem:[%s5040_s19 + $0x5e0] ss:$8 sps:$4 sm:$0xff]   ;;  %v4175_v22 = vld [vmem:[%s5040_s19 + $0x1f4] ss:$8 sps:$4 sm:$0xff]  }
 0x163   : > { %v4178_v23 = vld [vmem:[%s5040_s19 + $0x5f4] ss:$8 sps:$4 sm:$0xff]  }
 0x164   : > { %3043 = vmatpush1.bf16.msra.mxu1 %v4085_v24  ;;  %3247 = vmatpush1.bf16.msra.mxu0 %v4088_v25  ;;  %v4173_v24 = vld [vmem:[%s5040_s19 + $0x1f0] ss:$8 sps:$4 sm:$0xff]  }
 0x165   : > { %3044 = vmatprep.subr.bf16.mxu1 %v4093_v26  ;;  %3248 = vmatprep.subr.bf16.mxu0 %v4096_v27  ;;  %v4176_v25 = vld [vmem:[%s5040_s19 + $0x5f0] ss:$8 sps:$4 sm:$0xff]   ;;  %v4181_v26 = vld [vmem:[%s5040_s19 + $0x204] ss:$8 sps:$4 sm:$0xff]  }
 0x166   : > { %v4184_v27 = vld [vmem:[%s5040_s19 + $0x604] ss:$8 sps:$4 sm:$0xff]  }
 0x167   : > { %3032 = vmatmul.mubr.bf16.gmra.mrb[4].mxu1 %v3598_v3  ;;  %3236 = vmatmul.mubr.bf16.gmra.mrb[4].mxu0 %v3606_v2  ;;  %v3592_v3 = vcombine.low %v5161_v45, %v5166_v46  ;;  %v1302_v2 = vld [vmem:[%s5439_s0 + $0xa8] sm:$0xff]  ;;  %v4202_v45 = vld [vmem:[%s5040_s19 + $0x634] ss:$8 sps:$4 sm:$0xff]  }
 0x168   : > { %3045 = vmatpush1.bf16.msra.mxu1 %v4091_v0  ;;  %3249 = vmatpush1.bf16.msra.mxu0 %v4094_v1  ;;  %v1298_v0 = vld [vmem:[%s5439_s0 + $0x88] sm:$0xff]  ;;  %v3584_v1 = vcombine.low %v5147_v40, %v5152_v41  ;;  %v3608_v40 = vcombine.low %v1302_v2, %v1302_v2  ;;  %v5244_v41 = vld [vmem:[%s5439_s0 + $0x70] sm:$0xff] }
 0x169   : > { %3046 = vmatprep.subr.bf16.mxu1 %v4099_v5  ;;  %3250 = vmatprep.subr.bf16.mxu0 %v4102_v6  ;;  %v4179_v5 = vld [vmem:[%s5040_s19 + $0x200] ss:$8 sps:$4 sm:$0xff]  }
 0x16a   : > { %3072 = vmatprep.mubr.bf16.mxu1 %v3585_v43  ;;  %3276 = vmatprep.mubr.bf16.mxu0 %v3593_v48  ;;  %v4182_v6 = vld [vmem:[%s5040_s19 + $0x600] ss:$8 sps:$4 sm:$0xff]   ;;  %v4197_v48 = vld [vmem:[%s5040_s19 + $0x230] ss:$8 sps:$4 sm:$0xff]  }
 0x16b   : > { %v4194_v43 = vld [vmem:[%s5040_s19 + $0x620] ss:$8 sps:$4 sm:$0xff]  }
 0x16c   : > { %3047 = vmatpush1.bf16.msra.mxu1 %v4097_v28  ;;  %3251 = vmatpush1.bf16.msra.mxu0 %v4100_v29  ;;  %v4187_v28 = vld [vmem:[%s5040_s19 + $0x214] ss:$8 sps:$4 sm:$0xff]  }
 0x16d   : > { %3048 = vmatprep.subr.bf16.mxu1 %v4105_v30  ;;  %3252 = vmatprep.subr.bf16.mxu0 %v4108_v31  ;;  %v4190_v29 = vld [vmem:[%s5040_s19 + $0x614] ss:$8 sps:$4 sm:$0xff]   ;;  %v3601_v30 = vcombine.high %v1298_v0, %v1298_v0  ;;  %v3609_v31 = vcombine.high %v1302_v2, %v1302_v2  ;;  %v4260_v2 = vld [vmem:[%s5040_s19 + $0x6d0] ss:$8 sps:$4 sm:$0xff]  }
 0x170   : > { %3049 = vmatpush1.bf16.msra.mxu1 %v4103_v32  ;;  %3253 = vmatpush1.bf16.msra.mxu0 %v4106_v33  ;;  %v4185_v32 = vld [vmem:[%s5040_s19 + $0x210] ss:$8 sps:$4 sm:$0xff]  }
 0x171   : > { %3050 = vmatprep.subr.bf16.mxu1 %v4111_v34  ;;  %3254 = vmatprep.subr.bf16.mxu0 %v4114_v35  ;;  %v4188_v33 = vld [vmem:[%s5040_s19 + $0x610] ss:$8 sps:$4 sm:$0xff]   ;;  %v4193_v34 = vld [vmem:[%s5040_s19 + $0x224] ss:$8 sps:$4 sm:$0xff]  }
 0x172   : > { %v4196_v35 = vld [vmem:[%s5040_s19 + $0x624] ss:$8 sps:$4 sm:$0xff]  }
 0x174   : > { %3051 = vmatpush1.bf16.msra.mxu1 %v4109_v36  ;;  %3255 = vmatpush1.bf16.msra.mxu0 %v4112_v37  ;;  %v5229_v36 = vld [vmem:[%s5439_s0 + $0x10] sm:$0xff] }
 0x175   : > { %3052 = vmatprep.subr.bf16.mxu1 %v4117_v38  ;;  %3256 = vmatprep.subr.bf16.mxu0 %v4120_v39  ;;  %v5234_v37 = vld [vmem:[%s5439_s0 + $0x50] sm:$0xff]  ;;  %v3600_v39 = vcombine.low %v1298_v0, %v1298_v0 }
 0x176   : > { %v5239_v38 = vld [vmem:[%s5439_s0 + $0x30] sm:$0xff]  ;;  %v3587_v46 = vcombine.high %v5229_v36, %v5234_v37 }
 0x177   : > { %v4259_v0 = vld [vmem:[%s5040_s19 + $0x2d4] ss:$8 sps:$4 sm:$0xff]  }
 0x178   : > { %3053 = vmatpush1.bf16.msra.mxu1 %v4115_v42  ;;  %3257 = vmatpush1.bf16.msra.mxu0 %v4118_v44  ;;  %v4191_v42 = vld [vmem:[%s5040_s19 + $0x220] ss:$8 sps:$4 sm:$0xff]   ;;  %v4199_v44 = vld [vmem:[%s5040_s19 + $0x234] ss:$8 sps:$4 sm:$0xff]  }
 0x179   : > { %3054 = vmatprep.subr.bf16.mxu1 %v4123_v47  ;;  %3258 = vmatprep.subr.bf16.mxu0 %v4126_v49  ;;  %v3595_v47 = vcombine.high %v5239_v38, %v5244_v41  ;;  %v4200_v49 = vld [vmem:[%s5040_s19 + $0x630] ss:$8 sps:$4 sm:$0xff]  }
 0x17c   : > { %3055 = vmatpush1.bf16.msra.mxu1 %v4121_v50  ;;  %3259 = vmatpush1.bf16.msra.mxu0 %v4124_v51  ;;  %v4205_v50 = vld [vmem:[%s5040_s19 + $0x244] ss:$8 sps:$4 sm:$0xff]  }
 0x17d   : > { %3056 = vmatprep.subr.bf16.mxu1 %v4129_v52  ;;  %3260 = vmatprep.subr.bf16.mxu0 %v4132_v53  ;;  %v4208_v51 = vld [vmem:[%s5040_s19 + $0x644] ss:$8 sps:$4 sm:$0xff]   ;;  %v4203_v52 = vld [vmem:[%s5040_s19 + $0x240] ss:$8 sps:$4 sm:$0xff]  }
 0x17e   : > { %v4206_v53 = vld [vmem:[%s5040_s19 + $0x640] ss:$8 sps:$4 sm:$0xff]  }
 0x180   : > { %3057 = vmatpush1.bf16.msra.mxu1 %v4127_v54  ;;  %3261 = vmatpush1.bf16.msra.mxu0 %v4130_v55  ;;  %v4211_v54 = vld [vmem:[%s5040_s19 + $0x254] ss:$8 sps:$4 sm:$0xff]  }
 0x181   : > { %3058 = vmatprep.subr.bf16.mxu1 %v4135_v56  ;;  %3262 = vmatprep.subr.bf16.mxu0 %v4138_v57  ;;  %v4214_v55 = vld [vmem:[%s5040_s19 + $0x654] ss:$8 sps:$4 sm:$0xff]   ;;  %v4209_v56 = vld [vmem:[%s5040_s19 + $0x250] ss:$8 sps:$4 sm:$0xff]  }
 0x182   : > { %v4212_v57 = vld [vmem:[%s5040_s19 + $0x650] ss:$8 sps:$4 sm:$0xff]  }
 0x184   : > { %3059 = vmatpush1.bf16.msra.mxu1 %v4133_v58  ;;  %3263 = vmatpush1.bf16.msra.mxu0 %v4136_v59  ;;  %v4217_v58 = vld [vmem:[%s5040_s19 + $0x264] ss:$8 sps:$4 sm:$0xff]  }
 0x185   : > { %3060 = vmatprep.subr.bf16.mxu1 %v4141_v60  ;;  %3264 = vmatprep.subr.bf16.mxu0 %v4144_v61  ;;  %v4220_v59 = vld [vmem:[%s5040_s19 + $0x664] ss:$8 sps:$4 sm:$0xff]   ;;  %v4215_v60 = vld [vmem:[%s5040_s19 + $0x260] ss:$8 sps:$4 sm:$0xff]  }
 0x186   : > { %v4218_v61 = vld [vmem:[%s5040_s19 + $0x660] ss:$8 sps:$4 sm:$0xff]  }
 0x188   : > { %3061 = vmatpush1.bf16.msra.mxu1 %v4139_v62  ;;  %3265 = vmatpush1.bf16.msra.mxu0 %v4142_v63  ;;  %v4223_v62 = vld [vmem:[%s5040_s19 + $0x274] ss:$8 sps:$4 sm:$0xff]  }
 0x189   : > { %3062 = vmatprep.subr.bf16.mxu1 %v4147_v4  ;;  %3266 = vmatprep.subr.bf16.mxu0 %v4150_v7  ;;  %v4226_v63 = vld [vmem:[%s5040_s19 + $0x674] ss:$8 sps:$4 sm:$0xff]   ;;  %v4221_v4 = vld [vmem:[%s5040_s19 + $0x270] ss:$8 sps:$4 sm:$0xff]  }
 0x18a   : > { %v4224_v7 = vld [vmem:[%s5040_s19 + $0x670] ss:$8 sps:$4 sm:$0xff]  }
 0x18c   : > { %3063 = vmatpush1.bf16.msra.mxu1 %v4145_v8  ;;  %3267 = vmatpush1.bf16.msra.mxu0 %v4148_v9  ;;  %v4229_v8 = vld [vmem:[%s5040_s19 + $0x284] ss:$8 sps:$4 sm:$0xff]  }
 0x18d   : > { %3064 = vmatprep.subr.bf16.mxu1 %v4153_v10  ;;  %3268 = vmatprep.subr.bf16.mxu0 %v4156_v11  ;;  %v4232_v9 = vld [vmem:[%s5040_s19 + $0x684] ss:$8 sps:$4 sm:$0xff]   ;;  %v4227_v10 = vld [vmem:[%s5040_s19 + $0x280] ss:$8 sps:$4 sm:$0xff]  }
 0x18e   : > { %v4230_v11 = vld [vmem:[%s5040_s19 + $0x680] ss:$8 sps:$4 sm:$0xff]  }
 0x190   : > { %3065 = vmatpush1.bf16.msra.mxu1 %v4151_v12  ;;  %3269 = vmatpush1.bf16.msra.mxu0 %v4154_v13  ;;  %v4235_v12 = vld [vmem:[%s5040_s19 + $0x294] ss:$8 sps:$4 sm:$0xff]  }
 0x191   : > { %3066 = vmatprep.subr.bf16.mxu1 %v4159_v14  ;;  %3270 = vmatprep.subr.bf16.mxu0 %v4162_v15  ;;  %v4238_v13 = vld [vmem:[%s5040_s19 + $0x694] ss:$8 sps:$4 sm:$0xff]   ;;  %v4233_v14 = vld [vmem:[%s5040_s19 + $0x290] ss:$8 sps:$4 sm:$0xff]  }
 0x192   : > { %v4236_v15 = vld [vmem:[%s5040_s19 + $0x690] ss:$8 sps:$4 sm:$0xff]  }
 0x194   : > { %3067 = vmatpush1.bf16.msra.mxu1 %v4157_v16  ;;  %3271 = vmatpush1.bf16.msra.mxu0 %v4160_v17  ;;  %v4241_v16 = vld [vmem:[%s5040_s19 + $0x2a4] ss:$8 sps:$4 sm:$0xff]  }
 0x195   : > { %3068 = vmatprep.subr.bf16.mxu1 %v4166_v18  ;;  %3272 = vmatprep.subr.bf16.mxu0 %v4170_v19  ;;  %v4244_v17 = vld [vmem:[%s5040_s19 + $0x6a4] ss:$8 sps:$4 sm:$0xff]   ;;  %v4239_v18 = vld [vmem:[%s5040_s19 + $0x2a0] ss:$8 sps:$4 sm:$0xff]  }
 0x196   : > { %v4242_v19 = vld [vmem:[%s5040_s19 + $0x6a0] ss:$8 sps:$4 sm:$0xff]  }
 0x198   : > { %3069 = vmatpush1.bf16.msra.mxu1 %v4164_v20  ;;  %3273 = vmatpush1.bf16.msra.mxu0 %v4168_v21  ;;  %v4247_v20 = vld [vmem:[%s5040_s19 + $0x2b4] ss:$8 sps:$4 sm:$0xff]  }
 0x199   : > { %3070 = vmatprep.subr.bf16.mxu1 %v4175_v22  ;;  %3274 = vmatprep.subr.bf16.mxu0 %v4178_v23  ;;  %v4250_v21 = vld [vmem:[%s5040_s19 + $0x6b4] ss:$8 sps:$4 sm:$0xff]   ;;  %v4245_v22 = vld [vmem:[%s5040_s19 + $0x2b0] ss:$8 sps:$4 sm:$0xff]  }
 0x19a   : > { %v4248_v23 = vld [vmem:[%s5040_s19 + $0x6b0] ss:$8 sps:$4 sm:$0xff]  }
 0x19c   : > { %3071 = vmatpush1.bf16.msra.mxu1 %v4173_v24  ;;  %3275 = vmatpush1.bf16.msra.mxu0 %v4176_v25  ;;  %v4253_v24 = vld [vmem:[%s5040_s19 + $0x2c4] ss:$8 sps:$4 sm:$0xff]  }
 0x19d   : > { %3091 = vmatprep.subr.bf16.mxu1 %v4181_v26  ;;  %3295 = vmatprep.subr.bf16.mxu0 %v4184_v27  ;;  %v4256_v25 = vld [vmem:[%s5040_s19 + $0x6c4] ss:$8 sps:$4 sm:$0xff]   ;;  %v4251_v26 = vld [vmem:[%s5040_s19 + $0x2c0] ss:$8 sps:$4 sm:$0xff]  }
 0x19e   : > { %v4254_v27 = vld [vmem:[%s5040_s19 + $0x6c0] ss:$8 sps:$4 sm:$0xff]  }
 0x19f   : > { %3073 = vmatmul.mubr.bf16.vlgmr.msra.gmra.mrb[0].mxu1 %v3584_v1  ;;  %3277 = vmatmul.mubr.bf16.vlgmr.msra.gmra.mrb[0].mxu0 %v3592_v3  ;;  %v4262_v1 = vld [vmem:[%s5040_s19 + $0x6d4] ss:$8 sps:$4 sm:$0xff]   ;;  %v4257_v3 = vld [vmem:[%s5040_s19 + $0x2d0] ss:$8 sps:$4 sm:$0xff]  }
 0x1a0   : > { %3092 = vmatpush1.bf16.msra.mxu1 %v4179_v5  ;;  %3296 = vmatpush1.bf16.msra.mxu0 %v4182_v6  ;;  %v4266_v5 = vld [vmem:[%s5040_s19 + $0x2e4] ss:$8 sps:$4 sm:$0xff]  }
 0x1a1   : > { %3093 = vmatprep.subr.bf16.mxu1 %v4187_v28  ;;  %3297 = vmatprep.subr.bf16.mxu0 %v4190_v29  ;;  %v4270_v6 = vld [vmem:[%s5040_s19 + $0x6e4] ss:$8 sps:$4 sm:$0xff]   ;;  %v4264_v28 = vld [vmem:[%s5040_s19 + $0x2e0] ss:$8 sps:$4 sm:$0xff]  }
 0x1a2   : > { %3082 = vmatprep.mubr.bf16.mxu1 %v3601_v30  ;;  %3286 = vmatprep.mubr.bf16.mxu0 %v3609_v31  ;;  %v4268_v29 = vld [vmem:[%s5040_s19 + $0x6e0] ss:$8 sps:$4 sm:$0xff]   ;;  %v4275_v30 = vld [vmem:[%s5040_s19 + $0x2f4] ss:$8 sps:$4 sm:$0xff]  }
 0x1a3   : > { %v4278_v31 = vld [vmem:[%s5040_s19 + $0x6f4] ss:$8 sps:$4 sm:$0xff]  }
 0x1a4   : > { %3094 = vmatpush1.bf16.msra.mxu1 %v4185_v32  ;;  %3298 = vmatpush1.bf16.msra.mxu0 %v4188_v33  ;;  %v4273_v32 = vld [vmem:[%s5040_s19 + $0x2f0] ss:$8 sps:$4 sm:$0xff]  }
 0x1a5   : > { %3095 = vmatprep.subr.bf16.mxu1 %v4193_v34  ;;  %3299 = vmatprep.subr.bf16.mxu0 %v4196_v35  ;;  %v4276_v33 = vld [vmem:[%s5040_s19 + $0x6f0] ss:$8 sps:$4 sm:$0xff]   ;;  %v4281_v34 = vld [vmem:[%s5040_s19 + $0x304] ss:$8 sps:$4 sm:$0xff]  }
 0x1a6   : > { %v4284_v35 = vld [vmem:[%s5040_s19 + $0x704] ss:$8 sps:$4 sm:$0xff]  }
 0x1a7   : > { %3083 = vmatmul.mubr.bf16.gmra.mrb[4].mxu1 %v3600_v39  ;;  %3287 = vmatmul.mubr.bf16.gmra.mrb[4].mxu0 %v3608_v40  ;;  %v3586_v39 = vcombine.low %v5229_v36, %v5234_v37  ;;  %v3594_v40 = vcombine.low %v5239_v38, %v5244_v41  ;;  %v4287_v36 = vld [vmem:[%s5040_s19 + $0x314] ss:$8 sps:$4 sm:$0xff]  }
 0x1a8   : > { %3096 = vmatpush1.bf16.msra.mxu1 %v4191_v42  ;;  %3300 = vmatpush1.bf16.msra.mxu0 %v4194_v43  ;;  %v1299_v42 = vld [vmem:[%s5439_s0 + $0x90] sm:$0xff] }
 0x1a9   : > { %3097 = vmatprep.subr.bf16.mxu1 %v4199_v44  ;;  %3301 = vmatprep.subr.bf16.mxu0 %v4202_v45  ;;  %v1303_v43 = vld [vmem:[%s5439_s0 + $0xb0] sm:$0xff]  ;;  %v4279_v44 = vld [vmem:[%s5040_s19 + $0x300] ss:$8 sps:$4 sm:$0xff]   ;;  %v3603_v38 = vcombine.high %v1299_v42, %v1299_v42 }
 0x1aa   : > { %3123 = vmatprep.mubr.bf16.mxu1 %v3587_v46  ;;  %3327 = vmatprep.mubr.bf16.mxu0 %v3595_v47  ;;  %v4282_v45 = vld [vmem:[%s5040_s19 + $0x700] ss:$8 sps:$4 sm:$0xff]   ;;  %v4290_v37 = vld [vmem:[%s5040_s19 + $0x714] ss:$8 sps:$4 sm:$0xff]   ;;  %v3611_v41 = vcombine.high %v1303_v43, %v1303_v43  ;;  %v4285_v46 = vld [vmem:[%s5040_s19 + $0x310] ss:$8 sps:$4 sm:$0xff]  }
 0x1ab   : > { %v4288_v47 = vld [vmem:[%s5040_s19 + $0x710] ss:$8 sps:$4 sm:$0xff]  }
 0x1ac   : > { %3098 = vmatpush1.bf16.msra.mxu1 %v4197_v48  ;;  %3302 = vmatpush1.bf16.msra.mxu0 %v4200_v49  ;;  %v4293_v48 = vld [vmem:[%s5040_s19 + $0x324] ss:$8 sps:$4 sm:$0xff]  }
 0x1ad   : > { %3099 = vmatprep.subr.bf16.mxu1 %v4205_v50  ;;  %3303 = vmatprep.subr.bf16.mxu0 %v4208_v51  ;;  %v4296_v49 = vld [vmem:[%s5040_s19 + $0x724] ss:$8 sps:$4 sm:$0xff]   ;;  %v5327_v50 = vld [vmem:[%s5439_s0 + $0x18] sm:$0xff]  ;;  %v3602_v51 = vcombine.low %v1299_v42, %v1299_v42 }
 0x1ae   : > { %v4357_v42 = vld [vmem:[%s5040_s19 + $0x3d0] ss:$8 sps:$4 sm:$0xff]  }
 0x1b0   : > { %3100 = vmatpush1.bf16.msra.mxu1 %v4203_v52  ;;  %3304 = vmatpush1.bf16.msra.mxu0 %v4206_v53  ;;  %v3610_v52 = vcombine.low %v1303_v43, %v1303_v43  ;;  %v5332_v53 = vld [vmem:[%s5439_s0 + $0x58] sm:$0xff] }
 0x1b1   : > { %3101 = vmatprep.subr.bf16.mxu1 %v4211_v54  ;;  %3305 = vmatprep.subr.bf16.mxu0 %v4214_v55  ;;  %v5337_v54 = vld [vmem:[%s5439_s0 + $0x38] sm:$0xff] }
 0x1b2   : > { %v5342_v55 = vld [vmem:[%s5439_s0 + $0x78] sm:$0xff] }
 0x1b3   : > { %v4360_v43 = vld [vmem:[%s5040_s19 + $0x7d0] ss:$8 sps:$4 sm:$0xff]  }
 0x1b4   : > { %3102 = vmatpush1.bf16.msra.mxu1 %v4209_v56  ;;  %3306 = vmatpush1.bf16.msra.mxu0 %v4212_v57  ;;  %v4291_v56 = vld [vmem:[%s5040_s19 + $0x320] ss:$8 sps:$4 sm:$0xff]  }
 0x1b5   : > { %3103 = vmatprep.subr.bf16.mxu1 %v4217_v58  ;;  %3307 = vmatprep.subr.bf16.mxu0 %v4220_v59  ;;  %v4294_v57 = vld [vmem:[%s5040_s19 + $0x720] ss:$8 sps:$4 sm:$0xff]   ;;  %v4299_v58 = vld [vmem:[%s5040_s19 + $0x334] ss:$8 sps:$4 sm:$0xff]  }
 0x1b6   : > { %v4302_v59 = vld [vmem:[%s5040_s19 + $0x734] ss:$8 sps:$4 sm:$0xff]  }
 0x1b8   : > { %3104 = vmatpush1.bf16.msra.mxu1 %v4215_v60  ;;  %3308 = vmatpush1.bf16.msra.mxu0 %v4218_v61  ;;  %v3589_v60 = vcombine.high %v5327_v50, %v5332_v53  ;;  %v3597_v61 = vcombine.high %v5337_v54, %v5342_v55 }
 0x1b9   : > { %3105 = vmatprep.subr.bf16.mxu1 %v4223_v62  ;;  %3309 = vmatprep.subr.bf16.mxu0 %v4226_v63  ;;  %v4297_v62 = vld [vmem:[%s5040_s19 + $0x330] ss:$8 sps:$4 sm:$0xff]  }
 0x1ba   : > { %v4300_v63 = vld [vmem:[%s5040_s19 + $0x730] ss:$8 sps:$4 sm:$0xff]  }
 0x1bc   : > { %3106 = vmatpush1.bf16.msra.mxu1 %v4221_v4  ;;  %3310 = vmatpush1.bf16.msra.mxu0 %v4224_v7  ;;  %v4305_v4 = vld [vmem:[%s5040_s19 + $0x344] ss:$8 sps:$4 sm:$0xff]  }
 0x1bd   : > { %3107 = vmatprep.subr.bf16.mxu1 %v4229_v8  ;;  %3311 = vmatprep.subr.bf16.mxu0 %v4232_v9  ;;  %v4308_v7 = vld [vmem:[%s5040_s19 + $0x744] ss:$8 sps:$4 sm:$0xff]   ;;  %v4303_v8 = vld [vmem:[%s5040_s19 + $0x340] ss:$8 sps:$4 sm:$0xff]  }
 0x1be   : > { %v4306_v9 = vld [vmem:[%s5040_s19 + $0x740] ss:$8 sps:$4 sm:$0xff]  }
 0x1c0   : > { %3108 = vmatpush1.bf16.msra.mxu1 %v4227_v10  ;;  %3312 = vmatpush1.bf16.msra.mxu0 %v4230_v11  ;;  %v4311_v10 = vld [vmem:[%s5040_s19 + $0x354] ss:$8 sps:$4 sm:$0xff]  }
 0x1c1   : > { %3109 = vmatprep.subr.bf16.mxu1 %v4235_v12  ;;  %3313 = vmatprep.subr.bf16.mxu0 %v4238_v13  ;;  %v4314_v11 = vld [vmem:[%s5040_s19 + $0x754] ss:$8 sps:$4 sm:$0xff]   ;;  %v4309_v12 = vld [vmem:[%s5040_s19 + $0x350] ss:$8 sps:$4 sm:$0xff]  }
 0x1c2   : > { %v4312_v13 = vld [vmem:[%s5040_s19 + $0x750] ss:$8 sps:$4 sm:$0xff]  }
 0x1c4   : > { %3110 = vmatpush1.bf16.msra.mxu1 %v4233_v14  ;;  %3314 = vmatpush1.bf16.msra.mxu0 %v4236_v15  ;;  %v4317_v14 = vld [vmem:[%s5040_s19 + $0x364] ss:$8 sps:$4 sm:$0xff]  }
 0x1c5   : > { %3111 = vmatprep.subr.bf16.mxu1 %v4241_v16  ;;  %3315 = vmatprep.subr.bf16.mxu0 %v4244_v17  ;;  %v4320_v15 = vld [vmem:[%s5040_s19 + $0x764] ss:$8 sps:$4 sm:$0xff]   ;;  %v4315_v16 = vld [vmem:[%s5040_s19 + $0x360] ss:$8 sps:$4 sm:$0xff]  }
 0x1c6   : > { %v4318_v17 = vld [vmem:[%s5040_s19 + $0x760] ss:$8 sps:$4 sm:$0xff]  }
 0x1c8   : > { %3112 = vmatpush1.bf16.msra.mxu1 %v4239_v18  ;;  %3316 = vmatpush1.bf16.msra.mxu0 %v4242_v19  ;;  %v4323_v18 = vld [vmem:[%s5040_s19 + $0x374] ss:$8 sps:$4 sm:$0xff]  }
 0x1c9   : > { %3113 = vmatprep.subr.bf16.mxu1 %v4247_v20  ;;  %3317 = vmatprep.subr.bf16.mxu0 %v4250_v21  ;;  %v4326_v19 = vld [vmem:[%s5040_s19 + $0x774] ss:$8 sps:$4 sm:$0xff]   ;;  %v4321_v20 = vld [vmem:[%s5040_s19 + $0x370] ss:$8 sps:$4 sm:$0xff]  }
 0x1ca   : > { %v4324_v21 = vld [vmem:[%s5040_s19 + $0x770] ss:$8 sps:$4 sm:$0xff]  }
 0x1cc   : > { %3114 = vmatpush1.bf16.msra.mxu1 %v4245_v22  ;;  %3318 = vmatpush1.bf16.msra.mxu0 %v4248_v23  ;;  %v4329_v22 = vld [vmem:[%s5040_s19 + $0x384] ss:$8 sps:$4 sm:$0xff]  }
 0x1cd   : > { %3115 = vmatprep.subr.bf16.mxu1 %v4253_v24  ;;  %3319 = vmatprep.subr.bf16.mxu0 %v4256_v25  ;;  %v4332_v23 = vld [vmem:[%s5040_s19 + $0x784] ss:$8 sps:$4 sm:$0xff]   ;;  %v4327_v24 = vld [vmem:[%s5040_s19 + $0x380] ss:$8 sps:$4 sm:$0xff]  }
 0x1ce   : > { %v4330_v25 = vld [vmem:[%s5040_s19 + $0x780] ss:$8 sps:$4 sm:$0xff]  }
 0x1d0   : > { %3116 = vmatpush1.bf16.msra.mxu1 %v4251_v26  ;;  %3320 = vmatpush1.bf16.msra.mxu0 %v4254_v27  ;;  %v4335_v26 = vld [vmem:[%s5040_s19 + $0x394] ss:$8 sps:$4 sm:$0xff]  }
 0x1d1   : > { %3117 = vmatprep.subr.bf16.mxu1 %v4259_v0  ;;  %3321 = vmatprep.subr.bf16.mxu0 %v4262_v1  ;;  %v4338_v27 = vld [vmem:[%s5040_s19 + $0x794] ss:$8 sps:$4 sm:$0xff]   ;;  %v4333_v0 = vld [vmem:[%s5040_s19 + $0x390] ss:$8 sps:$4 sm:$0xff]  }
 0x1d2   : > { %v4336_v1 = vld [vmem:[%s5040_s19 + $0x790] ss:$8 sps:$4 sm:$0xff]  }
 0x1d4   : > { %3118 = vmatpush1.bf16.msra.mxu1 %v4257_v3  ;;  %3322 = vmatpush1.bf16.msra.mxu0 %v4260_v2  ;;  %v4341_v3 = vld [vmem:[%s5040_s19 + $0x3a4] ss:$8 sps:$4 sm:$0xff]  }
 0x1d5   : > { %3119 = vmatprep.subr.bf16.mxu1 %v4266_v5  ;;  %3323 = vmatprep.subr.bf16.mxu0 %v4270_v6  ;;  %v4344_v2 = vld [vmem:[%s5040_s19 + $0x7a4] ss:$8 sps:$4 sm:$0xff]   ;;  %v4339_v5 = vld [vmem:[%s5040_s19 + $0x3a0] ss:$8 sps:$4 sm:$0xff]  }
 0x1d6   : > { %v4342_v6 = vld [vmem:[%s5040_s19 + $0x7a0] ss:$8 sps:$4 sm:$0xff]  }
 0x1d8   : > { %3120 = vmatpush1.bf16.msra.mxu1 %v4264_v28  ;;  %3324 = vmatpush1.bf16.msra.mxu0 %v4268_v29  ;;  %v4347_v28 = vld [vmem:[%s5040_s19 + $0x3b4] ss:$8 sps:$4 sm:$0xff]  }
 0x1d9   : > { %3121 = vmatprep.subr.bf16.mxu1 %v4275_v30  ;;  %3325 = vmatprep.subr.bf16.mxu0 %v4278_v31  ;;  %v4350_v29 = vld [vmem:[%s5040_s19 + $0x7b4] ss:$8 sps:$4 sm:$0xff]   ;;  %v4345_v30 = vld [vmem:[%s5040_s19 + $0x3b0] ss:$8 sps:$4 sm:$0xff]  }
 0x1da   : > { %v4348_v31 = vld [vmem:[%s5040_s19 + $0x7b0] ss:$8 sps:$4 sm:$0xff]  }
 0x1dc   : > { %3122 = vmatpush1.bf16.msra.mxu1 %v4273_v32  ;;  %3326 = vmatpush1.bf16.msra.mxu0 %v4276_v33  ;;  %v4353_v32 = vld [vmem:[%s5040_s19 + $0x3c4] ss:$8 sps:$4 sm:$0xff]  }
 0x1dd   : > { %3142 = vmatprep.subr.bf16.mxu1 %v4281_v34  ;;  %3346 = vmatprep.subr.bf16.mxu0 %v4284_v35  ;;  %v4356_v33 = vld [vmem:[%s5040_s19 + $0x7c4] ss:$8 sps:$4 sm:$0xff]   ;;  %v4351_v34 = vld [vmem:[%s5040_s19 + $0x3c0] ss:$8 sps:$4 sm:$0xff]  }
 0x1de   : > { %v4354_v35 = vld [vmem:[%s5040_s19 + $0x7c0] ss:$8 sps:$4 sm:$0xff]  }
 0x1df   : > { %3124 = vmatmul.mubr.bf16.vlgmr.msra.gmra.mrb[0].mxu1 %v3586_v39  ;;  %3328 = vmatmul.mubr.bf16.vlgmr.msra.gmra.mrb[0].mxu0 %v3594_v40  ;;  %v4359_v39 = vld [vmem:[%s5040_s19 + $0x3d4] ss:$8 sps:$4 sm:$0xff]  }
 0x1e0   : > { %3143 = vmatpush1.bf16.msra.mxu1 %v4279_v44  ;;  %3347 = vmatpush1.bf16.msra.mxu0 %v4282_v45  ;;  %v4362_v40 = vld [vmem:[%s5040_s19 + $0x7d4] ss:$8 sps:$4 sm:$0xff]   ;;  %v4368_v44 = vld [vmem:[%s5040_s19 + $0x3e4] ss:$8 sps:$4 sm:$0xff]  }
 0x1e1   : > { %3144 = vmatprep.subr.bf16.mxu1 %v4287_v36  ;;  %3348 = vmatprep.subr.bf16.mxu0 %v4290_v37  ;;  %v4372_v45 = vld [vmem:[%s5040_s19 + $0x7e4] ss:$8 sps:$4 sm:$0xff]   ;;  %v4366_v36 = vld [vmem:[%s5040_s19 + $0x3e0] ss:$8 sps:$4 sm:$0xff]  }
 0x1e2   : > { %3133 = vmatprep.mubr.bf16.mxu1 %v3603_v38  ;;  %3337 = vmatprep.mubr.bf16.mxu0 %v3611_v41  ;;  %v4370_v37 = vld [vmem:[%s5040_s19 + $0x7e0] ss:$8 sps:$4 sm:$0xff]   ;;  %v4375_v38 = vld [vmem:[%s5040_s19 + $0x3f4] ss:$8 sps:$4 sm:$0xff]  }
 0x1e3   : > { %v4378_v41 = vld [vmem:[%s5040_s19 + $0x7f4] ss:$8 sps:$4 sm:$0xff]  }
 0x1e4   : > { %3145 = vmatpush1.bf16.msra.mxu1 %v4285_v46  ;;  %3349 = vmatpush1.bf16.msra.mxu0 %v4288_v47  ;;  %v4373_v46 = vld [vmem:[%s5040_s19 + $0x3f0] ss:$8 sps:$4 sm:$0xff]  }
 0x1e5   : > { %3146 = vmatprep.subr.bf16.mxu1 %v4293_v48  ;;  %3350 = vmatprep.subr.bf16.mxu0 %v4296_v49  ;;  %v4376_v47 = vld [vmem:[%s5040_s19 + $0x7f0] ss:$8 sps:$4 sm:$0xff]   ;;  %s3581_s19 = sshll.u32 %s4413_s14, 1 }
 0x1e6   : > { %v1300_v48 = vld [vmem:[%s5439_s0 + $0x98] sm:$0xff]  ;;  %p1275_p11 = scmp.lt.s32.totalorder %s3581_s19, 7 }
 0x1e7   : > { %3134 = vmatmul.mubr.bf16.gmra.mrb[4].mxu1 %v3602_v51  ;;  %3338 = vmatmul.mubr.bf16.gmra.mrb[4].mxu0 %v3610_v52  ;;  %v1304_v49 = vld [vmem:[%s5439_s0 + $0xb8] sm:$0xff]  ;;  %v3588_v51 = vcombine.low %v5327_v50, %v5332_v53  ;;  %v3596_v52 = vcombine.low %v5337_v54, %v5342_v55 }
 0x1e8   : > { %3147 = vmatpush1.bf16.msra.mxu1 %v4291_v56  ;;  %3351 = vmatpush1.bf16.msra.mxu0 %v4294_v57  ;;  %v3605_v56 = vcombine.high %v1300_v48, %v1300_v48  ;;  %v3613_v57 = vcombine.high %v1304_v49, %v1304_v49  ;;  %s5451_s19 = smov (!%p1275_p11, %s3581_s19), 7 }
 0x1e9   : > { %3148 = vmatprep.subr.bf16.mxu1 %v4299_v58  ;;  %3352 = vmatprep.subr.bf16.mxu0 %v4302_v59  ;;  %v3604_v58 = vcombine.low %v1300_v48, %v1300_v48  ;;  %v3612_v59 = vcombine.low %v1304_v49, %v1304_v49  ;;  %s1277_s4 = scalar_lea.vmem %s5441_s2, %s5451_s19 }
 0x1ea   : > { %3174 = vmatprep.mubr.bf16.mxu1 %v3589_v60  ;;  %3378 = vmatprep.mubr.bf16.mxu0 %v3597_v61  ;;  %v1563_v60 = vlaneseq  ;;  %v1561_v54 = vld [vmem:[%s1277_s4] sm:$0x3] }
 0x1ec   : > { %3149 = vmatpush1.bf16.msra.mxu1 %v4297_v62  ;;  %3353 = vmatpush1.bf16.msra.mxu0 %v4300_v63  ;;  %v1564_v50 = vshrl.u32 %v1563_v60, 7 }
 0x1ed   : > { %3150 = vmatprep.subr.bf16.mxu1 %v4305_v4  ;;  %3354 = vmatprep.subr.bf16.mxu0 %v4308_v7 }
 0x1ee   : > { %v1565_v53 = vsub.s32 0, %v1564_v50  ;;  %v1569_v55 = vsub.s32 1, %v1564_v50 }
 0x1f0   : > { %3151 = vmatpush1.bf16.msra.mxu1 %v4303_v8  ;;  %3355 = vmatpush1.bf16.msra.mxu0 %v4306_v9  ;;  %v1566_v61 = vrot.slane %v1561_v54, %v1565_v53  ;;  %v1570_v62 = vrot.slane %v1561_v54, %v1569_v55 }
 0x1f1   : > { %3152 = vmatprep.subr.bf16.mxu1 %v4311_v10  ;;  %3356 = vmatprep.subr.bf16.mxu0 %v4314_v11 }
 0x1f4   : > { %3153 = vmatpush1.bf16.msra.mxu1 %v4309_v12  ;;  %3357 = vmatpush1.bf16.msra.mxu0 %v4312_v13 }
 0x1f5   : > { %3154 = vmatprep.subr.bf16.mxu1 %v4317_v14  ;;  %3358 = vmatprep.subr.bf16.mxu0 %v4320_v15 }
 0x1f8   : > { %3155 = vmatpush1.bf16.msra.mxu1 %v4315_v16  ;;  %3359 = vmatpush1.bf16.msra.mxu0 %v4318_v17 }
 0x1f9   : > { %3156 = vmatprep.subr.bf16.mxu1 %v4323_v18  ;;  %3360 = vmatprep.subr.bf16.mxu0 %v4326_v19 }
 0x1fc   : > { %3157 = vmatpush1.bf16.msra.mxu1 %v4321_v20  ;;  %3361 = vmatpush1.bf16.msra.mxu0 %v4324_v21 }
 0x1fd   : > { %3158 = vmatprep.subr.bf16.mxu1 %v4329_v22  ;;  %3362 = vmatprep.subr.bf16.mxu0 %v4332_v23 }
 0x200   : > { %3159 = vmatpush1.bf16.msra.mxu1 %v4327_v24  ;;  %3363 = vmatpush1.bf16.msra.mxu0 %v4330_v25 }
 0x201   : > { %3160 = vmatprep.subr.bf16.mxu1 %v4335_v26  ;;  %3364 = vmatprep.subr.bf16.mxu0 %v4338_v27 }
 0x204   : > { %3161 = vmatpush1.bf16.msra.mxu1 %v4333_v0  ;;  %3365 = vmatpush1.bf16.msra.mxu0 %v4336_v1 }
 0x205   : > { %3162 = vmatprep.subr.bf16.mxu1 %v4341_v3  ;;  %3366 = vmatprep.subr.bf16.mxu0 %v4344_v2 }
 0x208   : > { %3163 = vmatpush1.bf16.msra.mxu1 %v4339_v5  ;;  %3367 = vmatpush1.bf16.msra.mxu0 %v4342_v6 }
 0x209   : > { %3164 = vmatprep.subr.bf16.mxu1 %v4347_v28  ;;  %3368 = vmatprep.subr.bf16.mxu0 %v4350_v29 }
 0x20c   : > { %3165 = vmatpush1.bf16.msra.mxu1 %v4345_v30  ;;  %3369 = vmatpush1.bf16.msra.mxu0 %v4348_v31 }
 0x20d   : > { %3166 = vmatprep.subr.bf16.mxu1 %v4353_v32  ;;  %3370 = vmatprep.subr.bf16.mxu0 %v4356_v33 }
 0x210   : > { %3167 = vmatpush1.bf16.msra.mxu1 %v4351_v34  ;;  %3371 = vmatpush1.bf16.msra.mxu0 %v4354_v35 }
 0x211   : > { %3168 = vmatprep.subr.bf16.mxu1 %v4359_v39  ;;  %3372 = vmatprep.subr.bf16.mxu0 %v4362_v40 }
 0x214   : > { %3169 = vmatpush1.bf16.msra.mxu1 %v4357_v42  ;;  %3373 = vmatpush1.bf16.msra.mxu0 %v4360_v43 }
 0x215   : > { %3170 = vmatprep.subr.bf16.mxu1 %v4368_v44  ;;  %3374 = vmatprep.subr.bf16.mxu0 %v4372_v45 }
 0x218   : > { %3171 = vmatpush1.bf16.msra.mxu1 %v4366_v36  ;;  %3375 = vmatpush1.bf16.msra.mxu0 %v4370_v37 }
 0x219   : > { %3172 = vmatprep.subr.bf16.mxu1 %v4375_v38  ;;  %3376 = vmatprep.subr.bf16.mxu0 %v4378_v41 }
 0x21c   : > { %3173 = vmatpush1.bf16.msra.mxu1 %v4373_v46  ;;  %3377 = vmatpush1.bf16.msra.mxu0 %v4376_v47 }
 0x21f   : > { %3175 = vmatmul.mubr.bf16.vlgmr.msra.gmra.mrb[0].mxu1 %v3588_v51  ;;  %3379 = vmatmul.mubr.bf16.vlgmr.msra.gmra.mrb[0].mxu0 %v3596_v52 }
 0x220   : > { %3184 = vmatprep.mubr.bf16.mxu1 %v3605_v56  ;;  %3388 = vmatprep.mubr.bf16.mxu0 %v3613_v57 }
 0x227   : > { %3185 = vmatmul.mubr.bf16.gmra.mrb[4].mxu1 %v3604_v58  ;;  %3389 = vmatmul.mubr.bf16.gmra.mrb[4].mxu0 %v3612_v59 }
 0x2f2   : > { %v3176_v63 = vpop.f32.mrb[0].mxu1  ;;  %v3380_v4 = vpop.f32.mrb[0].mxu0 }
 0x2f3   : > { %v3882_v7 = vadd.f32 %v3176_v63, %v1566_v61  ;;  %v3178_v8 = vpop.f32.mrb[1].mxu1  ;;  %v3382_v9 = vpop.f32.mrb[1].mxu0 }
 0x2f4   : > { %v3884_v10 = vadd.f32 %v3178_v8, %v1570_v62  ;;  %v3180_v11 = vpop.f32.mrb[2].mxu1  ;;  %v3384_v12 = vpop.f32.mrb[2].mxu0 }
 0x2f5   : > { %v3883_v13 = vadd.f32 %v3882_v7, %v3380_v4  ;;  %v3886_v14 = vadd.f32 %v3180_v11, %v1566_v61  ;;  %v3182_v15 = vpop.f32.mrb[3].mxu1  ;;  %v3386_v16 = vpop.f32.mrb[3].mxu0 }
 0x2f6   : > { %v3885_v17 = vadd.f32 %v3884_v10, %v3382_v9  ;;  %v3888_v18 = vadd.f32 %v3182_v15, %v1570_v62 }
 0x2f7   : > { %v3397_v19 = vmax.f32 %v3883_v13, 0.0  ;;  %v3887_v20 = vadd.f32 %v3886_v14, %v3384_v12 }
 0x2f8   : > { %v3398_v21 = vmax.f32 %v3885_v17, 0.0  ;;  %v3889_v22 = vadd.f32 %v3888_v18, %v3386_v16 }
 0x2f9   : > { %v3399_v23 = vmax.f32 %v3887_v20, 0.0 }
 0x2fa   : > { %v3878_v24 = vpack.c.bf16 %v3398_v21, %v3397_v19  ;;  %v3400_v25 = vmax.f32 %v3889_v22, 0.0  ;;  %v3186_v26 = vpop.f32.mrb[4].mxu1  ;;  %v3390_v27 = vpop.f32.mrb[4].mxu0 }
 0x2fb   : > { %v3890_v0 = vadd.f32 %v3186_v26, %v1566_v61  ;;  %v3188_v1 = vpop.f32.mrb[5].mxu1  ;;  %v3392_v3 = vpop.f32.mrb[5].mxu0 }
 0x2fc   : > { %3423 = vst [vmem:[%s1265_s6] sm:$0xff] %v3878_v24  ;;  %v3879_v2 = vpack.c.bf16 %v3400_v25, %v3399_v23  ;;  %v3892_v5 = vadd.f32 %v3188_v1, %v1570_v62  ;;  %v3190_v6 = vpop.f32.mrb[6].mxu1  ;;  %v3394_v28 = vpop.f32.mrb[6].mxu0 }
 0x2fd   : > { %v3891_v29 = vadd.f32 %v3890_v0, %v3390_v27  ;;  %v3191_v30 = vpop.f32.mrb[7].mxu1  ;;  %v3395_v31 = vpop.f32.mrb[7].mxu0 }
 0x2fe   : > { %3424 = vst [vmem:[%s1265_s6 + $0x8] sm:$0xff] %v3879_v2  ;;  %v3893_v32 = vadd.f32 %v3892_v5, %v3392_v3  ;;  %3432 = sbr.rel (!%p4478_p6) target bundleno = 781 (0x30d), region = 74 }
 0x2ff   : > { %v3401_v33 = vmax.f32 %v3891_v29, 0.0 }
 0x300   : > { %v3402_v34 = vmax.f32 %v3893_v32, 0.0 }
 0x302   : > { %v3880_v35 = vpack.c.bf16 %v3402_v34, %v3401_v33 }
 0x303   : > { %v3470_v39 = vld [vmem:[%s1265_s6] sm:$0xff] (%p4478_p6) }
 0x304   : > { %3425 = vst [vmem:[%s1265_s6 + $0x10] sm:$0xff] %v3880_v35  ;;  %3471 = vst [vmem:[%s3438_s8] sm:$0xff] (%p4478_p6), %v3470_v39 }
 0x305   : > { %v3472_v40 = vld [vmem:[%s1265_s6 + $0x8] sm:$0xff] }
 0x306   : > { %3473 = vst [vmem:[%s3438_s8 + $0x20] sm:$0xff] %v3472_v40 }
 0x30b   : > { %v3474_v42 = vld [vmem:[%s1265_s6 + $0x10] sm:$0xff] }
 0x30c   : > { %3475 = vst [vmem:[%s3438_s8 + $0x40] sm:$0xff] %v3474_v42 }
 0x30d PF: > { %s13_s16 = sadd.s32 1, %s4421_s16   ;;  %s5444_s12 = smov %s4409_s13 }
 0x30e   : > { %p10_p12 = scmp.ge.s32.totalorder %s13_s16, 6   ;;  %s5445_s13 = smov %s4483_s22 }
 0x30f   : > { %s5446_s14 = smov %s4417_s15  ;;  %s5447_s15 = smov %s5449_s17 }
 0x310   :  { %12 = sbr.rel (!%p10_p12) target bundleno = 3 (0x3), region = 149 }

// kernel: decoder_forward.9
= control target key start
LH: loop header
LB: loop body
LE: loop exit
PB: predicated region body
PF: predicated region fallthrough
CT: control target
= control target key end

     0   :  { %s5001_s12 = smov 0   ;;  %s5003_s13 = smov 0   ;;  %s6155_s0 = inlined_call_operand.vmem [shape: bf16[64,2048], index: 0, kind: input, shape index: {}]   ;;  %s6156_s1 = inlined_call_operand.vmem [shape: bf16[2048,512], index: 1, kind: input, shape index: {}]   ;;  %s6157_s2 = inlined_call_operand.vmem [shape: f32[1,512], index: 2, kind: input, shape index: {}]   ;;  %s6158_s3 = inlined_call_operand.vmem [shape: bf16[64,512], index: 3, kind: output, shape index: {}]  }
   0x1   :  { %s5005_s14 = smov 0   ;;  %s5007_s15 = smov 0  }
   0x2   :  { %s5009_s16 = smov 0  }
   0x3 LB: > { %s22_s17 = sadd.s32 1, %s4975_s15  ;;  %s4034_s18 = sadd.s32 4294967295, %s4979_s16   ;;  %s4979_s16 = sphi %s5009_s16, %s13_s16   ;;  %s4975_s15 = sphi %s5007_s15, %s6163_s15   ;;  %s4971_s14 = sphi %s5005_s14, %s6162_s14   ;;  %s4967_s13 = sphi %s5003_s13, %s6161_s13   ;;  %s4963_s12 = sphi %s5001_s12, %s6160_s12  }
   0x4   : > { %p23_p0 = scmp.ge.s32.totalorder %s22_s17, 2  ;;  %p65_p1 = scmp.ne.s32.totalorder %s4967_s13, %s4963_s12 }
   0x5   : > { %p66_p2 = scmp.eq.s32.totalorder %s4979_s16, 0  ;;  %p123_p4 = scmp.eq.s32.totalorder %s4034_s18, 1 }
   0x6   : > { %s6165_s17 = smov (%p23_p0, %s22_s17), 0  ;;  %s58_s20 = sadd.s32 1, %s4967_s13 }
   0x7   : > { %p67_p3 = por %p66_p2, %p65_p1  ;;  %s55_s19 = ssub.s32 %s4975_s15, %s6165_s17 }
   0x8   : > { %p56_p5 = scmp.eq.s32.totalorder %s55_s19, 0  ;;  %p5036_p6 = por %p123_p4, %p65_p1 }
   0x9   : > { %p4038_p7 = scmp.ge.s32.totalorder %s4979_s16, 2 }
   0xa   : > { %s5041_s22 = scalar_select %p56_p5, %s4967_s13, %s58_s20  }
   0xb   : > { %155 = sbr.rel (%p4038_p7) target bundleno = 150 (0x96), region = 20 }
  0x12   : > { %158 = sbr.rel (!%p67_p3) target bundleno = 150 (0x96), region = 24  ;;  %s160_s23 = sand.u32 (%p67_p3), 1, %s4967_s13  }
  0x13   : > { %s4379_s24 = sshll.u32 (%p67_p3), %s4975_s15, 3  ;;  %s4039_s25 = sshll.u32 (%p67_p3), %s160_s23, 11 }
  0x14   : > { %s5049_s28 = scalar_lea.vmem (%p67_p3), %s6156_s1, %s4379_s24  ;;  %s5054_s29 = scalar_lea.vmem (%p67_p3), [#allocation2], %s4039_s25 }
  0x15   : > { %v703_v0 = vld [vmem:[%s5049_s28] sm:$0xff] (%p67_p3)  ;;  %v705_v1 = vld [vmem:[%s5049_s28 + $0x10] sm:$0xff] (%p67_p3) }
  0x16   : > { %v707_v2 = vld [vmem:[%s5049_s28 + $0x20] sm:$0xff] (%p67_p3)  ;;  %704 = vst [vmem:[%s5054_s29] sm:$0xff] (%p67_p3), %v703_v0  ;;  %706 = vst [vmem:[%s5054_s29 + $0x8] sm:$0xff] (%p67_p3), %v705_v1  ;;  %v709_v3 = vld [vmem:[%s5049_s28 + $0x30] sm:$0xff] (%p67_p3) }
  0x17   : > { %708 = vst [vmem:[%s5054_s29 + $0x10] sm:$0xff] (%p67_p3), %v707_v2  ;;  %v711_v4 = vld [vmem:[%s5049_s28 + $0x40] sm:$0xff] (%p67_p3)  ;;  %v713_v5 = vld [vmem:[%s5049_s28 + $0x50] sm:$0xff] (%p67_p3)  ;;  %710 = vst [vmem:[%s5054_s29 + $0x18] sm:$0xff] (%p67_p3), %v709_v3 }
  0x18   : > { %712 = vst [vmem:[%s5054_s29 + $0x20] sm:$0xff] (%p67_p3), %v711_v4  ;;  %714 = vst [vmem:[%s5054_s29 + $0x28] sm:$0xff] (%p67_p3), %v713_v5  ;;  %v715_v6 = vld [vmem:[%s5049_s28 + $0x60] sm:$0xff] (%p67_p3)  ;;  %v717_v7 = vld [vmem:[%s5049_s28 + $0x70] sm:$0xff] (%p67_p3) }
  0x19   : > { %v719_v8 = vld [vmem:[%s5049_s28 + $0x80] sm:$0xff]  ;;  %716 = vst [vmem:[%s5054_s29 + $0x30] sm:$0xff] %v715_v6  ;;  %718 = vst [vmem:[%s5054_s29 + $0x38] sm:$0xff] %v717_v7  ;;  %v721_v9 = vld [vmem:[%s5049_s28 + $0x90] sm:$0xff] }
  0x1a   : > { %720 = vst [vmem:[%s5054_s29 + $0x40] sm:$0xff] %v719_v8  ;;  %v723_v10 = vld [vmem:[%s5049_s28 + $0xa0] sm:$0xff]  ;;  %v725_v11 = vld [vmem:[%s5049_s28 + $0xb0] sm:$0xff]  ;;  %722 = vst [vmem:[%s5054_s29 + $0x48] sm:$0xff] %v721_v9 }
  0x1b   : > { %724 = vst [vmem:[%s5054_s29 + $0x50] sm:$0xff] %v723_v10  ;;  %726 = vst [vmem:[%s5054_s29 + $0x58] sm:$0xff] %v725_v11  ;;  %v727_v12 = vld [vmem:[%s5049_s28 + $0xc0] sm:$0xff]  ;;  %v729_v13 = vld [vmem:[%s5049_s28 + $0xd0] sm:$0xff] }
  0x1c   : > { %v731_v14 = vld [vmem:[%s5049_s28 + $0xe0] sm:$0xff]  ;;  %728 = vst [vmem:[%s5054_s29 + $0x60] sm:$0xff] %v727_v12  ;;  %730 = vst [vmem:[%s5054_s29 + $0x68] sm:$0xff] %v729_v13  ;;  %v733_v15 = vld [vmem:[%s5049_s28 + $0xf0] sm:$0xff] }
  0x1d   : > { %732 = vst [vmem:[%s5054_s29 + $0x70] sm:$0xff] %v731_v14  ;;  %v735_v16 = vld [vmem:[%s5049_s28 + $0x100] sm:$0xff]  ;;  %v737_v17 = vld [vmem:[%s5049_s28 + $0x110] sm:$0xff]  ;;  %734 = vst [vmem:[%s5054_s29 + $0x78] sm:$0xff] %v733_v15 }
  0x1e   : > { %736 = vst [vmem:[%s5054_s29 + $0x80] sm:$0xff] %v735_v16  ;;  %738 = vst [vmem:[%s5054_s29 + $0x88] sm:$0xff] %v737_v17  ;;  %v739_v18 = vld [vmem:[%s5049_s28 + $0x120] sm:$0xff]  ;;  %v741_v19 = vld [vmem:[%s5049_s28 + $0x130] sm:$0xff] }
  0x1f   : > { %v743_v20 = vld [vmem:[%s5049_s28 + $0x140] sm:$0xff]  ;;  %740 = vst [vmem:[%s5054_s29 + $0x90] sm:$0xff] %v739_v18  ;;  %742 = vst [vmem:[%s5054_s29 + $0x98] sm:$0xff] %v741_v19  ;;  %v745_v21 = vld [vmem:[%s5049_s28 + $0x150] sm:$0xff] }
  0x20   : > { %744 = vst [vmem:[%s5054_s29 + $0xa0] sm:$0xff] %v743_v20  ;;  %v747_v22 = vld [vmem:[%s5049_s28 + $0x160] sm:$0xff]  ;;  %v749_v23 = vld [vmem:[%s5049_s28 + $0x170] sm:$0xff]  ;;  %746 = vst [vmem:[%s5054_s29 + $0xa8] sm:$0xff] %v745_v21 }
  0x21   : > { %748 = vst [vmem:[%s5054_s29 + $0xb0] sm:$0xff] %v747_v22  ;;  %750 = vst [vmem:[%s5054_s29 + $0xb8] sm:$0xff] %v749_v23  ;;  %v751_v24 = vld [vmem:[%s5049_s28 + $0x180] sm:$0xff]  ;;  %v753_v25 = vld [vmem:[%s5049_s28 + $0x190] sm:$0xff] }
  0x22   : > { %v755_v26 = vld [vmem:[%s5049_s28 + $0x1a0] sm:$0xff]  ;;  %752 = vst [vmem:[%s5054_s29 + $0xc0] sm:$0xff] %v751_v24  ;;  %754 = vst [vmem:[%s5054_s29 + $0xc8] sm:$0xff] %v753_v25  ;;  %v757_v27 = vld [vmem:[%s5049_s28 + $0x1b0] sm:$0xff] }
  0x23   : > { %756 = vst [vmem:[%s5054_s29 + $0xd0] sm:$0xff] %v755_v26  ;;  %v759_v28 = vld [vmem:[%s5049_s28 + $0x1c0] sm:$0xff]  ;;  %v761_v29 = vld [vmem:[%s5049_s28 + $0x1d0] sm:$0xff]  ;;  %758 = vst [vmem:[%s5054_s29 + $0xd8] sm:$0xff] %v757_v27 }
  0x24   : > { %760 = vst [vmem:[%s5054_s29 + $0xe0] sm:$0xff] %v759_v28  ;;  %762 = vst [vmem:[%s5054_s29 + $0xe8] sm:$0xff] %v761_v29  ;;  %v763_v30 = vld [vmem:[%s5049_s28 + $0x1e0] sm:$0xff]  ;;  %v765_v31 = vld [vmem:[%s5049_s28 + $0x1f0] sm:$0xff] }
  0x25   : > { %v767_v32 = vld [vmem:[%s5049_s28 + $0x200] sm:$0xff]  ;;  %764 = vst [vmem:[%s5054_s29 + $0xf0] sm:$0xff] %v763_v30  ;;  %766 = vst [vmem:[%s5054_s29 + $0xf8] sm:$0xff] %v765_v31  ;;  %v769_v33 = vld [vmem:[%s5049_s28 + $0x210] sm:$0xff] }
  0x26   : > { %768 = vst [vmem:[%s5054_s29 + $0x100] sm:$0xff] %v767_v32  ;;  %v771_v34 = vld [vmem:[%s5049_s28 + $0x220] sm:$0xff]  ;;  %v773_v35 = vld [vmem:[%s5049_s28 + $0x230] sm:$0xff]  ;;  %770 = vst [vmem:[%s5054_s29 + $0x108] sm:$0xff] %v769_v33 }
  0x27   : > { %772 = vst [vmem:[%s5054_s29 + $0x110] sm:$0xff] %v771_v34  ;;  %774 = vst [vmem:[%s5054_s29 + $0x118] sm:$0xff] %v773_v35  ;;  %v775_v36 = vld [vmem:[%s5049_s28 + $0x240] sm:$0xff]  ;;  %v777_v37 = vld [vmem:[%s5049_s28 + $0x250] sm:$0xff] }
  0x28   : > { %v779_v38 = vld [vmem:[%s5049_s28 + $0x260] sm:$0xff]  ;;  %776 = vst [vmem:[%s5054_s29 + $0x120] sm:$0xff] %v775_v36  ;;  %778 = vst [vmem:[%s5054_s29 + $0x128] sm:$0xff] %v777_v37  ;;  %v781_v39 = vld [vmem:[%s5049_s28 + $0x270] sm:$0xff] }
  0x29   : > { %780 = vst [vmem:[%s5054_s29 + $0x130] sm:$0xff] %v779_v38  ;;  %v783_v40 = vld [vmem:[%s5049_s28 + $0x280] sm:$0xff]  ;;  %v785_v41 = vld [vmem:[%s5049_s28 + $0x290] sm:$0xff]  ;;  %782 = vst [vmem:[%s5054_s29 + $0x138] sm:$0xff] %v781_v39 }
  0x2a   : > { %784 = vst [vmem:[%s5054_s29 + $0x140] sm:$0xff] %v783_v40  ;;  %786 = vst [vmem:[%s5054_s29 + $0x148] sm:$0xff] %v785_v41  ;;  %v787_v42 = vld [vmem:[%s5049_s28 + $0x2a0] sm:$0xff]  ;;  %v789_v43 = vld [vmem:[%s5049_s28 + $0x2b0] sm:$0xff] }
  0x2b   : > { %v791_v44 = vld [vmem:[%s5049_s28 + $0x2c0] sm:$0xff]  ;;  %788 = vst [vmem:[%s5054_s29 + $0x150] sm:$0xff] %v787_v42  ;;  %790 = vst [vmem:[%s5054_s29 + $0x158] sm:$0xff] %v789_v43  ;;  %v793_v45 = vld [vmem:[%s5049_s28 + $0x2d0] sm:$0xff] }
  0x2c   : > { %792 = vst [vmem:[%s5054_s29 + $0x160] sm:$0xff] %v791_v44  ;;  %v795_v46 = vld [vmem:[%s5049_s28 + $0x2e0] sm:$0xff]  ;;  %v797_v47 = vld [vmem:[%s5049_s28 + $0x2f0] sm:$0xff]  ;;  %794 = vst [vmem:[%s5054_s29 + $0x168] sm:$0xff] %v793_v45 }
  0x2d   : > { %796 = vst [vmem:[%s5054_s29 + $0x170] sm:$0xff] %v795_v46  ;;  %798 = vst [vmem:[%s5054_s29 + $0x178] sm:$0xff] %v797_v47  ;;  %v799_v48 = vld [vmem:[%s5049_s28 + $0x300] sm:$0xff]  ;;  %v801_v49 = vld [vmem:[%s5049_s28 + $0x310] sm:$0xff] }
  0x2e   : > { %v803_v50 = vld [vmem:[%s5049_s28 + $0x320] sm:$0xff]  ;;  %800 = vst [vmem:[%s5054_s29 + $0x180] sm:$0xff] %v799_v48  ;;  %802 = vst [vmem:[%s5054_s29 + $0x188] sm:$0xff] %v801_v49  ;;  %v805_v51 = vld [vmem:[%s5049_s28 + $0x330] sm:$0xff] }
  0x2f   : > { %804 = vst [vmem:[%s5054_s29 + $0x190] sm:$0xff] %v803_v50  ;;  %v807_v52 = vld [vmem:[%s5049_s28 + $0x340] sm:$0xff]  ;;  %v809_v53 = vld [vmem:[%s5049_s28 + $0x350] sm:$0xff]  ;;  %806 = vst [vmem:[%s5054_s29 + $0x198] sm:$0xff] %v805_v51 }
  0x30   : > { %808 = vst [vmem:[%s5054_s29 + $0x1a0] sm:$0xff] %v807_v52  ;;  %810 = vst [vmem:[%s5054_s29 + $0x1a8] sm:$0xff] %v809_v53  ;;  %v811_v54 = vld [vmem:[%s5049_s28 + $0x360] sm:$0xff]  ;;  %v813_v55 = vld [vmem:[%s5049_s28 + $0x370] sm:$0xff] }
  0x31   : > { %v815_v56 = vld [vmem:[%s5049_s28 + $0x380] sm:$0xff]  ;;  %812 = vst [vmem:[%s5054_s29 + $0x1b0] sm:$0xff] %v811_v54  ;;  %814 = vst [vmem:[%s5054_s29 + $0x1b8] sm:$0xff] %v813_v55  ;;  %v817_v57 = vld [vmem:[%s5049_s28 + $0x390] sm:$0xff] }
  0x32   : > { %816 = vst [vmem:[%s5054_s29 + $0x1c0] sm:$0xff] %v815_v56  ;;  %v819_v58 = vld [vmem:[%s5049_s28 + $0x3a0] sm:$0xff]  ;;  %v821_v59 = vld [vmem:[%s5049_s28 + $0x3b0] sm:$0xff]  ;;  %818 = vst [vmem:[%s5054_s29 + $0x1c8] sm:$0xff] %v817_v57 }
  0x33   : > { %820 = vst [vmem:[%s5054_s29 + $0x1d0] sm:$0xff] %v819_v58  ;;  %822 = vst [vmem:[%s5054_s29 + $0x1d8] sm:$0xff] %v821_v59  ;;  %v823_v60 = vld [vmem:[%s5049_s28 + $0x3c0] sm:$0xff]  ;;  %v825_v61 = vld [vmem:[%s5049_s28 + $0x3d0] sm:$0xff] }
  0x34   : > { %v827_v62 = vld [vmem:[%s5049_s28 + $0x3e0] sm:$0xff]  ;;  %824 = vst [vmem:[%s5054_s29 + $0x1e0] sm:$0xff] %v823_v60  ;;  %826 = vst [vmem:[%s5054_s29 + $0x1e8] sm:$0xff] %v825_v61  ;;  %v829_v63 = vld [vmem:[%s5049_s28 + $0x3f0] sm:$0xff] }
  0x35   : > { %828 = vst [vmem:[%s5054_s29 + $0x1f0] sm:$0xff] %v827_v62  ;;  %v831_v0 = vld [vmem:[%s5049_s28 + $0x400] sm:$0xff]  ;;  %v833_v1 = vld [vmem:[%s5049_s28 + $0x410] sm:$0xff]  ;;  %830 = vst [vmem:[%s5054_s29 + $0x1f8] sm:$0xff] %v829_v63 }
  0x36   : > { %832 = vst [vmem:[%s5054_s29 + $0x200] sm:$0xff] %v831_v0  ;;  %834 = vst [vmem:[%s5054_s29 + $0x208] sm:$0xff] %v833_v1  ;;  %v835_v2 = vld [vmem:[%s5049_s28 + $0x420] sm:$0xff]  ;;  %v837_v3 = vld [vmem:[%s5049_s28 + $0x430] sm:$0xff] }
  0x37   : > { %v839_v4 = vld [vmem:[%s5049_s28 + $0x440] sm:$0xff]  ;;  %836 = vst [vmem:[%s5054_s29 + $0x210] sm:$0xff] %v835_v2  ;;  %838 = vst [vmem:[%s5054_s29 + $0x218] sm:$0xff] %v837_v3  ;;  %v841_v5 = vld [vmem:[%s5049_s28 + $0x450] sm:$0xff] }
  0x38   : > { %840 = vst [vmem:[%s5054_s29 + $0x220] sm:$0xff] %v839_v4  ;;  %v843_v6 = vld [vmem:[%s5049_s28 + $0x460] sm:$0xff]  ;;  %v845_v7 = vld [vmem:[%s5049_s28 + $0x470] sm:$0xff]  ;;  %842 = vst [vmem:[%s5054_s29 + $0x228] sm:$0xff] %v841_v5 }
  0x39   : > { %844 = vst [vmem:[%s5054_s29 + $0x230] sm:$0xff] %v843_v6  ;;  %846 = vst [vmem:[%s5054_s29 + $0x238] sm:$0xff] %v845_v7  ;;  %v847_v8 = vld [vmem:[%s5049_s28 + $0x480] sm:$0xff]  ;;  %v849_v9 = vld [vmem:[%s5049_s28 + $0x490] sm:$0xff] }
  0x3a   : > { %v851_v10 = vld [vmem:[%s5049_s28 + $0x4a0] sm:$0xff]  ;;  %848 = vst [vmem:[%s5054_s29 + $0x240] sm:$0xff] %v847_v8  ;;  %850 = vst [vmem:[%s5054_s29 + $0x248] sm:$0xff] %v849_v9  ;;  %v853_v11 = vld [vmem:[%s5049_s28 + $0x4b0] sm:$0xff] }
  0x3b   : > { %852 = vst [vmem:[%s5054_s29 + $0x250] sm:$0xff] %v851_v10  ;;  %v855_v12 = vld [vmem:[%s5049_s28 + $0x4c0] sm:$0xff]  ;;  %v857_v13 = vld [vmem:[%s5049_s28 + $0x4d0] sm:$0xff]  ;;  %854 = vst [vmem:[%s5054_s29 + $0x258] sm:$0xff] %v853_v11 }
  0x3c   : > { %856 = vst [vmem:[%s5054_s29 + $0x260] sm:$0xff] %v855_v12  ;;  %858 = vst [vmem:[%s5054_s29 + $0x268] sm:$0xff] %v857_v13  ;;  %v859_v14 = vld [vmem:[%s5049_s28 + $0x4e0] sm:$0xff]  ;;  %v861_v15 = vld [vmem:[%s5049_s28 + $0x4f0] sm:$0xff] }
  0x3d   : > { %v863_v16 = vld [vmem:[%s5049_s28 + $0x500] sm:$0xff]  ;;  %860 = vst [vmem:[%s5054_s29 + $0x270] sm:$0xff] %v859_v14  ;;  %862 = vst [vmem:[%s5054_s29 + $0x278] sm:$0xff] %v861_v15  ;;  %v865_v17 = vld [vmem:[%s5049_s28 + $0x510] sm:$0xff] }
  0x3e   : > { %864 = vst [vmem:[%s5054_s29 + $0x280] sm:$0xff] %v863_v16  ;;  %v867_v18 = vld [vmem:[%s5049_s28 + $0x520] sm:$0xff]  ;;  %v869_v19 = vld [vmem:[%s5049_s28 + $0x530] sm:$0xff]  ;;  %866 = vst [vmem:[%s5054_s29 + $0x288] sm:$0xff] %v865_v17 }
  0x3f   : > { %868 = vst [vmem:[%s5054_s29 + $0x290] sm:$0xff] %v867_v18  ;;  %870 = vst [vmem:[%s5054_s29 + $0x298] sm:$0xff] %v869_v19  ;;  %v871_v20 = vld [vmem:[%s5049_s28 + $0x540] sm:$0xff]  ;;  %v873_v21 = vld [vmem:[%s5049_s28 + $0x550] sm:$0xff] }
  0x40   : > { %v875_v22 = vld [vmem:[%s5049_s28 + $0x560] sm:$0xff]  ;;  %872 = vst [vmem:[%s5054_s29 + $0x2a0] sm:$0xff] %v871_v20  ;;  %874 = vst [vmem:[%s5054_s29 + $0x2a8] sm:$0xff] %v873_v21  ;;  %v877_v23 = vld [vmem:[%s5049_s28 + $0x570] sm:$0xff] }
  0x41   : > { %876 = vst [vmem:[%s5054_s29 + $0x2b0] sm:$0xff] %v875_v22  ;;  %v879_v24 = vld [vmem:[%s5049_s28 + $0x580] sm:$0xff]  ;;  %v881_v25 = vld [vmem:[%s5049_s28 + $0x590] sm:$0xff]  ;;  %878 = vst [vmem:[%s5054_s29 + $0x2b8] sm:$0xff] %v877_v23 }
  0x42   : > { %880 = vst [vmem:[%s5054_s29 + $0x2c0] sm:$0xff] %v879_v24  ;;  %882 = vst [vmem:[%s5054_s29 + $0x2c8] sm:$0xff] %v881_v25  ;;  %v883_v26 = vld [vmem:[%s5049_s28 + $0x5a0] sm:$0xff]  ;;  %v885_v27 = vld [vmem:[%s5049_s28 + $0x5b0] sm:$0xff] }
  0x43   : > { %v887_v28 = vld [vmem:[%s5049_s28 + $0x5c0] sm:$0xff]  ;;  %884 = vst [vmem:[%s5054_s29 + $0x2d0] sm:$0xff] %v883_v26  ;;  %886 = vst [vmem:[%s5054_s29 + $0x2d8] sm:$0xff] %v885_v27  ;;  %v889_v29 = vld [vmem:[%s5049_s28 + $0x5d0] sm:$0xff] }
  0x44   : > { %888 = vst [vmem:[%s5054_s29 + $0x2e0] sm:$0xff] %v887_v28  ;;  %v891_v30 = vld [vmem:[%s5049_s28 + $0x5e0] sm:$0xff]  ;;  %v893_v31 = vld [vmem:[%s5049_s28 + $0x5f0] sm:$0xff]  ;;  %890 = vst [vmem:[%s5054_s29 + $0x2e8] sm:$0xff] %v889_v29 }
  0x45   : > { %892 = vst [vmem:[%s5054_s29 + $0x2f0] sm:$0xff] %v891_v30  ;;  %894 = vst [vmem:[%s5054_s29 + $0x2f8] sm:$0xff] %v893_v31  ;;  %v895_v32 = vld [vmem:[%s5049_s28 + $0x600] sm:$0xff]  ;;  %v897_v33 = vld [vmem:[%s5049_s28 + $0x610] sm:$0xff] }
  0x46   : > { %v899_v34 = vld [vmem:[%s5049_s28 + $0x620] sm:$0xff]  ;;  %896 = vst [vmem:[%s5054_s29 + $0x300] sm:$0xff] %v895_v32  ;;  %898 = vst [vmem:[%s5054_s29 + $0x308] sm:$0xff] %v897_v33  ;;  %v901_v35 = vld [vmem:[%s5049_s28 + $0x630] sm:$0xff] }
  0x47   : > { %900 = vst [vmem:[%s5054_s29 + $0x310] sm:$0xff] %v899_v34  ;;  %v903_v36 = vld [vmem:[%s5049_s28 + $0x640] sm:$0xff]  ;;  %v905_v37 = vld [vmem:[%s5049_s28 + $0x650] sm:$0xff]  ;;  %902 = vst [vmem:[%s5054_s29 + $0x318] sm:$0xff] %v901_v35 }
  0x48   : > { %904 = vst [vmem:[%s5054_s29 + $0x320] sm:$0xff] %v903_v36  ;;  %906 = vst [vmem:[%s5054_s29 + $0x328] sm:$0xff] %v905_v37  ;;  %v907_v38 = vld [vmem:[%s5049_s28 + $0x660] sm:$0xff]  ;;  %v909_v39 = vld [vmem:[%s5049_s28 + $0x670] sm:$0xff] }
  0x49   : > { %v911_v40 = vld [vmem:[%s5049_s28 + $0x680] sm:$0xff]  ;;  %908 = vst [vmem:[%s5054_s29 + $0x330] sm:$0xff] %v907_v38  ;;  %910 = vst [vmem:[%s5054_s29 + $0x338] sm:$0xff] %v909_v39  ;;  %v913_v41 = vld [vmem:[%s5049_s28 + $0x690] sm:$0xff] }
  0x4a   : > { %912 = vst [vmem:[%s5054_s29 + $0x340] sm:$0xff] %v911_v40  ;;  %v915_v42 = vld [vmem:[%s5049_s28 + $0x6a0] sm:$0xff]  ;;  %v917_v43 = vld [vmem:[%s5049_s28 + $0x6b0] sm:$0xff]  ;;  %914 = vst [vmem:[%s5054_s29 + $0x348] sm:$0xff] %v913_v41 }
  0x4b   : > { %916 = vst [vmem:[%s5054_s29 + $0x350] sm:$0xff] %v915_v42  ;;  %918 = vst [vmem:[%s5054_s29 + $0x358] sm:$0xff] %v917_v43  ;;  %v919_v44 = vld [vmem:[%s5049_s28 + $0x6c0] sm:$0xff]  ;;  %v921_v45 = vld [vmem:[%s5049_s28 + $0x6d0] sm:$0xff] }
  0x4c   : > { %v923_v46 = vld [vmem:[%s5049_s28 + $0x6e0] sm:$0xff]  ;;  %920 = vst [vmem:[%s5054_s29 + $0x360] sm:$0xff] %v919_v44  ;;  %922 = vst [vmem:[%s5054_s29 + $0x368] sm:$0xff] %v921_v45  ;;  %v925_v47 = vld [vmem:[%s5049_s28 + $0x6f0] sm:$0xff] }
  0x4d   : > { %924 = vst [vmem:[%s5054_s29 + $0x370] sm:$0xff] %v923_v46  ;;  %v927_v48 = vld [vmem:[%s5049_s28 + $0x700] sm:$0xff]  ;;  %v929_v49 = vld [vmem:[%s5049_s28 + $0x710] sm:$0xff]  ;;  %926 = vst [vmem:[%s5054_s29 + $0x378] sm:$0xff] %v925_v47 }
  0x4e   : > { %928 = vst [vmem:[%s5054_s29 + $0x380] sm:$0xff] %v927_v48  ;;  %930 = vst [vmem:[%s5054_s29 + $0x388] sm:$0xff] %v929_v49  ;;  %v931_v50 = vld [vmem:[%s5049_s28 + $0x720] sm:$0xff]  ;;  %v933_v51 = vld [vmem:[%s5049_s28 + $0x730] sm:$0xff] }
  0x4f   : > { %v935_v52 = vld [vmem:[%s5049_s28 + $0x740] sm:$0xff]  ;;  %932 = vst [vmem:[%s5054_s29 + $0x390] sm:$0xff] %v931_v50  ;;  %934 = vst [vmem:[%s5054_s29 + $0x398] sm:$0xff] %v933_v51  ;;  %v937_v53 = vld [vmem:[%s5049_s28 + $0x750] sm:$0xff] }
  0x50   : > { %936 = vst [vmem:[%s5054_s29 + $0x3a0] sm:$0xff] %v935_v52  ;;  %v939_v54 = vld [vmem:[%s5049_s28 + $0x760] sm:$0xff]  ;;  %v941_v55 = vld [vmem:[%s5049_s28 + $0x770] sm:$0xff]  ;;  %938 = vst [vmem:[%s5054_s29 + $0x3a8] sm:$0xff] %v937_v53 }
  0x51   : > { %940 = vst [vmem:[%s5054_s29 + $0x3b0] sm:$0xff] %v939_v54  ;;  %942 = vst [vmem:[%s5054_s29 + $0x3b8] sm:$0xff] %v941_v55  ;;  %v943_v56 = vld [vmem:[%s5049_s28 + $0x780] sm:$0xff]  ;;  %v945_v57 = vld [vmem:[%s5049_s28 + $0x790] sm:$0xff] }
  0x52   : > { %v947_v58 = vld [vmem:[%s5049_s28 + $0x7a0] sm:$0xff]  ;;  %944 = vst [vmem:[%s5054_s29 + $0x3c0] sm:$0xff] %v943_v56  ;;  %946 = vst [vmem:[%s5054_s29 + $0x3c8] sm:$0xff] %v945_v57  ;;  %v949_v59 = vld [vmem:[%s5049_s28 + $0x7b0] sm:$0xff] }
  0x53   : > { %948 = vst [vmem:[%s5054_s29 + $0x3d0] sm:$0xff] %v947_v58  ;;  %v951_v60 = vld [vmem:[%s5049_s28 + $0x7c0] sm:$0xff]  ;;  %v953_v61 = vld [vmem:[%s5049_s28 + $0x7d0] sm:$0xff]  ;;  %950 = vst [vmem:[%s5054_s29 + $0x3d8] sm:$0xff] %v949_v59 }
  0x54   : > { %952 = vst [vmem:[%s5054_s29 + $0x3e0] sm:$0xff] %v951_v60  ;;  %954 = vst [vmem:[%s5054_s29 + $0x3e8] sm:$0xff] %v953_v61  ;;  %v955_v62 = vld [vmem:[%s5049_s28 + $0x7e0] sm:$0xff]  ;;  %v957_v63 = vld [vmem:[%s5049_s28 + $0x7f0] sm:$0xff] }
  0x55   : > { %v959_v0 = vld [vmem:[%s5049_s28 + $0x800] sm:$0xff]  ;;  %956 = vst [vmem:[%s5054_s29 + $0x3f0] sm:$0xff] %v955_v62  ;;  %958 = vst [vmem:[%s5054_s29 + $0x3f8] sm:$0xff] %v957_v63  ;;  %v961_v1 = vld [vmem:[%s5049_s28 + $0x810] sm:$0xff] }
  0x56   : > { %960 = vst [vmem:[%s5054_s29 + $0x400] sm:$0xff] %v959_v0  ;;  %v963_v2 = vld [vmem:[%s5049_s28 + $0x820] sm:$0xff]  ;;  %v965_v3 = vld [vmem:[%s5049_s28 + $0x830] sm:$0xff]  ;;  %962 = vst [vmem:[%s5054_s29 + $0x408] sm:$0xff] %v961_v1 }
  0x57   : > { %964 = vst [vmem:[%s5054_s29 + $0x410] sm:$0xff] %v963_v2  ;;  %966 = vst [vmem:[%s5054_s29 + $0x418] sm:$0xff] %v965_v3  ;;  %v967_v4 = vld [vmem:[%s5049_s28 + $0x840] sm:$0xff]  ;;  %v969_v5 = vld [vmem:[%s5049_s28 + $0x850] sm:$0xff] }
  0x58   : > { %v971_v6 = vld [vmem:[%s5049_s28 + $0x860] sm:$0xff]  ;;  %968 = vst [vmem:[%s5054_s29 + $0x420] sm:$0xff] %v967_v4  ;;  %970 = vst [vmem:[%s5054_s29 + $0x428] sm:$0xff] %v969_v5  ;;  %v973_v7 = vld [vmem:[%s5049_s28 + $0x870] sm:$0xff] }
  0x59   : > { %972 = vst [vmem:[%s5054_s29 + $0x430] sm:$0xff] %v971_v6  ;;  %v975_v8 = vld [vmem:[%s5049_s28 + $0x880] sm:$0xff]  ;;  %v977_v9 = vld [vmem:[%s5049_s28 + $0x890] sm:$0xff]  ;;  %974 = vst [vmem:[%s5054_s29 + $0x438] sm:$0xff] %v973_v7 }
  0x5a   : > { %976 = vst [vmem:[%s5054_s29 + $0x440] sm:$0xff] %v975_v8  ;;  %978 = vst [vmem:[%s5054_s29 + $0x448] sm:$0xff] %v977_v9  ;;  %v979_v10 = vld [vmem:[%s5049_s28 + $0x8a0] sm:$0xff]  ;;  %v981_v11 = vld [vmem:[%s5049_s28 + $0x8b0] sm:$0xff] }
  0x5b   : > { %v983_v12 = vld [vmem:[%s5049_s28 + $0x8c0] sm:$0xff]  ;;  %980 = vst [vmem:[%s5054_s29 + $0x450] sm:$0xff] %v979_v10  ;;  %982 = vst [vmem:[%s5054_s29 + $0x458] sm:$0xff] %v981_v11  ;;  %v985_v13 = vld [vmem:[%s5049_s28 + $0x8d0] sm:$0xff] }
  0x5c   : > { %984 = vst [vmem:[%s5054_s29 + $0x460] sm:$0xff] %v983_v12  ;;  %v987_v14 = vld [vmem:[%s5049_s28 + $0x8e0] sm:$0xff]  ;;  %v989_v15 = vld [vmem:[%s5049_s28 + $0x8f0] sm:$0xff]  ;;  %986 = vst [vmem:[%s5054_s29 + $0x468] sm:$0xff] %v985_v13 }
  0x5d   : > { %988 = vst [vmem:[%s5054_s29 + $0x470] sm:$0xff] %v987_v14  ;;  %990 = vst [vmem:[%s5054_s29 + $0x478] sm:$0xff] %v989_v15  ;;  %v991_v16 = vld [vmem:[%s5049_s28 + $0x900] sm:$0xff]  ;;  %v993_v17 = vld [vmem:[%s5049_s28 + $0x910] sm:$0xff] }
  0x5e   : > { %v995_v18 = vld [vmem:[%s5049_s28 + $0x920] sm:$0xff]  ;;  %992 = vst [vmem:[%s5054_s29 + $0x480] sm:$0xff] %v991_v16  ;;  %994 = vst [vmem:[%s5054_s29 + $0x488] sm:$0xff] %v993_v17  ;;  %v997_v19 = vld [vmem:[%s5049_s28 + $0x930] sm:$0xff] }
  0x5f   : > { %996 = vst [vmem:[%s5054_s29 + $0x490] sm:$0xff] %v995_v18  ;;  %v999_v20 = vld [vmem:[%s5049_s28 + $0x940] sm:$0xff]  ;;  %v1001_v21 = vld [vmem:[%s5049_s28 + $0x950] sm:$0xff]  ;;  %998 = vst [vmem:[%s5054_s29 + $0x498] sm:$0xff] %v997_v19 }
  0x60   : > { %1000 = vst [vmem:[%s5054_s29 + $0x4a0] sm:$0xff] %v999_v20  ;;  %1002 = vst [vmem:[%s5054_s29 + $0x4a8] sm:$0xff] %v1001_v21  ;;  %v1003_v22 = vld [vmem:[%s5049_s28 + $0x960] sm:$0xff]  ;;  %v1005_v23 = vld [vmem:[%s5049_s28 + $0x970] sm:$0xff] }
  0x61   : > { %v1007_v24 = vld [vmem:[%s5049_s28 + $0x980] sm:$0xff]  ;;  %1004 = vst [vmem:[%s5054_s29 + $0x4b0] sm:$0xff] %v1003_v22  ;;  %1006 = vst [vmem:[%s5054_s29 + $0x4b8] sm:$0xff] %v1005_v23  ;;  %v1009_v25 = vld [vmem:[%s5049_s28 + $0x990] sm:$0xff] }
  0x62   : > { %1008 = vst [vmem:[%s5054_s29 + $0x4c0] sm:$0xff] %v1007_v24  ;;  %v1011_v26 = vld [vmem:[%s5049_s28 + $0x9a0] sm:$0xff]  ;;  %v1013_v27 = vld [vmem:[%s5049_s28 + $0x9b0] sm:$0xff]  ;;  %1010 = vst [vmem:[%s5054_s29 + $0x4c8] sm:$0xff] %v1009_v25 }
  0x63   : > { %1012 = vst [vmem:[%s5054_s29 + $0x4d0] sm:$0xff] %v1011_v26  ;;  %1014 = vst [vmem:[%s5054_s29 + $0x4d8] sm:$0xff] %v1013_v27  ;;  %v1015_v28 = vld [vmem:[%s5049_s28 + $0x9c0] sm:$0xff]  ;;  %v1017_v29 = vld [vmem:[%s5049_s28 + $0x9d0] sm:$0xff] }
  0x64   : > { %v1019_v30 = vld [vmem:[%s5049_s28 + $0x9e0] sm:$0xff]  ;;  %1016 = vst [vmem:[%s5054_s29 + $0x4e0] sm:$0xff] %v1015_v28  ;;  %1018 = vst [vmem:[%s5054_s29 + $0x4e8] sm:$0xff] %v1017_v29  ;;  %v1021_v31 = vld [vmem:[%s5049_s28 + $0x9f0] sm:$0xff] }
  0x65   : > { %1020 = vst [vmem:[%s5054_s29 + $0x4f0] sm:$0xff] %v1019_v30  ;;  %v1023_v32 = vld [vmem:[%s5049_s28 + $0xa00] sm:$0xff]  ;;  %v1025_v33 = vld [vmem:[%s5049_s28 + $0xa10] sm:$0xff]  ;;  %1022 = vst [vmem:[%s5054_s29 + $0x4f8] sm:$0xff] %v1021_v31 }
  0x66   : > { %1024 = vst [vmem:[%s5054_s29 + $0x500] sm:$0xff] %v1023_v32  ;;  %1026 = vst [vmem:[%s5054_s29 + $0x508] sm:$0xff] %v1025_v33  ;;  %v1027_v34 = vld [vmem:[%s5049_s28 + $0xa20] sm:$0xff]  ;;  %v1029_v35 = vld [vmem:[%s5049_s28 + $0xa30] sm:$0xff] }
  0x67   : > { %v1031_v36 = vld [vmem:[%s5049_s28 + $0xa40] sm:$0xff]  ;;  %1028 = vst [vmem:[%s5054_s29 + $0x510] sm:$0xff] %v1027_v34  ;;  %1030 = vst [vmem:[%s5054_s29 + $0x518] sm:$0xff] %v1029_v35  ;;  %v1033_v37 = vld [vmem:[%s5049_s28 + $0xa50] sm:$0xff] }
  0x68   : > { %1032 = vst [vmem:[%s5054_s29 + $0x520] sm:$0xff] %v1031_v36  ;;  %v1035_v38 = vld [vmem:[%s5049_s28 + $0xa60] sm:$0xff]  ;;  %v1037_v39 = vld [vmem:[%s5049_s28 + $0xa70] sm:$0xff]  ;;  %1034 = vst [vmem:[%s5054_s29 + $0x528] sm:$0xff] %v1033_v37 }
  0x69   : > { %1036 = vst [vmem:[%s5054_s29 + $0x530] sm:$0xff] %v1035_v38  ;;  %1038 = vst [vmem:[%s5054_s29 + $0x538] sm:$0xff] %v1037_v39  ;;  %v1039_v40 = vld [vmem:[%s5049_s28 + $0xa80] sm:$0xff]  ;;  %v1041_v41 = vld [vmem:[%s5049_s28 + $0xa90] sm:$0xff] }
  0x6a   : > { %v1043_v42 = vld [vmem:[%s5049_s28 + $0xaa0] sm:$0xff]  ;;  %1040 = vst [vmem:[%s5054_s29 + $0x540] sm:$0xff] %v1039_v40  ;;  %1042 = vst [vmem:[%s5054_s29 + $0x548] sm:$0xff] %v1041_v41  ;;  %v1045_v43 = vld [vmem:[%s5049_s28 + $0xab0] sm:$0xff] }
  0x6b   : > { %1044 = vst [vmem:[%s5054_s29 + $0x550] sm:$0xff] %v1043_v42  ;;  %v1047_v44 = vld [vmem:[%s5049_s28 + $0xac0] sm:$0xff]  ;;  %v1049_v45 = vld [vmem:[%s5049_s28 + $0xad0] sm:$0xff]  ;;  %1046 = vst [vmem:[%s5054_s29 + $0x558] sm:$0xff] %v1045_v43 }
  0x6c   : > { %1048 = vst [vmem:[%s5054_s29 + $0x560] sm:$0xff] %v1047_v44  ;;  %1050 = vst [vmem:[%s5054_s29 + $0x568] sm:$0xff] %v1049_v45  ;;  %v1051_v46 = vld [vmem:[%s5049_s28 + $0xae0] sm:$0xff]  ;;  %v1053_v47 = vld [vmem:[%s5049_s28 + $0xaf0] sm:$0xff] }
  0x6d   : > { %v1055_v48 = vld [vmem:[%s5049_s28 + $0xb00] sm:$0xff]  ;;  %1052 = vst [vmem:[%s5054_s29 + $0x570] sm:$0xff] %v1051_v46  ;;  %1054 = vst [vmem:[%s5054_s29 + $0x578] sm:$0xff] %v1053_v47  ;;  %v1057_v49 = vld [vmem:[%s5049_s28 + $0xb10] sm:$0xff] }
  0x6e   : > { %1056 = vst [vmem:[%s5054_s29 + $0x580] sm:$0xff] %v1055_v48  ;;  %v1059_v50 = vld [vmem:[%s5049_s28 + $0xb20] sm:$0xff]  ;;  %v1061_v51 = vld [vmem:[%s5049_s28 + $0xb30] sm:$0xff]  ;;  %1058 = vst [vmem:[%s5054_s29 + $0x588] sm:$0xff] %v1057_v49 }
  0x6f   : > { %1060 = vst [vmem:[%s5054_s29 + $0x590] sm:$0xff] %v1059_v50  ;;  %1062 = vst [vmem:[%s5054_s29 + $0x598] sm:$0xff] %v1061_v51  ;;  %v1063_v52 = vld [vmem:[%s5049_s28 + $0xb40] sm:$0xff]  ;;  %v1065_v53 = vld [vmem:[%s5049_s28 + $0xb50] sm:$0xff] }
  0x70   : > { %v1067_v54 = vld [vmem:[%s5049_s28 + $0xb60] sm:$0xff]  ;;  %1064 = vst [vmem:[%s5054_s29 + $0x5a0] sm:$0xff] %v1063_v52  ;;  %1066 = vst [vmem:[%s5054_s29 + $0x5a8] sm:$0xff] %v1065_v53  ;;  %v1069_v55 = vld [vmem:[%s5049_s28 + $0xb70] sm:$0xff] }
  0x71   : > { %1068 = vst [vmem:[%s5054_s29 + $0x5b0] sm:$0xff] %v1067_v54  ;;  %v1071_v56 = vld [vmem:[%s5049_s28 + $0xb80] sm:$0xff]  ;;  %v1073_v57 = vld [vmem:[%s5049_s28 + $0xb90] sm:$0xff]  ;;  %1070 = vst [vmem:[%s5054_s29 + $0x5b8] sm:$0xff] %v1069_v55 }
  0x72   : > { %1072 = vst [vmem:[%s5054_s29 + $0x5c0] sm:$0xff] %v1071_v56  ;;  %1074 = vst [vmem:[%s5054_s29 + $0x5c8] sm:$0xff] %v1073_v57  ;;  %v1075_v58 = vld [vmem:[%s5049_s28 + $0xba0] sm:$0xff]  ;;  %v1077_v59 = vld [vmem:[%s5049_s28 + $0xbb0] sm:$0xff] }
  0x73   : > { %v1079_v60 = vld [vmem:[%s5049_s28 + $0xbc0] sm:$0xff]  ;;  %1076 = vst [vmem:[%s5054_s29 + $0x5d0] sm:$0xff] %v1075_v58  ;;  %1078 = vst [vmem:[%s5054_s29 + $0x5d8] sm:$0xff] %v1077_v59  ;;  %v1081_v61 = vld [vmem:[%s5049_s28 + $0xbd0] sm:$0xff] }
  0x74   : > { %1080 = vst [vmem:[%s5054_s29 + $0x5e0] sm:$0xff] %v1079_v60  ;;  %v1083_v62 = vld [vmem:[%s5049_s28 + $0xbe0] sm:$0xff]  ;;  %v1085_v63 = vld [vmem:[%s5049_s28 + $0xbf0] sm:$0xff]  ;;  %1082 = vst [vmem:[%s5054_s29 + $0x5e8] sm:$0xff] %v1081_v61 }
  0x75   : > { %1084 = vst [vmem:[%s5054_s29 + $0x5f0] sm:$0xff] %v1083_v62  ;;  %1086 = vst [vmem:[%s5054_s29 + $0x5f8] sm:$0xff] %v1085_v63  ;;  %v1087_v0 = vld [vmem:[%s5049_s28 + $0xc00] sm:$0xff]  ;;  %v1089_v1 = vld [vmem:[%s5049_s28 + $0xc10] sm:$0xff] }
  0x76   : > { %v1091_v2 = vld [vmem:[%s5049_s28 + $0xc20] sm:$0xff]  ;;  %1088 = vst [vmem:[%s5054_s29 + $0x600] sm:$0xff] %v1087_v0  ;;  %1090 = vst [vmem:[%s5054_s29 + $0x608] sm:$0xff] %v1089_v1  ;;  %v1093_v3 = vld [vmem:[%s5049_s28 + $0xc30] sm:$0xff] }
  0x77   : > { %1092 = vst [vmem:[%s5054_s29 + $0x610] sm:$0xff] %v1091_v2  ;;  %v1095_v4 = vld [vmem:[%s5049_s28 + $0xc40] sm:$0xff]  ;;  %v1097_v5 = vld [vmem:[%s5049_s28 + $0xc50] sm:$0xff]  ;;  %1094 = vst [vmem:[%s5054_s29 + $0x618] sm:$0xff] %v1093_v3 }
  0x78   : > { %1096 = vst [vmem:[%s5054_s29 + $0x620] sm:$0xff] %v1095_v4  ;;  %1098 = vst [vmem:[%s5054_s29 + $0x628] sm:$0xff] %v1097_v5  ;;  %v1099_v6 = vld [vmem:[%s5049_s28 + $0xc60] sm:$0xff]  ;;  %v1101_v7 = vld [vmem:[%s5049_s28 + $0xc70] sm:$0xff] }
  0x79   : > { %v1103_v8 = vld [vmem:[%s5049_s28 + $0xc80] sm:$0xff]  ;;  %1100 = vst [vmem:[%s5054_s29 + $0x630] sm:$0xff] %v1099_v6  ;;  %1102 = vst [vmem:[%s5054_s29 + $0x638] sm:$0xff] %v1101_v7  ;;  %v1105_v9 = vld [vmem:[%s5049_s28 + $0xc90] sm:$0xff] }
  0x7a   : > { %1104 = vst [vmem:[%s5054_s29 + $0x640] sm:$0xff] %v1103_v8  ;;  %v1107_v10 = vld [vmem:[%s5049_s28 + $0xca0] sm:$0xff]  ;;  %v1109_v11 = vld [vmem:[%s5049_s28 + $0xcb0] sm:$0xff]  ;;  %1106 = vst [vmem:[%s5054_s29 + $0x648] sm:$0xff] %v1105_v9 }
  0x7b   : > { %1108 = vst [vmem:[%s5054_s29 + $0x650] sm:$0xff] %v1107_v10  ;;  %1110 = vst [vmem:[%s5054_s29 + $0x658] sm:$0xff] %v1109_v11  ;;  %v1111_v12 = vld [vmem:[%s5049_s28 + $0xcc0] sm:$0xff]  ;;  %v1113_v13 = vld [vmem:[%s5049_s28 + $0xcd0] sm:$0xff] }
  0x7c   : > { %v1115_v14 = vld [vmem:[%s5049_s28 + $0xce0] sm:$0xff]  ;;  %1112 = vst [vmem:[%s5054_s29 + $0x660] sm:$0xff] %v1111_v12  ;;  %1114 = vst [vmem:[%s5054_s29 + $0x668] sm:$0xff] %v1113_v13  ;;  %v1117_v15 = vld [vmem:[%s5049_s28 + $0xcf0] sm:$0xff] }
  0x7d   : > { %1116 = vst [vmem:[%s5054_s29 + $0x670] sm:$0xff] %v1115_v14  ;;  %v1119_v16 = vld [vmem:[%s5049_s28 + $0xd00] sm:$0xff]  ;;  %v1121_v17 = vld [vmem:[%s5049_s28 + $0xd10] sm:$0xff]  ;;  %1118 = vst [vmem:[%s5054_s29 + $0x678] sm:$0xff] %v1117_v15 }
  0x7e   : > { %1120 = vst [vmem:[%s5054_s29 + $0x680] sm:$0xff] %v1119_v16  ;;  %1122 = vst [vmem:[%s5054_s29 + $0x688] sm:$0xff] %v1121_v17  ;;  %v1123_v18 = vld [vmem:[%s5049_s28 + $0xd20] sm:$0xff]  ;;  %v1125_v19 = vld [vmem:[%s5049_s28 + $0xd30] sm:$0xff] }
  0x7f   : > { %v1127_v20 = vld [vmem:[%s5049_s28 + $0xd40] sm:$0xff]  ;;  %1124 = vst [vmem:[%s5054_s29 + $0x690] sm:$0xff] %v1123_v18  ;;  %1126 = vst [vmem:[%s5054_s29 + $0x698] sm:$0xff] %v1125_v19  ;;  %v1129_v21 = vld [vmem:[%s5049_s28 + $0xd50] sm:$0xff] }
  0x80   : > { %1128 = vst [vmem:[%s5054_s29 + $0x6a0] sm:$0xff] %v1127_v20  ;;  %v1131_v22 = vld [vmem:[%s5049_s28 + $0xd60] sm:$0xff]  ;;  %v1133_v23 = vld [vmem:[%s5049_s28 + $0xd70] sm:$0xff]  ;;  %1130 = vst [vmem:[%s5054_s29 + $0x6a8] sm:$0xff] %v1129_v21 }
  0x81   : > { %1132 = vst [vmem:[%s5054_s29 + $0x6b0] sm:$0xff] %v1131_v22  ;;  %1134 = vst [vmem:[%s5054_s29 + $0x6b8] sm:$0xff] %v1133_v23  ;;  %v1135_v24 = vld [vmem:[%s5049_s28 + $0xd80] sm:$0xff]  ;;  %v1137_v25 = vld [vmem:[%s5049_s28 + $0xd90] sm:$0xff] }
  0x82   : > { %v1139_v26 = vld [vmem:[%s5049_s28 + $0xda0] sm:$0xff]  ;;  %1136 = vst [vmem:[%s5054_s29 + $0x6c0] sm:$0xff] %v1135_v24  ;;  %1138 = vst [vmem:[%s5054_s29 + $0x6c8] sm:$0xff] %v1137_v25  ;;  %v1141_v27 = vld [vmem:[%s5049_s28 + $0xdb0] sm:$0xff] }
  0x83   : > { %1140 = vst [vmem:[%s5054_s29 + $0x6d0] sm:$0xff] %v1139_v26  ;;  %v1143_v28 = vld [vmem:[%s5049_s28 + $0xdc0] sm:$0xff]  ;;  %v1145_v29 = vld [vmem:[%s5049_s28 + $0xdd0] sm:$0xff]  ;;  %1142 = vst [vmem:[%s5054_s29 + $0x6d8] sm:$0xff] %v1141_v27 }
  0x84   : > { %1144 = vst [vmem:[%s5054_s29 + $0x6e0] sm:$0xff] %v1143_v28  ;;  %1146 = vst [vmem:[%s5054_s29 + $0x6e8] sm:$0xff] %v1145_v29  ;;  %v1147_v30 = vld [vmem:[%s5049_s28 + $0xde0] sm:$0xff]  ;;  %v1149_v31 = vld [vmem:[%s5049_s28 + $0xdf0] sm:$0xff] }
  0x85   : > { %v1151_v32 = vld [vmem:[%s5049_s28 + $0xe00] sm:$0xff]  ;;  %1148 = vst [vmem:[%s5054_s29 + $0x6f0] sm:$0xff] %v1147_v30  ;;  %1150 = vst [vmem:[%s5054_s29 + $0x6f8] sm:$0xff] %v1149_v31  ;;  %v1153_v33 = vld [vmem:[%s5049_s28 + $0xe10] sm:$0xff] }
  0x86   : > { %1152 = vst [vmem:[%s5054_s29 + $0x700] sm:$0xff] %v1151_v32  ;;  %v1155_v34 = vld [vmem:[%s5049_s28 + $0xe20] sm:$0xff]  ;;  %v1157_v35 = vld [vmem:[%s5049_s28 + $0xe30] sm:$0xff]  ;;  %1154 = vst [vmem:[%s5054_s29 + $0x708] sm:$0xff] %v1153_v33 }
  0x87   : > { %1156 = vst [vmem:[%s5054_s29 + $0x710] sm:$0xff] %v1155_v34  ;;  %1158 = vst [vmem:[%s5054_s29 + $0x718] sm:$0xff] %v1157_v35  ;;  %v1159_v36 = vld [vmem:[%s5049_s28 + $0xe40] sm:$0xff]  ;;  %v1161_v37 = vld [vmem:[%s5049_s28 + $0xe50] sm:$0xff] }
  0x88   : > { %v1163_v38 = vld [vmem:[%s5049_s28 + $0xe60] sm:$0xff]  ;;  %1160 = vst [vmem:[%s5054_s29 + $0x720] sm:$0xff] %v1159_v36  ;;  %1162 = vst [vmem:[%s5054_s29 + $0x728] sm:$0xff] %v1161_v37  ;;  %v1165_v39 = vld [vmem:[%s5049_s28 + $0xe70] sm:$0xff] }
  0x89   : > { %1164 = vst [vmem:[%s5054_s29 + $0x730] sm:$0xff] %v1163_v38  ;;  %v1167_v40 = vld [vmem:[%s5049_s28 + $0xe80] sm:$0xff]  ;;  %v1169_v41 = vld [vmem:[%s5049_s28 + $0xe90] sm:$0xff]  ;;  %1166 = vst [vmem:[%s5054_s29 + $0x738] sm:$0xff] %v1165_v39 }
  0x8a   : > { %1168 = vst [vmem:[%s5054_s29 + $0x740] sm:$0xff] %v1167_v40  ;;  %1170 = vst [vmem:[%s5054_s29 + $0x748] sm:$0xff] %v1169_v41  ;;  %v1171_v42 = vld [vmem:[%s5049_s28 + $0xea0] sm:$0xff]  ;;  %v1173_v43 = vld [vmem:[%s5049_s28 + $0xeb0] sm:$0xff] }
  0x8b   : > { %v1175_v44 = vld [vmem:[%s5049_s28 + $0xec0] sm:$0xff]  ;;  %1172 = vst [vmem:[%s5054_s29 + $0x750] sm:$0xff] %v1171_v42  ;;  %1174 = vst [vmem:[%s5054_s29 + $0x758] sm:$0xff] %v1173_v43  ;;  %v1177_v45 = vld [vmem:[%s5049_s28 + $0xed0] sm:$0xff] }
  0x8c   : > { %1176 = vst [vmem:[%s5054_s29 + $0x760] sm:$0xff] %v1175_v44  ;;  %v1179_v46 = vld [vmem:[%s5049_s28 + $0xee0] sm:$0xff]  ;;  %v1181_v47 = vld [vmem:[%s5049_s28 + $0xef0] sm:$0xff]  ;;  %1178 = vst [vmem:[%s5054_s29 + $0x768] sm:$0xff] %v1177_v45 }
  0x8d   : > { %1180 = vst [vmem:[%s5054_s29 + $0x770] sm:$0xff] %v1179_v46  ;;  %1182 = vst [vmem:[%s5054_s29 + $0x778] sm:$0xff] %v1181_v47  ;;  %v1183_v48 = vld [vmem:[%s5049_s28 + $0xf00] sm:$0xff]  ;;  %v1185_v49 = vld [vmem:[%s5049_s28 + $0xf10] sm:$0xff] }
  0x8e   : > { %v1187_v50 = vld [vmem:[%s5049_s28 + $0xf20] sm:$0xff]  ;;  %1184 = vst [vmem:[%s5054_s29 + $0x780] sm:$0xff] %v1183_v48  ;;  %1186 = vst [vmem:[%s5054_s29 + $0x788] sm:$0xff] %v1185_v49  ;;  %v1189_v51 = vld [vmem:[%s5049_s28 + $0xf30] sm:$0xff] }
  0x8f   : > { %1188 = vst [vmem:[%s5054_s29 + $0x790] sm:$0xff] %v1187_v50  ;;  %v1191_v52 = vld [vmem:[%s5049_s28 + $0xf40] sm:$0xff]  ;;  %v1193_v53 = vld [vmem:[%s5049_s28 + $0xf50] sm:$0xff]  ;;  %1190 = vst [vmem:[%s5054_s29 + $0x798] sm:$0xff] %v1189_v51 }
  0x90   : > { %1192 = vst [vmem:[%s5054_s29 + $0x7a0] sm:$0xff] %v1191_v52  ;;  %1194 = vst [vmem:[%s5054_s29 + $0x7a8] sm:$0xff] %v1193_v53  ;;  %v1195_v54 = vld [vmem:[%s5049_s28 + $0xf60] sm:$0xff]  ;;  %v1197_v55 = vld [vmem:[%s5049_s28 + $0xf70] sm:$0xff] }
  0x91   : > { %v1199_v56 = vld [vmem:[%s5049_s28 + $0xf80] sm:$0xff]  ;;  %1196 = vst [vmem:[%s5054_s29 + $0x7b0] sm:$0xff] %v1195_v54  ;;  %1198 = vst [vmem:[%s5054_s29 + $0x7b8] sm:$0xff] %v1197_v55  ;;  %v1201_v57 = vld [vmem:[%s5049_s28 + $0xf90] sm:$0xff] }
  0x92   : > { %1200 = vst [vmem:[%s5054_s29 + $0x7c0] sm:$0xff] %v1199_v56  ;;  %v1203_v58 = vld [vmem:[%s5049_s28 + $0xfa0] sm:$0xff]  ;;  %v1205_v59 = vld [vmem:[%s5049_s28 + $0xfb0] sm:$0xff]  ;;  %1202 = vst [vmem:[%s5054_s29 + $0x7c8] sm:$0xff] %v1201_v57 }
  0x93   : > { %1204 = vst [vmem:[%s5054_s29 + $0x7d0] sm:$0xff] %v1203_v58  ;;  %1206 = vst [vmem:[%s5054_s29 + $0x7d8] sm:$0xff] %v1205_v59  ;;  %v1207_v60 = vld [vmem:[%s5049_s28 + $0xfc0] sm:$0xff]  ;;  %v1209_v61 = vld [vmem:[%s5049_s28 + $0xfd0] sm:$0xff] }
  0x94   : > { %v1211_v62 = vld [vmem:[%s5049_s28 + $0xfe0] sm:$0xff]  ;;  %1208 = vst [vmem:[%s5054_s29 + $0x7e0] sm:$0xff] %v1207_v60  ;;  %1210 = vst [vmem:[%s5054_s29 + $0x7e8] sm:$0xff] %v1209_v61  ;;  %v1213_v63 = vld [vmem:[%s5049_s28 + $0xff0] sm:$0xff] }
  0x95   : > { %1212 = vst [vmem:[%s5054_s29 + $0x7f0] sm:$0xff] %v1211_v62  ;;  %1214 = vst [vmem:[%s5054_s29 + $0x7f8] sm:$0xff] %v1213_v63 }
  0x96 PF: > { %p4042_p8 = scmp.ge.s32.totalorder %s4979_s16, 1  ;;  %p1227_p9 = scmp.lt.s32.totalorder %s4979_s16, 3 }
  0x98   : > { %p1228_p10 = pnand %p4042_p8, %p1227_p9 }
  0x99   : > { %s1234_s30 = sand.u32 (!%p1228_p10), 1, %s4963_s12   ;;  %v5571_v0 = vld [vmem:[%s6155_s0] sm:$0xff] (!%p1228_p10)  ;;  %s4045_s20 = sshll.u32 (!%p1228_p10), %s4971_s14, 1 }
  0x9a   : > { %1231 = sbr.rel (%p1228_p10) target bundleno = 671 (0x29f), region = 66  ;;  %v5576_v1 = vld [vmem:[%s6155_s0 + $0x40] sm:$0xff] (!%p1228_p10)  ;;  %s4043_s10 = sshll.u32 (!%p1228_p10), %s1234_s30, 11 }
  0x9b   : > { %v5581_v2 = vld [vmem:[%s6155_s0 + $0x20] sm:$0xff] (!%p1228_p10)  ;;  %v4046_v3 = vcombine.low (!%p1228_p10), %v5571_v0, %v5576_v1  ;;  %v4047_v4 = vcombine.high (!%p1228_p10), %v5571_v0, %v5576_v1  ;;  %s5598_s19 = scalar_lea.vmem (!%p1228_p10), [#allocation2], %s4043_s10  ;;  %p1275_p11 = scmp.lt.s32.totalorder (!%p1228_p10), %s4045_s20, 3 }
  0x9c   : > { %v5592_v5 = vld [vmem:[%s6155_s0 + $0x60] sm:$0xff] (!%p1228_p10)  ;;  %v4563_v12 = vld [vmem:[%s5598_s19 + $0x14] ss:$8 sps:$4 sm:$0xff] (!%p1228_p10)   ;;  %v4567_v14 = vld [vmem:[%s5598_s19 + $0x10] ss:$8 sps:$4 sm:$0xff] (!%p1228_p10)   ;;  %s4044_s25 = sshll.u32 (!%p1228_p10), %s1234_s30, 6 }
  0x9d   : > { %v4054_v6 = vcombine.low (!%p1228_p10), %v5581_v2, %v5592_v5  ;;  %v4055_v7 = vcombine.high (!%p1228_p10), %v5581_v2, %v5592_v5  ;;  %v4557_v8 = vld [vmem:[%s5598_s19 + $0x4] ss:$8 sps:$4 sm:$0xff] (!%p1228_p10)   ;;  %3245 = vmatprep.mubr.bf16.mxu1 (!%p1228_p10), %v4047_v4  ;;  %v4561_v10 = vld [vmem:[%s5598_s19] ss:$8 sps:$4 sm:$0xff] (!%p1228_p10)   ;;  %v4565_v13 = vld [vmem:[%s5598_s19 + $0x414] ss:$8 sps:$4 sm:$0xff] (!%p1228_p10)  }
  0x9e   : > { %v4559_v9 = vld [vmem:[%s5598_s19 + $0x404] ss:$8 sps:$4 sm:$0xff] (!%p1228_p10)   ;;  %3213 = vmatprep.subr.bf16.mxu1 (!%p1228_p10), %v4557_v8  ;;  %v4562_v11 = vld [vmem:[%s5598_s19 + $0x400] ss:$8 sps:$4 sm:$0xff] (!%p1228_p10)   ;;  %v4568_v15 = vld [vmem:[%s5598_s19 + $0x410] ss:$8 sps:$4 sm:$0xff] (!%p1228_p10)  }
  0x9f   : > { %3537 = vmatprep.mubr.bf16.mxu0 (!%p1228_p10), %v4055_v7  ;;  %3505 = vmatprep.subr.bf16.mxu0 (!%p1228_p10), %v4559_v9  ;;  %v4569_v16 = vld [vmem:[%s5598_s19 + $0x24] ss:$8 sps:$4 sm:$0xff] (!%p1228_p10)   ;;  %v4573_v18 = vld [vmem:[%s5598_s19 + $0x20] ss:$8 sps:$4 sm:$0xff] (!%p1228_p10)   ;;  %v4575_v20 = vld [vmem:[%s5598_s19 + $0x34] ss:$8 sps:$4 sm:$0xff] (!%p1228_p10)  }
  0xa0   : > { %3214 = vmatpush1.bf16.msra.mxu1 (!%p1228_p10), %v4561_v10  ;;  %3506 = vmatpush1.bf16.msra.mxu0 (!%p1228_p10), %v4562_v11  ;;  %v4571_v17 = vld [vmem:[%s5598_s19 + $0x424] ss:$8 sps:$4 sm:$0xff] (!%p1228_p10)   ;;  %v4574_v19 = vld [vmem:[%s5598_s19 + $0x420] ss:$8 sps:$4 sm:$0xff] (!%p1228_p10)   ;;  %v4577_v21 = vld [vmem:[%s5598_s19 + $0x434] ss:$8 sps:$4 sm:$0xff] (!%p1228_p10)  }
  0xa1   : > { %3215 = vmatprep.subr.bf16.mxu1 %v4563_v12  ;;  %3507 = vmatprep.subr.bf16.mxu0 %v4565_v13  ;;  %v4579_v22 = vld [vmem:[%s5598_s19 + $0x30] ss:$8 sps:$4 sm:$0xff]   ;;  %v4581_v24 = vld [vmem:[%s5598_s19 + $0x44] ss:$8 sps:$4 sm:$0xff]   ;;  %v4585_v26 = vld [vmem:[%s5598_s19 + $0x40] ss:$8 sps:$4 sm:$0xff]  }
  0xa2   : > { %v4580_v23 = vld [vmem:[%s5598_s19 + $0x430] ss:$8 sps:$4 sm:$0xff]   ;;  %v4583_v25 = vld [vmem:[%s5598_s19 + $0x444] ss:$8 sps:$4 sm:$0xff]   ;;  %v4586_v27 = vld [vmem:[%s5598_s19 + $0x440] ss:$8 sps:$4 sm:$0xff]  }
  0xa3   : > { %v4587_v28 = vld [vmem:[%s5598_s19 + $0x54] ss:$8 sps:$4 sm:$0xff]   ;;  %v4591_v30 = vld [vmem:[%s5598_s19 + $0x50] ss:$8 sps:$4 sm:$0xff]   ;;  %v4593_v32 = vld [vmem:[%s5598_s19 + $0x64] ss:$8 sps:$4 sm:$0xff]  }
  0xa4   : > { %3216 = vmatpush1.bf16.msra.mxu1 %v4567_v14  ;;  %3508 = vmatpush1.bf16.msra.mxu0 %v4568_v15  ;;  %v4589_v29 = vld [vmem:[%s5598_s19 + $0x454] ss:$8 sps:$4 sm:$0xff]   ;;  %v4592_v31 = vld [vmem:[%s5598_s19 + $0x450] ss:$8 sps:$4 sm:$0xff]   ;;  %v4595_v33 = vld [vmem:[%s5598_s19 + $0x464] ss:$8 sps:$4 sm:$0xff]  }
  0xa5   : > { %3217 = vmatprep.subr.bf16.mxu1 %v4569_v16  ;;  %3509 = vmatprep.subr.bf16.mxu0 %v4571_v17  ;;  %v4597_v34 = vld [vmem:[%s5598_s19 + $0x60] ss:$8 sps:$4 sm:$0xff]   ;;  %v4599_v36 = vld [vmem:[%s5598_s19 + $0x74] ss:$8 sps:$4 sm:$0xff]   ;;  %v4603_v38 = vld [vmem:[%s5598_s19 + $0x70] ss:$8 sps:$4 sm:$0xff]  }
  0xa6   : > { %v4598_v35 = vld [vmem:[%s5598_s19 + $0x460] ss:$8 sps:$4 sm:$0xff]   ;;  %v4601_v37 = vld [vmem:[%s5598_s19 + $0x474] ss:$8 sps:$4 sm:$0xff]   ;;  %v4604_v39 = vld [vmem:[%s5598_s19 + $0x470] ss:$8 sps:$4 sm:$0xff]  }
  0xa7   : > { %v4605_v40 = vld [vmem:[%s5598_s19 + $0x84] ss:$8 sps:$4 sm:$0xff]   ;;  %v4609_v42 = vld [vmem:[%s5598_s19 + $0x80] ss:$8 sps:$4 sm:$0xff]   ;;  %v4611_v44 = vld [vmem:[%s5598_s19 + $0x94] ss:$8 sps:$4 sm:$0xff]  }
  0xa8   : > { %3218 = vmatpush1.bf16.msra.mxu1 %v4573_v18  ;;  %3510 = vmatpush1.bf16.msra.mxu0 %v4574_v19  ;;  %v4607_v41 = vld [vmem:[%s5598_s19 + $0x484] ss:$8 sps:$4 sm:$0xff]   ;;  %v4610_v43 = vld [vmem:[%s5598_s19 + $0x480] ss:$8 sps:$4 sm:$0xff]   ;;  %v4613_v45 = vld [vmem:[%s5598_s19 + $0x494] ss:$8 sps:$4 sm:$0xff]  }
  0xa9   : > { %3219 = vmatprep.subr.bf16.mxu1 %v4575_v20  ;;  %3511 = vmatprep.subr.bf16.mxu0 %v4577_v21  ;;  %v4615_v46 = vld [vmem:[%s5598_s19 + $0x90] ss:$8 sps:$4 sm:$0xff]   ;;  %v4617_v48 = vld [vmem:[%s5598_s19 + $0xa4] ss:$8 sps:$4 sm:$0xff]   ;;  %v4621_v50 = vld [vmem:[%s5598_s19 + $0xa0] ss:$8 sps:$4 sm:$0xff]  }
  0xaa   : > { %v4616_v47 = vld [vmem:[%s5598_s19 + $0x490] ss:$8 sps:$4 sm:$0xff]   ;;  %v4619_v49 = vld [vmem:[%s5598_s19 + $0x4a4] ss:$8 sps:$4 sm:$0xff]   ;;  %v4622_v51 = vld [vmem:[%s5598_s19 + $0x4a0] ss:$8 sps:$4 sm:$0xff]  }
  0xab   : > { %v4623_v52 = vld [vmem:[%s5598_s19 + $0xb4] ss:$8 sps:$4 sm:$0xff]   ;;  %v4627_v54 = vld [vmem:[%s5598_s19 + $0xb0] ss:$8 sps:$4 sm:$0xff]   ;;  %v4629_v56 = vld [vmem:[%s5598_s19 + $0xc4] ss:$8 sps:$4 sm:$0xff]  }
  0xac   : > { %3220 = vmatpush1.bf16.msra.mxu1 %v4579_v22  ;;  %3512 = vmatpush1.bf16.msra.mxu0 %v4580_v23  ;;  %v4625_v53 = vld [vmem:[%s5598_s19 + $0x4b4] ss:$8 sps:$4 sm:$0xff]   ;;  %v4628_v55 = vld [vmem:[%s5598_s19 + $0x4b0] ss:$8 sps:$4 sm:$0xff]   ;;  %v4631_v57 = vld [vmem:[%s5598_s19 + $0x4c4] ss:$8 sps:$4 sm:$0xff]  }
  0xad   : > { %3221 = vmatprep.subr.bf16.mxu1 %v4581_v24  ;;  %3513 = vmatprep.subr.bf16.mxu0 %v4583_v25  ;;  %v4633_v58 = vld [vmem:[%s5598_s19 + $0xc0] ss:$8 sps:$4 sm:$0xff]   ;;  %v4635_v60 = vld [vmem:[%s5598_s19 + $0xd4] ss:$8 sps:$4 sm:$0xff]   ;;  %v4639_v62 = vld [vmem:[%s5598_s19 + $0xd0] ss:$8 sps:$4 sm:$0xff]  }
  0xae   : > { %v4634_v59 = vld [vmem:[%s5598_s19 + $0x4c0] ss:$8 sps:$4 sm:$0xff]   ;;  %v4637_v61 = vld [vmem:[%s5598_s19 + $0x4d4] ss:$8 sps:$4 sm:$0xff]   ;;  %v4640_v63 = vld [vmem:[%s5598_s19 + $0x4d0] ss:$8 sps:$4 sm:$0xff]  }
  0xaf   : > { %v4641_v4 = vld [vmem:[%s5598_s19 + $0xe4] ss:$8 sps:$4 sm:$0xff]   ;;  %v4645_v8 = vld [vmem:[%s5598_s19 + $0xe0] ss:$8 sps:$4 sm:$0xff]   ;;  %v4647_v10 = vld [vmem:[%s5598_s19 + $0xf4] ss:$8 sps:$4 sm:$0xff]  }
  0xb0   : > { %3222 = vmatpush1.bf16.msra.mxu1 %v4585_v26  ;;  %3514 = vmatpush1.bf16.msra.mxu0 %v4586_v27  ;;  %v4643_v7 = vld [vmem:[%s5598_s19 + $0x4e4] ss:$8 sps:$4 sm:$0xff]   ;;  %v4646_v9 = vld [vmem:[%s5598_s19 + $0x4e0] ss:$8 sps:$4 sm:$0xff]   ;;  %v4649_v11 = vld [vmem:[%s5598_s19 + $0x4f4] ss:$8 sps:$4 sm:$0xff]  }
  0xb1   : > { %3223 = vmatprep.subr.bf16.mxu1 %v4587_v28  ;;  %3515 = vmatprep.subr.bf16.mxu0 %v4589_v29  ;;  %v4651_v12 = vld [vmem:[%s5598_s19 + $0xf0] ss:$8 sps:$4 sm:$0xff]   ;;  %v4655_v14 = vld [vmem:[%s5598_s19 + $0x104] ss:$8 sps:$4 sm:$0xff]   ;;  %v4653_v20 = vld [vmem:[%s5598_s19 + $0x100] ss:$8 sps:$4 sm:$0xff]  }
  0xb2   : > { %v4652_v13 = vld [vmem:[%s5598_s19 + $0x4f0] ss:$8 sps:$4 sm:$0xff]   ;;  %v4658_v15 = vld [vmem:[%s5598_s19 + $0x504] ss:$8 sps:$4 sm:$0xff]   ;;  %v4656_v21 = vld [vmem:[%s5598_s19 + $0x500] ss:$8 sps:$4 sm:$0xff]  }
  0xb3   : > { %v1297_v16 = vld [vmem:[%s6155_s0 + $0x80] sm:$0xff]  ;;  %v4661_v22 = vld [vmem:[%s5598_s19 + $0x114] ss:$8 sps:$4 sm:$0xff]   ;;  %v4659_v26 = vld [vmem:[%s5598_s19 + $0x110] ss:$8 sps:$4 sm:$0xff]   ;;  %s6167_s20 = smov (!%p1275_p11, %s4045_s20), 3 }
  0xb4   : > { %3224 = vmatpush1.bf16.msra.mxu1 %v4591_v30  ;;  %3516 = vmatpush1.bf16.msra.mxu0 %v4592_v31  ;;  %v1305_v17 = vld [vmem:[%s6155_s0 + $0xc0] sm:$0xff]  ;;  %v4664_v23 = vld [vmem:[%s5598_s19 + $0x514] ss:$8 sps:$4 sm:$0xff]   ;;  %v4662_v27 = vld [vmem:[%s5598_s19 + $0x510] ss:$8 sps:$4 sm:$0xff]   ;;  %s1277_s24 = scalar_lea.vmem %s6157_s2, %s6167_s20  ;;  %s6105_s26 = scalar_lea.vmem [#allocation3], %s4044_s25 }
  0xb5   : > { %3225 = vmatprep.subr.bf16.mxu1 %v4593_v32  ;;  %3517 = vmatprep.subr.bf16.mxu0 %v4595_v33  ;;  %v1301_v18 = vld [vmem:[%s6155_s0 + $0xa0] sm:$0xff]  ;;  %v4063_v24 = vcombine.high %v1297_v16, %v1305_v17  ;;  %v4676_v30 = vld [vmem:[%s5598_s19 + $0x534] ss:$8 sps:$4 sm:$0xff]   ;;  %v4671_v31 = vld [vmem:[%s5598_s19 + $0x130] ss:$8 sps:$4 sm:$0xff]   ;;  %s4388_s12 = sshll.u32 (%p5036_p6), %s4971_s14, 3 }
  0xb6   : > { %v1309_v19 = vld [vmem:[%s6155_s0 + $0xe0] sm:$0xff]  ;;  %v4674_v33 = vld [vmem:[%s5598_s19 + $0x530] ss:$8 sps:$4 sm:$0xff]   ;;  %s3881_s28 = scalar_lea.vmem (%p5036_p6), %s6158_s3, %s4388_s12 }
  0xb7   : > { %v4071_v25 = vcombine.high %v1301_v18, %v1309_v19  ;;  %v4667_v28 = vld [vmem:[%s5598_s19 + $0x124] ss:$8 sps:$4 sm:$0xff]   ;;  %v4665_v1 = vld [vmem:[%s5598_s19 + $0x120] ss:$8 sps:$4 sm:$0xff]   ;;  %v4070_v5 = vcombine.low %v1301_v18, %v1309_v19  ;;  %v4707_v18 = vld [vmem:[%s5598_s19 + $0x190] ss:$8 sps:$4 sm:$0xff]  }
  0xb8   : > { %3226 = vmatpush1.bf16.msra.mxu1 %v4597_v34  ;;  %3518 = vmatpush1.bf16.msra.mxu0 %v4598_v35  ;;  %v4670_v29 = vld [vmem:[%s5598_s19 + $0x524] ss:$8 sps:$4 sm:$0xff]   ;;  %v4668_v2 = vld [vmem:[%s5598_s19 + $0x520] ss:$8 sps:$4 sm:$0xff]   ;;  %v4710_v19 = vld [vmem:[%s5598_s19 + $0x590] ss:$8 sps:$4 sm:$0xff]  }
  0xb9   : > { %3227 = vmatprep.subr.bf16.mxu1 %v4599_v36  ;;  %3519 = vmatprep.subr.bf16.mxu0 %v4601_v37  ;;  %v1313_v0 = vld [vmem:[%s6155_s0 + $0x100] sm:$0xff] }
  0xba   : > { %v1321_v32 = vld [vmem:[%s6155_s0 + $0x140] sm:$0xff] }
  0xbb   : > { %v4079_v34 = vcombine.high %v1313_v0, %v1321_v32  ;;  %v4679_v35 = vld [vmem:[%s5598_s19 + $0x144] ss:$8 sps:$4 sm:$0xff]  }
  0xbc   : > { %3228 = vmatpush1.bf16.msra.mxu1 %v4603_v38  ;;  %3520 = vmatpush1.bf16.msra.mxu0 %v4604_v39  ;;  %v1317_v36 = vld [vmem:[%s6155_s0 + $0x120] sm:$0xff] }
  0xbd   : > { %3229 = vmatprep.subr.bf16.mxu1 %v4605_v40  ;;  %3521 = vmatprep.subr.bf16.mxu0 %v4607_v41  ;;  %v1325_v37 = vld [vmem:[%s6155_s0 + $0x160] sm:$0xff] }
  0xbe   : > { %v4682_v38 = vld [vmem:[%s5598_s19 + $0x544] ss:$8 sps:$4 sm:$0xff]   ;;  %v4087_v39 = vcombine.high %v1317_v36, %v1325_v37  ;;  %v4677_v40 = vld [vmem:[%s5598_s19 + $0x140] ss:$8 sps:$4 sm:$0xff]  }
  0xbf   : > { %v4680_v41 = vld [vmem:[%s5598_s19 + $0x540] ss:$8 sps:$4 sm:$0xff]  }
  0xc0   : > { %3230 = vmatpush1.bf16.msra.mxu1 %v4609_v42  ;;  %3522 = vmatpush1.bf16.msra.mxu0 %v4610_v43  ;;  %v4078_v42 = vcombine.low %v1313_v0, %v1321_v32  ;;  %v4086_v43 = vcombine.low %v1317_v36, %v1325_v37  ;;  %v4725_v0 = vld [vmem:[%s5598_s19 + $0x1c0] ss:$8 sps:$4 sm:$0xff]   ;;  %v4743_v36 = vld [vmem:[%s5598_s19 + $0x1f0] ss:$8 sps:$4 sm:$0xff]  }
  0xc1   : > { %3231 = vmatprep.subr.bf16.mxu1 %v4611_v44  ;;  %3523 = vmatprep.subr.bf16.mxu0 %v4613_v45  ;;  %v4685_v44 = vld [vmem:[%s5598_s19 + $0x154] ss:$8 sps:$4 sm:$0xff]   ;;  %v4737_v32 = vld [vmem:[%s5598_s19 + $0x1e0] ss:$8 sps:$4 sm:$0xff]   ;;  %v4746_v37 = vld [vmem:[%s5598_s19 + $0x5f0] ss:$8 sps:$4 sm:$0xff]  }
  0xc2   : > { %v4688_v45 = vld [vmem:[%s5598_s19 + $0x554] ss:$8 sps:$4 sm:$0xff]  }
  0xc4   : > { %3232 = vmatpush1.bf16.msra.mxu1 %v4615_v46  ;;  %3524 = vmatpush1.bf16.msra.mxu0 %v4616_v47  ;;  %v1329_v46 = vld [vmem:[%s6155_s0 + $0x180] sm:$0xff] }
  0xc5   : > { %3233 = vmatprep.subr.bf16.mxu1 %v4617_v48  ;;  %3525 = vmatprep.subr.bf16.mxu0 %v4619_v49  ;;  %v1337_v47 = vld [vmem:[%s6155_s0 + $0x1c0] sm:$0xff]  ;;  %v4683_v48 = vld [vmem:[%s5598_s19 + $0x150] ss:$8 sps:$4 sm:$0xff]  }
  0xc6   : > { %v4095_v49 = vcombine.high %v1329_v46, %v1337_v47 }
  0xc8   : > { %3234 = vmatpush1.bf16.msra.mxu1 %v4621_v50  ;;  %3526 = vmatpush1.bf16.msra.mxu0 %v4622_v51  ;;  %v1333_v50 = vld [vmem:[%s6155_s0 + $0x1a0] sm:$0xff] }
  0xc9   : > { %3235 = vmatprep.subr.bf16.mxu1 %v4623_v52  ;;  %3527 = vmatprep.subr.bf16.mxu0 %v4625_v53  ;;  %v1341_v51 = vld [vmem:[%s6155_s0 + $0x1e0] sm:$0xff]  ;;  %v4686_v52 = vld [vmem:[%s5598_s19 + $0x550] ss:$8 sps:$4 sm:$0xff]  }
  0xca   : > { %v4691_v53 = vld [vmem:[%s5598_s19 + $0x164] ss:$8 sps:$4 sm:$0xff]  }
  0xcc   : > { %3236 = vmatpush1.bf16.msra.mxu1 %v4627_v54  ;;  %3528 = vmatpush1.bf16.msra.mxu0 %v4628_v55  ;;  %v4103_v54 = vcombine.high %v1333_v50, %v1341_v51  ;;  %v4694_v55 = vld [vmem:[%s5598_s19 + $0x564] ss:$8 sps:$4 sm:$0xff]  }
  0xcd   : > { %3237 = vmatprep.subr.bf16.mxu1 %v4629_v56  ;;  %3529 = vmatprep.subr.bf16.mxu0 %v4631_v57  ;;  %v4689_v56 = vld [vmem:[%s5598_s19 + $0x160] ss:$8 sps:$4 sm:$0xff]  }
  0xce   : > { %v4692_v57 = vld [vmem:[%s5598_s19 + $0x560] ss:$8 sps:$4 sm:$0xff]  }
  0xd0   : > { %3238 = vmatpush1.bf16.msra.mxu1 %v4633_v58  ;;  %3530 = vmatpush1.bf16.msra.mxu0 %v4634_v59  ;;  %v4094_v58 = vcombine.low %v1329_v46, %v1337_v47  ;;  %v4102_v59 = vcombine.low %v1333_v50, %v1341_v51  ;;  %v4749_v46 = vld [vmem:[%s5598_s19 + $0x200] ss:$8 sps:$4 sm:$0xff]  }
  0xd1   : > { %3239 = vmatprep.subr.bf16.mxu1 %v4635_v60  ;;  %3531 = vmatprep.subr.bf16.mxu0 %v4637_v61  ;;  %v5737_v60 = vld [vmem:[%s6155_s0 + $0x8] sm:$0xff] }
  0xd2   : > { %v5742_v61 = vld [vmem:[%s6155_s0 + $0x48] sm:$0xff] }
  0xd3   : > { %v4752_v47 = vld [vmem:[%s5598_s19 + $0x600] ss:$8 sps:$4 sm:$0xff]  }
  0xd4   : > { %3240 = vmatpush1.bf16.msra.mxu1 %v4639_v62  ;;  %3532 = vmatpush1.bf16.msra.mxu0 %v4640_v63  ;;  %v4697_v62 = vld [vmem:[%s5598_s19 + $0x174] ss:$8 sps:$4 sm:$0xff]  }
  0xd5   : > { %3241 = vmatprep.subr.bf16.mxu1 %v4641_v4  ;;  %3533 = vmatprep.subr.bf16.mxu0 %v4643_v7  ;;  %v4700_v63 = vld [vmem:[%s5598_s19 + $0x574] ss:$8 sps:$4 sm:$0xff]   ;;  %v5749_v4 = vld [vmem:[%s6155_s0 + $0x28] sm:$0xff]  ;;  %v4049_v7 = vcombine.high %v5737_v60, %v5742_v61 }
  0xd8   : > { %3242 = vmatpush1.bf16.msra.mxu1 %v4645_v8  ;;  %3534 = vmatpush1.bf16.msra.mxu0 %v4646_v9  ;;  %v5756_v8 = vld [vmem:[%s6155_s0 + $0x68] sm:$0xff]  ;;  %v4695_v9 = vld [vmem:[%s5598_s19 + $0x170] ss:$8 sps:$4 sm:$0xff]  }
  0xd9   : > { %3243 = vmatprep.subr.bf16.mxu1 %v4647_v10  ;;  %3535 = vmatprep.subr.bf16.mxu0 %v4649_v11  ;;  %v4057_v10 = vcombine.high %v5749_v4, %v5756_v8  ;;  %v4698_v11 = vld [vmem:[%s5598_s19 + $0x570] ss:$8 sps:$4 sm:$0xff]  }
  0xdc   : > { %3244 = vmatpush1.bf16.msra.mxu1 %v4651_v12  ;;  %3536 = vmatpush1.bf16.msra.mxu0 %v4652_v13  ;;  %v4703_v12 = vld [vmem:[%s5598_s19 + $0x184] ss:$8 sps:$4 sm:$0xff]  }
  0xdd   : > { %3286 = vmatprep.subr.bf16.mxu1 %v4655_v14  ;;  %3578 = vmatprep.subr.bf16.mxu0 %v4658_v15  ;;  %v4706_v13 = vld [vmem:[%s5598_s19 + $0x584] ss:$8 sps:$4 sm:$0xff]   ;;  %v4701_v14 = vld [vmem:[%s5598_s19 + $0x180] ss:$8 sps:$4 sm:$0xff]  }
  0xde   : > { %v4704_v15 = vld [vmem:[%s5598_s19 + $0x580] ss:$8 sps:$4 sm:$0xff]  }
  0xdf   : > { %3246 = vmatmul.mubr.bf16.vlgmr.msra.gmra.mrb[0].mxu1 %v4046_v3  ;;  %3538 = vmatmul.mubr.bf16.vlgmr.msra.gmra.mrb[0].mxu0 %v4054_v6  ;;  %v4062_v3 = vcombine.low %v1297_v16, %v1305_v17  ;;  %v4673_v6 = vld [vmem:[%s5598_s19 + $0x134] ss:$8 sps:$4 sm:$0xff]  }
  0xe0   : > { %3287 = vmatpush1.bf16.msra.mxu1 %v4653_v20  ;;  %3579 = vmatpush1.bf16.msra.mxu0 %v4656_v21  ;;  %v4709_v16 = vld [vmem:[%s5598_s19 + $0x194] ss:$8 sps:$4 sm:$0xff]   ;;  %v4715_v20 = vld [vmem:[%s5598_s19 + $0x1a4] ss:$8 sps:$4 sm:$0xff]  }
  0xe1   : > { %3288 = vmatprep.subr.bf16.mxu1 %v4661_v22  ;;  %3580 = vmatprep.subr.bf16.mxu0 %v4664_v23  ;;  %v4712_v17 = vld [vmem:[%s5598_s19 + $0x594] ss:$8 sps:$4 sm:$0xff]   ;;  %v4718_v21 = vld [vmem:[%s5598_s19 + $0x5a4] ss:$8 sps:$4 sm:$0xff]   ;;  %v4713_v22 = vld [vmem:[%s5598_s19 + $0x1a0] ss:$8 sps:$4 sm:$0xff]  }
  0xe2   : > { %3255 = vmatprep.mubr.bf16.mxu1 %v4063_v24  ;;  %3547 = vmatprep.mubr.bf16.mxu0 %v4071_v25  ;;  %v4716_v23 = vld [vmem:[%s5598_s19 + $0x5a0] ss:$8 sps:$4 sm:$0xff]   ;;  %v4721_v24 = vld [vmem:[%s5598_s19 + $0x1b4] ss:$8 sps:$4 sm:$0xff]  }
  0xe3   : > { %v4724_v25 = vld [vmem:[%s5598_s19 + $0x5b4] ss:$8 sps:$4 sm:$0xff]  }
  0xe4   : > { %3289 = vmatpush1.bf16.msra.mxu1 %v4659_v26  ;;  %3581 = vmatpush1.bf16.msra.mxu0 %v4662_v27  ;;  %v4719_v26 = vld [vmem:[%s5598_s19 + $0x1b0] ss:$8 sps:$4 sm:$0xff]  }
  0xe5   : > { %3290 = vmatprep.subr.bf16.mxu1 %v4667_v28  ;;  %3582 = vmatprep.subr.bf16.mxu0 %v4670_v29  ;;  %v4722_v27 = vld [vmem:[%s5598_s19 + $0x5b0] ss:$8 sps:$4 sm:$0xff]   ;;  %v4727_v28 = vld [vmem:[%s5598_s19 + $0x1c4] ss:$8 sps:$4 sm:$0xff]  }
  0xe6   : > { %v4730_v29 = vld [vmem:[%s5598_s19 + $0x5c4] ss:$8 sps:$4 sm:$0xff]  }
  0xe7   : > { %3256 = vmatmul.mubr.bf16.gmra.mrb[4].mxu1 %v4062_v3  ;;  %3548 = vmatmul.mubr.bf16.gmra.mrb[4].mxu0 %v4070_v5  ;;  %v4736_v3 = vld [vmem:[%s5598_s19 + $0x5d4] ss:$8 sps:$4 sm:$0xff]   ;;  %v4731_v5 = vld [vmem:[%s5598_s19 + $0x1d0] ss:$8 sps:$4 sm:$0xff]  }
  0xe8   : > { %3291 = vmatpush1.bf16.msra.mxu1 %v4665_v1  ;;  %3583 = vmatpush1.bf16.msra.mxu0 %v4668_v2  ;;  %v4728_v1 = vld [vmem:[%s5598_s19 + $0x5c0] ss:$8 sps:$4 sm:$0xff]   ;;  %v4733_v2 = vld [vmem:[%s5598_s19 + $0x1d4] ss:$8 sps:$4 sm:$0xff]  }
  0xe9   : > { %3292 = vmatprep.subr.bf16.mxu1 %v4673_v6  ;;  %3584 = vmatprep.subr.bf16.mxu0 %v4676_v30  ;;  %v4734_v6 = vld [vmem:[%s5598_s19 + $0x5d0] ss:$8 sps:$4 sm:$0xff]   ;;  %v4739_v30 = vld [vmem:[%s5598_s19 + $0x1e4] ss:$8 sps:$4 sm:$0xff]  }
  0xea   : > { %3265 = vmatprep.mubr.bf16.mxu1 %v4079_v34  ;;  %3557 = vmatprep.mubr.bf16.mxu0 %v4087_v39  ;;  %v4745_v34 = vld [vmem:[%s5598_s19 + $0x1f4] ss:$8 sps:$4 sm:$0xff]   ;;  %v4754_v39 = vld [vmem:[%s5598_s19 + $0x604] ss:$8 sps:$4 sm:$0xff]  }
  0xec   : > { %3293 = vmatpush1.bf16.msra.mxu1 %v4671_v31  ;;  %3585 = vmatpush1.bf16.msra.mxu0 %v4674_v33  ;;  %v4742_v31 = vld [vmem:[%s5598_s19 + $0x5e4] ss:$8 sps:$4 sm:$0xff]   ;;  %v4740_v33 = vld [vmem:[%s5598_s19 + $0x5e0] ss:$8 sps:$4 sm:$0xff]  }
  0xed   : > { %3294 = vmatprep.subr.bf16.mxu1 %v4679_v35  ;;  %3586 = vmatprep.subr.bf16.mxu0 %v4682_v38  ;;  %v4748_v35 = vld [vmem:[%s5598_s19 + $0x5f4] ss:$8 sps:$4 sm:$0xff]   ;;  %v4751_v38 = vld [vmem:[%s5598_s19 + $0x204] ss:$8 sps:$4 sm:$0xff]  }
  0xef   : > { %3266 = vmatmul.mubr.bf16.gmra.mrb[8].mxu1 %v4078_v42  ;;  %3558 = vmatmul.mubr.bf16.gmra.mrb[8].mxu0 %v4086_v43  ;;  %v4048_v42 = vcombine.low %v5737_v60, %v5742_v61  ;;  %v4056_v43 = vcombine.low %v5749_v4, %v5756_v8  ;;  %v1322_v60 = vld [vmem:[%s6155_s0 + $0x148] sm:$0xff]  ;;  %v4769_v4 = vld [vmem:[%s5598_s19 + $0x234] ss:$8 sps:$4 sm:$0xff]  }
  0xf0   : > { %3295 = vmatpush1.bf16.msra.mxu1 %v4677_v40  ;;  %3587 = vmatpush1.bf16.msra.mxu0 %v4680_v41  ;;  %v1298_v40 = vld [vmem:[%s6155_s0 + $0x88] sm:$0xff] }
  0xf1   : > { %3296 = vmatprep.subr.bf16.mxu1 %v4685_v44  ;;  %3588 = vmatprep.subr.bf16.mxu0 %v4688_v45  ;;  %v1306_v41 = vld [vmem:[%s6155_s0 + $0xc8] sm:$0xff] }
  0xf2   : > { %3275 = vmatprep.mubr.bf16.mxu1 %v4095_v49  ;;  %3567 = vmatprep.mubr.bf16.mxu0 %v4103_v54  ;;  %v1302_v44 = vld [vmem:[%s6155_s0 + $0xa8] sm:$0xff]  ;;  %v4760_v49 = vld [vmem:[%s5598_s19 + $0x614] ss:$8 sps:$4 sm:$0xff]   ;;  %v4065_v50 = vcombine.high %v1298_v40, %v1306_v41 }
  0xf3   : > { %v1310_v45 = vld [vmem:[%s6155_s0 + $0xe8] sm:$0xff] }
  0xf4   : > { %3297 = vmatpush1.bf16.msra.mxu1 %v4683_v48  ;;  %3589 = vmatpush1.bf16.msra.mxu0 %v4686_v52  ;;  %v4757_v48 = vld [vmem:[%s5598_s19 + $0x214] ss:$8 sps:$4 sm:$0xff]   ;;  %v4073_v51 = vcombine.high %v1302_v44, %v1310_v45  ;;  %v4755_v52 = vld [vmem:[%s5598_s19 + $0x210] ss:$8 sps:$4 sm:$0xff]   ;;  %v4763_v54 = vld [vmem:[%s5598_s19 + $0x224] ss:$8 sps:$4 sm:$0xff]  }
  0xf5   : > { %3298 = vmatprep.subr.bf16.mxu1 %v4691_v53  ;;  %3590 = vmatprep.subr.bf16.mxu0 %v4694_v55  ;;  %v4758_v53 = vld [vmem:[%s5598_s19 + $0x610] ss:$8 sps:$4 sm:$0xff]   ;;  %v4766_v55 = vld [vmem:[%s5598_s19 + $0x624] ss:$8 sps:$4 sm:$0xff]  }
  0xf6   : > { %v1318_v61 = vld [vmem:[%s6155_s0 + $0x128] sm:$0xff] }
  0xf7   : > { %3276 = vmatmul.mubr.bf16.gmra.mrb[12].mxu1 %v4094_v58  ;;  %3568 = vmatmul.mubr.bf16.gmra.mrb[12].mxu0 %v4102_v59  ;;  %v4064_v58 = vcombine.low %v1298_v40, %v1306_v41  ;;  %v4072_v59 = vcombine.low %v1302_v44, %v1310_v45  ;;  %v4797_v40 = vld [vmem:[%s5598_s19 + $0x280] ss:$8 sps:$4 sm:$0xff]   ;;  %v4803_v44 = vld [vmem:[%s5598_s19 + $0x290] ss:$8 sps:$4 sm:$0xff]  }
  0xf8   : > { %3299 = vmatpush1.bf16.msra.mxu1 %v4689_v56  ;;  %3591 = vmatpush1.bf16.msra.mxu0 %v4692_v57  ;;  %v4761_v56 = vld [vmem:[%s5598_s19 + $0x220] ss:$8 sps:$4 sm:$0xff]   ;;  %v4806_v45 = vld [vmem:[%s5598_s19 + $0x690] ss:$8 sps:$4 sm:$0xff]  }
  0xf9   : > { %3300 = vmatprep.subr.bf16.mxu1 %v4697_v62  ;;  %3592 = vmatprep.subr.bf16.mxu0 %v4700_v63  ;;  %v1314_v57 = vld [vmem:[%s6155_s0 + $0x108] sm:$0xff] }
  0xfa   : > { %3318 = vmatprep.mubr.bf16.mxu1 %v4049_v7  ;;  %3610 = vmatprep.mubr.bf16.mxu0 %v4057_v10  ;;  %v1326_v62 = vld [vmem:[%s6155_s0 + $0x168] sm:$0xff]  ;;  %v4772_v7 = vld [vmem:[%s5598_s19 + $0x634] ss:$8 sps:$4 sm:$0xff]   ;;  %v4081_v8 = vcombine.high %v1314_v57, %v1322_v60  ;;  %v4767_v10 = vld [vmem:[%s5598_s19 + $0x230] ss:$8 sps:$4 sm:$0xff]  }
  0xfb   : > { %v4764_v63 = vld [vmem:[%s5598_s19 + $0x620] ss:$8 sps:$4 sm:$0xff]  }
  0xfc   : > { %3301 = vmatpush1.bf16.msra.mxu1 %v4695_v9  ;;  %3593 = vmatpush1.bf16.msra.mxu0 %v4698_v11  ;;  %v4089_v9 = vcombine.high %v1318_v61, %v1326_v62  ;;  %v4770_v11 = vld [vmem:[%s5598_s19 + $0x630] ss:$8 sps:$4 sm:$0xff]   ;;  %v4800_v41 = vld [vmem:[%s5598_s19 + $0x680] ss:$8 sps:$4 sm:$0xff]  }
  0xfd   : > { %3302 = vmatprep.subr.bf16.mxu1 %v4703_v12  ;;  %3594 = vmatprep.subr.bf16.mxu0 %v4706_v13  ;;  %v4775_v12 = vld [vmem:[%s5598_s19 + $0x244] ss:$8 sps:$4 sm:$0xff]  }
  0xfe   : > { %v4778_v13 = vld [vmem:[%s5598_s19 + $0x644] ss:$8 sps:$4 sm:$0xff]  }
 0x100   : > { %3303 = vmatpush1.bf16.msra.mxu1 %v4701_v14  ;;  %3595 = vmatpush1.bf16.msra.mxu0 %v4704_v15  ;;  %v1330_v14 = vld [vmem:[%s6155_s0 + $0x188] sm:$0xff] }
 0x101   : > { %3304 = vmatprep.subr.bf16.mxu1 %v4709_v16  ;;  %3596 = vmatprep.subr.bf16.mxu0 %v4712_v17  ;;  %v4773_v15 = vld [vmem:[%s5598_s19 + $0x240] ss:$8 sps:$4 sm:$0xff]   ;;  %v4080_v17 = vcombine.low %v1314_v57, %v1322_v60  ;;  %v4827_v60 = vld [vmem:[%s5598_s19 + $0x2d0] ss:$8 sps:$4 sm:$0xff]  }
 0x102   : > { %v1338_v16 = vld [vmem:[%s6155_s0 + $0x1c8] sm:$0xff] }
 0x103   : > { %v4824_v57 = vld [vmem:[%s5598_s19 + $0x6c0] ss:$8 sps:$4 sm:$0xff]  }
 0x104   : > { %3305 = vmatpush1.bf16.msra.mxu1 %v4707_v18  ;;  %3597 = vmatpush1.bf16.msra.mxu0 %v4710_v19  ;;  %v4088_v18 = vcombine.low %v1318_v61, %v1326_v62  ;;  %v1334_v19 = vld [vmem:[%s6155_s0 + $0x1a8] sm:$0xff]  ;;  %v4830_v61 = vld [vmem:[%s5598_s19 + $0x6d0] ss:$8 sps:$4 sm:$0xff]  }
 0x105   : > { %3306 = vmatprep.subr.bf16.mxu1 %v4715_v20  ;;  %3598 = vmatprep.subr.bf16.mxu0 %v4718_v21  ;;  %v1342_v20 = vld [vmem:[%s6155_s0 + $0x1e8] sm:$0xff] }
 0x106   : > { %v4776_v21 = vld [vmem:[%s5598_s19 + $0x640] ss:$8 sps:$4 sm:$0xff]   ;;  %v4835_v62 = vld [vmem:[%s5598_s19 + $0x2e4] ss:$8 sps:$4 sm:$0xff]  }
 0x108   : > { %3307 = vmatpush1.bf16.msra.mxu1 %v4713_v22  ;;  %3599 = vmatpush1.bf16.msra.mxu0 %v4716_v23  ;;  %v4781_v22 = vld [vmem:[%s5598_s19 + $0x254] ss:$8 sps:$4 sm:$0xff]  }
 0x109   : > { %3308 = vmatprep.subr.bf16.mxu1 %v4721_v24  ;;  %3600 = vmatprep.subr.bf16.mxu0 %v4724_v25  ;;  %v4784_v23 = vld [vmem:[%s5598_s19 + $0x654] ss:$8 sps:$4 sm:$0xff]   ;;  %v4097_v24 = vcombine.high %v1330_v14, %v1338_v16  ;;  %v4105_v25 = vcombine.high %v1334_v19, %v1342_v20 }
 0x10c   : > { %3309 = vmatpush1.bf16.msra.mxu1 %v4719_v26  ;;  %3601 = vmatpush1.bf16.msra.mxu0 %v4722_v27  ;;  %v4779_v26 = vld [vmem:[%s5598_s19 + $0x250] ss:$8 sps:$4 sm:$0xff]  }
 0x10d   : > { %3310 = vmatprep.subr.bf16.mxu1 %v4727_v28  ;;  %3602 = vmatprep.subr.bf16.mxu0 %v4730_v29  ;;  %v4782_v27 = vld [vmem:[%s5598_s19 + $0x650] ss:$8 sps:$4 sm:$0xff]   ;;  %v4787_v28 = vld [vmem:[%s5598_s19 + $0x264] ss:$8 sps:$4 sm:$0xff]  }
 0x10e   : > { %v4790_v29 = vld [vmem:[%s5598_s19 + $0x664] ss:$8 sps:$4 sm:$0xff]  }
 0x110   : > { %3311 = vmatpush1.bf16.msra.mxu1 %v4725_v0  ;;  %3603 = vmatpush1.bf16.msra.mxu0 %v4728_v1  ;;  %v5863_v0 = vld [vmem:[%s6155_s0 + $0x10] sm:$0xff]  ;;  %v4785_v1 = vld [vmem:[%s5598_s19 + $0x260] ss:$8 sps:$4 sm:$0xff]  }
 0x111   : > { %3312 = vmatprep.subr.bf16.mxu1 %v4733_v2  ;;  %3604 = vmatprep.subr.bf16.mxu0 %v4736_v3  ;;  %v5869_v2 = vld [vmem:[%s6155_s0 + $0x50] sm:$0xff]  ;;  %v4096_v3 = vcombine.low %v1330_v14, %v1338_v16 }
 0x112   : > { %v1299_v14 = vld [vmem:[%s6155_s0 + $0x90] sm:$0xff] }
 0x114   : > { %3313 = vmatpush1.bf16.msra.mxu1 %v4731_v5  ;;  %3605 = vmatpush1.bf16.msra.mxu0 %v4734_v6  ;;  %v4104_v5 = vcombine.low %v1334_v19, %v1342_v20  ;;  %v5874_v6 = vld [vmem:[%s6155_s0 + $0x30] sm:$0xff]  ;;  %v4845_v20 = vld [vmem:[%s5598_s19 + $0x300] ss:$8 sps:$4 sm:$0xff]  }
 0x115   : > { %3314 = vmatprep.subr.bf16.mxu1 %v4739_v30  ;;  %3606 = vmatprep.subr.bf16.mxu0 %v4742_v31  ;;  %v5879_v30 = vld [vmem:[%s6155_s0 + $0x70] sm:$0xff]  ;;  %v4788_v31 = vld [vmem:[%s5598_s19 + $0x660] ss:$8 sps:$4 sm:$0xff]  }
 0x116   : > { %v4058_v16 = vcombine.low %v5874_v6, %v5879_v30  ;;  %v1311_v19 = vld [vmem:[%s6155_s0 + $0xf0] sm:$0xff] }
 0x118   : > { %3315 = vmatpush1.bf16.msra.mxu1 %v4737_v32  ;;  %3607 = vmatpush1.bf16.msra.mxu0 %v4740_v33  ;;  %v4793_v32 = vld [vmem:[%s5598_s19 + $0x274] ss:$8 sps:$4 sm:$0xff]  }
 0x119   : > { %3316 = vmatprep.subr.bf16.mxu1 %v4745_v34  ;;  %3608 = vmatprep.subr.bf16.mxu0 %v4748_v35  ;;  %v4796_v33 = vld [vmem:[%s5598_s19 + $0x674] ss:$8 sps:$4 sm:$0xff]   ;;  %v4051_v34 = vcombine.high %v5863_v0, %v5869_v2  ;;  %v4059_v35 = vcombine.high %v5874_v6, %v5879_v30  ;;  %v4857_v30 = vld [vmem:[%s5598_s19 + $0x320] ss:$8 sps:$4 sm:$0xff]  }
 0x11a   : > { %v1327_v6 = vld [vmem:[%s6155_s0 + $0x170] sm:$0xff] }
 0x11c   : > { %3317 = vmatpush1.bf16.msra.mxu1 %v4743_v36  ;;  %3609 = vmatpush1.bf16.msra.mxu0 %v4746_v37  ;;  %v4791_v36 = vld [vmem:[%s5598_s19 + $0x270] ss:$8 sps:$4 sm:$0xff]  }
 0x11d   : > { %3359 = vmatprep.subr.bf16.mxu1 %v4751_v38  ;;  %3651 = vmatprep.subr.bf16.mxu0 %v4754_v39  ;;  %v4794_v37 = vld [vmem:[%s5598_s19 + $0x670] ss:$8 sps:$4 sm:$0xff]   ;;  %v4799_v38 = vld [vmem:[%s5598_s19 + $0x284] ss:$8 sps:$4 sm:$0xff]  }
 0x11e   : > { %v4802_v39 = vld [vmem:[%s5598_s19 + $0x684] ss:$8 sps:$4 sm:$0xff]  }
 0x11f   : > { %3319 = vmatmul.mubr.bf16.vlgmr.msra.gmra.mrb[0].mxu1 %v4048_v42  ;;  %3611 = vmatmul.mubr.bf16.vlgmr.msra.gmra.mrb[0].mxu0 %v4056_v43  ;;  %v4805_v42 = vld [vmem:[%s5598_s19 + $0x294] ss:$8 sps:$4 sm:$0xff]  }
 0x120   : > { %3360 = vmatpush1.bf16.msra.mxu1 %v4749_v46  ;;  %3652 = vmatpush1.bf16.msra.mxu0 %v4752_v47  ;;  %v4808_v43 = vld [vmem:[%s5598_s19 + $0x694] ss:$8 sps:$4 sm:$0xff]   ;;  %v4811_v46 = vld [vmem:[%s5598_s19 + $0x2a4] ss:$8 sps:$4 sm:$0xff]  }
 0x121   : > { %3361 = vmatprep.subr.bf16.mxu1 %v4757_v48  ;;  %3653 = vmatprep.subr.bf16.mxu0 %v4760_v49  ;;  %v4814_v47 = vld [vmem:[%s5598_s19 + $0x6a4] ss:$8 sps:$4 sm:$0xff]   ;;  %v4809_v48 = vld [vmem:[%s5598_s19 + $0x2a0] ss:$8 sps:$4 sm:$0xff]  }
 0x122   : > { %3328 = vmatprep.mubr.bf16.mxu1 %v4065_v50  ;;  %3620 = vmatprep.mubr.bf16.mxu0 %v4073_v51  ;;  %v4812_v49 = vld [vmem:[%s5598_s19 + $0x6a0] ss:$8 sps:$4 sm:$0xff]   ;;  %v4817_v50 = vld [vmem:[%s5598_s19 + $0x2b4] ss:$8 sps:$4 sm:$0xff]  }
 0x123   : > { %v4820_v51 = vld [vmem:[%s5598_s19 + $0x6b4] ss:$8 sps:$4 sm:$0xff]  }
 0x124   : > { %3362 = vmatpush1.bf16.msra.mxu1 %v4755_v52  ;;  %3654 = vmatpush1.bf16.msra.mxu0 %v4758_v53  ;;  %v4815_v52 = vld [vmem:[%s5598_s19 + $0x2b0] ss:$8 sps:$4 sm:$0xff]  }
 0x125   : > { %3363 = vmatprep.subr.bf16.mxu1 %v4763_v54  ;;  %3655 = vmatprep.subr.bf16.mxu0 %v4766_v55  ;;  %v4818_v53 = vld [vmem:[%s5598_s19 + $0x6b0] ss:$8 sps:$4 sm:$0xff]   ;;  %v4823_v54 = vld [vmem:[%s5598_s19 + $0x2c4] ss:$8 sps:$4 sm:$0xff]  }
 0x126   : > { %v4826_v55 = vld [vmem:[%s5598_s19 + $0x6c4] ss:$8 sps:$4 sm:$0xff]  }
 0x127   : > { %3329 = vmatmul.mubr.bf16.gmra.mrb[4].mxu1 %v4064_v58  ;;  %3621 = vmatmul.mubr.bf16.gmra.mrb[4].mxu0 %v4072_v59  ;;  %v4829_v58 = vld [vmem:[%s5598_s19 + $0x2d4] ss:$8 sps:$4 sm:$0xff]  }
 0x128   : > { %3364 = vmatpush1.bf16.msra.mxu1 %v4761_v56  ;;  %3656 = vmatpush1.bf16.msra.mxu0 %v4764_v63  ;;  %v4821_v56 = vld [vmem:[%s5598_s19 + $0x2c0] ss:$8 sps:$4 sm:$0xff]   ;;  %v4832_v59 = vld [vmem:[%s5598_s19 + $0x6d4] ss:$8 sps:$4 sm:$0xff]   ;;  %v4838_v63 = vld [vmem:[%s5598_s19 + $0x6e4] ss:$8 sps:$4 sm:$0xff]  }
 0x129   : > { %3365 = vmatprep.subr.bf16.mxu1 %v4769_v4  ;;  %3657 = vmatprep.subr.bf16.mxu0 %v4772_v7  ;;  %v4833_v4 = vld [vmem:[%s5598_s19 + $0x2e0] ss:$8 sps:$4 sm:$0xff]  }
 0x12a   : > { %3338 = vmatprep.mubr.bf16.mxu1 %v4081_v8  ;;  %3630 = vmatprep.mubr.bf16.mxu0 %v4089_v9  ;;  %v4836_v7 = vld [vmem:[%s5598_s19 + $0x6e0] ss:$8 sps:$4 sm:$0xff]   ;;  %v4841_v8 = vld [vmem:[%s5598_s19 + $0x2f4] ss:$8 sps:$4 sm:$0xff]  }
 0x12b   : > { %v4844_v9 = vld [vmem:[%s5598_s19 + $0x6f4] ss:$8 sps:$4 sm:$0xff]  }
 0x12c   : > { %3366 = vmatpush1.bf16.msra.mxu1 %v4767_v10  ;;  %3658 = vmatpush1.bf16.msra.mxu0 %v4770_v11  ;;  %v4839_v10 = vld [vmem:[%s5598_s19 + $0x2f0] ss:$8 sps:$4 sm:$0xff]  }
 0x12d   : > { %3367 = vmatprep.subr.bf16.mxu1 %v4775_v12  ;;  %3659 = vmatprep.subr.bf16.mxu0 %v4778_v13  ;;  %v4842_v11 = vld [vmem:[%s5598_s19 + $0x6f0] ss:$8 sps:$4 sm:$0xff]   ;;  %v4847_v12 = vld [vmem:[%s5598_s19 + $0x304] ss:$8 sps:$4 sm:$0xff]  }
 0x12e   : > { %v4850_v13 = vld [vmem:[%s5598_s19 + $0x704] ss:$8 sps:$4 sm:$0xff]  }
 0x12f   : > { %3339 = vmatmul.mubr.bf16.gmra.mrb[8].mxu1 %v4080_v17  ;;  %3631 = vmatmul.mubr.bf16.gmra.mrb[8].mxu0 %v4088_v18  ;;  %v1307_v17 = vld [vmem:[%s6155_s0 + $0xd0] sm:$0xff] }
 0x130   : > { %3368 = vmatpush1.bf16.msra.mxu1 %v4773_v15  ;;  %3660 = vmatpush1.bf16.msra.mxu0 %v4776_v21  ;;  %v4050_v15 = vcombine.low %v5863_v0, %v5869_v2  ;;  %v1303_v18 = vld [vmem:[%s6155_s0 + $0xb0] sm:$0xff]  ;;  %v4848_v21 = vld [vmem:[%s5598_s19 + $0x700] ss:$8 sps:$4 sm:$0xff]  }
 0x131   : > { %3369 = vmatprep.subr.bf16.mxu1 %v4781_v22  ;;  %3661 = vmatprep.subr.bf16.mxu0 %v4784_v23  ;;  %v4853_v22 = vld [vmem:[%s5598_s19 + $0x314] ss:$8 sps:$4 sm:$0xff]   ;;  %v4074_v2 = vcombine.low %v1303_v18, %v1311_v19 }
 0x132   : > { %3348 = vmatprep.mubr.bf16.mxu1 %v4097_v24  ;;  %3640 = vmatprep.mubr.bf16.mxu0 %v4105_v25  ;;  %v4856_v23 = vld [vmem:[%s5598_s19 + $0x714] ss:$8 sps:$4 sm:$0xff]   ;;  %v4067_v24 = vcombine.high %v1299_v14, %v1307_v17  ;;  %v4075_v25 = vcombine.high %v1303_v18, %v1311_v19  ;;  %v4899_v18 = vld [vmem:[%s5598_s19 + $0x390] ss:$8 sps:$4 sm:$0xff]  }
 0x133   : > { %v1315_v0 = vld [vmem:[%s6155_s0 + $0x110] sm:$0xff] }
 0x134   : > { %3370 = vmatpush1.bf16.msra.mxu1 %v4779_v26  ;;  %3662 = vmatpush1.bf16.msra.mxu0 %v4782_v27  ;;  %v4851_v26 = vld [vmem:[%s5598_s19 + $0x310] ss:$8 sps:$4 sm:$0xff]  }
 0x135   : > { %3371 = vmatprep.subr.bf16.mxu1 %v4787_v28  ;;  %3663 = vmatprep.subr.bf16.mxu0 %v4790_v29  ;;  %v4854_v27 = vld [vmem:[%s5598_s19 + $0x710] ss:$8 sps:$4 sm:$0xff]   ;;  %v4859_v28 = vld [vmem:[%s5598_s19 + $0x324] ss:$8 sps:$4 sm:$0xff]  }
 0x136   : > { %v4862_v29 = vld [vmem:[%s5598_s19 + $0x724] ss:$8 sps:$4 sm:$0xff]   ;;  %v4902_v19 = vld [vmem:[%s5598_s19 + $0x790] ss:$8 sps:$4 sm:$0xff]  }
 0x137   : > { %3349 = vmatmul.mubr.bf16.gmra.mrb[12].mxu1 %v4096_v3  ;;  %3641 = vmatmul.mubr.bf16.gmra.mrb[12].mxu0 %v4104_v5  ;;  %v1323_v3 = vld [vmem:[%s6155_s0 + $0x150] sm:$0xff] }
 0x138   : > { %3372 = vmatpush1.bf16.msra.mxu1 %v4785_v1  ;;  %3664 = vmatpush1.bf16.msra.mxu0 %v4788_v31  ;;  %v4066_v1 = vcombine.low %v1299_v14, %v1307_v17  ;;  %v1319_v5 = vld [vmem:[%s6155_s0 + $0x130] sm:$0xff]  ;;  %v4860_v31 = vld [vmem:[%s5598_s19 + $0x720] ss:$8 sps:$4 sm:$0xff]  }
 0x139   : > { %3373 = vmatprep.subr.bf16.mxu1 %v4793_v32  ;;  %3665 = vmatprep.subr.bf16.mxu0 %v4796_v33  ;;  %v4865_v32 = vld [vmem:[%s5598_s19 + $0x334] ss:$8 sps:$4 sm:$0xff]   ;;  %v4893_v14 = vld [vmem:[%s5598_s19 + $0x380] ss:$8 sps:$4 sm:$0xff]  }
 0x13a   : > { %3391 = vmatprep.mubr.bf16.mxu1 %v4051_v34  ;;  %3683 = vmatprep.mubr.bf16.mxu0 %v4059_v35  ;;  %v4868_v33 = vld [vmem:[%s5598_s19 + $0x734] ss:$8 sps:$4 sm:$0xff]   ;;  %v4083_v34 = vcombine.high %v1315_v0, %v1323_v3  ;;  %v4091_v35 = vcombine.high %v1319_v5, %v1327_v6 }
 0x13b   : > { %v4904_v17 = vld [vmem:[%s5598_s19 + $0x794] ss:$8 sps:$4 sm:$0xff]  }
 0x13c   : > { %3374 = vmatpush1.bf16.msra.mxu1 %v4791_v36  ;;  %3666 = vmatpush1.bf16.msra.mxu0 %v4794_v37  ;;  %v4863_v36 = vld [vmem:[%s5598_s19 + $0x330] ss:$8 sps:$4 sm:$0xff]  }
 0x13d   : > { %3375 = vmatprep.subr.bf16.mxu1 %v4799_v38  ;;  %3667 = vmatprep.subr.bf16.mxu0 %v4802_v39  ;;  %v4866_v37 = vld [vmem:[%s5598_s19 + $0x730] ss:$8 sps:$4 sm:$0xff]   ;;  %v4871_v38 = vld [vmem:[%s5598_s19 + $0x344] ss:$8 sps:$4 sm:$0xff]  }
 0x13e   : > { %v4874_v39 = vld [vmem:[%s5598_s19 + $0x744] ss:$8 sps:$4 sm:$0xff]  }
 0x140   : > { %3376 = vmatpush1.bf16.msra.mxu1 %v4797_v40  ;;  %3668 = vmatpush1.bf16.msra.mxu0 %v4800_v41  ;;  %v1331_v40 = vld [vmem:[%s6155_s0 + $0x190] sm:$0xff]  ;;  %v4082_v41 = vcombine.low %v1315_v0, %v1323_v3  ;;  %v4917_v0 = vld [vmem:[%s5598_s19 + $0x3c0] ss:$8 sps:$4 sm:$0xff]  }
 0x141   : > { %3377 = vmatprep.subr.bf16.mxu1 %v4805_v42  ;;  %3669 = vmatprep.subr.bf16.mxu0 %v4808_v43  ;;  %v4090_v42 = vcombine.low %v1319_v5, %v1327_v6  ;;  %v1339_v43 = vld [vmem:[%s6155_s0 + $0x1d0] sm:$0xff] }
 0x142   : > { %v4928_v3 = vld [vmem:[%s5598_s19 + $0x7d4] ss:$8 sps:$4 sm:$0xff]   ;;  %v4923_v5 = vld [vmem:[%s5598_s19 + $0x3d0] ss:$8 sps:$4 sm:$0xff]  }
 0x143   : > { %v4926_v6 = vld [vmem:[%s5598_s19 + $0x7d0] ss:$8 sps:$4 sm:$0xff]  }
 0x144   : > { %3378 = vmatpush1.bf16.msra.mxu1 %v4803_v44  ;;  %3670 = vmatpush1.bf16.msra.mxu0 %v4806_v45  ;;  %v1335_v44 = vld [vmem:[%s6155_s0 + $0x1b0] sm:$0xff] }
 0x145   : > { %3379 = vmatprep.subr.bf16.mxu1 %v4811_v46  ;;  %3671 = vmatprep.subr.bf16.mxu0 %v4814_v47  ;;  %v1343_v45 = vld [vmem:[%s6155_s0 + $0x1f0] sm:$0xff]  ;;  %v4869_v46 = vld [vmem:[%s5598_s19 + $0x340] ss:$8 sps:$4 sm:$0xff]  }
 0x146   : > { %v4872_v47 = vld [vmem:[%s5598_s19 + $0x740] ss:$8 sps:$4 sm:$0xff]  }
 0x148   : > { %3380 = vmatpush1.bf16.msra.mxu1 %v4809_v48  ;;  %3672 = vmatpush1.bf16.msra.mxu0 %v4812_v49  ;;  %v4877_v48 = vld [vmem:[%s5598_s19 + $0x354] ss:$8 sps:$4 sm:$0xff]  }
 0x149   : > { %3381 = vmatprep.subr.bf16.mxu1 %v4817_v50  ;;  %3673 = vmatprep.subr.bf16.mxu0 %v4820_v51  ;;  %v4880_v49 = vld [vmem:[%s5598_s19 + $0x754] ss:$8 sps:$4 sm:$0xff]   ;;  %v4099_v50 = vcombine.high %v1331_v40, %v1339_v43  ;;  %v4107_v51 = vcombine.high %v1335_v44, %v1343_v45 }
 0x14c   : > { %3382 = vmatpush1.bf16.msra.mxu1 %v4815_v52  ;;  %3674 = vmatpush1.bf16.msra.mxu0 %v4818_v53  ;;  %v4875_v52 = vld [vmem:[%s5598_s19 + $0x350] ss:$8 sps:$4 sm:$0xff]  }
 0x14d   : > { %3383 = vmatprep.subr.bf16.mxu1 %v4823_v54  ;;  %3675 = vmatprep.subr.bf16.mxu0 %v4826_v55  ;;  %v4878_v53 = vld [vmem:[%s5598_s19 + $0x750] ss:$8 sps:$4 sm:$0xff]   ;;  %v4883_v54 = vld [vmem:[%s5598_s19 + $0x364] ss:$8 sps:$4 sm:$0xff]  }
 0x14e   : > { %v4886_v55 = vld [vmem:[%s5598_s19 + $0x764] ss:$8 sps:$4 sm:$0xff]  }
 0x150   : > { %3384 = vmatpush1.bf16.msra.mxu1 %v4821_v56  ;;  %3676 = vmatpush1.bf16.msra.mxu0 %v4824_v57  ;;  %v5991_v56 = vld [vmem:[%s6155_s0 + $0x18] sm:$0xff]  ;;  %v4098_v57 = vcombine.low %v1331_v40, %v1339_v43 }
 0x151   : > { %3385 = vmatprep.subr.bf16.mxu1 %v4829_v58  ;;  %3677 = vmatprep.subr.bf16.mxu0 %v4832_v59  ;;  %v4106_v58 = vcombine.low %v1335_v44, %v1343_v45  ;;  %v5996_v59 = vld [vmem:[%s6155_s0 + $0x58] sm:$0xff] }
 0x152   : > { %v1304_v40 = vld [vmem:[%s6155_s0 + $0xb8] sm:$0xff] }
 0x154   : > { %3386 = vmatpush1.bf16.msra.mxu1 %v4827_v60  ;;  %3678 = vmatpush1.bf16.msra.mxu0 %v4830_v61  ;;  %v6001_v60 = vld [vmem:[%s6155_s0 + $0x38] sm:$0xff] }
 0x155   : > { %3387 = vmatprep.subr.bf16.mxu1 %v4835_v62  ;;  %3679 = vmatprep.subr.bf16.mxu0 %v4838_v63  ;;  %v6006_v61 = vld [vmem:[%s6155_s0 + $0x78] sm:$0xff]  ;;  %v4881_v62 = vld [vmem:[%s5598_s19 + $0x360] ss:$8 sps:$4 sm:$0xff]  }
 0x156   : > { %v4884_v63 = vld [vmem:[%s5598_s19 + $0x760] ss:$8 sps:$4 sm:$0xff]   ;;  %v4060_v43 = vcombine.low %v6001_v60, %v6006_v61 }
 0x158   : > { %3388 = vmatpush1.bf16.msra.mxu1 %v4833_v4  ;;  %3680 = vmatpush1.bf16.msra.mxu0 %v4836_v7  ;;  %v4889_v4 = vld [vmem:[%s5598_s19 + $0x374] ss:$8 sps:$4 sm:$0xff]  }
 0x159   : > { %3389 = vmatprep.subr.bf16.mxu1 %v4841_v8  ;;  %3681 = vmatprep.subr.bf16.mxu0 %v4844_v9  ;;  %v4892_v7 = vld [vmem:[%s5598_s19 + $0x774] ss:$8 sps:$4 sm:$0xff]   ;;  %v4053_v8 = vcombine.high %v5991_v56, %v5996_v59  ;;  %v4061_v9 = vcombine.high %v6001_v60, %v6006_v61 }
 0x15c   : > { %3390 = vmatpush1.bf16.msra.mxu1 %v4839_v10  ;;  %3682 = vmatpush1.bf16.msra.mxu0 %v4842_v11  ;;  %v4887_v10 = vld [vmem:[%s5598_s19 + $0x370] ss:$8 sps:$4 sm:$0xff]  }
 0x15d   : > { %3432 = vmatprep.subr.bf16.mxu1 %v4847_v12  ;;  %3724 = vmatprep.subr.bf16.mxu0 %v4850_v13  ;;  %v4890_v11 = vld [vmem:[%s5598_s19 + $0x770] ss:$8 sps:$4 sm:$0xff]   ;;  %v4895_v12 = vld [vmem:[%s5598_s19 + $0x384] ss:$8 sps:$4 sm:$0xff]  }
 0x15e   : > { %v4898_v13 = vld [vmem:[%s5598_s19 + $0x784] ss:$8 sps:$4 sm:$0xff]  }
 0x15f   : > { %3392 = vmatmul.mubr.bf16.vlgmr.msra.gmra.mrb[0].mxu1 %v4050_v15  ;;  %3684 = vmatmul.mubr.bf16.vlgmr.msra.gmra.mrb[0].mxu0 %v4058_v16  ;;  %v4896_v15 = vld [vmem:[%s5598_s19 + $0x780] ss:$8 sps:$4 sm:$0xff]   ;;  %v4901_v16 = vld [vmem:[%s5598_s19 + $0x394] ss:$8 sps:$4 sm:$0xff]  }
 0x160   : > { %3433 = vmatpush1.bf16.msra.mxu1 %v4845_v20  ;;  %3725 = vmatpush1.bf16.msra.mxu0 %v4848_v21  ;;  %v4907_v20 = vld [vmem:[%s5598_s19 + $0x3a4] ss:$8 sps:$4 sm:$0xff]  }
 0x161   : > { %3434 = vmatprep.subr.bf16.mxu1 %v4853_v22  ;;  %3726 = vmatprep.subr.bf16.mxu0 %v4856_v23  ;;  %v4910_v21 = vld [vmem:[%s5598_s19 + $0x7a4] ss:$8 sps:$4 sm:$0xff]   ;;  %v4905_v22 = vld [vmem:[%s5598_s19 + $0x3a0] ss:$8 sps:$4 sm:$0xff]  }
 0x162   : > { %3401 = vmatprep.mubr.bf16.mxu1 %v4067_v24  ;;  %3693 = vmatprep.mubr.bf16.mxu0 %v4075_v25  ;;  %v4908_v23 = vld [vmem:[%s5598_s19 + $0x7a0] ss:$8 sps:$4 sm:$0xff]   ;;  %v4913_v24 = vld [vmem:[%s5598_s19 + $0x3b4] ss:$8 sps:$4 sm:$0xff]  }
 0x163   : > { %v4916_v25 = vld [vmem:[%s5598_s19 + $0x7b4] ss:$8 sps:$4 sm:$0xff]  }
 0x164   : > { %3435 = vmatpush1.bf16.msra.mxu1 %v4851_v26  ;;  %3727 = vmatpush1.bf16.msra.mxu0 %v4854_v27  ;;  %v4911_v26 = vld [vmem:[%s5598_s19 + $0x3b0] ss:$8 sps:$4 sm:$0xff]  }
 0x165   : > { %3436 = vmatprep.subr.bf16.mxu1 %v4859_v28  ;;  %3728 = vmatprep.subr.bf16.mxu0 %v4862_v29  ;;  %v4914_v27 = vld [vmem:[%s5598_s19 + $0x7b0] ss:$8 sps:$4 sm:$0xff]   ;;  %v4919_v28 = vld [vmem:[%s5598_s19 + $0x3c4] ss:$8 sps:$4 sm:$0xff]  }
 0x166   : > { %v4922_v29 = vld [vmem:[%s5598_s19 + $0x7c4] ss:$8 sps:$4 sm:$0xff]  }
 0x167   : > { %3402 = vmatmul.mubr.bf16.gmra.mrb[4].mxu1 %v4066_v1  ;;  %3694 = vmatmul.mubr.bf16.gmra.mrb[4].mxu0 %v4074_v2  ;;  %v4920_v1 = vld [vmem:[%s5598_s19 + $0x7c0] ss:$8 sps:$4 sm:$0xff]   ;;  %v4925_v2 = vld [vmem:[%s5598_s19 + $0x3d4] ss:$8 sps:$4 sm:$0xff]  }
 0x168   : > { %3437 = vmatpush1.bf16.msra.mxu1 %v4857_v30  ;;  %3729 = vmatpush1.bf16.msra.mxu0 %v4860_v31  ;;  %v4931_v30 = vld [vmem:[%s5598_s19 + $0x3e4] ss:$8 sps:$4 sm:$0xff]  }
 0x169   : > { %3438 = vmatprep.subr.bf16.mxu1 %v4865_v32  ;;  %3730 = vmatprep.subr.bf16.mxu0 %v4868_v33  ;;  %v4934_v31 = vld [vmem:[%s5598_s19 + $0x7e4] ss:$8 sps:$4 sm:$0xff]   ;;  %v4929_v32 = vld [vmem:[%s5598_s19 + $0x3e0] ss:$8 sps:$4 sm:$0xff]  }
 0x16a   : > { %3411 = vmatprep.mubr.bf16.mxu1 %v4083_v34  ;;  %3703 = vmatprep.mubr.bf16.mxu0 %v4091_v35  ;;  %v4932_v33 = vld [vmem:[%s5598_s19 + $0x7e0] ss:$8 sps:$4 sm:$0xff]   ;;  %v4937_v34 = vld [vmem:[%s5598_s19 + $0x3f4] ss:$8 sps:$4 sm:$0xff]  }
 0x16b   : > { %v4940_v35 = vld [vmem:[%s5598_s19 + $0x7f4] ss:$8 sps:$4 sm:$0xff]  }
 0x16c   : > { %3439 = vmatpush1.bf16.msra.mxu1 %v4863_v36  ;;  %3731 = vmatpush1.bf16.msra.mxu0 %v4866_v37  ;;  %v4935_v36 = vld [vmem:[%s5598_s19 + $0x3f0] ss:$8 sps:$4 sm:$0xff]  }
 0x16d   : > { %3440 = vmatprep.subr.bf16.mxu1 %v4871_v38  ;;  %3732 = vmatprep.subr.bf16.mxu0 %v4874_v39  ;;  %v4938_v37 = vld [vmem:[%s5598_s19 + $0x7f0] ss:$8 sps:$4 sm:$0xff]  }
 0x16e   : > { %v1300_v38 = vld [vmem:[%s6155_s0 + $0x98] sm:$0xff] }
 0x16f   : > { %3412 = vmatmul.mubr.bf16.gmra.mrb[8].mxu1 %v4082_v41  ;;  %3704 = vmatmul.mubr.bf16.gmra.mrb[8].mxu0 %v4090_v42  ;;  %v1308_v39 = vld [vmem:[%s6155_s0 + $0xd8] sm:$0xff]  ;;  %v4052_v42 = vcombine.low %v5991_v56, %v5996_v59 }
 0x170   : > { %3441 = vmatpush1.bf16.msra.mxu1 %v4869_v46  ;;  %3733 = vmatpush1.bf16.msra.mxu0 %v4872_v47  ;;  %v1312_v41 = vld [vmem:[%s6155_s0 + $0xf8] sm:$0xff]  ;;  %v4069_v44 = vcombine.high %v1300_v38, %v1308_v39 }
 0x171   : > { %3442 = vmatprep.subr.bf16.mxu1 %v4877_v48  ;;  %3734 = vmatprep.subr.bf16.mxu0 %v4880_v49  ;;  %v4077_v45 = vcombine.high %v1304_v40, %v1312_v41  ;;  %v1316_v46 = vld [vmem:[%s6155_s0 + $0x118] sm:$0xff] }
 0x172   : > { %3421 = vmatprep.mubr.bf16.mxu1 %v4099_v50  ;;  %3713 = vmatprep.mubr.bf16.mxu0 %v4107_v51  ;;  %v1324_v47 = vld [vmem:[%s6155_s0 + $0x158] sm:$0xff]  ;;  %v4068_v50 = vcombine.low %v1300_v38, %v1308_v39  ;;  %v4076_v51 = vcombine.low %v1304_v40, %v1312_v41 }
 0x173   : > { %v1320_v48 = vld [vmem:[%s6155_s0 + $0x138] sm:$0xff] }
 0x174   : > { %3443 = vmatpush1.bf16.msra.mxu1 %v4875_v52  ;;  %3735 = vmatpush1.bf16.msra.mxu0 %v4878_v53  ;;  %v1328_v49 = vld [vmem:[%s6155_s0 + $0x178] sm:$0xff]  ;;  %v4085_v52 = vcombine.high %v1316_v46, %v1324_v47 }
 0x175   : > { %3444 = vmatprep.subr.bf16.mxu1 %v4883_v54  ;;  %3736 = vmatprep.subr.bf16.mxu0 %v4886_v55  ;;  %v4093_v53 = vcombine.high %v1320_v48, %v1328_v49  ;;  %v1332_v54 = vld [vmem:[%s6155_s0 + $0x198] sm:$0xff]  ;;  %v4092_v59 = vcombine.low %v1320_v48, %v1328_v49 }
 0x176   : > { %v1340_v55 = vld [vmem:[%s6155_s0 + $0x1d8] sm:$0xff] }
 0x177   : > { %3422 = vmatmul.mubr.bf16.gmra.mrb[12].mxu1 %v4098_v57  ;;  %3714 = vmatmul.mubr.bf16.gmra.mrb[12].mxu0 %v4106_v58  ;;  %v1336_v56 = vld [vmem:[%s6155_s0 + $0x1b8] sm:$0xff]  ;;  %v4084_v58 = vcombine.low %v1316_v46, %v1324_v47  ;;  %v4101_v60 = vcombine.high %v1332_v54, %v1340_v55 }
 0x178   : > { %3445 = vmatpush1.bf16.msra.mxu1 %v4881_v62  ;;  %3737 = vmatpush1.bf16.msra.mxu0 %v4884_v63  ;;  %v1344_v57 = vld [vmem:[%s6155_s0 + $0x1f8] sm:$0xff]  ;;  %v4100_v62 = vcombine.low %v1332_v54, %v1340_v55 }
 0x179   : > { %3446 = vmatprep.subr.bf16.mxu1 %v4889_v4  ;;  %3738 = vmatprep.subr.bf16.mxu0 %v4892_v7  ;;  %v4109_v61 = vcombine.high %v1336_v56, %v1344_v57  ;;  %v4108_v63 = vcombine.low %v1336_v56, %v1344_v57  ;;  %v1603_v4 = vlaneseq }
 0x17a   : > { %3464 = vmatprep.mubr.bf16.mxu1 %v4053_v8  ;;  %3756 = vmatprep.mubr.bf16.mxu0 %v4061_v9  ;;  %v1601_v9 = vld [vmem:[%s1277_s24] sm:$0x3] }
 0x17b   : > { %v1604_v7 = vshrl.u32 %v1603_v4, 7 }
 0x17c   : > { %3447 = vmatpush1.bf16.msra.mxu1 %v4887_v10  ;;  %3739 = vmatpush1.bf16.msra.mxu0 %v4890_v11 }
 0x17d   : > { %3448 = vmatprep.subr.bf16.mxu1 %v4895_v12  ;;  %3740 = vmatprep.subr.bf16.mxu0 %v4898_v13  ;;  %v1605_v8 = vsub.s32 0, %v1604_v7  ;;  %v1609_v10 = vsub.s32 1, %v1604_v7 }
 0x17f   : > { %v6094_v11 = vrot.slane %v1601_v9, %v1605_v8  ;;  %v6096_v12 = vrot.slane %v1601_v9, %v1609_v10 }
 0x180   : > { %3449 = vmatpush1.bf16.msra.mxu1 %v4893_v14  ;;  %3741 = vmatpush1.bf16.msra.mxu0 %v4896_v15 }
 0x181   : > { %3450 = vmatprep.subr.bf16.mxu1 %v4901_v16  ;;  %3742 = vmatprep.subr.bf16.mxu0 %v4904_v17 }
 0x184   : > { %3451 = vmatpush1.bf16.msra.mxu1 %v4899_v18  ;;  %3743 = vmatpush1.bf16.msra.mxu0 %v4902_v19 }
 0x185   : > { %3452 = vmatprep.subr.bf16.mxu1 %v4907_v20  ;;  %3744 = vmatprep.subr.bf16.mxu0 %v4910_v21 }
 0x188   : > { %3453 = vmatpush1.bf16.msra.mxu1 %v4905_v22  ;;  %3745 = vmatpush1.bf16.msra.mxu0 %v4908_v23 }
 0x189   : > { %3454 = vmatprep.subr.bf16.mxu1 %v4913_v24  ;;  %3746 = vmatprep.subr.bf16.mxu0 %v4916_v25 }
 0x18c   : > { %3455 = vmatpush1.bf16.msra.mxu1 %v4911_v26  ;;  %3747 = vmatpush1.bf16.msra.mxu0 %v4914_v27 }
 0x18d   : > { %3456 = vmatprep.subr.bf16.mxu1 %v4919_v28  ;;  %3748 = vmatprep.subr.bf16.mxu0 %v4922_v29 }
 0x190   : > { %3457 = vmatpush1.bf16.msra.mxu1 %v4917_v0  ;;  %3749 = vmatpush1.bf16.msra.mxu0 %v4920_v1 }
 0x191   : > { %3458 = vmatprep.subr.bf16.mxu1 %v4925_v2  ;;  %3750 = vmatprep.subr.bf16.mxu0 %v4928_v3 }
 0x194   : > { %3459 = vmatpush1.bf16.msra.mxu1 %v4923_v5  ;;  %3751 = vmatpush1.bf16.msra.mxu0 %v4926_v6 }
 0x195   : > { %3460 = vmatprep.subr.bf16.mxu1 %v4931_v30  ;;  %3752 = vmatprep.subr.bf16.mxu0 %v4934_v31 }
 0x198   : > { %3461 = vmatpush1.bf16.msra.mxu1 %v4929_v32  ;;  %3753 = vmatpush1.bf16.msra.mxu0 %v4932_v33 }
 0x199   : > { %3462 = vmatprep.subr.bf16.mxu1 %v4937_v34  ;;  %3754 = vmatprep.subr.bf16.mxu0 %v4940_v35 }
 0x19c   : > { %3463 = vmatpush1.bf16.msra.mxu1 %v4935_v36  ;;  %3755 = vmatpush1.bf16.msra.mxu0 %v4938_v37 }
 0x19f   : > { %3465 = vmatmul.mubr.bf16.vlgmr.msra.gmra.mrb[0].mxu1 %v4052_v42  ;;  %3757 = vmatmul.mubr.bf16.vlgmr.msra.gmra.mrb[0].mxu0 %v4060_v43 }
 0x1a0   : > { %3474 = vmatprep.mubr.bf16.mxu1 %v4069_v44  ;;  %3766 = vmatprep.mubr.bf16.mxu0 %v4077_v45 }
 0x1a7   : > { %3475 = vmatmul.mubr.bf16.gmra.mrb[4].mxu1 %v4068_v50  ;;  %3767 = vmatmul.mubr.bf16.gmra.mrb[4].mxu0 %v4076_v51 }
 0x1a8   : > { %3484 = vmatprep.mubr.bf16.mxu1 %v4085_v52  ;;  %3776 = vmatprep.mubr.bf16.mxu0 %v4093_v53 }
 0x1af   : > { %3485 = vmatmul.mubr.bf16.gmra.mrb[8].mxu1 %v4084_v58  ;;  %3777 = vmatmul.mubr.bf16.gmra.mrb[8].mxu0 %v4092_v59 }
 0x1b0   : > { %3494 = vmatprep.mubr.bf16.mxu1 %v4101_v60  ;;  %3786 = vmatprep.mubr.bf16.mxu0 %v4109_v61 }
 0x1b7   : > { %3495 = vmatmul.mubr.bf16.gmra.mrb[12].mxu1 %v4100_v62  ;;  %3787 = vmatmul.mubr.bf16.gmra.mrb[12].mxu0 %v4108_v63 }
 0x272   : > { %v3466_v13 = vpop.f32.mrb[0].mxu1  ;;  %v3758_v14 = vpop.f32.mrb[0].mxu0 }
 0x273   : > { %v4389_v15 = vadd.f32 %v3466_v13, %v6094_v11  ;;  %v3468_v16 = vpop.f32.mrb[1].mxu1  ;;  %v3760_v17 = vpop.f32.mrb[1].mxu0 }
 0x274   : > { %v4391_v18 = vadd.f32 %v3468_v16, %v6096_v12  ;;  %v3470_v19 = vpop.f32.mrb[2].mxu1  ;;  %v3762_v20 = vpop.f32.mrb[2].mxu0 }
 0x275   : > { %v4390_v21 = vadd.f32 %v4389_v15, %v3758_v14  ;;  %v4393_v22 = vadd.f32 %v3470_v19, %v6094_v11  ;;  %v3472_v23 = vpop.f32.mrb[3].mxu1  ;;  %v3764_v24 = vpop.f32.mrb[3].mxu0 }
 0x276   : > { %v4392_v25 = vadd.f32 %v4391_v18, %v3760_v17  ;;  %v4395_v26 = vadd.f32 %v3472_v23, %v6096_v12 }
 0x277   : > { %v3797_v27 = vmax.f32 %v4390_v21, 0.0  ;;  %v4394_v28 = vadd.f32 %v4393_v22, %v3762_v20 }
 0x278   : > { %v3798_v29 = vmax.f32 %v4392_v25, 0.0  ;;  %v4396_v0 = vadd.f32 %v4395_v26, %v3764_v24 }
 0x279   : > { %v3799_v1 = vmax.f32 %v4394_v28, 0.0 }
 0x27a   : > { %v4380_v2 = vpack.c.bf16 %v3798_v29, %v3797_v27  ;;  %v3800_v3 = vmax.f32 %v4396_v0, 0.0  ;;  %v3476_v5 = vpop.f32.mrb[4].mxu1  ;;  %v3768_v6 = vpop.f32.mrb[4].mxu0 }
 0x27b   : > { %v4397_v30 = vadd.f32 %v3476_v5, %v6094_v11  ;;  %v3478_v31 = vpop.f32.mrb[5].mxu1  ;;  %v3770_v32 = vpop.f32.mrb[5].mxu0 }
 0x27c   : > { %3861 = vst [vmem:[%s6105_s26] sm:$0xff] %v4380_v2  ;;  %v4381_v33 = vpack.c.bf16 %v3800_v3, %v3799_v1  ;;  %v4399_v34 = vadd.f32 %v3478_v31, %v6096_v12  ;;  %v3480_v35 = vpop.f32.mrb[6].mxu1  ;;  %v3772_v36 = vpop.f32.mrb[6].mxu0 }
 0x27d   : > { %v4398_v37 = vadd.f32 %v4397_v30, %v3768_v6  ;;  %v4401_v38 = vadd.f32 %v3480_v35, %v6094_v11  ;;  %v3482_v39 = vpop.f32.mrb[7].mxu1  ;;  %v3774_v40 = vpop.f32.mrb[7].mxu0 }
 0x27e   : > { %3862 = vst [vmem:[%s6105_s26 + $0x8] sm:$0xff] %v4381_v33  ;;  %v4400_v41 = vadd.f32 %v4399_v34, %v3770_v32  ;;  %v4403_v42 = vadd.f32 %v3482_v39, %v6096_v12 }
 0x27f   : > { %v3801_v43 = vmax.f32 %v4398_v37, 0.0  ;;  %v4402_v44 = vadd.f32 %v4401_v38, %v3772_v36 }
 0x280   : > { %v3802_v45 = vmax.f32 %v4400_v41, 0.0  ;;  %v4404_v46 = vadd.f32 %v4403_v42, %v3774_v40 }
 0x281   : > { %v3803_v47 = vmax.f32 %v4402_v44, 0.0 }
 0x282   : > { %v4382_v48 = vpack.c.bf16 %v3802_v45, %v3801_v43  ;;  %v3804_v49 = vmax.f32 %v4404_v46, 0.0  ;;  %v3486_v50 = vpop.f32.mrb[8].mxu1  ;;  %v3778_v51 = vpop.f32.mrb[8].mxu0 }
 0x283   : > { %v4405_v52 = vadd.f32 %v3486_v50, %v6094_v11  ;;  %v3488_v53 = vpop.f32.mrb[9].mxu1  ;;  %v3780_v54 = vpop.f32.mrb[9].mxu0 }
 0x284   : > { %3863 = vst [vmem:[%s6105_s26 + $0x10] sm:$0xff] %v4382_v48  ;;  %v4383_v55 = vpack.c.bf16 %v3804_v49, %v3803_v47  ;;  %v4407_v56 = vadd.f32 %v3488_v53, %v6096_v12  ;;  %v3490_v57 = vpop.f32.mrb[10].mxu1  ;;  %v3782_v58 = vpop.f32.mrb[10].mxu0 }
 0x285   : > { %v4406_v59 = vadd.f32 %v4405_v52, %v3778_v51  ;;  %v4409_v60 = vadd.f32 %v3490_v57, %v6094_v11  ;;  %v3492_v61 = vpop.f32.mrb[11].mxu1  ;;  %v3784_v62 = vpop.f32.mrb[11].mxu0 }
 0x286   : > { %3864 = vst [vmem:[%s6105_s26 + $0x18] sm:$0xff] %v4383_v55  ;;  %v4408_v63 = vadd.f32 %v4407_v56, %v3780_v54  ;;  %v4411_v4 = vadd.f32 %v3492_v61, %v6096_v12 }
 0x287   : > { %v3805_v7 = vmax.f32 %v4406_v59, 0.0  ;;  %v4410_v8 = vadd.f32 %v4409_v60, %v3782_v58 }
 0x288   : > { %v3806_v9 = vmax.f32 %v4408_v63, 0.0  ;;  %v4412_v10 = vadd.f32 %v4411_v4, %v3784_v62 }
 0x289   : > { %v3807_v13 = vmax.f32 %v4410_v8, 0.0 }
 0x28a   : > { %v4384_v14 = vpack.c.bf16 %v3806_v9, %v3805_v7  ;;  %v3808_v15 = vmax.f32 %v4412_v10, 0.0  ;;  %v3496_v16 = vpop.f32.mrb[12].mxu1  ;;  %v3788_v17 = vpop.f32.mrb[12].mxu0 }
 0x28b   : > { %v4413_v18 = vadd.f32 %v3496_v16, %v6094_v11  ;;  %v3498_v19 = vpop.f32.mrb[13].mxu1  ;;  %v3790_v20 = vpop.f32.mrb[13].mxu0  ;;  %v3927_v33 = vld [vmem:[%s6105_s26 + $0x10] sm:$0xff] (%p5036_p6) }
 0x28c   : > { %3865 = vst [vmem:[%s6105_s26 + $0x20] sm:$0xff] %v4384_v14  ;;  %v4385_v21 = vpack.c.bf16 %v3808_v15, %v3807_v13  ;;  %v4415_v22 = vadd.f32 %v3498_v19, %v6096_v12  ;;  %v3500_v23 = vpop.f32.mrb[14].mxu1  ;;  %v3792_v24 = vpop.f32.mrb[14].mxu0  ;;  %3928 = vst [vmem:[%s3881_s28 + $0x20] sm:$0xff] (%p5036_p6), %v3927_v33 }
 0x28d   : > { %v4414_v25 = vadd.f32 %v4413_v18, %v3788_v17  ;;  %v4417_v26 = vadd.f32 %v3500_v23, %v6094_v11  ;;  %v3502_v27 = vpop.f32.mrb[15].mxu1  ;;  %v3794_v28 = vpop.f32.mrb[15].mxu0  ;;  %v3923_v11 = vld [vmem:[%s6105_s26] sm:$0xff] (%p5036_p6)  ;;  %v3929_v34 = vld [vmem:[%s6105_s26 + $0x18] sm:$0xff] (%p5036_p6) }
 0x28e   : > { %3866 = vst [vmem:[%s6105_s26 + $0x28] sm:$0xff] %v4385_v21  ;;  %v4416_v29 = vadd.f32 %v4415_v22, %v3790_v20  ;;  %v4419_v0 = vadd.f32 %v3502_v27, %v6096_v12  ;;  %v3925_v12 = vld [vmem:[%s6105_s26 + $0x8] sm:$0xff] (%p5036_p6)  ;;  %3924 = vst [vmem:[%s3881_s28] sm:$0xff] (%p5036_p6), %v3923_v11 }
 0x28f   : > { %v3809_v1 = vmax.f32 %v4414_v25, 0.0  ;;  %v4418_v2 = vadd.f32 %v4417_v26, %v3792_v24  ;;  %3926 = vst [vmem:[%s3881_s28 + $0x10] sm:$0xff] (%p5036_p6), %v3925_v12  ;;  %3930 = vst [vmem:[%s3881_s28 + $0x30] sm:$0xff] (%p5036_p6), %v3929_v34 }
 0x290   : > { %v3810_v3 = vmax.f32 %v4416_v29, 0.0  ;;  %v4420_v5 = vadd.f32 %v4419_v0, %v3794_v28  ;;  %3875 = sbr.rel (!%p5036_p6) target bundleno = 671 (0x29f), region = 74 }
 0x291   : > { %v3811_v6 = vmax.f32 %v4418_v2, 0.0 }
 0x292   : > { %v4386_v30 = vpack.c.bf16 %v3810_v3, %v3809_v1  ;;  %v3812_v31 = vmax.f32 %v4420_v5, 0.0 }
 0x293   : > { %v3931_v35 = vld [vmem:[%s6105_s26 + $0x20] sm:$0xff] (%p5036_p6) }
 0x294   : > { %3867 = vst [vmem:[%s6105_s26 + $0x30] sm:$0xff] %v4386_v30  ;;  %v4387_v32 = vpack.c.bf16 %v3812_v31, %v3811_v6  ;;  %3932 = vst [vmem:[%s3881_s28 + $0x40] sm:$0xff] (%p5036_p6), %v3931_v35 }
 0x295   : > { %v3933_v36 = vld [vmem:[%s6105_s26 + $0x28] sm:$0xff] (%p5036_p6) }
 0x296   : > { %3868 = vst [vmem:[%s6105_s26 + $0x38] sm:$0xff] %v4387_v32  ;;  %3934 = vst [vmem:[%s3881_s28 + $0x50] sm:$0xff] (%p5036_p6), %v3933_v36 }
 0x29b   : > { %v3935_v37 = vld [vmem:[%s6105_s26 + $0x30] sm:$0xff] }
 0x29c   : > { %3936 = vst [vmem:[%s3881_s28 + $0x60] sm:$0xff] %v3935_v37 }
 0x29d   : > { %v3937_v38 = vld [vmem:[%s6105_s26 + $0x38] sm:$0xff] }
 0x29e   : > { %3938 = vst [vmem:[%s3881_s28 + $0x70] sm:$0xff] %v3937_v38 }
 0x29f PF: > { %s13_s16 = sadd.s32 1, %s4979_s16   ;;  %s6160_s12 = smov %s4967_s13 }
 0x2a0   : > { %p10_p12 = scmp.ge.s32.totalorder %s13_s16, 4   ;;  %s6161_s13 = smov %s5041_s22 }
 0x2a1   : > { %s6162_s14 = smov %s4975_s15  ;;  %s6163_s15 = smov %s6165_s17 }
 0x2a2   :  { %12 = sbr.rel (!%p10_p12) target bundleno = 3 (0x3), region = 149 }

// kernel: decoder_forward.10
= control target key start
LH: loop header
LB: loop body
LE: loop exit
PB: predicated region body
PF: predicated region fallthrough
CT: control target
= control target key end

     0   :  { %s4013_s1 = inlined_call_operand.vmem [shape: bf16[1024,256], index: 1, kind: input, shape index: {}]   ;;  %s4014_s0 = inlined_call_operand.vmem [shape: bf16[224,1024], index: 0, kind: input, shape index: {}]   ;;  %s4015_s2 = inlined_call_operand.vmem [shape: f32[1,256], index: 2, kind: input, shape index: {}]   ;;  %s4016_s3 = inlined_call_operand.vmem [shape: bf16[224,256], index: 3, kind: output, shape index: {}]  }
   0x1   :  { %v2934_v0 = vld [vmem:[%s4013_s1 + $0x4] ss:$8 sps:$4 sm:$0xff]   ;;  %v2938_v2 = vld [vmem:[%s4013_s1] ss:$8 sps:$4 sm:$0xff]   ;;  %v2940_v4 = vld [vmem:[%s4013_s1 + $0x14] ss:$8 sps:$4 sm:$0xff]  }
   0x2   :  { %v2936_v1 = vld [vmem:[%s4013_s1 + $0x204] ss:$8 sps:$4 sm:$0xff]   ;;  %1466 = vmatprep.subr.bf16.mxu1 %v2934_v0  ;;  %v2939_v3 = vld [vmem:[%s4013_s1 + $0x200] ss:$8 sps:$4 sm:$0xff]   ;;  %v2942_v5 = vld [vmem:[%s4013_s1 + $0x214] ss:$8 sps:$4 sm:$0xff]  }
   0x3   :  { %1812 = vmatprep.subr.bf16.mxu0 %v2936_v1  ;;  %1467 = vmatpush1.bf16.msra.mxu1 %v2938_v2  ;;  %v2944_v6 = vld [vmem:[%s4013_s1 + $0x10] ss:$8 sps:$4 sm:$0xff]   ;;  %v2946_v8 = vld [vmem:[%s4013_s1 + $0x24] ss:$8 sps:$4 sm:$0xff]   ;;  %v2950_v10 = vld [vmem:[%s4013_s1 + $0x20] ss:$8 sps:$4 sm:$0xff]  }
   0x4   :  { %1813 = vmatpush1.bf16.msra.mxu0 %v2939_v3  ;;  %1468 = vmatprep.subr.bf16.mxu1 %v2940_v4  ;;  %v2945_v7 = vld [vmem:[%s4013_s1 + $0x210] ss:$8 sps:$4 sm:$0xff]   ;;  %v2948_v9 = vld [vmem:[%s4013_s1 + $0x224] ss:$8 sps:$4 sm:$0xff]   ;;  %v2951_v11 = vld [vmem:[%s4013_s1 + $0x220] ss:$8 sps:$4 sm:$0xff]  }
   0x5   :  { %1814 = vmatprep.subr.bf16.mxu0 %v2942_v5  ;;  %v2952_v12 = vld [vmem:[%s4013_s1 + $0x34] ss:$8 sps:$4 sm:$0xff]   ;;  %v2956_v14 = vld [vmem:[%s4013_s1 + $0x30] ss:$8 sps:$4 sm:$0xff]   ;;  %v2958_v16 = vld [vmem:[%s4013_s1 + $0x44] ss:$8 sps:$4 sm:$0xff]  }
   0x6   :  { %v2954_v13 = vld [vmem:[%s4013_s1 + $0x234] ss:$8 sps:$4 sm:$0xff]   ;;  %v2957_v15 = vld [vmem:[%s4013_s1 + $0x230] ss:$8 sps:$4 sm:$0xff]   ;;  %v2960_v17 = vld [vmem:[%s4013_s1 + $0x244] ss:$8 sps:$4 sm:$0xff]  }
   0x7   :  { %1469 = vmatpush1.bf16.msra.mxu1 %v2944_v6  ;;  %v2962_v18 = vld [vmem:[%s4013_s1 + $0x40] ss:$8 sps:$4 sm:$0xff]   ;;  %v2964_v20 = vld [vmem:[%s4013_s1 + $0x54] ss:$8 sps:$4 sm:$0xff]   ;;  %v2968_v22 = vld [vmem:[%s4013_s1 + $0x50] ss:$8 sps:$4 sm:$0xff]  }
   0x8   :  { %1815 = vmatpush1.bf16.msra.mxu0 %v2945_v7  ;;  %1470 = vmatprep.subr.bf16.mxu1 %v2946_v8  ;;  %v2963_v19 = vld [vmem:[%s4013_s1 + $0x240] ss:$8 sps:$4 sm:$0xff]   ;;  %v2966_v21 = vld [vmem:[%s4013_s1 + $0x254] ss:$8 sps:$4 sm:$0xff]   ;;  %v2969_v23 = vld [vmem:[%s4013_s1 + $0x250] ss:$8 sps:$4 sm:$0xff]  }
   0x9   :  { %1816 = vmatprep.subr.bf16.mxu0 %v2948_v9  ;;  %v2970_v24 = vld [vmem:[%s4013_s1 + $0x64] ss:$8 sps:$4 sm:$0xff]   ;;  %v2974_v26 = vld [vmem:[%s4013_s1 + $0x60] ss:$8 sps:$4 sm:$0xff]   ;;  %v2976_v28 = vld [vmem:[%s4013_s1 + $0x74] ss:$8 sps:$4 sm:$0xff]  }
   0xa   :  { %v2972_v25 = vld [vmem:[%s4013_s1 + $0x264] ss:$8 sps:$4 sm:$0xff]   ;;  %v2975_v27 = vld [vmem:[%s4013_s1 + $0x260] ss:$8 sps:$4 sm:$0xff]   ;;  %v2978_v29 = vld [vmem:[%s4013_s1 + $0x274] ss:$8 sps:$4 sm:$0xff]  }
   0xb   :  { %1471 = vmatpush1.bf16.msra.mxu1 %v2950_v10  ;;  %v2980_v30 = vld [vmem:[%s4013_s1 + $0x70] ss:$8 sps:$4 sm:$0xff]   ;;  %v2982_v32 = vld [vmem:[%s4013_s1 + $0x84] ss:$8 sps:$4 sm:$0xff]   ;;  %v2986_v34 = vld [vmem:[%s4013_s1 + $0x80] ss:$8 sps:$4 sm:$0xff]  }
   0xc   :  { %1817 = vmatpush1.bf16.msra.mxu0 %v2951_v11  ;;  %1472 = vmatprep.subr.bf16.mxu1 %v2952_v12  ;;  %v2981_v31 = vld [vmem:[%s4013_s1 + $0x270] ss:$8 sps:$4 sm:$0xff]   ;;  %v2984_v33 = vld [vmem:[%s4013_s1 + $0x284] ss:$8 sps:$4 sm:$0xff]   ;;  %v2987_v35 = vld [vmem:[%s4013_s1 + $0x280] ss:$8 sps:$4 sm:$0xff]  }
   0xd   :  { %1818 = vmatprep.subr.bf16.mxu0 %v2954_v13  ;;  %v2988_v36 = vld [vmem:[%s4013_s1 + $0x94] ss:$8 sps:$4 sm:$0xff]   ;;  %v2992_v38 = vld [vmem:[%s4013_s1 + $0x90] ss:$8 sps:$4 sm:$0xff]   ;;  %v2994_v40 = vld [vmem:[%s4013_s1 + $0xa4] ss:$8 sps:$4 sm:$0xff]  }
   0xe   :  { %v2990_v37 = vld [vmem:[%s4013_s1 + $0x294] ss:$8 sps:$4 sm:$0xff]   ;;  %v2993_v39 = vld [vmem:[%s4013_s1 + $0x290] ss:$8 sps:$4 sm:$0xff]   ;;  %v2996_v41 = vld [vmem:[%s4013_s1 + $0x2a4] ss:$8 sps:$4 sm:$0xff]  }
   0xf   :  { %1473 = vmatpush1.bf16.msra.mxu1 %v2956_v14  ;;  %v2998_v42 = vld [vmem:[%s4013_s1 + $0xa0] ss:$8 sps:$4 sm:$0xff]   ;;  %v3000_v44 = vld [vmem:[%s4013_s1 + $0xb4] ss:$8 sps:$4 sm:$0xff]   ;;  %v3004_v46 = vld [vmem:[%s4013_s1 + $0xb0] ss:$8 sps:$4 sm:$0xff]  }
  0x10   :  { %1819 = vmatpush1.bf16.msra.mxu0 %v2957_v15  ;;  %1474 = vmatprep.subr.bf16.mxu1 %v2958_v16  ;;  %v2999_v43 = vld [vmem:[%s4013_s1 + $0x2a0] ss:$8 sps:$4 sm:$0xff]   ;;  %v3002_v45 = vld [vmem:[%s4013_s1 + $0x2b4] ss:$8 sps:$4 sm:$0xff]   ;;  %v3005_v47 = vld [vmem:[%s4013_s1 + $0x2b0] ss:$8 sps:$4 sm:$0xff]  }
  0x11   :  { %1820 = vmatprep.subr.bf16.mxu0 %v2960_v17  ;;  %v14_v48 = vld [vmem:[%s4014_s0] sm:$0xff]  ;;  %v16_v50 = vld [vmem:[%s4014_s0 + $0x10] sm:$0xff] }
  0x12   :  { %v18_v49 = vld [vmem:[%s4014_s0 + $0x20] sm:$0xff]  ;;  %v20_v51 = vld [vmem:[%s4014_s0 + $0x30] sm:$0xff] }
  0x13   :  { %1475 = vmatpush1.bf16.msra.mxu1 %v2962_v18  ;;  %v3006_v52 = vld [vmem:[%s4013_s1 + $0xc4] ss:$8 sps:$4 sm:$0xff]   ;;  %v2415_v53 = vcombine.high %v14_v48, %v18_v49  ;;  %v2419_v55 = vcombine.high %v16_v50, %v20_v51  ;;  %v3010_v56 = vld [vmem:[%s4013_s1 + $0xc0] ss:$8 sps:$4 sm:$0xff]   ;;  %v3012_v58 = vld [vmem:[%s4013_s1 + $0xd4] ss:$8 sps:$4 sm:$0xff]   ;;  %v2414_v11 = vcombine.low %v14_v48, %v18_v49  ;;  %v2418_v12 = vcombine.low %v16_v50, %v20_v51 }
  0x14   :  { %1821 = vmatpush1.bf16.msra.mxu0 %v2963_v19  ;;  %1476 = vmatprep.subr.bf16.mxu1 %v2964_v20  ;;  %v3008_v54 = vld [vmem:[%s4013_s1 + $0x2c4] ss:$8 sps:$4 sm:$0xff]   ;;  %v3011_v57 = vld [vmem:[%s4013_s1 + $0x2c0] ss:$8 sps:$4 sm:$0xff]   ;;  %v3014_v59 = vld [vmem:[%s4013_s1 + $0x2d4] ss:$8 sps:$4 sm:$0xff]  }
  0x15   :  { %1822 = vmatprep.subr.bf16.mxu0 %v2966_v21  ;;  %1498 = vmatprep.mubr.bf16.mxu1 %v2415_v53  ;;  %v3016_v60 = vld [vmem:[%s4013_s1 + $0xd0] ss:$8 sps:$4 sm:$0xff]   ;;  %v3018_v62 = vld [vmem:[%s4013_s1 + $0xe4] ss:$8 sps:$4 sm:$0xff]   ;;  %v3022_v0 = vld [vmem:[%s4013_s1 + $0xe0] ss:$8 sps:$4 sm:$0xff]  }
  0x16   :  { %1844 = vmatprep.mubr.bf16.mxu0 %v2419_v55  ;;  %v3017_v61 = vld [vmem:[%s4013_s1 + $0x2d0] ss:$8 sps:$4 sm:$0xff]   ;;  %v3020_v63 = vld [vmem:[%s4013_s1 + $0x2e4] ss:$8 sps:$4 sm:$0xff]   ;;  %v3023_v1 = vld [vmem:[%s4013_s1 + $0x2e0] ss:$8 sps:$4 sm:$0xff]  }
  0x17   :  { %1477 = vmatpush1.bf16.msra.mxu1 %v2968_v22  ;;  %v3024_v2 = vld [vmem:[%s4013_s1 + $0xf4] ss:$8 sps:$4 sm:$0xff]   ;;  %v3028_v4 = vld [vmem:[%s4013_s1 + $0xf0] ss:$8 sps:$4 sm:$0xff]   ;;  %v3032_v6 = vld [vmem:[%s4013_s1 + $0x104] ss:$8 sps:$4 sm:$0xff]  }
  0x18   :  { %1823 = vmatpush1.bf16.msra.mxu0 %v2969_v23  ;;  %1478 = vmatprep.subr.bf16.mxu1 %v2970_v24  ;;  %v3026_v3 = vld [vmem:[%s4013_s1 + $0x2f4] ss:$8 sps:$4 sm:$0xff]   ;;  %v3029_v5 = vld [vmem:[%s4013_s1 + $0x2f0] ss:$8 sps:$4 sm:$0xff]   ;;  %v3035_v7 = vld [vmem:[%s4013_s1 + $0x304] ss:$8 sps:$4 sm:$0xff]  }
  0x19   :  { %1824 = vmatprep.subr.bf16.mxu0 %v2972_v25  ;;  %v3030_v8 = vld [vmem:[%s4013_s1 + $0x100] ss:$8 sps:$4 sm:$0xff]   ;;  %v24_v13 = vld [vmem:[%s4014_s0 + $0x50] sm:$0xff]  ;;  %v3044_v22 = vld [vmem:[%s4013_s1 + $0x124] ss:$8 sps:$4 sm:$0xff]  }
  0x1a   :  { %v22_v9 = vld [vmem:[%s4014_s0 + $0x40] sm:$0xff]  ;;  %v28_v14 = vld [vmem:[%s4014_s0 + $0x70] sm:$0xff] }
  0x1b   :  { %1479 = vmatpush1.bf16.msra.mxu1 %v2974_v26  ;;  %v26_v10 = vld [vmem:[%s4014_s0 + $0x60] sm:$0xff]  ;;  %v3038_v17 = vld [vmem:[%s4013_s1 + $0x114] ss:$8 sps:$4 sm:$0xff]   ;;  %v2427_v18 = vcombine.high %v24_v13, %v28_v14  ;;  %v3036_v20 = vld [vmem:[%s4013_s1 + $0x110] ss:$8 sps:$4 sm:$0xff]  }
  0x1c   :  { %1825 = vmatpush1.bf16.msra.mxu0 %v2975_v27  ;;  %1480 = vmatprep.subr.bf16.mxu1 %v2976_v28  ;;  %v3033_v15 = vld [vmem:[%s4013_s1 + $0x300] ss:$8 sps:$4 sm:$0xff]   ;;  %v2423_v16 = vcombine.high %v22_v9, %v26_v10  ;;  %v3041_v19 = vld [vmem:[%s4013_s1 + $0x314] ss:$8 sps:$4 sm:$0xff]   ;;  %v3039_v21 = vld [vmem:[%s4013_s1 + $0x310] ss:$8 sps:$4 sm:$0xff]   ;;  %v2422_v28 = vcombine.low %v22_v9, %v26_v10 }
  0x1d   :  { %1826 = vmatprep.subr.bf16.mxu0 %v2978_v29  ;;  %v30_v23 = vld [vmem:[%s4014_s0 + $0x80] sm:$0xff]  ;;  %v32_v26 = vld [vmem:[%s4014_s0 + $0x90] sm:$0xff]  ;;  %v2426_v29 = vcombine.low %v24_v13, %v28_v14 }
  0x1e   :  { %v34_v24 = vld [vmem:[%s4014_s0 + $0xa0] sm:$0xff]  ;;  %v36_v27 = vld [vmem:[%s4014_s0 + $0xb0] sm:$0xff] }
  0x1f   :  { %1481 = vmatpush1.bf16.msra.mxu1 %v2980_v30  ;;  %v3047_v25 = vld [vmem:[%s4013_s1 + $0x324] ss:$8 sps:$4 sm:$0xff]   ;;  %v3042_v30 = vld [vmem:[%s4013_s1 + $0x120] ss:$8 sps:$4 sm:$0xff]   ;;  %v3062_v50 = vld [vmem:[%s4013_s1 + $0x154] ss:$8 sps:$4 sm:$0xff]  }
  0x20   :  { %1827 = vmatpush1.bf16.msra.mxu0 %v2981_v31  ;;  %1482 = vmatprep.subr.bf16.mxu1 %v2982_v32  ;;  %v2431_v31 = vcombine.high %v30_v23, %v34_v24  ;;  %v2435_v32 = vcombine.high %v32_v26, %v36_v27  ;;  %v3054_v48 = vld [vmem:[%s4013_s1 + $0x140] ss:$8 sps:$4 sm:$0xff]   ;;  %v3065_v51 = vld [vmem:[%s4013_s1 + $0x354] ss:$8 sps:$4 sm:$0xff]   ;;  %v3075_v9 = vld [vmem:[%s4013_s1 + $0x370] ss:$8 sps:$4 sm:$0xff]  }
  0x21   :  { %1828 = vmatprep.subr.bf16.mxu0 %v2984_v33  ;;  %v3045_v33 = vld [vmem:[%s4013_s1 + $0x320] ss:$8 sps:$4 sm:$0xff]   ;;  %v52_v55 = vld [vmem:[%s4014_s0 + $0x130] sm:$0xff]  ;;  %v3080_v10 = vld [vmem:[%s4013_s1 + $0x184] ss:$8 sps:$4 sm:$0xff]  }
  0x22   :  { %v3057_v49 = vld [vmem:[%s4013_s1 + $0x340] ss:$8 sps:$4 sm:$0xff]  }
  0x23   :  { %1483 = vmatpush1.bf16.msra.mxu1 %v2986_v34  ;;  %v3048_v34 = vld [vmem:[%s4013_s1 + $0x130] ss:$8 sps:$4 sm:$0xff]   ;;  %v50_v53 = vld [vmem:[%s4014_s0 + $0x120] sm:$0xff] }
  0x24   :  { %1829 = vmatpush1.bf16.msra.mxu0 %v2987_v35  ;;  %1484 = vmatprep.subr.bf16.mxu1 %v2988_v36  ;;  %v3050_v35 = vld [vmem:[%s4013_s1 + $0x134] ss:$8 sps:$4 sm:$0xff]  }
  0x25   :  { %1830 = vmatprep.subr.bf16.mxu0 %v2990_v37  ;;  %v3053_v36 = vld [vmem:[%s4013_s1 + $0x334] ss:$8 sps:$4 sm:$0xff]   ;;  %v38_v37 = vld [vmem:[%s4014_s0 + $0xc0] sm:$0xff] }
  0x27   :  { %1485 = vmatpush1.bf16.msra.mxu1 %v2992_v38  ;;  %v42_v38 = vld [vmem:[%s4014_s0 + $0xe0] sm:$0xff] }
  0x28   :  { %1831 = vmatpush1.bf16.msra.mxu0 %v2993_v39  ;;  %1486 = vmatprep.subr.bf16.mxu1 %v2994_v40  ;;  %v40_v39 = vld [vmem:[%s4014_s0 + $0xd0] sm:$0xff] }
  0x29   :  { %1832 = vmatprep.subr.bf16.mxu0 %v2996_v41  ;;  %v44_v40 = vld [vmem:[%s4014_s0 + $0xf0] sm:$0xff] }
  0x2a   :  { %v3051_v41 = vld [vmem:[%s4013_s1 + $0x330] ss:$8 sps:$4 sm:$0xff]  }
  0x2b   :  { %1487 = vmatpush1.bf16.msra.mxu1 %v2998_v42  ;;  %v3056_v42 = vld [vmem:[%s4013_s1 + $0x144] ss:$8 sps:$4 sm:$0xff]  }
  0x2c   :  { %1833 = vmatpush1.bf16.msra.mxu0 %v2999_v43  ;;  %1488 = vmatprep.subr.bf16.mxu1 %v3000_v44  ;;  %v3059_v43 = vld [vmem:[%s4013_s1 + $0x344] ss:$8 sps:$4 sm:$0xff]   ;;  %v2430_v44 = vcombine.low %v30_v23, %v34_v24  ;;  %v68_v23 = vld [vmem:[%s4014_s0 + $0x1b0] sm:$0xff] }
  0x2d   :  { %1834 = vmatprep.subr.bf16.mxu0 %v3002_v45  ;;  %v2434_v45 = vcombine.low %v32_v26, %v36_v27  ;;  %v3084_v24 = vld [vmem:[%s4013_s1 + $0x190] ss:$8 sps:$4 sm:$0xff]   ;;  %v3092_v26 = vld [vmem:[%s4013_s1 + $0x1a4] ss:$8 sps:$4 sm:$0xff]  }
  0x2e   :  { %v3095_v27 = vld [vmem:[%s4013_s1 + $0x3a4] ss:$8 sps:$4 sm:$0xff]  }
  0x2f   :  { %1489 = vmatpush1.bf16.msra.mxu1 %v3004_v46  ;;  %v2439_v46 = vcombine.high %v38_v37, %v42_v38 }
  0x30   :  { %1835 = vmatpush1.bf16.msra.mxu0 %v3005_v47  ;;  %1490 = vmatprep.subr.bf16.mxu1 %v3006_v52  ;;  %v2443_v47 = vcombine.high %v40_v39, %v44_v40  ;;  %v46_v52 = vld [vmem:[%s4014_s0 + $0x100] sm:$0xff] }
  0x31   :  { %1836 = vmatprep.subr.bf16.mxu0 %v3008_v54  ;;  %v48_v54 = vld [vmem:[%s4014_s0 + $0x110] sm:$0xff] }
  0x32   :  { %v2450_v13 = vcombine.low %v48_v54, %v52_v55 }
  0x33   :  { %1491 = vmatpush1.bf16.msra.mxu1 %v3010_v56  ;;  %v3060_v56 = vld [vmem:[%s4013_s1 + $0x150] ss:$8 sps:$4 sm:$0xff]  }
  0x34   :  { %1837 = vmatpush1.bf16.msra.mxu0 %v3011_v57  ;;  %1492 = vmatprep.subr.bf16.mxu1 %v3012_v58  ;;  %v3063_v57 = vld [vmem:[%s4013_s1 + $0x350] ss:$8 sps:$4 sm:$0xff]   ;;  %v3068_v58 = vld [vmem:[%s4013_s1 + $0x164] ss:$8 sps:$4 sm:$0xff]  }
  0x35   :  { %1838 = vmatprep.subr.bf16.mxu0 %v3014_v59  ;;  %v3071_v59 = vld [vmem:[%s4013_s1 + $0x364] ss:$8 sps:$4 sm:$0xff]  }
  0x37   :  { %1493 = vmatpush1.bf16.msra.mxu1 %v3016_v60  ;;  %v2438_v60 = vcombine.low %v38_v37, %v42_v38  ;;  %v74_v37 = vld [vmem:[%s4014_s0 + $0x1e0] sm:$0xff]  ;;  %v72_v38 = vld [vmem:[%s4014_s0 + $0x1d0] sm:$0xff] }
  0x38   :  { %1839 = vmatpush1.bf16.msra.mxu0 %v3017_v61  ;;  %1494 = vmatprep.subr.bf16.mxu1 %v3018_v62  ;;  %v2442_v61 = vcombine.low %v40_v39, %v44_v40  ;;  %v2447_v62 = vcombine.high %v46_v52, %v50_v53  ;;  %v76_v39 = vld [vmem:[%s4014_s0 + $0x1f0] sm:$0xff] }
  0x39   :  { %1840 = vmatprep.subr.bf16.mxu0 %v3020_v63  ;;  %v2451_v63 = vcombine.high %v48_v54, %v52_v55  ;;  %v3096_v40 = vld [vmem:[%s4013_s1 + $0x1b0] ss:$8 sps:$4 sm:$0xff]  }
  0x3a   :  { %v80_v54 = vld [vmem:[%s4014_s0 + $0x210] sm:$0xff] }
  0x3b   :  { %1495 = vmatpush1.bf16.msra.mxu1 %v3022_v0  ;;  %v3066_v0 = vld [vmem:[%s4013_s1 + $0x160] ss:$8 sps:$4 sm:$0xff]   ;;  %v84_v55 = vld [vmem:[%s4014_s0 + $0x230] sm:$0xff] }
  0x3c   :  { %1841 = vmatpush1.bf16.msra.mxu0 %v3023_v1  ;;  %1496 = vmatprep.subr.bf16.mxu1 %v3024_v2  ;;  %v3069_v1 = vld [vmem:[%s4013_s1 + $0x360] ss:$8 sps:$4 sm:$0xff]   ;;  %v3074_v2 = vld [vmem:[%s4013_s1 + $0x174] ss:$8 sps:$4 sm:$0xff]  }
  0x3d   :  { %1842 = vmatprep.subr.bf16.mxu0 %v3026_v3  ;;  %v3077_v3 = vld [vmem:[%s4013_s1 + $0x374] ss:$8 sps:$4 sm:$0xff]  }
  0x3f   :  { %1497 = vmatpush1.bf16.msra.mxu1 %v3028_v4  ;;  %v54_v4 = vld [vmem:[%s4014_s0 + $0x140] sm:$0xff] }
  0x40   :  { %1843 = vmatpush1.bf16.msra.mxu0 %v3029_v5  ;;  %1639 = vmatprep.subr.bf16.mxu1 %v3032_v6  ;;  %v58_v5 = vld [vmem:[%s4014_s0 + $0x160] sm:$0xff]  ;;  %v56_v6 = vld [vmem:[%s4014_s0 + $0x150] sm:$0xff] }
  0x41   :  { %1985 = vmatprep.subr.bf16.mxu0 %v3035_v7  ;;  %v60_v7 = vld [vmem:[%s4014_s0 + $0x170] sm:$0xff]  ;;  %v2455_v14 = vcombine.high %v54_v4, %v58_v5 }
  0x42   :  { %1499 = vmatmul.mubr.bf16.vlgmr.msra.gmra.mrb[0].mxu1 %v2414_v11  ;;  %v3083_v11 = vld [vmem:[%s4013_s1 + $0x384] ss:$8 sps:$4 sm:$0xff]  }
  0x43   :  { %1845 = vmatmul.mubr.bf16.vlgmr.msra.gmra.mrb[0].mxu0 %v2418_v12  ;;  %1640 = vmatpush1.bf16.msra.mxu1 %v3030_v8  ;;  %v3072_v8 = vld [vmem:[%s4013_s1 + $0x170] ss:$8 sps:$4 sm:$0xff]   ;;  %v2446_v12 = vcombine.low %v46_v52, %v50_v53  ;;  %v78_v52 = vld [vmem:[%s4014_s0 + $0x200] sm:$0xff] }
  0x44   :  { %1986 = vmatpush1.bf16.msra.mxu0 %v3033_v15  ;;  %1508 = vmatprep.mubr.bf16.mxu1 %v2423_v16  ;;  %v2459_v15 = vcombine.high %v56_v6, %v60_v7  ;;  %v3078_v16 = vld [vmem:[%s4013_s1 + $0x180] ss:$8 sps:$4 sm:$0xff]  }
  0x45   :  { %1641 = vmatprep.subr.bf16.mxu1 %v3038_v17  ;;  %1854 = vmatprep.mubr.bf16.mxu0 %v2427_v18  ;;  %v3081_v17 = vld [vmem:[%s4013_s1 + $0x380] ss:$8 sps:$4 sm:$0xff]   ;;  %v3086_v18 = vld [vmem:[%s4013_s1 + $0x194] ss:$8 sps:$4 sm:$0xff]  }
  0x46   :  { %1987 = vmatprep.subr.bf16.mxu0 %v3041_v19  ;;  %v3089_v19 = vld [vmem:[%s4013_s1 + $0x394] ss:$8 sps:$4 sm:$0xff]   ;;  %v82_v53 = vld [vmem:[%s4014_s0 + $0x220] sm:$0xff] }
  0x47   :  { %1642 = vmatpush1.bf16.msra.mxu1 %v3036_v20  ;;  %v62_v20 = vld [vmem:[%s4014_s0 + $0x180] sm:$0xff] }
  0x48   :  { %1988 = vmatpush1.bf16.msra.mxu0 %v3039_v21  ;;  %1643 = vmatprep.subr.bf16.mxu1 %v3044_v22  ;;  %v66_v21 = vld [vmem:[%s4014_s0 + $0x1a0] sm:$0xff]  ;;  %v64_v22 = vld [vmem:[%s4014_s0 + $0x190] sm:$0xff] }
  0x49   :  { %1989 = vmatprep.subr.bf16.mxu0 %v3047_v25  ;;  %v3087_v25 = vld [vmem:[%s4013_s1 + $0x390] ss:$8 sps:$4 sm:$0xff]  }
  0x4a   :  { %1509 = vmatmul.mubr.bf16.gmra.mrb[4].mxu1 %v2422_v28  ;;  %v2454_v28 = vcombine.low %v54_v4, %v58_v5  ;;  %v86_v4 = vld [vmem:[%s4014_s0 + $0x240] sm:$0xff] }
  0x4b   :  { %1855 = vmatmul.mubr.bf16.gmra.mrb[4].mxu0 %v2426_v29  ;;  %1518 = vmatprep.mubr.bf16.mxu1 %v2431_v31  ;;  %v2458_v29 = vcombine.low %v56_v6, %v60_v7  ;;  %v2467_v31 = vcombine.high %v64_v22, %v68_v23  ;;  %v90_v5 = vld [vmem:[%s4014_s0 + $0x260] sm:$0xff]  ;;  %v88_v6 = vld [vmem:[%s4014_s0 + $0x250] sm:$0xff] }
  0x4c   :  { %1644 = vmatpush1.bf16.msra.mxu1 %v3042_v30  ;;  %1864 = vmatprep.mubr.bf16.mxu0 %v2435_v32  ;;  %v2463_v30 = vcombine.high %v62_v20, %v66_v21  ;;  %v3090_v32 = vld [vmem:[%s4013_s1 + $0x1a0] ss:$8 sps:$4 sm:$0xff]   ;;  %v92_v7 = vld [vmem:[%s4014_s0 + $0x270] sm:$0xff] }
  0x4d   :  { %1990 = vmatpush1.bf16.msra.mxu0 %v3045_v33  ;;  %1645 = vmatprep.subr.bf16.mxu1 %v3050_v35  ;;  %v3093_v33 = vld [vmem:[%s4013_s1 + $0x3a0] ss:$8 sps:$4 sm:$0xff]   ;;  %v3101_v35 = vld [vmem:[%s4013_s1 + $0x3b4] ss:$8 sps:$4 sm:$0xff]  }
  0x4e   :  { %1991 = vmatprep.subr.bf16.mxu0 %v3053_v36  ;;  %v70_v36 = vld [vmem:[%s4014_s0 + $0x1c0] sm:$0xff] }
  0x50   :  { %1646 = vmatpush1.bf16.msra.mxu1 %v3048_v34  ;;  %v3098_v34 = vld [vmem:[%s4013_s1 + $0x1b4] ss:$8 sps:$4 sm:$0xff]  }
  0x51   :  { %1992 = vmatpush1.bf16.msra.mxu0 %v3051_v41  ;;  %1647 = vmatprep.subr.bf16.mxu1 %v3056_v42  ;;  %v3099_v41 = vld [vmem:[%s4013_s1 + $0x3b0] ss:$8 sps:$4 sm:$0xff]   ;;  %v3104_v42 = vld [vmem:[%s4013_s1 + $0x1c4] ss:$8 sps:$4 sm:$0xff]  }
  0x52   :  { %1993 = vmatprep.subr.bf16.mxu0 %v3059_v43  ;;  %1519 = vmatmul.mubr.bf16.gmra.mrb[8].mxu1 %v2430_v44  ;;  %v3107_v43 = vld [vmem:[%s4013_s1 + $0x3c4] ss:$8 sps:$4 sm:$0xff]   ;;  %v2462_v44 = vcombine.low %v62_v20, %v66_v21 }
  0x53   :  { %1865 = vmatmul.mubr.bf16.gmra.mrb[8].mxu0 %v2434_v45  ;;  %1528 = vmatprep.mubr.bf16.mxu1 %v2439_v46  ;;  %v2466_v45 = vcombine.low %v64_v22, %v68_v23  ;;  %v2471_v46 = vcombine.high %v70_v36, %v74_v37  ;;  %v102_v22 = vld [vmem:[%s4014_s0 + $0x2c0] sm:$0xff] }
  0x54   :  { %1874 = vmatprep.mubr.bf16.mxu0 %v2443_v47  ;;  %1648 = vmatpush1.bf16.msra.mxu1 %v3054_v48  ;;  %v2475_v47 = vcombine.high %v72_v38, %v76_v39  ;;  %v3102_v48 = vld [vmem:[%s4013_s1 + $0x1c0] ss:$8 sps:$4 sm:$0xff]  }
  0x55   :  { %1994 = vmatpush1.bf16.msra.mxu0 %v3057_v49  ;;  %1649 = vmatprep.subr.bf16.mxu1 %v3062_v50  ;;  %v3105_v49 = vld [vmem:[%s4013_s1 + $0x3c0] ss:$8 sps:$4 sm:$0xff]   ;;  %v3110_v50 = vld [vmem:[%s4013_s1 + $0x1d4] ss:$8 sps:$4 sm:$0xff]  }
  0x56   :  { %1995 = vmatprep.subr.bf16.mxu0 %v3065_v51  ;;  %v3113_v51 = vld [vmem:[%s4013_s1 + $0x3d4] ss:$8 sps:$4 sm:$0xff]   ;;  %v106_v23 = vld [vmem:[%s4014_s0 + $0x2e0] sm:$0xff] }
  0x58   :  { %1650 = vmatpush1.bf16.msra.mxu1 %v3060_v56  ;;  %v3108_v56 = vld [vmem:[%s4013_s1 + $0x1d0] ss:$8 sps:$4 sm:$0xff]  }
  0x59   :  { %1996 = vmatpush1.bf16.msra.mxu0 %v3063_v57  ;;  %1651 = vmatprep.subr.bf16.mxu1 %v3068_v58  ;;  %v3111_v57 = vld [vmem:[%s4013_s1 + $0x3d0] ss:$8 sps:$4 sm:$0xff]   ;;  %v3116_v58 = vld [vmem:[%s4013_s1 + $0x1e4] ss:$8 sps:$4 sm:$0xff]  }
  0x5a   :  { %1997 = vmatprep.subr.bf16.mxu0 %v3071_v59  ;;  %1529 = vmatmul.mubr.bf16.gmra.mrb[12].mxu1 %v2438_v60  ;;  %v3119_v59 = vld [vmem:[%s4013_s1 + $0x3e4] ss:$8 sps:$4 sm:$0xff]   ;;  %v2470_v60 = vcombine.low %v70_v36, %v74_v37 }
  0x5b   :  { %1875 = vmatmul.mubr.bf16.gmra.mrb[12].mxu0 %v2442_v61  ;;  %1538 = vmatprep.mubr.bf16.mxu1 %v2447_v62  ;;  %v2474_v61 = vcombine.low %v72_v38, %v76_v39  ;;  %v2479_v62 = vcombine.high %v78_v52, %v82_v53  ;;  %v118_v38 = vld [vmem:[%s4014_s0 + $0x340] sm:$0xff] }
  0x5c   :  { %1884 = vmatprep.mubr.bf16.mxu0 %v2451_v63  ;;  %1652 = vmatpush1.bf16.msra.mxu1 %v3066_v0  ;;  %v2483_v63 = vcombine.high %v80_v54, %v84_v55  ;;  %v3114_v0 = vld [vmem:[%s4013_s1 + $0x1e0] ss:$8 sps:$4 sm:$0xff]  }
  0x5d   :  { %1998 = vmatpush1.bf16.msra.mxu0 %v3069_v1  ;;  %1653 = vmatprep.subr.bf16.mxu1 %v3074_v2  ;;  %v3117_v1 = vld [vmem:[%s4013_s1 + $0x3e0] ss:$8 sps:$4 sm:$0xff]   ;;  %v3122_v2 = vld [vmem:[%s4013_s1 + $0x1f4] ss:$8 sps:$4 sm:$0xff]  }
  0x5e   :  { %1999 = vmatprep.subr.bf16.mxu0 %v3077_v3  ;;  %v3125_v3 = vld [vmem:[%s4013_s1 + $0x3f4] ss:$8 sps:$4 sm:$0xff]   ;;  %v122_v39 = vld [vmem:[%s4014_s0 + $0x360] sm:$0xff] }
  0x60   :  { %1654 = vmatpush1.bf16.msra.mxu1 %v3072_v8  ;;  %v3120_v8 = vld [vmem:[%s4013_s1 + $0x1f0] ss:$8 sps:$4 sm:$0xff]  }
  0x61   :  { %2000 = vmatpush1.bf16.msra.mxu0 %v3075_v9  ;;  %1655 = vmatprep.subr.bf16.mxu1 %v3080_v10  ;;  %v3123_v9 = vld [vmem:[%s4013_s1 + $0x3f0] ss:$8 sps:$4 sm:$0xff]   ;;  %v2478_v10 = vcombine.low %v78_v52, %v82_v53 }
  0x62   :  { %2001 = vmatprep.subr.bf16.mxu0 %v3083_v11  ;;  %1539 = vmatmul.mubr.bf16.gmra.mrb[16].mxu1 %v2446_v12  ;;  %v2482_v11 = vcombine.low %v80_v54, %v84_v55  ;;  %v2487_v12 = vcombine.high %v86_v4, %v90_v5  ;;  %v23_v54 = vld [vmem:[%s4014_s0 + $0x48] sm:$0xff] }
  0x63   :  { %1885 = vmatmul.mubr.bf16.gmra.mrb[16].mxu0 %v2450_v13  ;;  %1548 = vmatprep.mubr.bf16.mxu1 %v2455_v14  ;;  %v2491_v13 = vcombine.high %v88_v6, %v92_v7  ;;  %v94_v14 = vld [vmem:[%s4014_s0 + $0x280] sm:$0xff]  ;;  %v27_v55 = vld [vmem:[%s4014_s0 + $0x68] sm:$0xff] }
  0x64   :  { %1894 = vmatprep.mubr.bf16.mxu0 %v2459_v15  ;;  %1656 = vmatpush1.bf16.msra.mxu1 %v3078_v16  ;;  %v98_v15 = vld [vmem:[%s4014_s0 + $0x2a0] sm:$0xff]  ;;  %v96_v16 = vld [vmem:[%s4014_s0 + $0x290] sm:$0xff] }
  0x65   :  { %2002 = vmatpush1.bf16.msra.mxu0 %v3081_v17  ;;  %1657 = vmatprep.subr.bf16.mxu1 %v3086_v18  ;;  %v100_v17 = vld [vmem:[%s4014_s0 + $0x2b0] sm:$0xff]  ;;  %v2486_v18 = vcombine.low %v86_v4, %v90_v5  ;;  %v2495_v20 = vcombine.high %v94_v14, %v98_v15 }
  0x66   :  { %2003 = vmatprep.subr.bf16.mxu0 %v3089_v19  ;;  %v2490_v19 = vcombine.low %v88_v6, %v92_v7  ;;  %v2499_v21 = vcombine.high %v96_v16, %v100_v17  ;;  %v39_v6 = vld [vmem:[%s4014_s0 + $0xc8] sm:$0xff] }
  0x67   :  { %v43_v7 = vld [vmem:[%s4014_s0 + $0xe8] sm:$0xff] }
  0x68   :  { %1658 = vmatpush1.bf16.msra.mxu1 %v3084_v24  ;;  %v104_v24 = vld [vmem:[%s4014_s0 + $0x2d0] sm:$0xff] }
  0x69   :  { %2004 = vmatpush1.bf16.msra.mxu0 %v3087_v25  ;;  %1659 = vmatprep.subr.bf16.mxu1 %v3092_v26  ;;  %v108_v25 = vld [vmem:[%s4014_s0 + $0x2f0] sm:$0xff]  ;;  %v2494_v26 = vcombine.low %v94_v14, %v98_v15  ;;  %v47_v14 = vld [vmem:[%s4014_s0 + $0x108] sm:$0xff] }
  0x6a   :  { %2005 = vmatprep.subr.bf16.mxu0 %v3095_v27  ;;  %1549 = vmatmul.mubr.bf16.gmra.mrb[20].mxu1 %v2454_v28  ;;  %v2498_v27 = vcombine.low %v96_v16, %v100_v17  ;;  %v2503_v28 = vcombine.high %v102_v22, %v106_v23  ;;  %v51_v15 = vld [vmem:[%s4014_s0 + $0x128] sm:$0xff]  ;;  %v49_v16 = vld [vmem:[%s4014_s0 + $0x118] sm:$0xff] }
  0x6b   :  { %1895 = vmatmul.mubr.bf16.gmra.mrb[20].mxu0 %v2458_v29  ;;  %1558 = vmatprep.mubr.bf16.mxu1 %v2463_v30  ;;  %v2507_v29 = vcombine.high %v104_v24, %v108_v25  ;;  %v110_v30 = vld [vmem:[%s4014_s0 + $0x300] sm:$0xff]  ;;  %v53_v17 = vld [vmem:[%s4014_s0 + $0x138] sm:$0xff] }
  0x6c   :  { %1904 = vmatprep.mubr.bf16.mxu0 %v2467_v31  ;;  %1660 = vmatpush1.bf16.msra.mxu1 %v3090_v32  ;;  %v114_v31 = vld [vmem:[%s4014_s0 + $0x320] sm:$0xff]  ;;  %v112_v32 = vld [vmem:[%s4014_s0 + $0x310] sm:$0xff] }
  0x6d   :  { %2006 = vmatpush1.bf16.msra.mxu0 %v3093_v33  ;;  %1661 = vmatprep.subr.bf16.mxu1 %v3098_v34  ;;  %v116_v33 = vld [vmem:[%s4014_s0 + $0x330] sm:$0xff]  ;;  %v2502_v34 = vcombine.low %v102_v22, %v106_v23  ;;  %v2511_v36 = vcombine.high %v110_v30, %v114_v31  ;;  %v55_v22 = vld [vmem:[%s4014_s0 + $0x148] sm:$0xff] }
  0x6e   :  { %2007 = vmatprep.subr.bf16.mxu0 %v3101_v35  ;;  %v2506_v35 = vcombine.low %v104_v24, %v108_v25  ;;  %v2515_v37 = vcombine.high %v112_v32, %v116_v33  ;;  %v59_v23 = vld [vmem:[%s4014_s0 + $0x168] sm:$0xff]  ;;  %v57_v24 = vld [vmem:[%s4014_s0 + $0x158] sm:$0xff] }
  0x6f   :  { %v61_v25 = vld [vmem:[%s4014_s0 + $0x178] sm:$0xff] }
  0x70   :  { %1662 = vmatpush1.bf16.msra.mxu1 %v3096_v40  ;;  %v120_v40 = vld [vmem:[%s4014_s0 + $0x350] sm:$0xff] }
  0x71   :  { %2008 = vmatpush1.bf16.msra.mxu0 %v3099_v41  ;;  %1663 = vmatprep.subr.bf16.mxu1 %v3104_v42  ;;  %v124_v41 = vld [vmem:[%s4014_s0 + $0x370] sm:$0xff]  ;;  %v2510_v42 = vcombine.low %v110_v30, %v114_v31  ;;  %v63_v30 = vld [vmem:[%s4014_s0 + $0x188] sm:$0xff] }
  0x72   :  { %2009 = vmatprep.subr.bf16.mxu0 %v3107_v43  ;;  %1559 = vmatmul.mubr.bf16.gmra.mrb[24].mxu1 %v2462_v44  ;;  %v2514_v43 = vcombine.low %v112_v32, %v116_v33  ;;  %v2519_v44 = vcombine.high %v118_v38, %v122_v39  ;;  %v67_v31 = vld [vmem:[%s4014_s0 + $0x1a8] sm:$0xff]  ;;  %v65_v32 = vld [vmem:[%s4014_s0 + $0x198] sm:$0xff] }
  0x73   :  { %1905 = vmatmul.mubr.bf16.gmra.mrb[24].mxu0 %v2466_v45  ;;  %1568 = vmatprep.mubr.bf16.mxu1 %v2471_v46  ;;  %v2523_v45 = vcombine.high %v120_v40, %v124_v41  ;;  %v15_v46 = vld [vmem:[%s4014_s0 + $0x8] sm:$0xff]  ;;  %v69_v33 = vld [vmem:[%s4014_s0 + $0x1b8] sm:$0xff] }
  0x74   :  { %1914 = vmatprep.mubr.bf16.mxu0 %v2475_v47  ;;  %1664 = vmatpush1.bf16.msra.mxu1 %v3102_v48  ;;  %v19_v47 = vld [vmem:[%s4014_s0 + $0x28] sm:$0xff]  ;;  %v17_v48 = vld [vmem:[%s4014_s0 + $0x18] sm:$0xff] }
  0x75   :  { %2010 = vmatpush1.bf16.msra.mxu0 %v3105_v49  ;;  %1665 = vmatprep.subr.bf16.mxu1 %v3110_v50  ;;  %v21_v49 = vld [vmem:[%s4014_s0 + $0x38] sm:$0xff]  ;;  %v2518_v50 = vcombine.low %v118_v38, %v122_v39  ;;  %v2417_v52 = vcombine.high %v15_v46, %v19_v47  ;;  %v71_v38 = vld [vmem:[%s4014_s0 + $0x1c8] sm:$0xff] }
  0x76   :  { %2011 = vmatprep.subr.bf16.mxu0 %v3113_v51  ;;  %v2522_v51 = vcombine.low %v120_v40, %v124_v41  ;;  %v2421_v53 = vcombine.high %v17_v48, %v21_v49  ;;  %v75_v39 = vld [vmem:[%s4014_s0 + $0x1e8] sm:$0xff]  ;;  %v73_v40 = vld [vmem:[%s4014_s0 + $0x1d8] sm:$0xff] }
  0x77   :  { %v77_v41 = vld [vmem:[%s4014_s0 + $0x1f8] sm:$0xff] }
  0x78   :  { %1666 = vmatpush1.bf16.msra.mxu1 %v3108_v56  ;;  %v25_v56 = vld [vmem:[%s4014_s0 + $0x58] sm:$0xff] }
  0x79   :  { %2012 = vmatpush1.bf16.msra.mxu0 %v3111_v57  ;;  %1667 = vmatprep.subr.bf16.mxu1 %v3116_v58  ;;  %v29_v57 = vld [vmem:[%s4014_s0 + $0x78] sm:$0xff]  ;;  %v2416_v58 = vcombine.low %v15_v46, %v19_v47  ;;  %v79_v46 = vld [vmem:[%s4014_s0 + $0x208] sm:$0xff] }
  0x7a   :  { %2013 = vmatprep.subr.bf16.mxu0 %v3119_v59  ;;  %1569 = vmatmul.mubr.bf16.gmra.mrb[28].mxu1 %v2470_v60  ;;  %v2420_v59 = vcombine.low %v17_v48, %v21_v49  ;;  %v2425_v60 = vcombine.high %v23_v54, %v27_v55  ;;  %v83_v47 = vld [vmem:[%s4014_s0 + $0x228] sm:$0xff]  ;;  %v81_v48 = vld [vmem:[%s4014_s0 + $0x218] sm:$0xff] }
  0x7b   :  { %1915 = vmatmul.mubr.bf16.gmra.mrb[28].mxu0 %v2474_v61  ;;  %1578 = vmatprep.mubr.bf16.mxu1 %v2479_v62  ;;  %v2429_v61 = vcombine.high %v25_v56, %v29_v57  ;;  %v31_v62 = vld [vmem:[%s4014_s0 + $0x88] sm:$0xff]  ;;  %v85_v49 = vld [vmem:[%s4014_s0 + $0x238] sm:$0xff] }
  0x7c   :  { %1924 = vmatprep.mubr.bf16.mxu0 %v2483_v63  ;;  %1668 = vmatpush1.bf16.msra.mxu1 %v3114_v0  ;;  %v35_v63 = vld [vmem:[%s4014_s0 + $0xa8] sm:$0xff]  ;;  %v33_v0 = vld [vmem:[%s4014_s0 + $0x98] sm:$0xff] }
  0x7d   :  { %2014 = vmatpush1.bf16.msra.mxu0 %v3117_v1  ;;  %1669 = vmatprep.subr.bf16.mxu1 %v3122_v2  ;;  %v37_v1 = vld [vmem:[%s4014_s0 + $0xb8] sm:$0xff]  ;;  %v2424_v2 = vcombine.low %v23_v54, %v27_v55  ;;  %v2433_v4 = vcombine.high %v31_v62, %v35_v63  ;;  %v87_v54 = vld [vmem:[%s4014_s0 + $0x248] sm:$0xff] }
  0x7e   :  { %2015 = vmatprep.subr.bf16.mxu0 %v3125_v3  ;;  %v2428_v3 = vcombine.low %v25_v56, %v29_v57  ;;  %v2437_v5 = vcombine.high %v33_v0, %v37_v1  ;;  %v91_v55 = vld [vmem:[%s4014_s0 + $0x268] sm:$0xff]  ;;  %v89_v56 = vld [vmem:[%s4014_s0 + $0x258] sm:$0xff] }
  0x7f   :  { %v93_v57 = vld [vmem:[%s4014_s0 + $0x278] sm:$0xff] }
  0x80   :  { %1670 = vmatpush1.bf16.msra.mxu1 %v3120_v8  ;;  %v41_v8 = vld [vmem:[%s4014_s0 + $0xd8] sm:$0xff] }
  0x81   :  { %2016 = vmatpush1.bf16.msra.mxu0 %v3123_v9  ;;  %v45_v9 = vld [vmem:[%s4014_s0 + $0xf8] sm:$0xff] }
  0x82   :  { %1579 = vmatmul.mubr.bf16.gmra.mrb[32].mxu1 %v2478_v10  ;;  %v2432_v10 = vcombine.low %v31_v62, %v35_v63  ;;  %v95_v62 = vld [vmem:[%s4014_s0 + $0x288] sm:$0xff] }
  0x83   :  { %1925 = vmatmul.mubr.bf16.gmra.mrb[32].mxu0 %v2482_v11  ;;  %1588 = vmatprep.mubr.bf16.mxu1 %v2487_v12  ;;  %v2436_v11 = vcombine.low %v33_v0, %v37_v1  ;;  %v2441_v12 = vcombine.high %v39_v6, %v43_v7  ;;  %v99_v63 = vld [vmem:[%s4014_s0 + $0x2a8] sm:$0xff]  ;;  %v97_v0 = vld [vmem:[%s4014_s0 + $0x298] sm:$0xff] }
  0x84   :  { %1934 = vmatprep.mubr.bf16.mxu0 %v2491_v13  ;;  %v2445_v13 = vcombine.high %v41_v8, %v45_v9  ;;  %v101_v1 = vld [vmem:[%s4014_s0 + $0x2b8] sm:$0xff] }
  0x8a   :  { %1589 = vmatmul.mubr.bf16.gmra.mrb[36].mxu1 %v2486_v18  ;;  %v2440_v18 = vcombine.low %v39_v6, %v43_v7  ;;  %v103_v6 = vld [vmem:[%s4014_s0 + $0x2c8] sm:$0xff] }
  0x8b   :  { %1935 = vmatmul.mubr.bf16.gmra.mrb[36].mxu0 %v2490_v19  ;;  %1598 = vmatprep.mubr.bf16.mxu1 %v2495_v20  ;;  %v2444_v19 = vcombine.low %v41_v8, %v45_v9  ;;  %v2449_v20 = vcombine.high %v47_v14, %v51_v15  ;;  %v107_v7 = vld [vmem:[%s4014_s0 + $0x2e8] sm:$0xff]  ;;  %v105_v8 = vld [vmem:[%s4014_s0 + $0x2d8] sm:$0xff] }
  0x8c   :  { %1944 = vmatprep.mubr.bf16.mxu0 %v2499_v21  ;;  %v2453_v21 = vcombine.high %v49_v16, %v53_v17  ;;  %v109_v9 = vld [vmem:[%s4014_s0 + $0x2f8] sm:$0xff] }
  0x92   :  { %1599 = vmatmul.mubr.bf16.gmra.mrb[40].mxu1 %v2494_v26  ;;  %v2448_v26 = vcombine.low %v47_v14, %v51_v15  ;;  %v111_v14 = vld [vmem:[%s4014_s0 + $0x308] sm:$0xff] }
  0x93   :  { %1945 = vmatmul.mubr.bf16.gmra.mrb[40].mxu0 %v2498_v27  ;;  %1608 = vmatprep.mubr.bf16.mxu1 %v2503_v28  ;;  %v2452_v27 = vcombine.low %v49_v16, %v53_v17  ;;  %v2457_v28 = vcombine.high %v55_v22, %v59_v23  ;;  %v115_v15 = vld [vmem:[%s4014_s0 + $0x328] sm:$0xff]  ;;  %v113_v16 = vld [vmem:[%s4014_s0 + $0x318] sm:$0xff] }
  0x94   :  { %1954 = vmatprep.mubr.bf16.mxu0 %v2507_v29  ;;  %v2461_v29 = vcombine.high %v57_v24, %v61_v25  ;;  %v117_v17 = vld [vmem:[%s4014_s0 + $0x338] sm:$0xff] }
  0x9a   :  { %1609 = vmatmul.mubr.bf16.gmra.mrb[44].mxu1 %v2502_v34  ;;  %v2456_v34 = vcombine.low %v55_v22, %v59_v23  ;;  %v119_v22 = vld [vmem:[%s4014_s0 + $0x348] sm:$0xff] }
  0x9b   :  { %1955 = vmatmul.mubr.bf16.gmra.mrb[44].mxu0 %v2506_v35  ;;  %1618 = vmatprep.mubr.bf16.mxu1 %v2511_v36  ;;  %v2460_v35 = vcombine.low %v57_v24, %v61_v25  ;;  %v2465_v36 = vcombine.high %v63_v30, %v67_v31  ;;  %v123_v23 = vld [vmem:[%s4014_s0 + $0x368] sm:$0xff]  ;;  %v121_v24 = vld [vmem:[%s4014_s0 + $0x358] sm:$0xff] }
  0x9c   :  { %1964 = vmatprep.mubr.bf16.mxu0 %v2515_v37  ;;  %v2469_v37 = vcombine.high %v65_v32, %v69_v33  ;;  %v125_v25 = vld [vmem:[%s4014_s0 + $0x378] sm:$0xff] }
  0xa2   :  { %1619 = vmatmul.mubr.bf16.gmra.mrb[48].mxu1 %v2510_v42  ;;  %v2464_v42 = vcombine.low %v63_v30, %v67_v31  ;;  %v2520_v30 = vcombine.low %v119_v22, %v123_v23  ;;  %v2524_v31 = vcombine.low %v121_v24, %v125_v25 }
  0xa3   :  { %1965 = vmatmul.mubr.bf16.gmra.mrb[48].mxu0 %v2514_v43  ;;  %1628 = vmatprep.mubr.bf16.mxu1 %v2519_v44  ;;  %v2468_v43 = vcombine.low %v65_v32, %v69_v33  ;;  %v2473_v44 = vcombine.high %v71_v38, %v75_v39  ;;  %v256_v32 = vlaneseq }
  0xa4   :  { %1974 = vmatprep.mubr.bf16.mxu0 %v2523_v45  ;;  %v2477_v45 = vcombine.high %v73_v40, %v77_v41 }
  0xa5   :  { %v257_v33 = vshrl.u32 %v256_v32, 7 }
  0xaa   :  { %1629 = vmatmul.mubr.bf16.gmra.mrb[52].mxu1 %v2518_v50  ;;  %v2472_v50 = vcombine.low %v71_v38, %v75_v39 }
  0xab   :  { %1975 = vmatmul.mubr.bf16.gmra.mrb[52].mxu0 %v2522_v51  ;;  %1671 = vmatprep.mubr.bf16.mxu1 %v2417_v52  ;;  %v2476_v51 = vcombine.low %v73_v40, %v77_v41  ;;  %v2481_v52 = vcombine.high %v79_v46, %v83_v47 }
  0xac   :  { %2017 = vmatprep.mubr.bf16.mxu0 %v2421_v53  ;;  %v2485_v53 = vcombine.high %v81_v48, %v85_v49 }
  0xb2   :  { %1672 = vmatmul.mubr.bf16.vlgmr.msra.gmra.mrb[0].mxu1 %v2416_v58  ;;  %v2480_v58 = vcombine.low %v79_v46, %v83_v47 }
  0xb3   :  { %2018 = vmatmul.mubr.bf16.vlgmr.msra.gmra.mrb[0].mxu0 %v2420_v59  ;;  %1681 = vmatprep.mubr.bf16.mxu1 %v2425_v60  ;;  %v2484_v59 = vcombine.low %v81_v48, %v85_v49  ;;  %v2489_v60 = vcombine.high %v87_v54, %v91_v55 }
  0xb4   :  { %2027 = vmatprep.mubr.bf16.mxu0 %v2429_v61  ;;  %v2493_v61 = vcombine.high %v89_v56, %v93_v57 }
  0xba   :  { %1682 = vmatmul.mubr.bf16.gmra.mrb[4].mxu1 %v2424_v2  ;;  %v2488_v2 = vcombine.low %v87_v54, %v91_v55 }
  0xbb   :  { %2028 = vmatmul.mubr.bf16.gmra.mrb[4].mxu0 %v2428_v3  ;;  %1691 = vmatprep.mubr.bf16.mxu1 %v2433_v4  ;;  %v2492_v3 = vcombine.low %v89_v56, %v93_v57  ;;  %v2497_v4 = vcombine.high %v95_v62, %v99_v63 }
  0xbc   :  { %2037 = vmatprep.mubr.bf16.mxu0 %v2437_v5  ;;  %v2501_v5 = vcombine.high %v97_v0, %v101_v1 }
  0xc2   :  { %1692 = vmatmul.mubr.bf16.gmra.mrb[8].mxu1 %v2432_v10  ;;  %v2496_v10 = vcombine.low %v95_v62, %v99_v63 }
  0xc3   :  { %2038 = vmatmul.mubr.bf16.gmra.mrb[8].mxu0 %v2436_v11  ;;  %1701 = vmatprep.mubr.bf16.mxu1 %v2441_v12  ;;  %v2500_v11 = vcombine.low %v97_v0, %v101_v1  ;;  %v2505_v12 = vcombine.high %v103_v6, %v107_v7 }
  0xc4   :  { %2047 = vmatprep.mubr.bf16.mxu0 %v2445_v13  ;;  %v2509_v13 = vcombine.high %v105_v8, %v109_v9 }
  0xca   :  { %1702 = vmatmul.mubr.bf16.gmra.mrb[12].mxu1 %v2440_v18  ;;  %v2504_v18 = vcombine.low %v103_v6, %v107_v7 }
  0xcb   :  { %2048 = vmatmul.mubr.bf16.gmra.mrb[12].mxu0 %v2444_v19  ;;  %1711 = vmatprep.mubr.bf16.mxu1 %v2449_v20  ;;  %v2508_v19 = vcombine.low %v105_v8, %v109_v9  ;;  %v2513_v20 = vcombine.high %v111_v14, %v115_v15 }
  0xcc   :  { %2057 = vmatprep.mubr.bf16.mxu0 %v2453_v21  ;;  %v2517_v21 = vcombine.high %v113_v16, %v117_v17 }
  0xd2   :  { %1712 = vmatmul.mubr.bf16.gmra.mrb[16].mxu1 %v2448_v26  ;;  %v2512_v26 = vcombine.low %v111_v14, %v115_v15 }
  0xd3   :  { %2058 = vmatmul.mubr.bf16.gmra.mrb[16].mxu0 %v2452_v27  ;;  %1721 = vmatprep.mubr.bf16.mxu1 %v2457_v28  ;;  %v2516_v27 = vcombine.low %v113_v16, %v117_v17  ;;  %v2521_v28 = vcombine.high %v119_v22, %v123_v23 }
  0xd4   :  { %2067 = vmatprep.mubr.bf16.mxu0 %v2461_v29  ;;  %v2525_v29 = vcombine.high %v121_v24, %v125_v25 }
  0xda   :  { %1722 = vmatmul.mubr.bf16.gmra.mrb[20].mxu1 %v2456_v34  ;;  %v258_v34 = vsub.s32 0, %v257_v33 }
  0xdb   :  { %2068 = vmatmul.mubr.bf16.gmra.mrb[20].mxu0 %v2460_v35  ;;  %1731 = vmatprep.mubr.bf16.mxu1 %v2465_v36  ;;  %v254_v35 = vld [vmem:[%s4015_s2] sm:$0x3]  ;;  %v262_v36 = vsub.s32 1, %v257_v33 }
  0xdc   :  { %2077 = vmatprep.mubr.bf16.mxu0 %v2469_v37  ;;  %v3869_v37 = vrot.slane %v254_v35, %v258_v34 }
  0xdd   :  { %v3871_v38 = vrot.slane %v254_v35, %v262_v36 }
  0xe2   :  { %1732 = vmatmul.mubr.bf16.gmra.mrb[24].mxu1 %v2464_v42 }
  0xe3   :  { %2078 = vmatmul.mubr.bf16.gmra.mrb[24].mxu0 %v2468_v43  ;;  %1741 = vmatprep.mubr.bf16.mxu1 %v2473_v44 }
  0xe4   :  { %2087 = vmatprep.mubr.bf16.mxu0 %v2477_v45 }
  0xea   :  { %1742 = vmatmul.mubr.bf16.gmra.mrb[28].mxu1 %v2472_v50 }
  0xeb   :  { %2088 = vmatmul.mubr.bf16.gmra.mrb[28].mxu0 %v2476_v51  ;;  %1751 = vmatprep.mubr.bf16.mxu1 %v2481_v52 }
  0xec   :  { %2097 = vmatprep.mubr.bf16.mxu0 %v2485_v53 }
  0xf2   :  { %1752 = vmatmul.mubr.bf16.gmra.mrb[32].mxu1 %v2480_v58 }
  0xf3   :  { %2098 = vmatmul.mubr.bf16.gmra.mrb[32].mxu0 %v2484_v59  ;;  %1761 = vmatprep.mubr.bf16.mxu1 %v2489_v60 }
  0xf4   :  { %2107 = vmatprep.mubr.bf16.mxu0 %v2493_v61 }
  0xfa   :  { %1762 = vmatmul.mubr.bf16.gmra.mrb[36].mxu1 %v2488_v2 }
  0xfb   :  { %2108 = vmatmul.mubr.bf16.gmra.mrb[36].mxu0 %v2492_v3  ;;  %1771 = vmatprep.mubr.bf16.mxu1 %v2497_v4 }
  0xfc   :  { %2117 = vmatprep.mubr.bf16.mxu0 %v2501_v5 }
 0x102   :  { %1772 = vmatmul.mubr.bf16.gmra.mrb[40].mxu1 %v2496_v10 }
 0x103   :  { %2118 = vmatmul.mubr.bf16.gmra.mrb[40].mxu0 %v2500_v11  ;;  %1781 = vmatprep.mubr.bf16.mxu1 %v2505_v12 }
 0x104   :  { %2127 = vmatprep.mubr.bf16.mxu0 %v2509_v13 }
 0x10a   :  { %1782 = vmatmul.mubr.bf16.gmra.mrb[44].mxu1 %v2504_v18 }
 0x10b   :  { %2128 = vmatmul.mubr.bf16.gmra.mrb[44].mxu0 %v2508_v19  ;;  %1791 = vmatprep.mubr.bf16.mxu1 %v2513_v20 }
 0x10c   :  { %2137 = vmatprep.mubr.bf16.mxu0 %v2517_v21 }
 0x112   :  { %1792 = vmatmul.mubr.bf16.gmra.mrb[48].mxu1 %v2512_v26 }
 0x113   :  { %2138 = vmatmul.mubr.bf16.gmra.mrb[48].mxu0 %v2516_v27  ;;  %1801 = vmatprep.mubr.bf16.mxu1 %v2521_v28 }
 0x114   :  { %2147 = vmatprep.mubr.bf16.mxu0 %v2525_v29 }
 0x11a   :  { %1802 = vmatmul.mubr.bf16.gmra.mrb[52].mxu1 %v2520_v30 }
 0x11b   :  { %2148 = vmatmul.mubr.bf16.gmra.mrb[52].mxu0 %v2524_v31 }
 0x185   :  { %v1673_v39 = vpop.f32.mrb[0].mxu1 }
 0x186   :  { %v2019_v40 = vpop.f32.mrb[0].mxu0  ;;  %v2710_v41 = vadd.f32 %v1673_v39, %v3869_v37  ;;  %v1675_v42 = vpop.f32.mrb[1].mxu1 }
 0x187   :  { %v2021_v43 = vpop.f32.mrb[1].mxu0  ;;  %v2712_v44 = vadd.f32 %v1675_v42, %v3871_v38  ;;  %v1677_v45 = vpop.f32.mrb[2].mxu1 }
 0x188   :  { %v2023_v46 = vpop.f32.mrb[2].mxu0  ;;  %v2711_v47 = vadd.f32 %v2710_v41, %v2019_v40  ;;  %v2714_v48 = vadd.f32 %v1677_v45, %v3869_v37  ;;  %v1679_v49 = vpop.f32.mrb[3].mxu1 }
 0x189   :  { %v2025_v50 = vpop.f32.mrb[3].mxu0  ;;  %v2713_v51 = vadd.f32 %v2712_v44, %v2021_v43  ;;  %v2716_v52 = vadd.f32 %v1679_v49, %v3871_v38 }
 0x18a   :  { %v2158_v53 = vmax.f32 %v2711_v47, 0.0  ;;  %v2715_v54 = vadd.f32 %v2714_v48, %v2023_v46 }
 0x18b   :  { %v2159_v55 = vmax.f32 %v2713_v51, 0.0  ;;  %v2717_v56 = vadd.f32 %v2716_v52, %v2025_v50 }
 0x18c   :  { %v2160_v57 = vmax.f32 %v2715_v54, 0.0 }
 0x18d   :  { %v2682_v58 = vpack.c.bf16 %v2159_v55, %v2158_v53  ;;  %v2161_v59 = vmax.f32 %v2717_v56, 0.0  ;;  %v1683_v60 = vpop.f32.mrb[4].mxu1 }
 0x18e   :  { %v2029_v61 = vpop.f32.mrb[4].mxu0  ;;  %v2718_v62 = vadd.f32 %v1683_v60, %v3869_v37  ;;  %v1685_v63 = vpop.f32.mrb[5].mxu1 }
 0x18f   :  { %v2031_v0 = vpop.f32.mrb[5].mxu0  ;;  %2382 = vst [vmem:[%s4016_s3] sm:$0xff] %v2682_v58  ;;  %v2683_v1 = vpack.c.bf16 %v2161_v59, %v2160_v57  ;;  %v2720_v2 = vadd.f32 %v1685_v63, %v3871_v38  ;;  %v1687_v3 = vpop.f32.mrb[6].mxu1 }
 0x190   :  { %v2033_v4 = vpop.f32.mrb[6].mxu0  ;;  %v2719_v5 = vadd.f32 %v2718_v62, %v2029_v61  ;;  %v2722_v6 = vadd.f32 %v1687_v3, %v3869_v37  ;;  %v1689_v7 = vpop.f32.mrb[7].mxu1 }
 0x191   :  { %v2035_v8 = vpop.f32.mrb[7].mxu0  ;;  %2383 = vst [vmem:[%s4016_s3 + $0x8] sm:$0xff] %v2683_v1  ;;  %v2721_v9 = vadd.f32 %v2720_v2, %v2031_v0  ;;  %v2724_v10 = vadd.f32 %v1689_v7, %v3871_v38 }
 0x192   :  { %v2162_v11 = vmax.f32 %v2719_v5, 0.0  ;;  %v2723_v12 = vadd.f32 %v2722_v6, %v2033_v4 }
 0x193   :  { %v2163_v13 = vmax.f32 %v2721_v9, 0.0  ;;  %v2725_v14 = vadd.f32 %v2724_v10, %v2035_v8 }
 0x194   :  { %v2164_v15 = vmax.f32 %v2723_v12, 0.0 }
 0x195   :  { %v2684_v16 = vpack.c.bf16 %v2163_v13, %v2162_v11  ;;  %v2165_v17 = vmax.f32 %v2725_v14, 0.0  ;;  %v1693_v18 = vpop.f32.mrb[8].mxu1 }
 0x196   :  { %v2039_v19 = vpop.f32.mrb[8].mxu0  ;;  %v2726_v20 = vadd.f32 %v1693_v18, %v3869_v37  ;;  %v1695_v21 = vpop.f32.mrb[9].mxu1 }
 0x197   :  { %v2041_v22 = vpop.f32.mrb[9].mxu0  ;;  %2384 = vst [vmem:[%s4016_s3 + $0x10] sm:$0xff] %v2684_v16  ;;  %v2685_v23 = vpack.c.bf16 %v2165_v17, %v2164_v15  ;;  %v2728_v24 = vadd.f32 %v1695_v21, %v3871_v38  ;;  %v1697_v25 = vpop.f32.mrb[10].mxu1 }
 0x198   :  { %v2043_v26 = vpop.f32.mrb[10].mxu0  ;;  %v2727_v27 = vadd.f32 %v2726_v20, %v2039_v19  ;;  %v2730_v28 = vadd.f32 %v1697_v25, %v3869_v37  ;;  %v1699_v29 = vpop.f32.mrb[11].mxu1 }
 0x199   :  { %v2045_v30 = vpop.f32.mrb[11].mxu0  ;;  %2385 = vst [vmem:[%s4016_s3 + $0x18] sm:$0xff] %v2685_v23  ;;  %v2729_v31 = vadd.f32 %v2728_v24, %v2041_v22  ;;  %v2732_v32 = vadd.f32 %v1699_v29, %v3871_v38 }
 0x19a   :  { %v2166_v33 = vmax.f32 %v2727_v27, 0.0  ;;  %v2731_v34 = vadd.f32 %v2730_v28, %v2043_v26 }
 0x19b   :  { %v2167_v35 = vmax.f32 %v2729_v31, 0.0  ;;  %v2733_v36 = vadd.f32 %v2732_v32, %v2045_v30 }
 0x19c   :  { %v2168_v39 = vmax.f32 %v2731_v34, 0.0 }
 0x19d   :  { %v2686_v40 = vpack.c.bf16 %v2167_v35, %v2166_v33  ;;  %v2169_v41 = vmax.f32 %v2733_v36, 0.0  ;;  %v1703_v42 = vpop.f32.mrb[12].mxu1 }
 0x19e   :  { %v2049_v43 = vpop.f32.mrb[12].mxu0  ;;  %v2734_v44 = vadd.f32 %v1703_v42, %v3869_v37  ;;  %v1705_v45 = vpop.f32.mrb[13].mxu1 }
 0x19f   :  { %v2051_v46 = vpop.f32.mrb[13].mxu0  ;;  %2386 = vst [vmem:[%s4016_s3 + $0x20] sm:$0xff] %v2686_v40  ;;  %v2687_v47 = vpack.c.bf16 %v2169_v41, %v2168_v39  ;;  %v2736_v48 = vadd.f32 %v1705_v45, %v3871_v38  ;;  %v1707_v49 = vpop.f32.mrb[14].mxu1 }
 0x1a0   :  { %v2053_v50 = vpop.f32.mrb[14].mxu0  ;;  %v2735_v51 = vadd.f32 %v2734_v44, %v2049_v43  ;;  %v2738_v52 = vadd.f32 %v1707_v49, %v3869_v37  ;;  %v1709_v53 = vpop.f32.mrb[15].mxu1 }
 0x1a1   :  { %v2055_v54 = vpop.f32.mrb[15].mxu0  ;;  %2387 = vst [vmem:[%s4016_s3 + $0x28] sm:$0xff] %v2687_v47  ;;  %v2737_v55 = vadd.f32 %v2736_v48, %v2051_v46  ;;  %v2740_v56 = vadd.f32 %v1709_v53, %v3871_v38 }
 0x1a2   :  { %v2170_v57 = vmax.f32 %v2735_v51, 0.0  ;;  %v2739_v58 = vadd.f32 %v2738_v52, %v2053_v50 }
 0x1a3   :  { %v2171_v59 = vmax.f32 %v2737_v55, 0.0  ;;  %v2741_v60 = vadd.f32 %v2740_v56, %v2055_v54 }
 0x1a4   :  { %v2172_v61 = vmax.f32 %v2739_v58, 0.0 }
 0x1a5   :  { %v2688_v62 = vpack.c.bf16 %v2171_v59, %v2170_v57  ;;  %v2173_v63 = vmax.f32 %v2741_v60, 0.0  ;;  %v1713_v0 = vpop.f32.mrb[16].mxu1 }
 0x1a6   :  { %v2059_v1 = vpop.f32.mrb[16].mxu0  ;;  %v2742_v2 = vadd.f32 %v1713_v0, %v3869_v37  ;;  %v1715_v3 = vpop.f32.mrb[17].mxu1 }
 0x1a7   :  { %v2061_v4 = vpop.f32.mrb[17].mxu0  ;;  %2388 = vst [vmem:[%s4016_s3 + $0x30] sm:$0xff] %v2688_v62  ;;  %v2689_v5 = vpack.c.bf16 %v2173_v63, %v2172_v61  ;;  %v2744_v6 = vadd.f32 %v1715_v3, %v3871_v38  ;;  %v1717_v7 = vpop.f32.mrb[18].mxu1 }
 0x1a8   :  { %v2063_v8 = vpop.f32.mrb[18].mxu0  ;;  %v2743_v9 = vadd.f32 %v2742_v2, %v2059_v1  ;;  %v2746_v10 = vadd.f32 %v1717_v7, %v3869_v37  ;;  %v1719_v11 = vpop.f32.mrb[19].mxu1 }
 0x1a9   :  { %v2065_v12 = vpop.f32.mrb[19].mxu0  ;;  %2389 = vst [vmem:[%s4016_s3 + $0x38] sm:$0xff] %v2689_v5  ;;  %v2745_v13 = vadd.f32 %v2744_v6, %v2061_v4  ;;  %v2748_v14 = vadd.f32 %v1719_v11, %v3871_v38 }
 0x1aa   :  { %v2174_v15 = vmax.f32 %v2743_v9, 0.0  ;;  %v2747_v16 = vadd.f32 %v2746_v10, %v2063_v8 }
 0x1ab   :  { %v2175_v17 = vmax.f32 %v2745_v13, 0.0  ;;  %v2749_v18 = vadd.f32 %v2748_v14, %v2065_v12 }
 0x1ac   :  { %v2176_v19 = vmax.f32 %v2747_v16, 0.0 }
 0x1ad   :  { %v2690_v20 = vpack.c.bf16 %v2175_v17, %v2174_v15  ;;  %v2177_v21 = vmax.f32 %v2749_v18, 0.0  ;;  %v1723_v22 = vpop.f32.mrb[20].mxu1 }
 0x1ae   :  { %v2069_v23 = vpop.f32.mrb[20].mxu0  ;;  %v2750_v24 = vadd.f32 %v1723_v22, %v3869_v37  ;;  %v1725_v25 = vpop.f32.mrb[21].mxu1 }
 0x1af   :  { %v2071_v26 = vpop.f32.mrb[21].mxu0  ;;  %2390 = vst [vmem:[%s4016_s3 + $0x40] sm:$0xff] %v2690_v20  ;;  %v2691_v27 = vpack.c.bf16 %v2177_v21, %v2176_v19  ;;  %v2752_v28 = vadd.f32 %v1725_v25, %v3871_v38  ;;  %v1727_v29 = vpop.f32.mrb[22].mxu1 }
 0x1b0   :  { %v2073_v30 = vpop.f32.mrb[22].mxu0  ;;  %v2751_v31 = vadd.f32 %v2750_v24, %v2069_v23  ;;  %v2754_v32 = vadd.f32 %v1727_v29, %v3869_v37  ;;  %v1729_v33 = vpop.f32.mrb[23].mxu1 }
 0x1b1   :  { %v2075_v34 = vpop.f32.mrb[23].mxu0  ;;  %2391 = vst [vmem:[%s4016_s3 + $0x48] sm:$0xff] %v2691_v27  ;;  %v2753_v35 = vadd.f32 %v2752_v28, %v2071_v26  ;;  %v2756_v36 = vadd.f32 %v1729_v33, %v3871_v38 }
 0x1b2   :  { %v2178_v39 = vmax.f32 %v2751_v31, 0.0  ;;  %v2755_v40 = vadd.f32 %v2754_v32, %v2073_v30 }
 0x1b3   :  { %v2179_v41 = vmax.f32 %v2753_v35, 0.0  ;;  %v2757_v42 = vadd.f32 %v2756_v36, %v2075_v34 }
 0x1b4   :  { %v2180_v43 = vmax.f32 %v2755_v40, 0.0 }
 0x1b5   :  { %v2692_v44 = vpack.c.bf16 %v2179_v41, %v2178_v39  ;;  %v2181_v45 = vmax.f32 %v2757_v42, 0.0  ;;  %v1733_v46 = vpop.f32.mrb[24].mxu1 }
 0x1b6   :  { %v2079_v47 = vpop.f32.mrb[24].mxu0  ;;  %v2758_v48 = vadd.f32 %v1733_v46, %v3869_v37  ;;  %v1735_v49 = vpop.f32.mrb[25].mxu1 }
 0x1b7   :  { %v2081_v50 = vpop.f32.mrb[25].mxu0  ;;  %2392 = vst [vmem:[%s4016_s3 + $0x50] sm:$0xff] %v2692_v44  ;;  %v2693_v51 = vpack.c.bf16 %v2181_v45, %v2180_v43  ;;  %v2760_v52 = vadd.f32 %v1735_v49, %v3871_v38  ;;  %v1737_v53 = vpop.f32.mrb[26].mxu1 }
 0x1b8   :  { %v2083_v54 = vpop.f32.mrb[26].mxu0  ;;  %v2759_v55 = vadd.f32 %v2758_v48, %v2079_v47  ;;  %v2762_v56 = vadd.f32 %v1737_v53, %v3869_v37  ;;  %v1739_v57 = vpop.f32.mrb[27].mxu1 }
 0x1b9   :  { %v2085_v58 = vpop.f32.mrb[27].mxu0  ;;  %2393 = vst [vmem:[%s4016_s3 + $0x58] sm:$0xff] %v2693_v51  ;;  %v2761_v59 = vadd.f32 %v2760_v52, %v2081_v50  ;;  %v2764_v60 = vadd.f32 %v1739_v57, %v3871_v38 }
 0x1ba   :  { %v2182_v61 = vmax.f32 %v2759_v55, 0.0  ;;  %v2763_v62 = vadd.f32 %v2762_v56, %v2083_v54 }
 0x1bb   :  { %v2183_v63 = vmax.f32 %v2761_v59, 0.0  ;;  %v2765_v0 = vadd.f32 %v2764_v60, %v2085_v58 }
 0x1bc   :  { %v2184_v1 = vmax.f32 %v2763_v62, 0.0 }
 0x1bd   :  { %v2694_v2 = vpack.c.bf16 %v2183_v63, %v2182_v61  ;;  %v2185_v3 = vmax.f32 %v2765_v0, 0.0  ;;  %v1743_v4 = vpop.f32.mrb[28].mxu1 }
 0x1be   :  { %v2089_v5 = vpop.f32.mrb[28].mxu0  ;;  %v2766_v6 = vadd.f32 %v1743_v4, %v3869_v37  ;;  %v1745_v7 = vpop.f32.mrb[29].mxu1 }
 0x1bf   :  { %v2091_v8 = vpop.f32.mrb[29].mxu0  ;;  %2394 = vst [vmem:[%s4016_s3 + $0x60] sm:$0xff] %v2694_v2  ;;  %v2695_v9 = vpack.c.bf16 %v2185_v3, %v2184_v1  ;;  %v2768_v10 = vadd.f32 %v1745_v7, %v3871_v38  ;;  %v1747_v11 = vpop.f32.mrb[30].mxu1 }
 0x1c0   :  { %v2093_v12 = vpop.f32.mrb[30].mxu0  ;;  %v2767_v13 = vadd.f32 %v2766_v6, %v2089_v5  ;;  %v2770_v14 = vadd.f32 %v1747_v11, %v3869_v37  ;;  %v1749_v15 = vpop.f32.mrb[31].mxu1 }
 0x1c1   :  { %v2095_v16 = vpop.f32.mrb[31].mxu0  ;;  %2395 = vst [vmem:[%s4016_s3 + $0x68] sm:$0xff] %v2695_v9  ;;  %v2769_v17 = vadd.f32 %v2768_v10, %v2091_v8  ;;  %v2772_v18 = vadd.f32 %v1749_v15, %v3871_v38 }
 0x1c2   :  { %v2186_v19 = vmax.f32 %v2767_v13, 0.0  ;;  %v2771_v20 = vadd.f32 %v2770_v14, %v2093_v12 }
 0x1c3   :  { %v2187_v21 = vmax.f32 %v2769_v17, 0.0  ;;  %v2773_v22 = vadd.f32 %v2772_v18, %v2095_v16 }
 0x1c4   :  { %v2188_v23 = vmax.f32 %v2771_v20, 0.0 }
 0x1c5   :  { %v2696_v24 = vpack.c.bf16 %v2187_v21, %v2186_v19  ;;  %v2189_v25 = vmax.f32 %v2773_v22, 0.0  ;;  %v1753_v26 = vpop.f32.mrb[32].mxu1 }
 0x1c6   :  { %v2099_v27 = vpop.f32.mrb[32].mxu0  ;;  %v2774_v28 = vadd.f32 %v1753_v26, %v3869_v37  ;;  %v1755_v29 = vpop.f32.mrb[33].mxu1 }
 0x1c7   :  { %v2101_v30 = vpop.f32.mrb[33].mxu0  ;;  %2396 = vst [vmem:[%s4016_s3 + $0x70] sm:$0xff] %v2696_v24  ;;  %v2697_v31 = vpack.c.bf16 %v2189_v25, %v2188_v23  ;;  %v2776_v32 = vadd.f32 %v1755_v29, %v3871_v38  ;;  %v1757_v33 = vpop.f32.mrb[34].mxu1 }
 0x1c8   :  { %v2103_v34 = vpop.f32.mrb[34].mxu0  ;;  %v2775_v35 = vadd.f32 %v2774_v28, %v2099_v27  ;;  %v2778_v36 = vadd.f32 %v1757_v33, %v3869_v37  ;;  %v1759_v39 = vpop.f32.mrb[35].mxu1 }
 0x1c9   :  { %v2105_v40 = vpop.f32.mrb[35].mxu0  ;;  %2397 = vst [vmem:[%s4016_s3 + $0x78] sm:$0xff] %v2697_v31  ;;  %v2777_v41 = vadd.f32 %v2776_v32, %v2101_v30  ;;  %v2780_v42 = vadd.f32 %v1759_v39, %v3871_v38 }
 0x1ca   :  { %v2190_v43 = vmax.f32 %v2775_v35, 0.0  ;;  %v2779_v44 = vadd.f32 %v2778_v36, %v2103_v34 }
 0x1cb   :  { %v2191_v45 = vmax.f32 %v2777_v41, 0.0  ;;  %v2781_v46 = vadd.f32 %v2780_v42, %v2105_v40 }
 0x1cc   :  { %v2192_v47 = vmax.f32 %v2779_v44, 0.0 }
 0x1cd   :  { %v2698_v48 = vpack.c.bf16 %v2191_v45, %v2190_v43  ;;  %v2193_v49 = vmax.f32 %v2781_v46, 0.0  ;;  %v1763_v50 = vpop.f32.mrb[36].mxu1 }
 0x1ce   :  { %v2109_v51 = vpop.f32.mrb[36].mxu0  ;;  %v2782_v52 = vadd.f32 %v1763_v50, %v3869_v37  ;;  %v1765_v53 = vpop.f32.mrb[37].mxu1 }
 0x1cf   :  { %v2111_v54 = vpop.f32.mrb[37].mxu0  ;;  %2398 = vst [vmem:[%s4016_s3 + $0x80] sm:$0xff] %v2698_v48  ;;  %v2699_v55 = vpack.c.bf16 %v2193_v49, %v2192_v47  ;;  %v2784_v56 = vadd.f32 %v1765_v53, %v3871_v38  ;;  %v1767_v57 = vpop.f32.mrb[38].mxu1 }
 0x1d0   :  { %v2113_v58 = vpop.f32.mrb[38].mxu0  ;;  %v2783_v59 = vadd.f32 %v2782_v52, %v2109_v51  ;;  %v2786_v60 = vadd.f32 %v1767_v57, %v3869_v37  ;;  %v1769_v61 = vpop.f32.mrb[39].mxu1 }
 0x1d1   :  { %v2115_v62 = vpop.f32.mrb[39].mxu0  ;;  %2399 = vst [vmem:[%s4016_s3 + $0x88] sm:$0xff] %v2699_v55  ;;  %v2785_v63 = vadd.f32 %v2784_v56, %v2111_v54  ;;  %v2788_v0 = vadd.f32 %v1769_v61, %v3871_v38 }
 0x1d2   :  { %v2194_v1 = vmax.f32 %v2783_v59, 0.0  ;;  %v2787_v2 = vadd.f32 %v2786_v60, %v2113_v58 }
 0x1d3   :  { %v2195_v3 = vmax.f32 %v2785_v63, 0.0  ;;  %v2789_v4 = vadd.f32 %v2788_v0, %v2115_v62 }
 0x1d4   :  { %v2196_v5 = vmax.f32 %v2787_v2, 0.0 }
 0x1d5   :  { %v2700_v6 = vpack.c.bf16 %v2195_v3, %v2194_v1  ;;  %v2197_v7 = vmax.f32 %v2789_v4, 0.0  ;;  %v1773_v8 = vpop.f32.mrb[40].mxu1 }
 0x1d6   :  { %v2119_v9 = vpop.f32.mrb[40].mxu0  ;;  %v2790_v10 = vadd.f32 %v1773_v8, %v3869_v37  ;;  %v1775_v11 = vpop.f32.mrb[41].mxu1 }
 0x1d7   :  { %v2121_v12 = vpop.f32.mrb[41].mxu0  ;;  %2400 = vst [vmem:[%s4016_s3 + $0x90] sm:$0xff] %v2700_v6  ;;  %v2701_v13 = vpack.c.bf16 %v2197_v7, %v2196_v5  ;;  %v2792_v14 = vadd.f32 %v1775_v11, %v3871_v38  ;;  %v1777_v15 = vpop.f32.mrb[42].mxu1 }
 0x1d8   :  { %v2123_v16 = vpop.f32.mrb[42].mxu0  ;;  %v2791_v17 = vadd.f32 %v2790_v10, %v2119_v9  ;;  %v2794_v18 = vadd.f32 %v1777_v15, %v3869_v37  ;;  %v1779_v19 = vpop.f32.mrb[43].mxu1 }
 0x1d9   :  { %v2125_v20 = vpop.f32.mrb[43].mxu0  ;;  %2401 = vst [vmem:[%s4016_s3 + $0x98] sm:$0xff] %v2701_v13  ;;  %v2793_v21 = vadd.f32 %v2792_v14, %v2121_v12  ;;  %v2796_v22 = vadd.f32 %v1779_v19, %v3871_v38 }
 0x1da   :  { %v2198_v23 = vmax.f32 %v2791_v17, 0.0  ;;  %v2795_v24 = vadd.f32 %v2794_v18, %v2123_v16 }
 0x1db   :  { %v2199_v25 = vmax.f32 %v2793_v21, 0.0  ;;  %v2797_v26 = vadd.f32 %v2796_v22, %v2125_v20 }
 0x1dc   :  { %v2200_v27 = vmax.f32 %v2795_v24, 0.0 }
 0x1dd   :  { %v2702_v28 = vpack.c.bf16 %v2199_v25, %v2198_v23  ;;  %v2201_v29 = vmax.f32 %v2797_v26, 0.0  ;;  %v1783_v30 = vpop.f32.mrb[44].mxu1 }
 0x1de   :  { %v2129_v31 = vpop.f32.mrb[44].mxu0  ;;  %v2798_v32 = vadd.f32 %v1783_v30, %v3869_v37  ;;  %v1785_v33 = vpop.f32.mrb[45].mxu1 }
 0x1df   :  { %v2131_v34 = vpop.f32.mrb[45].mxu0  ;;  %2402 = vst [vmem:[%s4016_s3 + $0xa0] sm:$0xff] %v2702_v28  ;;  %v2703_v35 = vpack.c.bf16 %v2201_v29, %v2200_v27  ;;  %v2800_v36 = vadd.f32 %v1785_v33, %v3871_v38  ;;  %v1787_v39 = vpop.f32.mrb[46].mxu1 }
 0x1e0   :  { %v2133_v40 = vpop.f32.mrb[46].mxu0  ;;  %v2799_v41 = vadd.f32 %v2798_v32, %v2129_v31  ;;  %v2802_v42 = vadd.f32 %v1787_v39, %v3869_v37  ;;  %v1789_v43 = vpop.f32.mrb[47].mxu1 }
 0x1e1   :  { %v2135_v44 = vpop.f32.mrb[47].mxu0  ;;  %2403 = vst [vmem:[%s4016_s3 + $0xa8] sm:$0xff] %v2703_v35  ;;  %v2801_v45 = vadd.f32 %v2800_v36, %v2131_v34  ;;  %v2804_v46 = vadd.f32 %v1789_v43, %v3871_v38 }
 0x1e2   :  { %v2202_v47 = vmax.f32 %v2799_v41, 0.0  ;;  %v2803_v48 = vadd.f32 %v2802_v42, %v2133_v40 }
 0x1e3   :  { %v2203_v49 = vmax.f32 %v2801_v45, 0.0  ;;  %v2805_v50 = vadd.f32 %v2804_v46, %v2135_v44 }
 0x1e4   :  { %v2204_v51 = vmax.f32 %v2803_v48, 0.0 }
 0x1e5   :  { %v2704_v52 = vpack.c.bf16 %v2203_v49, %v2202_v47  ;;  %v2205_v53 = vmax.f32 %v2805_v50, 0.0  ;;  %v1793_v54 = vpop.f32.mrb[48].mxu1 }
 0x1e6   :  { %v2139_v55 = vpop.f32.mrb[48].mxu0  ;;  %v2806_v56 = vadd.f32 %v1793_v54, %v3869_v37  ;;  %v1795_v57 = vpop.f32.mrb[49].mxu1 }
 0x1e7   :  { %v2141_v58 = vpop.f32.mrb[49].mxu0  ;;  %2404 = vst [vmem:[%s4016_s3 + $0xb0] sm:$0xff] %v2704_v52  ;;  %v2705_v59 = vpack.c.bf16 %v2205_v53, %v2204_v51  ;;  %v2808_v60 = vadd.f32 %v1795_v57, %v3871_v38  ;;  %v1797_v61 = vpop.f32.mrb[50].mxu1 }
 0x1e8   :  { %v2143_v62 = vpop.f32.mrb[50].mxu0  ;;  %v2807_v63 = vadd.f32 %v2806_v56, %v2139_v55  ;;  %v2810_v0 = vadd.f32 %v1797_v61, %v3869_v37  ;;  %v1799_v1 = vpop.f32.mrb[51].mxu1 }
 0x1e9   :  { %v2145_v2 = vpop.f32.mrb[51].mxu0  ;;  %2405 = vst [vmem:[%s4016_s3 + $0xb8] sm:$0xff] %v2705_v59  ;;  %v2809_v3 = vadd.f32 %v2808_v60, %v2141_v58  ;;  %v2812_v4 = vadd.f32 %v1799_v1, %v3871_v38 }
 0x1ea   :  { %v2206_v5 = vmax.f32 %v2807_v63, 0.0  ;;  %v2811_v6 = vadd.f32 %v2810_v0, %v2143_v62 }
 0x1eb   :  { %v2207_v7 = vmax.f32 %v2809_v3, 0.0  ;;  %v2813_v8 = vadd.f32 %v2812_v4, %v2145_v2 }
 0x1ec   :  { %v2208_v9 = vmax.f32 %v2811_v6, 0.0 }
 0x1ed   :  { %v2706_v10 = vpack.c.bf16 %v2207_v7, %v2206_v5  ;;  %v2209_v11 = vmax.f32 %v2813_v8, 0.0  ;;  %v1803_v12 = vpop.f32.mrb[52].mxu1 }
 0x1ee   :  { %v2149_v13 = vpop.f32.mrb[52].mxu0  ;;  %v2814_v14 = vadd.f32 %v1803_v12, %v3869_v37  ;;  %v1805_v15 = vpop.f32.mrb[53].mxu1 }
 0x1ef   :  { %v2151_v16 = vpop.f32.mrb[53].mxu0  ;;  %2406 = vst [vmem:[%s4016_s3 + $0xc0] sm:$0xff] %v2706_v10  ;;  %v2707_v17 = vpack.c.bf16 %v2209_v11, %v2208_v9  ;;  %v2816_v18 = vadd.f32 %v1805_v15, %v3871_v38  ;;  %v1807_v19 = vpop.f32.mrb[54].mxu1 }
 0x1f0   :  { %v2153_v20 = vpop.f32.mrb[54].mxu0  ;;  %v2815_v21 = vadd.f32 %v2814_v14, %v2149_v13  ;;  %v2818_v22 = vadd.f32 %v1807_v19, %v3869_v37  ;;  %v1809_v23 = vpop.f32.mrb[55].mxu1 }
 0x1f1   :  { %v2155_v24 = vpop.f32.mrb[55].mxu0  ;;  %2407 = vst [vmem:[%s4016_s3 + $0xc8] sm:$0xff] %v2707_v17  ;;  %v2817_v25 = vadd.f32 %v2816_v18, %v2151_v16  ;;  %v2820_v26 = vadd.f32 %v1809_v23, %v3871_v38 }
 0x1f2   :  { %v2210_v27 = vmax.f32 %v2815_v21, 0.0  ;;  %v2819_v28 = vadd.f32 %v2818_v22, %v2153_v20 }
 0x1f3   :  { %v2211_v29 = vmax.f32 %v2817_v25, 0.0  ;;  %v2821_v30 = vadd.f32 %v2820_v26, %v2155_v24 }
 0x1f4   :  { %v2212_v31 = vmax.f32 %v2819_v28, 0.0 }
 0x1f5   :  { %v2708_v32 = vpack.c.bf16 %v2211_v29, %v2210_v27  ;;  %v2213_v33 = vmax.f32 %v2821_v30, 0.0 }
 0x1f7   :  { %2408 = vst [vmem:[%s4016_s3 + $0xd0] sm:$0xff] %v2708_v32  ;;  %v2709_v37 = vpack.c.bf16 %v2213_v33, %v2212_v31 }
 0x1f9   :  { %2409 = vst [vmem:[%s4016_s3 + $0xd8] sm:$0xff] %v2709_v37 }

// kernel: decoder_forward.11
= control target key start
LH: loop header
LB: loop body
LE: loop exit
PB: predicated region body
PF: predicated region fallthrough
CT: control target
= control target key end

     0   :  { %s2183_s12 = smov 0   ;;  %s2185_s13 = smov 0   ;;  %s2440_s0 = inlined_call_operand.vmem [shape: bf16[1024,512], index: 0, kind: input, shape index: {}]   ;;  %s2441_s1 = inlined_call_operand.vmem [shape: bf16[512,128], index: 1, kind: input, shape index: {}]   ;;  %s2442_s2 = inlined_call_operand.vmem [shape: f32[1,128], index: 2, kind: input, shape index: {}]   ;;  %s2443_s3 = inlined_call_operand.vmem [shape: bf16[1024,128], index: 3, kind: output, shape index: {}]  }
   0x1   :  { %s2187_s14 = smov 0  }
   0x2 LB: > { %s25_s15 = sadd.s32 1, %s2157_s13  ;;  %p1498_p0 = scmp.ge.s32.totalorder %s2161_s14, 1  ;;  %s2161_s14 = sphi %s2187_s14, %s13_s14   ;;  %s2157_s13 = sphi %s2185_s13, %s2445_s13   ;;  %s2153_s12 = sphi %s2183_s12, %s2444_s12  }
   0x3   : > { %p27_p1 = scmp.ge.s32.totalorder %s25_s15, 4  ;;  %p170_p2 = scmp.lt.s32.totalorder %s2161_s14, 5 }
   0x5   : > { %s2447_s15 = smov (%p27_p1, %s25_s15), 0  ;;  %p171_p3 = pnand %p1498_p0, %p170_p2 }
   0x6   : > { %v2011_v0 = vld [vmem:[%s2441_s1 + $0x40] sm:$0xff] (!%p171_p3)   ;;  %v2015_v4 = vld [vmem:[%s2441_s1 + $0x48] sm:$0xff] (!%p171_p3)   ;;  %v2019_v8 = vld [vmem:[%s2441_s1 + $0x50] sm:$0xff] (!%p171_p3)   ;;  %s1499_s25 = sshll.u32 (!%p171_p3), %s2153_s12, 5 }
   0x7   : > { %174 = sbr.rel (%p171_p3) target bundleno = 386 (0x182), region = 32  ;;  %v2012_v1 = vld [vmem:[%s2441_s1 + $0xc0] sm:$0xff] (!%p171_p3)   ;;  %1763 = vmatprep.subr.bf16.mxu0 (!%p171_p3), %v2011_v0  ;;  %v2016_v5 = vld [vmem:[%s2441_s1 + $0xc8] sm:$0xff] (!%p171_p3)   ;;  %v2020_v9 = vld [vmem:[%s2441_s1 + $0xd0] sm:$0xff] (!%p171_p3)   ;;  %p206_p4 = scmp.lt.s32.totalorder (!%p171_p3), %s1499_s25, 127 }
   0x8   : > { %v2013_v2 = vld [vmem:[%s2441_s1] sm:$0xff] (!%p171_p3)   ;;  %1875 = vmatprep.subr.bf16.mxu1 (!%p171_p3), %v2012_v1  ;;  %v2017_v6 = vld [vmem:[%s2441_s1 + $0x8] sm:$0xff] (!%p171_p3)   ;;  %v2021_v10 = vld [vmem:[%s2441_s1 + $0x10] sm:$0xff] (!%p171_p3)  }
   0x9   : > { %v2014_v3 = vld [vmem:[%s2441_s1 + $0x80] sm:$0xff] (!%p171_p3)   ;;  %1764 = vmatpush3.bf16.msra.mxu0 (!%p171_p3), %v2013_v2  ;;  %v2018_v7 = vld [vmem:[%s2441_s1 + $0x88] sm:$0xff] (!%p171_p3)   ;;  %v2022_v11 = vld [vmem:[%s2441_s1 + $0x90] sm:$0xff] (!%p171_p3)  }
   0xa   : > { %1876 = vmatpush3.bf16.msra.mxu1 (!%p171_p3), %v2014_v3  ;;  %1765 = vmatprep.subr.bf16.mxu0 (!%p171_p3), %v2015_v4  ;;  %v2023_v12 = vld [vmem:[%s2441_s1 + $0x58] sm:$0xff] (!%p171_p3)   ;;  %v2027_v16 = vld [vmem:[%s2441_s1 + $0x60] sm:$0xff] (!%p171_p3)   ;;  %v2031_v20 = vld [vmem:[%s2441_s1 + $0x68] sm:$0xff] (!%p171_p3)  }
   0xb   : > { %1877 = vmatprep.subr.bf16.mxu1 (!%p171_p3), %v2016_v5  ;;  %v2024_v13 = vld [vmem:[%s2441_s1 + $0xd8] sm:$0xff] (!%p171_p3)   ;;  %v2028_v17 = vld [vmem:[%s2441_s1 + $0xe0] sm:$0xff] (!%p171_p3)   ;;  %v2032_v21 = vld [vmem:[%s2441_s1 + $0xe8] sm:$0xff] (!%p171_p3)  }
   0xc   : > { %v2025_v14 = vld [vmem:[%s2441_s1 + $0x18] sm:$0xff] (!%p171_p3)   ;;  %v2029_v18 = vld [vmem:[%s2441_s1 + $0x20] sm:$0xff] (!%p171_p3)   ;;  %v2033_v22 = vld [vmem:[%s2441_s1 + $0x28] sm:$0xff] (!%p171_p3)  }
   0xd   : > { %1766 = vmatpush3.bf16.msra.mxu0 (!%p171_p3), %v2017_v6  ;;  %v2026_v15 = vld [vmem:[%s2441_s1 + $0x98] sm:$0xff] (!%p171_p3)   ;;  %v2030_v19 = vld [vmem:[%s2441_s1 + $0xa0] sm:$0xff] (!%p171_p3)   ;;  %v2034_v23 = vld [vmem:[%s2441_s1 + $0xa8] sm:$0xff] (!%p171_p3)  }
   0xe   : > { %1878 = vmatpush3.bf16.msra.mxu1 %v2018_v7  ;;  %1767 = vmatprep.subr.bf16.mxu0 %v2019_v8  ;;  %s2449_s25 = smov (!%p206_p4, %s1499_s25), 127  ;;  %v2035_v24 = vld [vmem:[%s2441_s1 + $0x70] sm:$0xff]   ;;  %v2039_v28 = vld [vmem:[%s2441_s1 + $0x78] sm:$0xff]  }
   0xf   : > { %1879 = vmatprep.subr.bf16.mxu1 %v2020_v9  ;;  %v2036_v25 = vld [vmem:[%s2441_s1 + $0xf0] sm:$0xff]   ;;  %s1635_s24 = sshll.u32 %s2449_s25, 4  ;;  %v2040_v29 = vld [vmem:[%s2441_s1 + $0xf8] sm:$0xff]   ;;  %s1503_s17 = sshll.u32 %s2449_s25, 2 }
  0x10   : > { %v2037_v26 = vld [vmem:[%s2441_s1 + $0x30] sm:$0xff]   ;;  %s2300_s12 = scalar_lea.vmem %s2440_s0, %s1635_s24  ;;  %v2041_v30 = vld [vmem:[%s2441_s1 + $0x38] sm:$0xff]   ;;  %s2383_s20 = scalar_lea.vmem %s2443_s3, %s1503_s17 }
  0x11   : > { %1768 = vmatpush3.bf16.msra.mxu0 %v2021_v10  ;;  %v2038_v27 = vld [vmem:[%s2441_s1 + $0xb0] sm:$0xff]   ;;  %v2042_v31 = vld [vmem:[%s2441_s1 + $0xb8] sm:$0xff]  }
  0x12   : > { %1880 = vmatpush3.bf16.msra.mxu1 %v2022_v11  ;;  %1769 = vmatprep.subr.bf16.mxu0 %v2023_v12  ;;  %v2043_v32 = vld [vmem:[%s2300_s12] ss:$16 sps:$4 sm:$0xff]   ;;  %v2045_v33 = vld [vmem:[%s2300_s12 + $0x4] ss:$16 sps:$4 sm:$0xff]   ;;  %v2046_v34 = vld [vmem:[%s2300_s12 + $0x8] ss:$16 sps:$4 sm:$0xff]  }
  0x13   : > { %1881 = vmatprep.subr.bf16.mxu1 %v2024_v13  ;;  %v2048_v35 = vld [vmem:[%s2300_s12 + $0xc] ss:$16 sps:$4 sm:$0xff]   ;;  %908 = vmatprep.mubr.bf16.mxu0 %v2045_v33  ;;  %v2049_v36 = vld [vmem:[%s2300_s12 + $0x24] ss:$16 sps:$4 sm:$0xff]   ;;  %v2053_v38 = vld [vmem:[%s2300_s12 + $0x20] ss:$16 sps:$4 sm:$0xff]  }
  0x14   : > { %1069 = vmatprep.mubr.bf16.mxu1 %v2048_v35  ;;  %v2051_v37 = vld [vmem:[%s2300_s12 + $0x2c] ss:$16 sps:$4 sm:$0xff]   ;;  %v2054_v39 = vld [vmem:[%s2300_s12 + $0x28] ss:$16 sps:$4 sm:$0xff]   ;;  %v2055_v40 = vld [vmem:[%s2300_s12 + $0x44] ss:$16 sps:$4 sm:$0xff]  }
  0x15   : > { %1770 = vmatpush3.bf16.msra.mxu0 %v2025_v14  ;;  %v2057_v41 = vld [vmem:[%s2300_s12 + $0x4c] ss:$16 sps:$4 sm:$0xff]   ;;  %v2059_v42 = vld [vmem:[%s2300_s12 + $0x40] ss:$16 sps:$4 sm:$0xff]   ;;  %v2060_v43 = vld [vmem:[%s2300_s12 + $0x48] ss:$16 sps:$4 sm:$0xff]  }
  0x16   : > { %1882 = vmatpush3.bf16.msra.mxu1 %v2026_v15  ;;  %1771 = vmatprep.subr.bf16.mxu0 %v2027_v16  ;;  %v2061_v44 = vld [vmem:[%s2300_s12 + $0x64] ss:$16 sps:$4 sm:$0xff]   ;;  %v2063_v45 = vld [vmem:[%s2300_s12 + $0x6c] ss:$16 sps:$4 sm:$0xff]   ;;  %v2065_v46 = vld [vmem:[%s2300_s12 + $0x60] ss:$16 sps:$4 sm:$0xff]  }
  0x17   : > { %1883 = vmatprep.subr.bf16.mxu1 %v2028_v17  ;;  %v2066_v47 = vld [vmem:[%s2300_s12 + $0x68] ss:$16 sps:$4 sm:$0xff]   ;;  %v2067_v48 = vld [vmem:[%s2300_s12 + $0x84] ss:$16 sps:$4 sm:$0xff]   ;;  %v2069_v49 = vld [vmem:[%s2300_s12 + $0x8c] ss:$16 sps:$4 sm:$0xff]  }
  0x18   : > { %v2071_v50 = vld [vmem:[%s2300_s12 + $0x80] ss:$16 sps:$4 sm:$0xff]   ;;  %v2072_v51 = vld [vmem:[%s2300_s12 + $0x88] ss:$16 sps:$4 sm:$0xff]   ;;  %v2073_v52 = vld [vmem:[%s2300_s12 + $0xa4] ss:$16 sps:$4 sm:$0xff]  }
  0x19   : > { %1772 = vmatpush3.bf16.msra.mxu0 %v2029_v18  ;;  %v2075_v53 = vld [vmem:[%s2300_s12 + $0xac] ss:$16 sps:$4 sm:$0xff]   ;;  %v2077_v54 = vld [vmem:[%s2300_s12 + $0xa0] ss:$16 sps:$4 sm:$0xff]   ;;  %v2078_v55 = vld [vmem:[%s2300_s12 + $0xa8] ss:$16 sps:$4 sm:$0xff]  }
  0x1a   : > { %1884 = vmatpush3.bf16.msra.mxu1 %v2030_v19  ;;  %1773 = vmatprep.subr.bf16.mxu0 %v2031_v20  ;;  %v2079_v56 = vld [vmem:[%s2300_s12 + $0xc4] ss:$16 sps:$4 sm:$0xff]   ;;  %v2081_v57 = vld [vmem:[%s2300_s12 + $0xcc] ss:$16 sps:$4 sm:$0xff]   ;;  %v2083_v58 = vld [vmem:[%s2300_s12 + $0xc0] ss:$16 sps:$4 sm:$0xff]  }
  0x1b   : > { %1885 = vmatprep.subr.bf16.mxu1 %v2032_v21  ;;  %v2084_v59 = vld [vmem:[%s2300_s12 + $0xc8] ss:$16 sps:$4 sm:$0xff]   ;;  %v2085_v60 = vld [vmem:[%s2300_s12 + $0xe4] ss:$16 sps:$4 sm:$0xff]   ;;  %v2087_v61 = vld [vmem:[%s2300_s12 + $0xec] ss:$16 sps:$4 sm:$0xff]  }
  0x1c   : > { %v2089_v62 = vld [vmem:[%s2300_s12 + $0xe0] ss:$16 sps:$4 sm:$0xff]   ;;  %v2090_v63 = vld [vmem:[%s2300_s12 + $0xe8] ss:$16 sps:$4 sm:$0xff]   ;;  %v2091_v0 = vld [vmem:[%s2300_s12 + $0x104] ss:$16 sps:$4 sm:$0xff]  }
  0x1d   : > { %1774 = vmatpush3.bf16.msra.mxu0 %v2033_v22  ;;  %v2093_v1 = vld [vmem:[%s2300_s12 + $0x10c] ss:$16 sps:$4 sm:$0xff]   ;;  %v2095_v2 = vld [vmem:[%s2300_s12 + $0x100] ss:$16 sps:$4 sm:$0xff]   ;;  %v2096_v3 = vld [vmem:[%s2300_s12 + $0x108] ss:$16 sps:$4 sm:$0xff]  }
  0x1e   : > { %1886 = vmatpush3.bf16.msra.mxu1 %v2034_v23  ;;  %1775 = vmatprep.subr.bf16.mxu0 %v2035_v24  ;;  %v2097_v4 = vld [vmem:[%s2300_s12 + $0x124] ss:$16 sps:$4 sm:$0xff]   ;;  %v2099_v5 = vld [vmem:[%s2300_s12 + $0x12c] ss:$16 sps:$4 sm:$0xff]   ;;  %v2101_v6 = vld [vmem:[%s2300_s12 + $0x120] ss:$16 sps:$4 sm:$0xff]  }
  0x1f   : > { %1887 = vmatprep.subr.bf16.mxu1 %v2036_v25  ;;  %v2102_v7 = vld [vmem:[%s2300_s12 + $0x128] ss:$16 sps:$4 sm:$0xff]   ;;  %v2103_v8 = vld [vmem:[%s2300_s12 + $0x144] ss:$16 sps:$4 sm:$0xff]   ;;  %v2105_v9 = vld [vmem:[%s2300_s12 + $0x14c] ss:$16 sps:$4 sm:$0xff]  }
  0x20   : > { %v2107_v10 = vld [vmem:[%s2300_s12 + $0x140] ss:$16 sps:$4 sm:$0xff]   ;;  %v2108_v11 = vld [vmem:[%s2300_s12 + $0x148] ss:$16 sps:$4 sm:$0xff]   ;;  %v2109_v12 = vld [vmem:[%s2300_s12 + $0x164] ss:$16 sps:$4 sm:$0xff]  }
  0x21   : > { %1776 = vmatpush3.bf16.msra.mxu0 %v2037_v26  ;;  %v2111_v13 = vld [vmem:[%s2300_s12 + $0x16c] ss:$16 sps:$4 sm:$0xff]   ;;  %v2113_v14 = vld [vmem:[%s2300_s12 + $0x160] ss:$16 sps:$4 sm:$0xff]   ;;  %v2114_v15 = vld [vmem:[%s2300_s12 + $0x168] ss:$16 sps:$4 sm:$0xff]  }
  0x22   : > { %1888 = vmatpush3.bf16.msra.mxu1 %v2038_v27  ;;  %1777 = vmatprep.subr.bf16.mxu0 %v2039_v28  ;;  %v2115_v16 = vld [vmem:[%s2300_s12 + $0x184] ss:$16 sps:$4 sm:$0xff]   ;;  %v2117_v17 = vld [vmem:[%s2300_s12 + $0x18c] ss:$16 sps:$4 sm:$0xff]   ;;  %v2119_v18 = vld [vmem:[%s2300_s12 + $0x180] ss:$16 sps:$4 sm:$0xff]  }
  0x23   : > { %1889 = vmatprep.subr.bf16.mxu1 %v2040_v29  ;;  %v2120_v19 = vld [vmem:[%s2300_s12 + $0x188] ss:$16 sps:$4 sm:$0xff]   ;;  %v2121_v20 = vld [vmem:[%s2300_s12 + $0x1a4] ss:$16 sps:$4 sm:$0xff]   ;;  %v2123_v21 = vld [vmem:[%s2300_s12 + $0x1ac] ss:$16 sps:$4 sm:$0xff]  }
  0x24   : > { %v2125_v22 = vld [vmem:[%s2300_s12 + $0x1a0] ss:$16 sps:$4 sm:$0xff]   ;;  %v2126_v23 = vld [vmem:[%s2300_s12 + $0x1a8] ss:$16 sps:$4 sm:$0xff]   ;;  %v2127_v24 = vld [vmem:[%s2300_s12 + $0x1c4] ss:$16 sps:$4 sm:$0xff]  }
  0x25   : > { %1778 = vmatpush3.bf16.msra.mxu0 %v2041_v30  ;;  %v2129_v25 = vld [vmem:[%s2300_s12 + $0x1cc] ss:$16 sps:$4 sm:$0xff]   ;;  %v2131_v26 = vld [vmem:[%s2300_s12 + $0x1c0] ss:$16 sps:$4 sm:$0xff]   ;;  %v2132_v27 = vld [vmem:[%s2300_s12 + $0x1c8] ss:$16 sps:$4 sm:$0xff]  }
  0x26   : > { %1890 = vmatpush3.bf16.msra.mxu1 %v2042_v31  ;;  %v2133_v28 = vld [vmem:[%s2300_s12 + $0x1e4] ss:$16 sps:$4 sm:$0xff]   ;;  %v2135_v29 = vld [vmem:[%s2300_s12 + $0x1ec] ss:$16 sps:$4 sm:$0xff]   ;;  %v2137_v30 = vld [vmem:[%s2300_s12 + $0x1e0] ss:$16 sps:$4 sm:$0xff]  }
  0x27   : > { %v2138_v31 = vld [vmem:[%s2300_s12 + $0x1e8] ss:$16 sps:$4 sm:$0xff]  }
  0x28   : > { %909 = vmatmul.mubr.bf16.vlgmr.msra.gmra.mrb[0].mxu0 %v2043_v32 }
  0x29   : > { %1070 = vmatmul.mubr.bf16.vlgmr.msra.gmra.mrb[0].mxu1 %v2046_v34  ;;  %916 = vmatprep.mubr.bf16.mxu0 %v2049_v36  ;;  %v2375_v34 = vld [vmem:[%s2442_s2] ss:$0 sm:$0xff] }
  0x2a   : > { %1077 = vmatprep.mubr.bf16.mxu1 %v2051_v37 }
  0x30   : > { %917 = vmatmul.mubr.bf16.gmra.mrb[4].mxu0 %v2053_v38 }
  0x31   : > { %1078 = vmatmul.mubr.bf16.gmra.mrb[4].mxu1 %v2054_v39  ;;  %924 = vmatprep.mubr.bf16.mxu0 %v2055_v40 }
  0x32   : > { %1085 = vmatprep.mubr.bf16.mxu1 %v2057_v41 }
  0x38   : > { %925 = vmatmul.mubr.bf16.gmra.mrb[8].mxu0 %v2059_v42 }
  0x39   : > { %1086 = vmatmul.mubr.bf16.gmra.mrb[8].mxu1 %v2060_v43  ;;  %932 = vmatprep.mubr.bf16.mxu0 %v2061_v44 }
  0x3a   : > { %1093 = vmatprep.mubr.bf16.mxu1 %v2063_v45 }
  0x40   : > { %933 = vmatmul.mubr.bf16.gmra.mrb[12].mxu0 %v2065_v46 }
  0x41   : > { %1094 = vmatmul.mubr.bf16.gmra.mrb[12].mxu1 %v2066_v47  ;;  %940 = vmatprep.mubr.bf16.mxu0 %v2067_v48 }
  0x42   : > { %1101 = vmatprep.mubr.bf16.mxu1 %v2069_v49 }
  0x48   : > { %941 = vmatmul.mubr.bf16.gmra.mrb[16].mxu0 %v2071_v50 }
  0x49   : > { %1102 = vmatmul.mubr.bf16.gmra.mrb[16].mxu1 %v2072_v51  ;;  %948 = vmatprep.mubr.bf16.mxu0 %v2073_v52 }
  0x4a   : > { %1109 = vmatprep.mubr.bf16.mxu1 %v2075_v53 }
  0x50   : > { %949 = vmatmul.mubr.bf16.gmra.mrb[20].mxu0 %v2077_v54 }
  0x51   : > { %1110 = vmatmul.mubr.bf16.gmra.mrb[20].mxu1 %v2078_v55  ;;  %956 = vmatprep.mubr.bf16.mxu0 %v2079_v56 }
  0x52   : > { %1117 = vmatprep.mubr.bf16.mxu1 %v2081_v57 }
  0x58   : > { %957 = vmatmul.mubr.bf16.gmra.mrb[24].mxu0 %v2083_v58 }
  0x59   : > { %1118 = vmatmul.mubr.bf16.gmra.mrb[24].mxu1 %v2084_v59  ;;  %964 = vmatprep.mubr.bf16.mxu0 %v2085_v60 }
  0x5a   : > { %1125 = vmatprep.mubr.bf16.mxu1 %v2087_v61 }
  0x60   : > { %965 = vmatmul.mubr.bf16.gmra.mrb[28].mxu0 %v2089_v62 }
  0x61   : > { %1126 = vmatmul.mubr.bf16.gmra.mrb[28].mxu1 %v2090_v63  ;;  %972 = vmatprep.mubr.bf16.mxu0 %v2091_v0 }
  0x62   : > { %1133 = vmatprep.mubr.bf16.mxu1 %v2093_v1 }
  0x68   : > { %973 = vmatmul.mubr.bf16.gmra.mrb[32].mxu0 %v2095_v2 }
  0x69   : > { %1134 = vmatmul.mubr.bf16.gmra.mrb[32].mxu1 %v2096_v3  ;;  %980 = vmatprep.mubr.bf16.mxu0 %v2097_v4 }
  0x6a   : > { %1141 = vmatprep.mubr.bf16.mxu1 %v2099_v5 }
  0x70   : > { %981 = vmatmul.mubr.bf16.gmra.mrb[36].mxu0 %v2101_v6 }
  0x71   : > { %1142 = vmatmul.mubr.bf16.gmra.mrb[36].mxu1 %v2102_v7  ;;  %988 = vmatprep.mubr.bf16.mxu0 %v2103_v8 }
  0x72   : > { %1149 = vmatprep.mubr.bf16.mxu1 %v2105_v9 }
  0x78   : > { %989 = vmatmul.mubr.bf16.gmra.mrb[40].mxu0 %v2107_v10 }
  0x79   : > { %1150 = vmatmul.mubr.bf16.gmra.mrb[40].mxu1 %v2108_v11  ;;  %996 = vmatprep.mubr.bf16.mxu0 %v2109_v12 }
  0x7a   : > { %1157 = vmatprep.mubr.bf16.mxu1 %v2111_v13 }
  0x80   : > { %997 = vmatmul.mubr.bf16.gmra.mrb[44].mxu0 %v2113_v14 }
  0x81   : > { %1158 = vmatmul.mubr.bf16.gmra.mrb[44].mxu1 %v2114_v15  ;;  %1004 = vmatprep.mubr.bf16.mxu0 %v2115_v16 }
  0x82   : > { %1165 = vmatprep.mubr.bf16.mxu1 %v2117_v17 }
  0x88   : > { %1005 = vmatmul.mubr.bf16.gmra.mrb[48].mxu0 %v2119_v18 }
  0x89   : > { %1166 = vmatmul.mubr.bf16.gmra.mrb[48].mxu1 %v2120_v19  ;;  %1012 = vmatprep.mubr.bf16.mxu0 %v2121_v20 }
  0x8a   : > { %1173 = vmatprep.mubr.bf16.mxu1 %v2123_v21 }
  0x90   : > { %1013 = vmatmul.mubr.bf16.gmra.mrb[52].mxu0 %v2125_v22 }
  0x91   : > { %1174 = vmatmul.mubr.bf16.gmra.mrb[52].mxu1 %v2126_v23  ;;  %1020 = vmatprep.mubr.bf16.mxu0 %v2127_v24 }
  0x92   : > { %1181 = vmatprep.mubr.bf16.mxu1 %v2129_v25 }
  0x98   : > { %1021 = vmatmul.mubr.bf16.gmra.mrb[56].mxu0 %v2131_v26 }
  0x99   : > { %1182 = vmatmul.mubr.bf16.gmra.mrb[56].mxu1 %v2132_v27  ;;  %1028 = vmatprep.mubr.bf16.mxu0 %v2133_v28 }
  0x9a   : > { %1189 = vmatprep.mubr.bf16.mxu1 %v2135_v29 }
  0xa0   : > { %1029 = vmatmul.mubr.bf16.gmra.mrb[60].mxu0 %v2137_v30 }
  0xa1   : > { %1190 = vmatmul.mubr.bf16.gmra.mrb[60].mxu1 %v2138_v31 }
  0xfb   : > { %v1779_v32 = vpop.f32.mrb[0].mxu0 }
  0xfc   : > { %v1891_v33 = vpop.f32.mrb[0].mxu1  ;;  %v1780_v35 = vpop.f32.mrb[1].mxu0 }
  0xfd   : > { %v1781_v36 = vadd.f32 %v1780_v35, %v1779_v32  ;;  %v1892_v37 = vpop.f32.mrb[1].mxu1  ;;  %v1782_v38 = vpop.f32.mrb[2].mxu0 }
  0xfe   : > { %v1893_v39 = vadd.f32 %v1892_v37, %v1891_v33  ;;  %v1894_v40 = vpop.f32.mrb[2].mxu1  ;;  %v1783_v41 = vpop.f32.mrb[3].mxu0 }
  0xff   : > { %v911_v42 = vadd.f32 %v1781_v36, %v2375_v34  ;;  %v1784_v43 = vadd.f32 %v1783_v41, %v1782_v38  ;;  %v1895_v44 = vpop.f32.mrb[3].mxu1 }
 0x100   : > { %v1896_v45 = vadd.f32 %v1895_v44, %v1894_v40 }
 0x101   : > { %v1072_v46 = vadd.f32 %v1893_v39, %v911_v42  ;;  %v914_v47 = vadd.f32 %v1784_v43, %v2375_v34 }
 0x103   : > { %v1075_v48 = vadd.f32 %v1896_v45, %v914_v47  ;;  %v1785_v49 = vpop.f32.mrb[4].mxu0  ;;  %v1198_v52 = vmax.f32 %v1072_v46, 0.0 }
 0x104   : > { %v1897_v50 = vpop.f32.mrb[4].mxu1  ;;  %v1786_v51 = vpop.f32.mrb[5].mxu0 }
 0x105   : > { %v1199_v53 = vmax.f32 %v1075_v48, 0.0  ;;  %v1787_v54 = vadd.f32 %v1786_v51, %v1785_v49  ;;  %v1898_v55 = vpop.f32.mrb[5].mxu1  ;;  %v1788_v56 = vpop.f32.mrb[6].mxu0 }
 0x106   : > { %v1899_v57 = vadd.f32 %v1898_v55, %v1897_v50  ;;  %v1900_v58 = vpop.f32.mrb[6].mxu1  ;;  %v1789_v59 = vpop.f32.mrb[7].mxu0 }
 0x107   : > { %v1671_v60 = vpack.c.bf16 %v1199_v53, %v1198_v52  ;;  %v919_v61 = vadd.f32 %v1787_v54, %v2375_v34  ;;  %v1790_v62 = vadd.f32 %v1789_v59, %v1788_v56  ;;  %v1901_v63 = vpop.f32.mrb[7].mxu1 }
 0x108   : > { %v1902_v0 = vadd.f32 %v1901_v63, %v1900_v58 }
 0x109   : > { %1672 = vst [vmem:[%s2383_s20] sm:$0xff] %v1671_v60   ;;  %v1080_v1 = vadd.f32 %v1899_v57, %v919_v61  ;;  %v922_v2 = vadd.f32 %v1790_v62, %v2375_v34 }
 0x10b   : > { %v1083_v3 = vadd.f32 %v1902_v0, %v922_v2  ;;  %v1791_v4 = vpop.f32.mrb[8].mxu0  ;;  %v1200_v7 = vmax.f32 %v1080_v1, 0.0 }
 0x10c   : > { %v1903_v5 = vpop.f32.mrb[8].mxu1  ;;  %v1792_v6 = vpop.f32.mrb[9].mxu0 }
 0x10d   : > { %v1201_v8 = vmax.f32 %v1083_v3, 0.0  ;;  %v1793_v9 = vadd.f32 %v1792_v6, %v1791_v4  ;;  %v1904_v10 = vpop.f32.mrb[9].mxu1  ;;  %v1794_v11 = vpop.f32.mrb[10].mxu0 }
 0x10e   : > { %v1905_v12 = vadd.f32 %v1904_v10, %v1903_v5  ;;  %v1906_v13 = vpop.f32.mrb[10].mxu1  ;;  %v1795_v14 = vpop.f32.mrb[11].mxu0 }
 0x10f   : > { %v1676_v15 = vpack.c.bf16 %v1201_v8, %v1200_v7  ;;  %v927_v16 = vadd.f32 %v1793_v9, %v2375_v34  ;;  %v1796_v17 = vadd.f32 %v1795_v14, %v1794_v11  ;;  %v1907_v18 = vpop.f32.mrb[11].mxu1 }
 0x110   : > { %v1908_v19 = vadd.f32 %v1907_v18, %v1906_v13 }
 0x111   : > { %1748 = vst [vmem:[%s2383_s20 + $0x8] sm:$0xff] %v1676_v15   ;;  %v1088_v20 = vadd.f32 %v1905_v12, %v927_v16  ;;  %v930_v21 = vadd.f32 %v1796_v17, %v2375_v34 }
 0x113   : > { %v1091_v22 = vadd.f32 %v1908_v19, %v930_v21  ;;  %v1797_v23 = vpop.f32.mrb[12].mxu0  ;;  %v1202_v26 = vmax.f32 %v1088_v20, 0.0 }
 0x114   : > { %v1909_v24 = vpop.f32.mrb[12].mxu1  ;;  %v1798_v25 = vpop.f32.mrb[13].mxu0 }
 0x115   : > { %v1203_v27 = vmax.f32 %v1091_v22, 0.0  ;;  %v1799_v28 = vadd.f32 %v1798_v25, %v1797_v23  ;;  %v1910_v29 = vpop.f32.mrb[13].mxu1  ;;  %v1800_v30 = vpop.f32.mrb[14].mxu0 }
 0x116   : > { %v1911_v31 = vadd.f32 %v1910_v29, %v1909_v24  ;;  %v1912_v32 = vpop.f32.mrb[14].mxu1  ;;  %v1801_v33 = vpop.f32.mrb[15].mxu0 }
 0x117   : > { %v1681_v35 = vpack.c.bf16 %v1203_v27, %v1202_v26  ;;  %v935_v36 = vadd.f32 %v1799_v28, %v2375_v34  ;;  %v1802_v37 = vadd.f32 %v1801_v33, %v1800_v30  ;;  %v1913_v38 = vpop.f32.mrb[15].mxu1 }
 0x118   : > { %v1914_v39 = vadd.f32 %v1913_v38, %v1912_v32 }
 0x119   : > { %1749 = vst [vmem:[%s2383_s20 + $0x10] sm:$0xff] %v1681_v35   ;;  %v1096_v40 = vadd.f32 %v1911_v31, %v935_v36  ;;  %v938_v41 = vadd.f32 %v1802_v37, %v2375_v34 }
 0x11b   : > { %v1099_v42 = vadd.f32 %v1914_v39, %v938_v41  ;;  %v1803_v43 = vpop.f32.mrb[16].mxu0  ;;  %v1204_v46 = vmax.f32 %v1096_v40, 0.0 }
 0x11c   : > { %v1915_v44 = vpop.f32.mrb[16].mxu1  ;;  %v1804_v45 = vpop.f32.mrb[17].mxu0 }
 0x11d   : > { %v1205_v47 = vmax.f32 %v1099_v42, 0.0  ;;  %v1805_v48 = vadd.f32 %v1804_v45, %v1803_v43  ;;  %v1916_v49 = vpop.f32.mrb[17].mxu1  ;;  %v1806_v50 = vpop.f32.mrb[18].mxu0 }
 0x11e   : > { %v1917_v51 = vadd.f32 %v1916_v49, %v1915_v44  ;;  %v1918_v52 = vpop.f32.mrb[18].mxu1  ;;  %v1807_v53 = vpop.f32.mrb[19].mxu0 }
 0x11f   : > { %v1686_v54 = vpack.c.bf16 %v1205_v47, %v1204_v46  ;;  %v943_v55 = vadd.f32 %v1805_v48, %v2375_v34  ;;  %v1808_v56 = vadd.f32 %v1807_v53, %v1806_v50  ;;  %v1919_v57 = vpop.f32.mrb[19].mxu1 }
 0x120   : > { %v1920_v58 = vadd.f32 %v1919_v57, %v1918_v52 }
 0x121   : > { %1750 = vst [vmem:[%s2383_s20 + $0x18] sm:$0xff] %v1686_v54   ;;  %v1104_v59 = vadd.f32 %v1917_v51, %v943_v55  ;;  %v946_v60 = vadd.f32 %v1808_v56, %v2375_v34 }
 0x123   : > { %v1107_v61 = vadd.f32 %v1920_v58, %v946_v60  ;;  %v1809_v62 = vpop.f32.mrb[20].mxu0  ;;  %v1206_v1 = vmax.f32 %v1104_v59, 0.0 }
 0x124   : > { %v1921_v63 = vpop.f32.mrb[20].mxu1  ;;  %v1810_v0 = vpop.f32.mrb[21].mxu0 }
 0x125   : > { %v1207_v2 = vmax.f32 %v1107_v61, 0.0  ;;  %v1811_v3 = vadd.f32 %v1810_v0, %v1809_v62  ;;  %v1922_v4 = vpop.f32.mrb[21].mxu1  ;;  %v1812_v5 = vpop.f32.mrb[22].mxu0 }
 0x126   : > { %v1923_v6 = vadd.f32 %v1922_v4, %v1921_v63  ;;  %v1924_v7 = vpop.f32.mrb[22].mxu1  ;;  %v1813_v8 = vpop.f32.mrb[23].mxu0 }
 0x127   : > { %v1691_v9 = vpack.c.bf16 %v1207_v2, %v1206_v1  ;;  %v951_v10 = vadd.f32 %v1811_v3, %v2375_v34  ;;  %v1814_v11 = vadd.f32 %v1813_v8, %v1812_v5  ;;  %v1925_v12 = vpop.f32.mrb[23].mxu1 }
 0x128   : > { %v1926_v13 = vadd.f32 %v1925_v12, %v1924_v7 }
 0x129   : > { %1751 = vst [vmem:[%s2383_s20 + $0x20] sm:$0xff] %v1691_v9   ;;  %v1112_v14 = vadd.f32 %v1923_v6, %v951_v10  ;;  %v954_v15 = vadd.f32 %v1814_v11, %v2375_v34 }
 0x12b   : > { %v1115_v16 = vadd.f32 %v1926_v13, %v954_v15  ;;  %v1815_v17 = vpop.f32.mrb[24].mxu0  ;;  %v1208_v20 = vmax.f32 %v1112_v14, 0.0 }
 0x12c   : > { %v1927_v18 = vpop.f32.mrb[24].mxu1  ;;  %v1816_v19 = vpop.f32.mrb[25].mxu0 }
 0x12d   : > { %v1209_v21 = vmax.f32 %v1115_v16, 0.0  ;;  %v1817_v22 = vadd.f32 %v1816_v19, %v1815_v17  ;;  %v1928_v23 = vpop.f32.mrb[25].mxu1  ;;  %v1818_v24 = vpop.f32.mrb[26].mxu0 }
 0x12e   : > { %v1929_v25 = vadd.f32 %v1928_v23, %v1927_v18  ;;  %v1930_v26 = vpop.f32.mrb[26].mxu1  ;;  %v1819_v27 = vpop.f32.mrb[27].mxu0 }
 0x12f   : > { %v1696_v28 = vpack.c.bf16 %v1209_v21, %v1208_v20  ;;  %v959_v29 = vadd.f32 %v1817_v22, %v2375_v34  ;;  %v1820_v30 = vadd.f32 %v1819_v27, %v1818_v24  ;;  %v1931_v31 = vpop.f32.mrb[27].mxu1 }
 0x130   : > { %v1932_v32 = vadd.f32 %v1931_v31, %v1930_v26 }
 0x131   : > { %1752 = vst [vmem:[%s2383_s20 + $0x28] sm:$0xff] %v1696_v28   ;;  %v1120_v33 = vadd.f32 %v1929_v25, %v959_v29  ;;  %v962_v35 = vadd.f32 %v1820_v30, %v2375_v34 }
 0x133   : > { %v1123_v36 = vadd.f32 %v1932_v32, %v962_v35  ;;  %v1821_v37 = vpop.f32.mrb[28].mxu0  ;;  %v1210_v40 = vmax.f32 %v1120_v33, 0.0 }
 0x134   : > { %v1933_v38 = vpop.f32.mrb[28].mxu1  ;;  %v1822_v39 = vpop.f32.mrb[29].mxu0 }
 0x135   : > { %v1211_v41 = vmax.f32 %v1123_v36, 0.0  ;;  %v1823_v42 = vadd.f32 %v1822_v39, %v1821_v37  ;;  %v1934_v43 = vpop.f32.mrb[29].mxu1  ;;  %v1824_v44 = vpop.f32.mrb[30].mxu0 }
 0x136   : > { %v1935_v45 = vadd.f32 %v1934_v43, %v1933_v38  ;;  %v1936_v46 = vpop.f32.mrb[30].mxu1  ;;  %v1825_v47 = vpop.f32.mrb[31].mxu0 }
 0x137   : > { %v1701_v48 = vpack.c.bf16 %v1211_v41, %v1210_v40  ;;  %v967_v49 = vadd.f32 %v1823_v42, %v2375_v34  ;;  %v1826_v50 = vadd.f32 %v1825_v47, %v1824_v44  ;;  %v1937_v51 = vpop.f32.mrb[31].mxu1 }
 0x138   : > { %v1938_v52 = vadd.f32 %v1937_v51, %v1936_v46 }
 0x139   : > { %1753 = vst [vmem:[%s2383_s20 + $0x30] sm:$0xff] %v1701_v48   ;;  %v1128_v53 = vadd.f32 %v1935_v45, %v967_v49  ;;  %v970_v54 = vadd.f32 %v1826_v50, %v2375_v34 }
 0x13b   : > { %v1131_v55 = vadd.f32 %v1938_v52, %v970_v54  ;;  %v1827_v56 = vpop.f32.mrb[32].mxu0  ;;  %v1212_v59 = vmax.f32 %v1128_v53, 0.0 }
 0x13c   : > { %v1939_v57 = vpop.f32.mrb[32].mxu1  ;;  %v1828_v58 = vpop.f32.mrb[33].mxu0 }
 0x13d   : > { %v1213_v60 = vmax.f32 %v1131_v55, 0.0  ;;  %v1829_v61 = vadd.f32 %v1828_v58, %v1827_v56  ;;  %v1940_v62 = vpop.f32.mrb[33].mxu1  ;;  %v1830_v63 = vpop.f32.mrb[34].mxu0 }
 0x13e   : > { %v1941_v0 = vadd.f32 %v1940_v62, %v1939_v57  ;;  %v1942_v1 = vpop.f32.mrb[34].mxu1  ;;  %v1831_v2 = vpop.f32.mrb[35].mxu0 }
 0x13f   : > { %v1706_v3 = vpack.c.bf16 %v1213_v60, %v1212_v59  ;;  %v975_v4 = vadd.f32 %v1829_v61, %v2375_v34  ;;  %v1832_v5 = vadd.f32 %v1831_v2, %v1830_v63  ;;  %v1943_v6 = vpop.f32.mrb[35].mxu1 }
 0x140   : > { %v1944_v7 = vadd.f32 %v1943_v6, %v1942_v1 }
 0x141   : > { %1754 = vst [vmem:[%s2383_s20 + $0x38] sm:$0xff] %v1706_v3   ;;  %v1136_v8 = vadd.f32 %v1941_v0, %v975_v4  ;;  %v978_v9 = vadd.f32 %v1832_v5, %v2375_v34 }
 0x143   : > { %v1139_v10 = vadd.f32 %v1944_v7, %v978_v9  ;;  %v1833_v11 = vpop.f32.mrb[36].mxu0  ;;  %v1214_v14 = vmax.f32 %v1136_v8, 0.0 }
 0x144   : > { %v1945_v12 = vpop.f32.mrb[36].mxu1  ;;  %v1834_v13 = vpop.f32.mrb[37].mxu0 }
 0x145   : > { %v1215_v15 = vmax.f32 %v1139_v10, 0.0  ;;  %v1835_v16 = vadd.f32 %v1834_v13, %v1833_v11  ;;  %v1946_v17 = vpop.f32.mrb[37].mxu1  ;;  %v1836_v18 = vpop.f32.mrb[38].mxu0 }
 0x146   : > { %v1947_v19 = vadd.f32 %v1946_v17, %v1945_v12  ;;  %v1948_v20 = vpop.f32.mrb[38].mxu1  ;;  %v1837_v21 = vpop.f32.mrb[39].mxu0 }
 0x147   : > { %v1711_v22 = vpack.c.bf16 %v1215_v15, %v1214_v14  ;;  %v983_v23 = vadd.f32 %v1835_v16, %v2375_v34  ;;  %v1838_v24 = vadd.f32 %v1837_v21, %v1836_v18  ;;  %v1949_v25 = vpop.f32.mrb[39].mxu1 }
 0x148   : > { %v1950_v26 = vadd.f32 %v1949_v25, %v1948_v20 }
 0x149   : > { %1755 = vst [vmem:[%s2383_s20 + $0x40] sm:$0xff] %v1711_v22   ;;  %v1144_v27 = vadd.f32 %v1947_v19, %v983_v23  ;;  %v986_v28 = vadd.f32 %v1838_v24, %v2375_v34 }
 0x14b   : > { %v1147_v29 = vadd.f32 %v1950_v26, %v986_v28  ;;  %v1839_v30 = vpop.f32.mrb[40].mxu0  ;;  %v1216_v33 = vmax.f32 %v1144_v27, 0.0 }
 0x14c   : > { %v1951_v31 = vpop.f32.mrb[40].mxu1  ;;  %v1840_v32 = vpop.f32.mrb[41].mxu0 }
 0x14d   : > { %v1217_v35 = vmax.f32 %v1147_v29, 0.0  ;;  %v1841_v36 = vadd.f32 %v1840_v32, %v1839_v30  ;;  %v1952_v37 = vpop.f32.mrb[41].mxu1  ;;  %v1842_v38 = vpop.f32.mrb[42].mxu0 }
 0x14e   : > { %v1953_v39 = vadd.f32 %v1952_v37, %v1951_v31  ;;  %v1954_v40 = vpop.f32.mrb[42].mxu1  ;;  %v1843_v41 = vpop.f32.mrb[43].mxu0 }
 0x14f   : > { %v1716_v42 = vpack.c.bf16 %v1217_v35, %v1216_v33  ;;  %v991_v43 = vadd.f32 %v1841_v36, %v2375_v34  ;;  %v1844_v44 = vadd.f32 %v1843_v41, %v1842_v38  ;;  %v1955_v45 = vpop.f32.mrb[43].mxu1 }
 0x150   : > { %v1956_v46 = vadd.f32 %v1955_v45, %v1954_v40 }
 0x151   : > { %1756 = vst [vmem:[%s2383_s20 + $0x48] sm:$0xff] %v1716_v42   ;;  %v1152_v47 = vadd.f32 %v1953_v39, %v991_v43  ;;  %v994_v48 = vadd.f32 %v1844_v44, %v2375_v34 }
 0x153   : > { %v1155_v49 = vadd.f32 %v1956_v46, %v994_v48  ;;  %v1845_v50 = vpop.f32.mrb[44].mxu0  ;;  %v1218_v53 = vmax.f32 %v1152_v47, 0.0 }
 0x154   : > { %v1957_v51 = vpop.f32.mrb[44].mxu1  ;;  %v1846_v52 = vpop.f32.mrb[45].mxu0 }
 0x155   : > { %v1219_v54 = vmax.f32 %v1155_v49, 0.0  ;;  %v1847_v55 = vadd.f32 %v1846_v52, %v1845_v50  ;;  %v1958_v56 = vpop.f32.mrb[45].mxu1  ;;  %v1848_v57 = vpop.f32.mrb[46].mxu0 }
 0x156   : > { %v1959_v58 = vadd.f32 %v1958_v56, %v1957_v51  ;;  %v1960_v59 = vpop.f32.mrb[46].mxu1  ;;  %v1849_v60 = vpop.f32.mrb[47].mxu0 }
 0x157   : > { %v1721_v61 = vpack.c.bf16 %v1219_v54, %v1218_v53  ;;  %v999_v62 = vadd.f32 %v1847_v55, %v2375_v34  ;;  %v1850_v63 = vadd.f32 %v1849_v60, %v1848_v57  ;;  %v1961_v0 = vpop.f32.mrb[47].mxu1 }
 0x158   : > { %v1962_v1 = vadd.f32 %v1961_v0, %v1960_v59 }
 0x159   : > { %1757 = vst [vmem:[%s2383_s20 + $0x50] sm:$0xff] %v1721_v61   ;;  %v1160_v2 = vadd.f32 %v1959_v58, %v999_v62  ;;  %v1002_v3 = vadd.f32 %v1850_v63, %v2375_v34 }
 0x15b   : > { %v1163_v4 = vadd.f32 %v1962_v1, %v1002_v3  ;;  %v1851_v5 = vpop.f32.mrb[48].mxu0  ;;  %v1220_v8 = vmax.f32 %v1160_v2, 0.0 }
 0x15c   : > { %v1963_v6 = vpop.f32.mrb[48].mxu1  ;;  %v1852_v7 = vpop.f32.mrb[49].mxu0 }
 0x15d   : > { %v1221_v9 = vmax.f32 %v1163_v4, 0.0  ;;  %v1853_v10 = vadd.f32 %v1852_v7, %v1851_v5  ;;  %v1964_v11 = vpop.f32.mrb[49].mxu1  ;;  %v1854_v12 = vpop.f32.mrb[50].mxu0 }
 0x15e   : > { %v1965_v13 = vadd.f32 %v1964_v11, %v1963_v6  ;;  %v1966_v14 = vpop.f32.mrb[50].mxu1  ;;  %v1855_v15 = vpop.f32.mrb[51].mxu0 }
 0x15f   : > { %v1726_v16 = vpack.c.bf16 %v1221_v9, %v1220_v8  ;;  %v1007_v17 = vadd.f32 %v1853_v10, %v2375_v34  ;;  %v1856_v18 = vadd.f32 %v1855_v15, %v1854_v12  ;;  %v1967_v19 = vpop.f32.mrb[51].mxu1 }
 0x160   : > { %v1968_v20 = vadd.f32 %v1967_v19, %v1966_v14 }
 0x161   : > { %1758 = vst [vmem:[%s2383_s20 + $0x58] sm:$0xff] %v1726_v16   ;;  %v1168_v21 = vadd.f32 %v1965_v13, %v1007_v17  ;;  %v1010_v22 = vadd.f32 %v1856_v18, %v2375_v34 }
 0x163   : > { %v1171_v23 = vadd.f32 %v1968_v20, %v1010_v22  ;;  %v1857_v24 = vpop.f32.mrb[52].mxu0  ;;  %v1222_v27 = vmax.f32 %v1168_v21, 0.0 }
 0x164   : > { %v1969_v25 = vpop.f32.mrb[52].mxu1  ;;  %v1858_v26 = vpop.f32.mrb[53].mxu0 }
 0x165   : > { %v1223_v28 = vmax.f32 %v1171_v23, 0.0  ;;  %v1859_v29 = vadd.f32 %v1858_v26, %v1857_v24  ;;  %v1970_v30 = vpop.f32.mrb[53].mxu1  ;;  %v1860_v31 = vpop.f32.mrb[54].mxu0 }
 0x166   : > { %v1971_v32 = vadd.f32 %v1970_v30, %v1969_v25  ;;  %v1972_v33 = vpop.f32.mrb[54].mxu1  ;;  %v1861_v35 = vpop.f32.mrb[55].mxu0 }
 0x167   : > { %v1731_v36 = vpack.c.bf16 %v1223_v28, %v1222_v27  ;;  %v1015_v37 = vadd.f32 %v1859_v29, %v2375_v34  ;;  %v1862_v38 = vadd.f32 %v1861_v35, %v1860_v31  ;;  %v1973_v39 = vpop.f32.mrb[55].mxu1 }
 0x168   : > { %v1974_v40 = vadd.f32 %v1973_v39, %v1972_v33 }
 0x169   : > { %1759 = vst [vmem:[%s2383_s20 + $0x60] sm:$0xff] %v1731_v36   ;;  %v1176_v41 = vadd.f32 %v1971_v32, %v1015_v37  ;;  %v1018_v42 = vadd.f32 %v1862_v38, %v2375_v34 }
 0x16b   : > { %v1179_v43 = vadd.f32 %v1974_v40, %v1018_v42  ;;  %v1863_v44 = vpop.f32.mrb[56].mxu0  ;;  %v1224_v47 = vmax.f32 %v1176_v41, 0.0 }
 0x16c   : > { %v1975_v45 = vpop.f32.mrb[56].mxu1  ;;  %v1864_v46 = vpop.f32.mrb[57].mxu0 }
 0x16d   : > { %v1225_v48 = vmax.f32 %v1179_v43, 0.0  ;;  %v1865_v49 = vadd.f32 %v1864_v46, %v1863_v44  ;;  %v1976_v50 = vpop.f32.mrb[57].mxu1  ;;  %v1866_v51 = vpop.f32.mrb[58].mxu0 }
 0x16e   : > { %v1977_v52 = vadd.f32 %v1976_v50, %v1975_v45  ;;  %v1978_v53 = vpop.f32.mrb[58].mxu1  ;;  %v1867_v54 = vpop.f32.mrb[59].mxu0 }
 0x16f   : > { %v1736_v55 = vpack.c.bf16 %v1225_v48, %v1224_v47  ;;  %v1023_v56 = vadd.f32 %v1865_v49, %v2375_v34  ;;  %v1868_v57 = vadd.f32 %v1867_v54, %v1866_v51  ;;  %v1979_v58 = vpop.f32.mrb[59].mxu1 }
 0x170   : > { %v1980_v59 = vadd.f32 %v1979_v58, %v1978_v53 }
 0x171   : > { %1760 = vst [vmem:[%s2383_s20 + $0x68] sm:$0xff] %v1736_v55   ;;  %v1184_v60 = vadd.f32 %v1977_v52, %v1023_v56  ;;  %v1026_v61 = vadd.f32 %v1868_v57, %v2375_v34 }
 0x173   : > { %v1187_v62 = vadd.f32 %v1980_v59, %v1026_v61  ;;  %v1869_v63 = vpop.f32.mrb[60].mxu0  ;;  %v1226_v2 = vmax.f32 %v1184_v60, 0.0 }
 0x174   : > { %v1981_v0 = vpop.f32.mrb[60].mxu1  ;;  %v1870_v1 = vpop.f32.mrb[61].mxu0 }
 0x175   : > { %v1227_v3 = vmax.f32 %v1187_v62, 0.0  ;;  %v1871_v4 = vadd.f32 %v1870_v1, %v1869_v63  ;;  %v1982_v5 = vpop.f32.mrb[61].mxu1  ;;  %v1872_v6 = vpop.f32.mrb[62].mxu0 }
 0x176   : > { %v1983_v7 = vadd.f32 %v1982_v5, %v1981_v0  ;;  %v1984_v8 = vpop.f32.mrb[62].mxu1  ;;  %v1873_v9 = vpop.f32.mrb[63].mxu0 }
 0x177   : > { %v1741_v10 = vpack.c.bf16 %v1227_v3, %v1226_v2  ;;  %v1031_v11 = vadd.f32 %v1871_v4, %v2375_v34  ;;  %v1874_v12 = vadd.f32 %v1873_v9, %v1872_v6  ;;  %v1985_v13 = vpop.f32.mrb[63].mxu1 }
 0x178   : > { %v1986_v14 = vadd.f32 %v1985_v13, %v1984_v8 }
 0x179   : > { %1761 = vst [vmem:[%s2383_s20 + $0x70] sm:$0xff] %v1741_v10   ;;  %v1192_v15 = vadd.f32 %v1983_v7, %v1031_v11  ;;  %v1034_v16 = vadd.f32 %v1874_v12, %v2375_v34 }
 0x17b   : > { %v1195_v17 = vadd.f32 %v1986_v14, %v1034_v16  ;;  %v1228_v18 = vmax.f32 %v1192_v15, 0.0 }
 0x17d   : > { %v1229_v19 = vmax.f32 %v1195_v17, 0.0 }
 0x17f   : > { %v1746_v20 = vpack.c.bf16 %v1229_v19, %v1228_v18 }
 0x181   : > { %1762 = vst [vmem:[%s2383_s20 + $0x78] sm:$0xff] %v1746_v20  }
 0x182 PF: > { %s13_s14 = sadd.s32 1, %s2161_s14   ;;  %s2444_s12 = smov %s2157_s13 }
 0x183   : > { %p10_p5 = scmp.ge.s32.totalorder %s13_s14, 6   ;;  %s2445_s13 = smov %s2447_s15 }
 0x185   :  { %12 = sbr.rel (!%p10_p5) target bundleno = 2 (0x2), region = 68 }

// kernel: decoder_forward.12
= control target key start
LH: loop header
LB: loop body
LE: loop exit
PB: predicated region body
PF: predicated region fallthrough
CT: control target
= control target key end

     0   :  { %s3924_s12 = smov 0   ;;  %s3926_s13 = smov 0   ;;  %s4586_s0 = inlined_call_operand.vmem [shape: bf16[4096,256], index: 0, kind: input, shape index: {}]   ;;  %s4587_s1 = inlined_call_operand.vmem [shape: bf16[256,256], index: 1, kind: input, shape index: {}]   ;;  %s4588_s2 = inlined_call_operand.vmem [shape: f32[1,256], index: 2, kind: input, shape index: {}]   ;;  %s4589_s3 = inlined_call_operand.vmem [shape: bf16[4096,256], index: 3, kind: output, shape index: {}]  }
   0x1   :  { %s3928_s14 = smov 0  }
   0x2 LB: > { %s25_s15 = sadd.s32 1, %s3898_s13  ;;  %p3157_p0 = scmp.ge.s32.totalorder %s3902_s14, 1  ;;  %s3902_s14 = sphi %s3928_s14, %s13_s14   ;;  %s3898_s13 = sphi %s3926_s13, %s4591_s13   ;;  %s3894_s12 = sphi %s3924_s12, %s4590_s12  }
   0x3   : > { %p27_p1 = scmp.ge.s32.totalorder %s25_s15, 4  ;;  %p174_p2 = scmp.lt.s32.totalorder %s3902_s14, 5 }
   0x5   : > { %s4593_s15 = smov (%p27_p1, %s25_s15), 0  ;;  %p175_p3 = pnand %p3157_p0, %p174_p2 }
   0x6   : > { %v3640_v0 = vld [vmem:[%s4587_s1 + $0x4] ss:$8 sps:$4 sm:$0xff] (!%p175_p3)   ;;  %v3642_v1 = vld [vmem:[%s4587_s1] ss:$8 sps:$4 sm:$0xff] (!%p175_p3)   ;;  %v3643_v2 = vld [vmem:[%s4587_s1 + $0x14] ss:$8 sps:$4 sm:$0xff] (!%p175_p3)  }
   0x7   : > { %178 = sbr.rel (%p175_p3) target bundleno = 541 (0x21d), region = 32  ;;  %1215 = vmatprep.subr.bf16.mxu0 (!%p175_p3), %v3640_v0  ;;  %3584 = vmatprep.subr.bf16.mxu1 (!%p175_p3), %v3640_v0  ;;  %v3645_v3 = vld [vmem:[%s4587_s1 + $0x10] ss:$8 sps:$4 sm:$0xff] (!%p175_p3)   ;;  %v3646_v4 = vld [vmem:[%s4587_s1 + $0x24] ss:$8 sps:$4 sm:$0xff] (!%p175_p3)   ;;  %s3158_s26 = sshll.u32 (!%p175_p3), %s3894_s12, 7 }
   0x8   : > { %1216 = vmatpush1.bf16.msra.mxu0 (!%p175_p3), %v3642_v1  ;;  %3600 = vmatpush1.bf16.msra.mxu1 (!%p175_p3), %v3642_v1  ;;  %v3648_v5 = vld [vmem:[%s4587_s1 + $0x20] ss:$8 sps:$4 sm:$0xff] (!%p175_p3)   ;;  %v3649_v6 = vld [vmem:[%s4587_s1 + $0x34] ss:$8 sps:$4 sm:$0xff] (!%p175_p3)   ;;  %p214_p4 = scmp.lt.s32.totalorder (!%p175_p3), %s3158_s26, 511 }
   0x9   : > { %1217 = vmatprep.subr.bf16.mxu0 (!%p175_p3), %v3643_v2  ;;  %3585 = vmatprep.subr.bf16.mxu1 (!%p175_p3), %v3643_v2  ;;  %v3651_v7 = vld [vmem:[%s4587_s1 + $0x30] ss:$8 sps:$4 sm:$0xff] (!%p175_p3)   ;;  %v3652_v8 = vld [vmem:[%s4587_s1 + $0x44] ss:$8 sps:$4 sm:$0xff] (!%p175_p3)   ;;  %v3654_v9 = vld [vmem:[%s4587_s1 + $0x40] ss:$8 sps:$4 sm:$0xff] (!%p175_p3)  }
   0xa   : > { %v3655_v10 = vld [vmem:[%s4587_s1 + $0x54] ss:$8 sps:$4 sm:$0xff] (!%p175_p3)   ;;  %v3657_v11 = vld [vmem:[%s4587_s1 + $0x50] ss:$8 sps:$4 sm:$0xff] (!%p175_p3)   ;;  %v3658_v12 = vld [vmem:[%s4587_s1 + $0x64] ss:$8 sps:$4 sm:$0xff] (!%p175_p3)  }
   0xb   : > { %v3660_v14 = vld [vmem:[%s4587_s1 + $0x60] ss:$8 sps:$4 sm:$0xff] (!%p175_p3)   ;;  %v3661_v16 = vld [vmem:[%s4587_s1 + $0x74] ss:$8 sps:$4 sm:$0xff] (!%p175_p3)   ;;  %v3663_v17 = vld [vmem:[%s4587_s1 + $0x70] ss:$8 sps:$4 sm:$0xff] (!%p175_p3)  }
   0xc   : > { %1218 = vmatpush1.bf16.msra.mxu0 (!%p175_p3), %v3645_v3  ;;  %3601 = vmatpush1.bf16.msra.mxu1 (!%p175_p3), %v3645_v3  ;;  %v3664_v18 = vld [vmem:[%s4587_s1 + $0x84] ss:$8 sps:$4 sm:$0xff] (!%p175_p3)   ;;  %v3666_v19 = vld [vmem:[%s4587_s1 + $0x80] ss:$8 sps:$4 sm:$0xff] (!%p175_p3)   ;;  %v3667_v20 = vld [vmem:[%s4587_s1 + $0x94] ss:$8 sps:$4 sm:$0xff] (!%p175_p3)  }
   0xd   : > { %1219 = vmatprep.subr.bf16.mxu0 (!%p175_p3), %v3646_v4  ;;  %3586 = vmatprep.subr.bf16.mxu1 (!%p175_p3), %v3646_v4  ;;  %v3669_v21 = vld [vmem:[%s4587_s1 + $0x90] ss:$8 sps:$4 sm:$0xff] (!%p175_p3)   ;;  %v3670_v22 = vld [vmem:[%s4587_s1 + $0xa4] ss:$8 sps:$4 sm:$0xff] (!%p175_p3)   ;;  %v3672_v23 = vld [vmem:[%s4587_s1 + $0xa0] ss:$8 sps:$4 sm:$0xff] (!%p175_p3)  }
   0xe   : > { %s4595_s26 = smov (!%p214_p4, %s3158_s26), 511  ;;  %v3673_v24 = vld [vmem:[%s4587_s1 + $0xb4] ss:$8 sps:$4 sm:$0xff]   ;;  %v3675_v25 = vld [vmem:[%s4587_s1 + $0xb0] ss:$8 sps:$4 sm:$0xff]  }
   0xf   : > { %s3454_s12 = sshll.u32 %s4595_s26, 3  ;;  %v3676_v26 = vld [vmem:[%s4587_s1 + $0xc4] ss:$8 sps:$4 sm:$0xff]   ;;  %v3678_v27 = vld [vmem:[%s4587_s1 + $0xc0] ss:$8 sps:$4 sm:$0xff]  }
  0x10   : > { %1220 = vmatpush1.bf16.msra.mxu0 %v3648_v5  ;;  %3602 = vmatpush1.bf16.msra.mxu1 %v3648_v5  ;;  %s3989_s20 = scalar_lea.vmem %s4586_s0, %s3454_s12  ;;  %v3679_v28 = vld [vmem:[%s4587_s1 + $0xd4] ss:$8 sps:$4 sm:$0xff]   ;;  %v3681_v29 = vld [vmem:[%s4587_s1 + $0xd0] ss:$8 sps:$4 sm:$0xff]   ;;  %v3682_v30 = vld [vmem:[%s4587_s1 + $0xe4] ss:$8 sps:$4 sm:$0xff]   ;;  %s4185_s23 = scalar_lea.vmem %s4589_s3, %s3454_s12 }
  0x11   : > { %1221 = vmatprep.subr.bf16.mxu0 %v3649_v6  ;;  %3587 = vmatprep.subr.bf16.mxu1 %v3649_v6  ;;  %v3690_v13 = vld [vmem:[%s3989_s20 + $0x4] ss:$8 sps:$4 sm:$0xff]   ;;  %v3684_v31 = vld [vmem:[%s4587_s1 + $0xe0] ss:$8 sps:$4 sm:$0xff]   ;;  %v3685_v32 = vld [vmem:[%s4587_s1 + $0xf4] ss:$8 sps:$4 sm:$0xff]  }
  0x12   : > { %v3693_v15 = vld [vmem:[%s3989_s20 + $0x204] ss:$8 sps:$4 sm:$0xff]   ;;  %1247 = vmatprep.mubr.bf16.mxu0 %v3690_v13  ;;  %v3687_v33 = vld [vmem:[%s4587_s1 + $0xf0] ss:$8 sps:$4 sm:$0xff]   ;;  %v3688_v34 = vld [vmem:[%s3989_s20] ss:$8 sps:$4 sm:$0xff]  }
  0x13   : > { %1567 = vmatprep.mubr.bf16.mxu1 %v3693_v15  ;;  %v3691_v35 = vld [vmem:[%s3989_s20 + $0x200] ss:$8 sps:$4 sm:$0xff]   ;;  %v3694_v36 = vld [vmem:[%s3989_s20 + $0x14] ss:$8 sps:$4 sm:$0xff]   ;;  %v3698_v38 = vld [vmem:[%s3989_s20 + $0x10] ss:$8 sps:$4 sm:$0xff]  }
  0x14   : > { %1222 = vmatpush1.bf16.msra.mxu0 %v3651_v7  ;;  %3603 = vmatpush1.bf16.msra.mxu1 %v3651_v7  ;;  %v3696_v37 = vld [vmem:[%s3989_s20 + $0x214] ss:$8 sps:$4 sm:$0xff]   ;;  %v3699_v39 = vld [vmem:[%s3989_s20 + $0x210] ss:$8 sps:$4 sm:$0xff]   ;;  %v3700_v40 = vld [vmem:[%s3989_s20 + $0x24] ss:$8 sps:$4 sm:$0xff]  }
  0x15   : > { %1223 = vmatprep.subr.bf16.mxu0 %v3652_v8  ;;  %3588 = vmatprep.subr.bf16.mxu1 %v3652_v8  ;;  %v3702_v41 = vld [vmem:[%s3989_s20 + $0x224] ss:$8 sps:$4 sm:$0xff]   ;;  %v3704_v42 = vld [vmem:[%s3989_s20 + $0x20] ss:$8 sps:$4 sm:$0xff]   ;;  %v3706_v44 = vld [vmem:[%s3989_s20 + $0x34] ss:$8 sps:$4 sm:$0xff]  }
  0x16   : > { %v3705_v43 = vld [vmem:[%s3989_s20 + $0x220] ss:$8 sps:$4 sm:$0xff]   ;;  %v3708_v45 = vld [vmem:[%s3989_s20 + $0x234] ss:$8 sps:$4 sm:$0xff]   ;;  %v3710_v46 = vld [vmem:[%s3989_s20 + $0x30] ss:$8 sps:$4 sm:$0xff]  }
  0x17   : > { %v3711_v47 = vld [vmem:[%s3989_s20 + $0x230] ss:$8 sps:$4 sm:$0xff]   ;;  %v3712_v48 = vld [vmem:[%s3989_s20 + $0x44] ss:$8 sps:$4 sm:$0xff]   ;;  %v3716_v50 = vld [vmem:[%s3989_s20 + $0x40] ss:$8 sps:$4 sm:$0xff]  }
  0x18   : > { %1224 = vmatpush1.bf16.msra.mxu0 %v3654_v9  ;;  %3604 = vmatpush1.bf16.msra.mxu1 %v3654_v9  ;;  %v3714_v49 = vld [vmem:[%s3989_s20 + $0x244] ss:$8 sps:$4 sm:$0xff]   ;;  %v3717_v51 = vld [vmem:[%s3989_s20 + $0x240] ss:$8 sps:$4 sm:$0xff]   ;;  %v3718_v52 = vld [vmem:[%s3989_s20 + $0x54] ss:$8 sps:$4 sm:$0xff]  }
  0x19   : > { %1225 = vmatprep.subr.bf16.mxu0 %v3655_v10  ;;  %3589 = vmatprep.subr.bf16.mxu1 %v3655_v10  ;;  %v3720_v53 = vld [vmem:[%s3989_s20 + $0x254] ss:$8 sps:$4 sm:$0xff]   ;;  %v3722_v54 = vld [vmem:[%s3989_s20 + $0x50] ss:$8 sps:$4 sm:$0xff]   ;;  %v3724_v56 = vld [vmem:[%s3989_s20 + $0x64] ss:$8 sps:$4 sm:$0xff]  }
  0x1a   : > { %v3723_v55 = vld [vmem:[%s3989_s20 + $0x250] ss:$8 sps:$4 sm:$0xff]   ;;  %v3726_v57 = vld [vmem:[%s3989_s20 + $0x264] ss:$8 sps:$4 sm:$0xff]   ;;  %v3728_v58 = vld [vmem:[%s3989_s20 + $0x60] ss:$8 sps:$4 sm:$0xff]  }
  0x1b   : > { %v3729_v59 = vld [vmem:[%s3989_s20 + $0x260] ss:$8 sps:$4 sm:$0xff]   ;;  %v3730_v60 = vld [vmem:[%s3989_s20 + $0x74] ss:$8 sps:$4 sm:$0xff]   ;;  %v3734_v62 = vld [vmem:[%s3989_s20 + $0x70] ss:$8 sps:$4 sm:$0xff]  }
  0x1c   : > { %1226 = vmatpush1.bf16.msra.mxu0 %v3657_v11  ;;  %3605 = vmatpush1.bf16.msra.mxu1 %v3657_v11  ;;  %v3732_v61 = vld [vmem:[%s3989_s20 + $0x274] ss:$8 sps:$4 sm:$0xff]   ;;  %v3735_v63 = vld [vmem:[%s3989_s20 + $0x270] ss:$8 sps:$4 sm:$0xff]   ;;  %v3736_v0 = vld [vmem:[%s3989_s20 + $0x84] ss:$8 sps:$4 sm:$0xff]  }
  0x1d   : > { %1227 = vmatprep.subr.bf16.mxu0 %v3658_v12  ;;  %3590 = vmatprep.subr.bf16.mxu1 %v3658_v12  ;;  %v3738_v1 = vld [vmem:[%s3989_s20 + $0x284] ss:$8 sps:$4 sm:$0xff]   ;;  %v3740_v2 = vld [vmem:[%s3989_s20 + $0x80] ss:$8 sps:$4 sm:$0xff]   ;;  %v3742_v4 = vld [vmem:[%s3989_s20 + $0x94] ss:$8 sps:$4 sm:$0xff]  }
  0x1e   : > { %v3741_v3 = vld [vmem:[%s3989_s20 + $0x280] ss:$8 sps:$4 sm:$0xff]   ;;  %v3744_v5 = vld [vmem:[%s3989_s20 + $0x294] ss:$8 sps:$4 sm:$0xff]   ;;  %v3746_v6 = vld [vmem:[%s3989_s20 + $0x90] ss:$8 sps:$4 sm:$0xff]  }
  0x1f   : > { %v3747_v7 = vld [vmem:[%s3989_s20 + $0x290] ss:$8 sps:$4 sm:$0xff]   ;;  %v3748_v8 = vld [vmem:[%s3989_s20 + $0xa4] ss:$8 sps:$4 sm:$0xff]   ;;  %v3752_v10 = vld [vmem:[%s3989_s20 + $0xa0] ss:$8 sps:$4 sm:$0xff]  }
  0x20   : > { %1228 = vmatpush1.bf16.msra.mxu0 %v3660_v14  ;;  %3606 = vmatpush1.bf16.msra.mxu1 %v3660_v14  ;;  %v3750_v9 = vld [vmem:[%s3989_s20 + $0x2a4] ss:$8 sps:$4 sm:$0xff]   ;;  %v3753_v11 = vld [vmem:[%s3989_s20 + $0x2a0] ss:$8 sps:$4 sm:$0xff]   ;;  %v3754_v12 = vld [vmem:[%s3989_s20 + $0xb4] ss:$8 sps:$4 sm:$0xff]  }
  0x21   : > { %1229 = vmatprep.subr.bf16.mxu0 %v3661_v16  ;;  %3591 = vmatprep.subr.bf16.mxu1 %v3661_v16  ;;  %v3756_v13 = vld [vmem:[%s3989_s20 + $0x2b4] ss:$8 sps:$4 sm:$0xff]   ;;  %v3758_v14 = vld [vmem:[%s3989_s20 + $0xb0] ss:$8 sps:$4 sm:$0xff]   ;;  %v3760_v16 = vld [vmem:[%s3989_s20 + $0xc4] ss:$8 sps:$4 sm:$0xff]  }
  0x22   : > { %v3759_v15 = vld [vmem:[%s3989_s20 + $0x2b0] ss:$8 sps:$4 sm:$0xff]  }
  0x24   : > { %1230 = vmatpush1.bf16.msra.mxu0 %v3663_v17  ;;  %3607 = vmatpush1.bf16.msra.mxu1 %v3663_v17  ;;  %v3762_v17 = vld [vmem:[%s3989_s20 + $0x2c4] ss:$8 sps:$4 sm:$0xff]  }
  0x25   : > { %1231 = vmatprep.subr.bf16.mxu0 %v3664_v18  ;;  %3592 = vmatprep.subr.bf16.mxu1 %v3664_v18  ;;  %v3764_v18 = vld [vmem:[%s3989_s20 + $0xc0] ss:$8 sps:$4 sm:$0xff]  }
  0x28   : > { %1232 = vmatpush1.bf16.msra.mxu0 %v3666_v19  ;;  %3608 = vmatpush1.bf16.msra.mxu1 %v3666_v19  ;;  %v3765_v19 = vld [vmem:[%s3989_s20 + $0x2c0] ss:$8 sps:$4 sm:$0xff]  }
  0x29   : > { %1233 = vmatprep.subr.bf16.mxu0 %v3667_v20  ;;  %3593 = vmatprep.subr.bf16.mxu1 %v3667_v20  ;;  %v3766_v20 = vld [vmem:[%s3989_s20 + $0xd4] ss:$8 sps:$4 sm:$0xff]  }
  0x2c   : > { %1234 = vmatpush1.bf16.msra.mxu0 %v3669_v21  ;;  %3609 = vmatpush1.bf16.msra.mxu1 %v3669_v21  ;;  %v3768_v21 = vld [vmem:[%s3989_s20 + $0x2d4] ss:$8 sps:$4 sm:$0xff]  }
  0x2d   : > { %1235 = vmatprep.subr.bf16.mxu0 %v3670_v22  ;;  %3594 = vmatprep.subr.bf16.mxu1 %v3670_v22  ;;  %v3770_v22 = vld [vmem:[%s3989_s20 + $0xd0] ss:$8 sps:$4 sm:$0xff]  }
  0x30   : > { %1236 = vmatpush1.bf16.msra.mxu0 %v3672_v23  ;;  %3610 = vmatpush1.bf16.msra.mxu1 %v3672_v23  ;;  %v3771_v23 = vld [vmem:[%s3989_s20 + $0x2d0] ss:$8 sps:$4 sm:$0xff]  }
  0x31   : > { %1237 = vmatprep.subr.bf16.mxu0 %v3673_v24  ;;  %3595 = vmatprep.subr.bf16.mxu1 %v3673_v24  ;;  %v3772_v24 = vld [vmem:[%s3989_s20 + $0xe4] ss:$8 sps:$4 sm:$0xff]  }
  0x34   : > { %1238 = vmatpush1.bf16.msra.mxu0 %v3675_v25  ;;  %3611 = vmatpush1.bf16.msra.mxu1 %v3675_v25  ;;  %v3774_v25 = vld [vmem:[%s3989_s20 + $0x2e4] ss:$8 sps:$4 sm:$0xff]  }
  0x35   : > { %1239 = vmatprep.subr.bf16.mxu0 %v3676_v26  ;;  %3596 = vmatprep.subr.bf16.mxu1 %v3676_v26  ;;  %v3776_v26 = vld [vmem:[%s3989_s20 + $0xe0] ss:$8 sps:$4 sm:$0xff]  }
  0x38   : > { %1240 = vmatpush1.bf16.msra.mxu0 %v3678_v27  ;;  %3612 = vmatpush1.bf16.msra.mxu1 %v3678_v27  ;;  %v3777_v27 = vld [vmem:[%s3989_s20 + $0x2e0] ss:$8 sps:$4 sm:$0xff]  }
  0x39   : > { %1241 = vmatprep.subr.bf16.mxu0 %v3679_v28  ;;  %3597 = vmatprep.subr.bf16.mxu1 %v3679_v28  ;;  %v3778_v28 = vld [vmem:[%s3989_s20 + $0xf4] ss:$8 sps:$4 sm:$0xff]  }
  0x3c   : > { %1242 = vmatpush1.bf16.msra.mxu0 %v3681_v29  ;;  %3613 = vmatpush1.bf16.msra.mxu1 %v3681_v29  ;;  %v3780_v29 = vld [vmem:[%s3989_s20 + $0x2f4] ss:$8 sps:$4 sm:$0xff]  }
  0x3d   : > { %1243 = vmatprep.subr.bf16.mxu0 %v3682_v30  ;;  %3598 = vmatprep.subr.bf16.mxu1 %v3682_v30  ;;  %v3782_v30 = vld [vmem:[%s3989_s20 + $0xf0] ss:$8 sps:$4 sm:$0xff]  }
  0x40   : > { %1244 = vmatpush1.bf16.msra.mxu0 %v3684_v31  ;;  %3614 = vmatpush1.bf16.msra.mxu1 %v3684_v31  ;;  %v3783_v31 = vld [vmem:[%s3989_s20 + $0x2f0] ss:$8 sps:$4 sm:$0xff]  }
  0x41   : > { %1245 = vmatprep.subr.bf16.mxu0 %v3685_v32  ;;  %3599 = vmatprep.subr.bf16.mxu1 %v3685_v32  ;;  %v3784_v32 = vld [vmem:[%s3989_s20 + $0x104] ss:$8 sps:$4 sm:$0xff]  }
  0x44   : > { %1246 = vmatpush1.bf16.msra.mxu0 %v3687_v33  ;;  %3615 = vmatpush1.bf16.msra.mxu1 %v3687_v33  ;;  %v3786_v33 = vld [vmem:[%s3989_s20 + $0x304] ss:$8 sps:$4 sm:$0xff]  }
  0x47   : > { %1248 = vmatmul.mubr.bf16.vlgmr.msra.gmra.mrb[0].mxu0 %v3688_v34  ;;  %1568 = vmatmul.mubr.bf16.vlgmr.msra.gmra.mrb[0].mxu1 %v3691_v35  ;;  %v3788_v34 = vld [vmem:[%s3989_s20 + $0x100] ss:$8 sps:$4 sm:$0xff]  }
  0x48   : > { %1257 = vmatprep.mubr.bf16.mxu0 %v3694_v36  ;;  %1577 = vmatprep.mubr.bf16.mxu1 %v3696_v37  ;;  %v3789_v35 = vld [vmem:[%s3989_s20 + $0x300] ss:$8 sps:$4 sm:$0xff]   ;;  %v3790_v36 = vld [vmem:[%s3989_s20 + $0x114] ss:$8 sps:$4 sm:$0xff]  }
  0x49   : > { %v3792_v37 = vld [vmem:[%s3989_s20 + $0x314] ss:$8 sps:$4 sm:$0xff]  }
  0x4f   : > { %1258 = vmatmul.mubr.bf16.gmra.mrb[4].mxu0 %v3698_v38  ;;  %1578 = vmatmul.mubr.bf16.gmra.mrb[4].mxu1 %v3699_v39  ;;  %v3794_v38 = vld [vmem:[%s3989_s20 + $0x110] ss:$8 sps:$4 sm:$0xff]  }
  0x50   : > { %1267 = vmatprep.mubr.bf16.mxu0 %v3700_v40  ;;  %1587 = vmatprep.mubr.bf16.mxu1 %v3702_v41  ;;  %v3795_v39 = vld [vmem:[%s3989_s20 + $0x310] ss:$8 sps:$4 sm:$0xff]   ;;  %v3796_v40 = vld [vmem:[%s3989_s20 + $0x124] ss:$8 sps:$4 sm:$0xff]  }
  0x51   : > { %v3798_v41 = vld [vmem:[%s3989_s20 + $0x324] ss:$8 sps:$4 sm:$0xff]  }
  0x57   : > { %1268 = vmatmul.mubr.bf16.gmra.mrb[8].mxu0 %v3704_v42  ;;  %1588 = vmatmul.mubr.bf16.gmra.mrb[8].mxu1 %v3705_v43  ;;  %v3800_v42 = vld [vmem:[%s3989_s20 + $0x120] ss:$8 sps:$4 sm:$0xff]  }
  0x58   : > { %1277 = vmatprep.mubr.bf16.mxu0 %v3706_v44  ;;  %1597 = vmatprep.mubr.bf16.mxu1 %v3708_v45  ;;  %v3801_v43 = vld [vmem:[%s3989_s20 + $0x320] ss:$8 sps:$4 sm:$0xff]   ;;  %v3802_v44 = vld [vmem:[%s3989_s20 + $0x134] ss:$8 sps:$4 sm:$0xff]  }
  0x59   : > { %v3804_v45 = vld [vmem:[%s3989_s20 + $0x334] ss:$8 sps:$4 sm:$0xff]  }
  0x5f   : > { %1278 = vmatmul.mubr.bf16.gmra.mrb[12].mxu0 %v3710_v46  ;;  %1598 = vmatmul.mubr.bf16.gmra.mrb[12].mxu1 %v3711_v47  ;;  %v3806_v46 = vld [vmem:[%s3989_s20 + $0x130] ss:$8 sps:$4 sm:$0xff]  }
  0x60   : > { %1287 = vmatprep.mubr.bf16.mxu0 %v3712_v48  ;;  %1607 = vmatprep.mubr.bf16.mxu1 %v3714_v49  ;;  %v3807_v47 = vld [vmem:[%s3989_s20 + $0x330] ss:$8 sps:$4 sm:$0xff]   ;;  %v3808_v48 = vld [vmem:[%s3989_s20 + $0x144] ss:$8 sps:$4 sm:$0xff]  }
  0x61   : > { %v3810_v49 = vld [vmem:[%s3989_s20 + $0x344] ss:$8 sps:$4 sm:$0xff]  }
  0x67   : > { %1288 = vmatmul.mubr.bf16.gmra.mrb[16].mxu0 %v3716_v50  ;;  %1608 = vmatmul.mubr.bf16.gmra.mrb[16].mxu1 %v3717_v51  ;;  %v3812_v50 = vld [vmem:[%s3989_s20 + $0x140] ss:$8 sps:$4 sm:$0xff]  }
  0x68   : > { %1297 = vmatprep.mubr.bf16.mxu0 %v3718_v52  ;;  %1617 = vmatprep.mubr.bf16.mxu1 %v3720_v53  ;;  %v3813_v51 = vld [vmem:[%s3989_s20 + $0x340] ss:$8 sps:$4 sm:$0xff]   ;;  %v3814_v52 = vld [vmem:[%s3989_s20 + $0x154] ss:$8 sps:$4 sm:$0xff]  }
  0x69   : > { %v3816_v53 = vld [vmem:[%s3989_s20 + $0x354] ss:$8 sps:$4 sm:$0xff]  }
  0x6f   : > { %1298 = vmatmul.mubr.bf16.gmra.mrb[20].mxu0 %v3722_v54  ;;  %1618 = vmatmul.mubr.bf16.gmra.mrb[20].mxu1 %v3723_v55  ;;  %v3818_v54 = vld [vmem:[%s3989_s20 + $0x150] ss:$8 sps:$4 sm:$0xff]  }
  0x70   : > { %1307 = vmatprep.mubr.bf16.mxu0 %v3724_v56  ;;  %1627 = vmatprep.mubr.bf16.mxu1 %v3726_v57  ;;  %v3819_v55 = vld [vmem:[%s3989_s20 + $0x350] ss:$8 sps:$4 sm:$0xff]   ;;  %v3820_v56 = vld [vmem:[%s3989_s20 + $0x164] ss:$8 sps:$4 sm:$0xff]  }
  0x71   : > { %v3822_v57 = vld [vmem:[%s3989_s20 + $0x364] ss:$8 sps:$4 sm:$0xff]  }
  0x77   : > { %1308 = vmatmul.mubr.bf16.gmra.mrb[24].mxu0 %v3728_v58  ;;  %1628 = vmatmul.mubr.bf16.gmra.mrb[24].mxu1 %v3729_v59  ;;  %v3824_v58 = vld [vmem:[%s3989_s20 + $0x160] ss:$8 sps:$4 sm:$0xff]  }
  0x78   : > { %1317 = vmatprep.mubr.bf16.mxu0 %v3730_v60  ;;  %1637 = vmatprep.mubr.bf16.mxu1 %v3732_v61  ;;  %v3825_v59 = vld [vmem:[%s3989_s20 + $0x360] ss:$8 sps:$4 sm:$0xff]   ;;  %v3826_v60 = vld [vmem:[%s3989_s20 + $0x174] ss:$8 sps:$4 sm:$0xff]  }
  0x79   : > { %v3828_v61 = vld [vmem:[%s3989_s20 + $0x374] ss:$8 sps:$4 sm:$0xff]  }
  0x7f   : > { %1318 = vmatmul.mubr.bf16.gmra.mrb[28].mxu0 %v3734_v62  ;;  %1638 = vmatmul.mubr.bf16.gmra.mrb[28].mxu1 %v3735_v63  ;;  %v3830_v62 = vld [vmem:[%s3989_s20 + $0x170] ss:$8 sps:$4 sm:$0xff]  }
  0x80   : > { %1327 = vmatprep.mubr.bf16.mxu0 %v3736_v0  ;;  %1647 = vmatprep.mubr.bf16.mxu1 %v3738_v1  ;;  %v3831_v63 = vld [vmem:[%s3989_s20 + $0x370] ss:$8 sps:$4 sm:$0xff]   ;;  %v3832_v0 = vld [vmem:[%s3989_s20 + $0x184] ss:$8 sps:$4 sm:$0xff]  }
  0x81   : > { %v3834_v1 = vld [vmem:[%s3989_s20 + $0x384] ss:$8 sps:$4 sm:$0xff]  }
  0x87   : > { %1328 = vmatmul.mubr.bf16.gmra.mrb[32].mxu0 %v3740_v2  ;;  %1648 = vmatmul.mubr.bf16.gmra.mrb[32].mxu1 %v3741_v3  ;;  %v3836_v2 = vld [vmem:[%s3989_s20 + $0x180] ss:$8 sps:$4 sm:$0xff]  }
  0x88   : > { %1337 = vmatprep.mubr.bf16.mxu0 %v3742_v4  ;;  %1657 = vmatprep.mubr.bf16.mxu1 %v3744_v5  ;;  %v3837_v3 = vld [vmem:[%s3989_s20 + $0x380] ss:$8 sps:$4 sm:$0xff]   ;;  %v3838_v4 = vld [vmem:[%s3989_s20 + $0x194] ss:$8 sps:$4 sm:$0xff]  }
  0x89   : > { %v3840_v5 = vld [vmem:[%s3989_s20 + $0x394] ss:$8 sps:$4 sm:$0xff]  }
  0x8f   : > { %1338 = vmatmul.mubr.bf16.gmra.mrb[36].mxu0 %v3746_v6  ;;  %1658 = vmatmul.mubr.bf16.gmra.mrb[36].mxu1 %v3747_v7  ;;  %v3842_v6 = vld [vmem:[%s3989_s20 + $0x190] ss:$8 sps:$4 sm:$0xff]  }
  0x90   : > { %1347 = vmatprep.mubr.bf16.mxu0 %v3748_v8  ;;  %1667 = vmatprep.mubr.bf16.mxu1 %v3750_v9  ;;  %v3843_v7 = vld [vmem:[%s3989_s20 + $0x390] ss:$8 sps:$4 sm:$0xff]   ;;  %v405_v8 = vlaneseq  ;;  %v3844_v9 = vld [vmem:[%s3989_s20 + $0x1a4] ss:$8 sps:$4 sm:$0xff]  }
  0x97   : > { %1348 = vmatmul.mubr.bf16.gmra.mrb[40].mxu0 %v3752_v10  ;;  %1668 = vmatmul.mubr.bf16.gmra.mrb[40].mxu1 %v3753_v11  ;;  %v3846_v10 = vld [vmem:[%s3989_s20 + $0x3a4] ss:$8 sps:$4 sm:$0xff]   ;;  %v406_v11 = vshrl.u32 %v405_v8, 7 }
  0x98   : > { %1357 = vmatprep.mubr.bf16.mxu0 %v3754_v12  ;;  %1677 = vmatprep.mubr.bf16.mxu1 %v3756_v13  ;;  %v3848_v12 = vld [vmem:[%s3989_s20 + $0x1a0] ss:$8 sps:$4 sm:$0xff]  }
  0x99   : > { %v3849_v13 = vld [vmem:[%s3989_s20 + $0x3a0] ss:$8 sps:$4 sm:$0xff]  }
  0x9f   : > { %1358 = vmatmul.mubr.bf16.gmra.mrb[44].mxu0 %v3758_v14  ;;  %1678 = vmatmul.mubr.bf16.gmra.mrb[44].mxu1 %v3759_v15  ;;  %v403_v14 = vld [vmem:[%s4588_s2] sm:$0x3]  ;;  %v407_v15 = vsub.s32 0, %v406_v11 }
  0xa0   : > { %1367 = vmatprep.mubr.bf16.mxu0 %v3760_v16  ;;  %1687 = vmatprep.mubr.bf16.mxu1 %v3762_v17  ;;  %v411_v16 = vsub.s32 1, %v406_v11  ;;  %v3850_v17 = vld [vmem:[%s3989_s20 + $0x1b4] ss:$8 sps:$4 sm:$0xff]  }
  0xa7   : > { %1368 = vmatmul.mubr.bf16.gmra.mrb[48].mxu0 %v3764_v18  ;;  %1688 = vmatmul.mubr.bf16.gmra.mrb[48].mxu1 %v3765_v19  ;;  %v3852_v18 = vld [vmem:[%s3989_s20 + $0x3b4] ss:$8 sps:$4 sm:$0xff]   ;;  %v4164_v19 = vrot.slane %v403_v14, %v407_v15 }
  0xa8   : > { %1377 = vmatprep.mubr.bf16.mxu0 %v3766_v20  ;;  %1697 = vmatprep.mubr.bf16.mxu1 %v3768_v21  ;;  %v4166_v20 = vrot.slane %v403_v14, %v411_v16 }
  0xaf   : > { %1378 = vmatmul.mubr.bf16.gmra.mrb[52].mxu0 %v3770_v22  ;;  %1698 = vmatmul.mubr.bf16.gmra.mrb[52].mxu1 %v3771_v23 }
  0xb0   : > { %1387 = vmatprep.mubr.bf16.mxu0 %v3772_v24  ;;  %1707 = vmatprep.mubr.bf16.mxu1 %v3774_v25 }
  0xb7   : > { %1388 = vmatmul.mubr.bf16.gmra.mrb[56].mxu0 %v3776_v26  ;;  %1708 = vmatmul.mubr.bf16.gmra.mrb[56].mxu1 %v3777_v27  ;;  %v3854_v27 = vld [vmem:[%s3989_s20 + $0x1b0] ss:$8 sps:$4 sm:$0xff]  }
  0xb8   : > { %1397 = vmatprep.mubr.bf16.mxu0 %v3778_v28  ;;  %1717 = vmatprep.mubr.bf16.mxu1 %v3780_v29  ;;  %v3855_v28 = vld [vmem:[%s3989_s20 + $0x3b0] ss:$8 sps:$4 sm:$0xff]  }
  0xbf   : > { %1398 = vmatmul.mubr.bf16.gmra.mrb[60].mxu0 %v3782_v30  ;;  %1718 = vmatmul.mubr.bf16.gmra.mrb[60].mxu1 %v3783_v31 }
  0xc0   : > { %1407 = vmatprep.mubr.bf16.mxu0 %v3784_v32  ;;  %1727 = vmatprep.mubr.bf16.mxu1 %v3786_v33  ;;  %v3856_v33 = vld [vmem:[%s3989_s20 + $0x1c4] ss:$8 sps:$4 sm:$0xff]  }
  0xc7   : > { %1408 = vmatmul.mubr.bf16.gmra.mrb[64].mxu0 %v3788_v34  ;;  %1728 = vmatmul.mubr.bf16.gmra.mrb[64].mxu1 %v3789_v35  ;;  %v3858_v34 = vld [vmem:[%s3989_s20 + $0x3c4] ss:$8 sps:$4 sm:$0xff]  }
  0xc8   : > { %1417 = vmatprep.mubr.bf16.mxu0 %v3790_v36  ;;  %1737 = vmatprep.mubr.bf16.mxu1 %v3792_v37 }
  0xcf   : > { %1418 = vmatmul.mubr.bf16.gmra.mrb[68].mxu0 %v3794_v38  ;;  %1738 = vmatmul.mubr.bf16.gmra.mrb[68].mxu1 %v3795_v39 }
  0xd0   : > { %1427 = vmatprep.mubr.bf16.mxu0 %v3796_v40  ;;  %1747 = vmatprep.mubr.bf16.mxu1 %v3798_v41 }
  0xd7   : > { %1428 = vmatmul.mubr.bf16.gmra.mrb[72].mxu0 %v3800_v42  ;;  %1748 = vmatmul.mubr.bf16.gmra.mrb[72].mxu1 %v3801_v43 }
  0xd8   : > { %1437 = vmatprep.mubr.bf16.mxu0 %v3802_v44  ;;  %1757 = vmatprep.mubr.bf16.mxu1 %v3804_v45 }
  0xdf   : > { %1438 = vmatmul.mubr.bf16.gmra.mrb[76].mxu0 %v3806_v46  ;;  %1758 = vmatmul.mubr.bf16.gmra.mrb[76].mxu1 %v3807_v47 }
  0xe0   : > { %1447 = vmatprep.mubr.bf16.mxu0 %v3808_v48  ;;  %1767 = vmatprep.mubr.bf16.mxu1 %v3810_v49 }
  0xe7   : > { %1448 = vmatmul.mubr.bf16.gmra.mrb[80].mxu0 %v3812_v50  ;;  %1768 = vmatmul.mubr.bf16.gmra.mrb[80].mxu1 %v3813_v51 }
  0xe8   : > { %1457 = vmatprep.mubr.bf16.mxu0 %v3814_v52  ;;  %1777 = vmatprep.mubr.bf16.mxu1 %v3816_v53 }
  0xef   : > { %1458 = vmatmul.mubr.bf16.gmra.mrb[84].mxu0 %v3818_v54  ;;  %1778 = vmatmul.mubr.bf16.gmra.mrb[84].mxu1 %v3819_v55 }
  0xf0   : > { %1467 = vmatprep.mubr.bf16.mxu0 %v3820_v56  ;;  %1787 = vmatprep.mubr.bf16.mxu1 %v3822_v57 }
  0xf7   : > { %1468 = vmatmul.mubr.bf16.gmra.mrb[88].mxu0 %v3824_v58  ;;  %1788 = vmatmul.mubr.bf16.gmra.mrb[88].mxu1 %v3825_v59  ;;  %v3860_v59 = vld [vmem:[%s3989_s20 + $0x1c0] ss:$8 sps:$4 sm:$0xff]  }
  0xf8   : > { %1477 = vmatprep.mubr.bf16.mxu0 %v3826_v60  ;;  %1797 = vmatprep.mubr.bf16.mxu1 %v3828_v61  ;;  %v3861_v60 = vld [vmem:[%s3989_s20 + $0x3c0] ss:$8 sps:$4 sm:$0xff]  }
  0xff   : > { %1478 = vmatmul.mubr.bf16.gmra.mrb[92].mxu0 %v3830_v62  ;;  %1798 = vmatmul.mubr.bf16.gmra.mrb[92].mxu1 %v3831_v63 }
 0x100   : > { %1487 = vmatprep.mubr.bf16.mxu0 %v3832_v0  ;;  %1807 = vmatprep.mubr.bf16.mxu1 %v3834_v1  ;;  %v3862_v1 = vld [vmem:[%s3989_s20 + $0x1d4] ss:$8 sps:$4 sm:$0xff]  }
 0x107   : > { %1488 = vmatmul.mubr.bf16.gmra.mrb[96].mxu0 %v3836_v2  ;;  %1808 = vmatmul.mubr.bf16.gmra.mrb[96].mxu1 %v3837_v3  ;;  %v3864_v2 = vld [vmem:[%s3989_s20 + $0x3d4] ss:$8 sps:$4 sm:$0xff]  }
 0x108   : > { %1497 = vmatprep.mubr.bf16.mxu0 %v3838_v4  ;;  %1817 = vmatprep.mubr.bf16.mxu1 %v3840_v5 }
 0x10f   : > { %1498 = vmatmul.mubr.bf16.gmra.mrb[100].mxu0 %v3842_v6  ;;  %1818 = vmatmul.mubr.bf16.gmra.mrb[100].mxu1 %v3843_v7 }
 0x110   : > { %1507 = vmatprep.mubr.bf16.mxu0 %v3844_v9  ;;  %1827 = vmatprep.mubr.bf16.mxu1 %v3846_v10 }
 0x117   : > { %1508 = vmatmul.mubr.bf16.gmra.mrb[104].mxu0 %v3848_v12  ;;  %1828 = vmatmul.mubr.bf16.gmra.mrb[104].mxu1 %v3849_v13 }
 0x118   : > { %1517 = vmatprep.mubr.bf16.mxu0 %v3850_v17  ;;  %1837 = vmatprep.mubr.bf16.mxu1 %v3852_v18 }
 0x11a   : > { %v1249_v21 = vpop.f32.mrb[0].mxu0  ;;  %v1569_v22 = vpop.f32.mrb[0].mxu1 }
 0x11b   : > { %v1250_v23 = vadd.f32 %v1249_v21, %v4164_v19  ;;  %v1570_v24 = vadd.f32 %v1569_v22, %v4164_v19  ;;  %v1251_v25 = vpop.f32.mrb[1].mxu0  ;;  %v1571_v26 = vpop.f32.mrb[1].mxu1 }
 0x11c   : > { %v1252_v29 = vadd.f32 %v1251_v25, %v4166_v20  ;;  %v1572_v30 = vadd.f32 %v1571_v26, %v4166_v20  ;;  %v1253_v31 = vpop.f32.mrb[2].mxu0  ;;  %v1573_v32 = vpop.f32.mrb[2].mxu1 }
 0x11d   : > { %v1888_v35 = vmax.f32 %v1250_v23, 0.0  ;;  %v2016_v36 = vmax.f32 %v1570_v24, 0.0  ;;  %v1254_v37 = vadd.f32 %v1253_v31, %v4164_v19  ;;  %v1574_v38 = vadd.f32 %v1573_v32, %v4164_v19  ;;  %v1255_v39 = vpop.f32.mrb[3].mxu0  ;;  %v1575_v40 = vpop.f32.mrb[3].mxu1 }
 0x11e   : > { %v1889_v41 = vmax.f32 %v1252_v29, 0.0  ;;  %v2017_v42 = vmax.f32 %v1572_v30, 0.0  ;;  %v1256_v43 = vadd.f32 %v1255_v39, %v4166_v20  ;;  %v1576_v44 = vadd.f32 %v1575_v40, %v4166_v20  ;;  %v3866_v29 = vld [vmem:[%s3989_s20 + $0x1d0] ss:$8 sps:$4 sm:$0xff]  }
 0x11f   : > { %v1890_v45 = vmax.f32 %v1254_v37, 0.0  ;;  %v2018_v46 = vmax.f32 %v1574_v38, 0.0  ;;  %1518 = vmatmul.mubr.bf16.gmra.mrb[108].mxu0 %v3854_v27  ;;  %1838 = vmatmul.mubr.bf16.gmra.mrb[108].mxu1 %v3855_v28  ;;  %v3867_v30 = vld [vmem:[%s3989_s20 + $0x3d0] ss:$8 sps:$4 sm:$0xff]  }
 0x120   : > { %v3456_v47 = vpack.c.bf16 %v1889_v41, %v1888_v35  ;;  %v3520_v48 = vpack.c.bf16 %v2017_v42, %v2016_v36  ;;  %v1891_v49 = vmax.f32 %v1256_v43, 0.0  ;;  %v2019_v50 = vmax.f32 %v1576_v44, 0.0  ;;  %1527 = vmatprep.mubr.bf16.mxu0 %v3856_v33  ;;  %1847 = vmatprep.mubr.bf16.mxu1 %v3858_v34  ;;  %v3868_v35 = vld [vmem:[%s3989_s20 + $0x1e4] ss:$8 sps:$4 sm:$0xff]  }
 0x121   : > { %v3870_v36 = vld [vmem:[%s3989_s20 + $0x3e4] ss:$8 sps:$4 sm:$0xff]  }
 0x122   : > { %2912 = vst [vmem:[%s4185_s23] sm:$0xff] %v3456_v47  ;;  %2976 = vst [vmem:[%s4185_s23 + $0x200] sm:$0xff] %v3520_v48  ;;  %v3457_v51 = vpack.c.bf16 %v1891_v49, %v1890_v45  ;;  %v3521_v52 = vpack.c.bf16 %v2019_v50, %v2018_v46  ;;  %v1259_v53 = vpop.f32.mrb[4].mxu0  ;;  %v1579_v54 = vpop.f32.mrb[4].mxu1 }
 0x123   : > { %v1260_v55 = vadd.f32 %v1259_v53, %v4164_v19  ;;  %v1580_v56 = vadd.f32 %v1579_v54, %v4164_v19  ;;  %v1261_v57 = vpop.f32.mrb[5].mxu0  ;;  %v1581_v58 = vpop.f32.mrb[5].mxu1 }
 0x124   : > { %2913 = vst [vmem:[%s4185_s23 + $0x8] sm:$0xff] %v3457_v51  ;;  %2977 = vst [vmem:[%s4185_s23 + $0x208] sm:$0xff] %v3521_v52  ;;  %v1262_v61 = vadd.f32 %v1261_v57, %v4166_v20  ;;  %v1582_v62 = vadd.f32 %v1581_v58, %v4166_v20  ;;  %v1263_v63 = vpop.f32.mrb[6].mxu0  ;;  %v1583_v0 = vpop.f32.mrb[6].mxu1 }
 0x125   : > { %v1892_v3 = vmax.f32 %v1260_v55, 0.0  ;;  %v2020_v4 = vmax.f32 %v1580_v56, 0.0  ;;  %v1264_v5 = vadd.f32 %v1263_v63, %v4164_v19  ;;  %v1584_v6 = vadd.f32 %v1583_v0, %v4164_v19  ;;  %v1265_v7 = vpop.f32.mrb[7].mxu0  ;;  %v1585_v8 = vpop.f32.mrb[7].mxu1 }
 0x126   : > { %v1893_v9 = vmax.f32 %v1262_v61, 0.0  ;;  %v2021_v10 = vmax.f32 %v1582_v62, 0.0  ;;  %v1266_v11 = vadd.f32 %v1265_v7, %v4166_v20  ;;  %v1586_v12 = vadd.f32 %v1585_v8, %v4166_v20  ;;  %v3872_v61 = vld [vmem:[%s3989_s20 + $0x1e0] ss:$8 sps:$4 sm:$0xff]  }
 0x127   : > { %v1894_v13 = vmax.f32 %v1264_v5, 0.0  ;;  %v2022_v14 = vmax.f32 %v1584_v6, 0.0  ;;  %1528 = vmatmul.mubr.bf16.gmra.mrb[112].mxu0 %v3860_v59  ;;  %1848 = vmatmul.mubr.bf16.gmra.mrb[112].mxu1 %v3861_v60  ;;  %v3873_v62 = vld [vmem:[%s3989_s20 + $0x3e0] ss:$8 sps:$4 sm:$0xff]  }
 0x128   : > { %v3458_v15 = vpack.c.bf16 %v1893_v9, %v1892_v3  ;;  %v3522_v16 = vpack.c.bf16 %v2021_v10, %v2020_v4  ;;  %v1895_v17 = vmax.f32 %v1266_v11, 0.0  ;;  %v2023_v18 = vmax.f32 %v1586_v12, 0.0  ;;  %1537 = vmatprep.mubr.bf16.mxu0 %v3862_v1  ;;  %1857 = vmatprep.mubr.bf16.mxu1 %v3864_v2  ;;  %v3874_v3 = vld [vmem:[%s3989_s20 + $0x1f4] ss:$8 sps:$4 sm:$0xff]  }
 0x129   : > { %v3876_v4 = vld [vmem:[%s3989_s20 + $0x3f4] ss:$8 sps:$4 sm:$0xff]  }
 0x12a   : > { %2914 = vst [vmem:[%s4185_s23 + $0x10] sm:$0xff] %v3458_v15  ;;  %2978 = vst [vmem:[%s4185_s23 + $0x210] sm:$0xff] %v3522_v16  ;;  %v3459_v21 = vpack.c.bf16 %v1895_v17, %v1894_v13  ;;  %v3523_v22 = vpack.c.bf16 %v2023_v18, %v2022_v14  ;;  %v1269_v23 = vpop.f32.mrb[8].mxu0  ;;  %v1589_v24 = vpop.f32.mrb[8].mxu1 }
 0x12b   : > { %v1270_v25 = vadd.f32 %v1269_v23, %v4164_v19  ;;  %v1590_v26 = vadd.f32 %v1589_v24, %v4164_v19  ;;  %v1271_v27 = vpop.f32.mrb[9].mxu0  ;;  %v1591_v28 = vpop.f32.mrb[9].mxu1 }
 0x12c   : > { %2915 = vst [vmem:[%s4185_s23 + $0x18] sm:$0xff] %v3459_v21  ;;  %2979 = vst [vmem:[%s4185_s23 + $0x218] sm:$0xff] %v3523_v22  ;;  %v1272_v31 = vadd.f32 %v1271_v27, %v4166_v20  ;;  %v1592_v32 = vadd.f32 %v1591_v28, %v4166_v20  ;;  %v1273_v33 = vpop.f32.mrb[10].mxu0  ;;  %v1593_v34 = vpop.f32.mrb[10].mxu1 }
 0x12d   : > { %v1896_v37 = vmax.f32 %v1270_v25, 0.0  ;;  %v2024_v38 = vmax.f32 %v1590_v26, 0.0  ;;  %v1274_v39 = vadd.f32 %v1273_v33, %v4164_v19  ;;  %v1594_v40 = vadd.f32 %v1593_v34, %v4164_v19  ;;  %v1275_v41 = vpop.f32.mrb[11].mxu0  ;;  %v1595_v42 = vpop.f32.mrb[11].mxu1 }
 0x12e   : > { %v1897_v43 = vmax.f32 %v1272_v31, 0.0  ;;  %v2025_v44 = vmax.f32 %v1592_v32, 0.0  ;;  %v1276_v45 = vadd.f32 %v1275_v41, %v4166_v20  ;;  %v1596_v46 = vadd.f32 %v1595_v42, %v4166_v20  ;;  %v3878_v31 = vld [vmem:[%s3989_s20 + $0x1f0] ss:$8 sps:$4 sm:$0xff]  }
 0x12f   : > { %v1898_v47 = vmax.f32 %v1274_v39, 0.0  ;;  %v2026_v48 = vmax.f32 %v1594_v40, 0.0  ;;  %1538 = vmatmul.mubr.bf16.gmra.mrb[116].mxu0 %v3866_v29  ;;  %1858 = vmatmul.mubr.bf16.gmra.mrb[116].mxu1 %v3867_v30  ;;  %v3879_v32 = vld [vmem:[%s3989_s20 + $0x3f0] ss:$8 sps:$4 sm:$0xff]  }
 0x130   : > { %v3460_v49 = vpack.c.bf16 %v1897_v43, %v1896_v37  ;;  %v3524_v50 = vpack.c.bf16 %v2025_v44, %v2024_v38  ;;  %v1899_v51 = vmax.f32 %v1276_v45, 0.0  ;;  %v2027_v52 = vmax.f32 %v1596_v46, 0.0  ;;  %1547 = vmatprep.mubr.bf16.mxu0 %v3868_v35  ;;  %1867 = vmatprep.mubr.bf16.mxu1 %v3870_v36 }
 0x132   : > { %2916 = vst [vmem:[%s4185_s23 + $0x20] sm:$0xff] %v3460_v49  ;;  %2980 = vst [vmem:[%s4185_s23 + $0x220] sm:$0xff] %v3524_v50  ;;  %v3461_v53 = vpack.c.bf16 %v1899_v51, %v1898_v47  ;;  %v3525_v54 = vpack.c.bf16 %v2027_v52, %v2026_v48  ;;  %v1279_v55 = vpop.f32.mrb[12].mxu0  ;;  %v1599_v56 = vpop.f32.mrb[12].mxu1 }
 0x133   : > { %v1280_v57 = vadd.f32 %v1279_v55, %v4164_v19  ;;  %v1600_v58 = vadd.f32 %v1599_v56, %v4164_v19  ;;  %v1281_v59 = vpop.f32.mrb[13].mxu0  ;;  %v1601_v60 = vpop.f32.mrb[13].mxu1 }
 0x134   : > { %2917 = vst [vmem:[%s4185_s23 + $0x28] sm:$0xff] %v3461_v53  ;;  %2981 = vst [vmem:[%s4185_s23 + $0x228] sm:$0xff] %v3525_v54  ;;  %v1282_v63 = vadd.f32 %v1281_v59, %v4166_v20  ;;  %v1602_v0 = vadd.f32 %v1601_v60, %v4166_v20  ;;  %v1283_v1 = vpop.f32.mrb[14].mxu0  ;;  %v1603_v2 = vpop.f32.mrb[14].mxu1 }
 0x135   : > { %v1900_v5 = vmax.f32 %v1280_v57, 0.0  ;;  %v2028_v6 = vmax.f32 %v1600_v58, 0.0  ;;  %v1284_v7 = vadd.f32 %v1283_v1, %v4164_v19  ;;  %v1604_v8 = vadd.f32 %v1603_v2, %v4164_v19  ;;  %v1285_v9 = vpop.f32.mrb[15].mxu0  ;;  %v1605_v10 = vpop.f32.mrb[15].mxu1 }
 0x136   : > { %v1901_v11 = vmax.f32 %v1282_v63, 0.0  ;;  %v2029_v12 = vmax.f32 %v1602_v0, 0.0  ;;  %v1286_v13 = vadd.f32 %v1285_v9, %v4166_v20  ;;  %v1606_v14 = vadd.f32 %v1605_v10, %v4166_v20 }
 0x137   : > { %v1902_v15 = vmax.f32 %v1284_v7, 0.0  ;;  %v2030_v16 = vmax.f32 %v1604_v8, 0.0  ;;  %1548 = vmatmul.mubr.bf16.gmra.mrb[120].mxu0 %v3872_v61  ;;  %1868 = vmatmul.mubr.bf16.gmra.mrb[120].mxu1 %v3873_v62 }
 0x138   : > { %v3462_v17 = vpack.c.bf16 %v1901_v11, %v1900_v5  ;;  %v3526_v18 = vpack.c.bf16 %v2029_v12, %v2028_v6  ;;  %v1903_v21 = vmax.f32 %v1286_v13, 0.0  ;;  %v2031_v22 = vmax.f32 %v1606_v14, 0.0  ;;  %1557 = vmatprep.mubr.bf16.mxu0 %v3874_v3  ;;  %1877 = vmatprep.mubr.bf16.mxu1 %v3876_v4 }
 0x13a   : > { %2918 = vst [vmem:[%s4185_s23 + $0x30] sm:$0xff] %v3462_v17  ;;  %2982 = vst [vmem:[%s4185_s23 + $0x230] sm:$0xff] %v3526_v18  ;;  %v3463_v23 = vpack.c.bf16 %v1903_v21, %v1902_v15  ;;  %v3527_v24 = vpack.c.bf16 %v2031_v22, %v2030_v16  ;;  %v1289_v25 = vpop.f32.mrb[16].mxu0  ;;  %v1609_v26 = vpop.f32.mrb[16].mxu1 }
 0x13b   : > { %v1290_v27 = vadd.f32 %v1289_v25, %v4164_v19  ;;  %v1610_v28 = vadd.f32 %v1609_v26, %v4164_v19  ;;  %v1291_v29 = vpop.f32.mrb[17].mxu0  ;;  %v1611_v30 = vpop.f32.mrb[17].mxu1 }
 0x13c   : > { %2919 = vst [vmem:[%s4185_s23 + $0x38] sm:$0xff] %v3463_v23  ;;  %2983 = vst [vmem:[%s4185_s23 + $0x238] sm:$0xff] %v3527_v24  ;;  %v1292_v33 = vadd.f32 %v1291_v29, %v4166_v20  ;;  %v1612_v34 = vadd.f32 %v1611_v30, %v4166_v20  ;;  %v1293_v35 = vpop.f32.mrb[18].mxu0  ;;  %v1613_v36 = vpop.f32.mrb[18].mxu1 }
 0x13d   : > { %v1904_v37 = vmax.f32 %v1290_v27, 0.0  ;;  %v2032_v38 = vmax.f32 %v1610_v28, 0.0  ;;  %v1294_v39 = vadd.f32 %v1293_v35, %v4164_v19  ;;  %v1614_v40 = vadd.f32 %v1613_v36, %v4164_v19  ;;  %v1295_v41 = vpop.f32.mrb[19].mxu0  ;;  %v1615_v42 = vpop.f32.mrb[19].mxu1 }
 0x13e   : > { %v1905_v43 = vmax.f32 %v1292_v33, 0.0  ;;  %v2033_v44 = vmax.f32 %v1612_v34, 0.0  ;;  %v1296_v45 = vadd.f32 %v1295_v41, %v4166_v20  ;;  %v1616_v46 = vadd.f32 %v1615_v42, %v4166_v20 }
 0x13f   : > { %v1906_v47 = vmax.f32 %v1294_v39, 0.0  ;;  %v2034_v48 = vmax.f32 %v1614_v40, 0.0  ;;  %1558 = vmatmul.mubr.bf16.gmra.mrb[124].mxu0 %v3878_v31  ;;  %1878 = vmatmul.mubr.bf16.gmra.mrb[124].mxu1 %v3879_v32 }
 0x140   : > { %v3464_v49 = vpack.c.bf16 %v1905_v43, %v1904_v37  ;;  %v3528_v50 = vpack.c.bf16 %v2033_v44, %v2032_v38  ;;  %v1907_v51 = vmax.f32 %v1296_v45, 0.0  ;;  %v2035_v52 = vmax.f32 %v1616_v46, 0.0 }
 0x142   : > { %2920 = vst [vmem:[%s4185_s23 + $0x40] sm:$0xff] %v3464_v49  ;;  %2984 = vst [vmem:[%s4185_s23 + $0x240] sm:$0xff] %v3528_v50  ;;  %v3465_v53 = vpack.c.bf16 %v1907_v51, %v1906_v47  ;;  %v3529_v54 = vpack.c.bf16 %v2035_v52, %v2034_v48  ;;  %v1299_v55 = vpop.f32.mrb[20].mxu0  ;;  %v1619_v56 = vpop.f32.mrb[20].mxu1 }
 0x143   : > { %v1300_v57 = vadd.f32 %v1299_v55, %v4164_v19  ;;  %v1620_v58 = vadd.f32 %v1619_v56, %v4164_v19  ;;  %v1301_v59 = vpop.f32.mrb[21].mxu0  ;;  %v1621_v60 = vpop.f32.mrb[21].mxu1 }
 0x144   : > { %2921 = vst [vmem:[%s4185_s23 + $0x48] sm:$0xff] %v3465_v53  ;;  %2985 = vst [vmem:[%s4185_s23 + $0x248] sm:$0xff] %v3529_v54  ;;  %v1302_v61 = vadd.f32 %v1301_v59, %v4166_v20  ;;  %v1622_v62 = vadd.f32 %v1621_v60, %v4166_v20  ;;  %v1303_v63 = vpop.f32.mrb[22].mxu0  ;;  %v1623_v0 = vpop.f32.mrb[22].mxu1 }
 0x145   : > { %v1908_v1 = vmax.f32 %v1300_v57, 0.0  ;;  %v2036_v2 = vmax.f32 %v1620_v58, 0.0  ;;  %v1304_v3 = vadd.f32 %v1303_v63, %v4164_v19  ;;  %v1624_v4 = vadd.f32 %v1623_v0, %v4164_v19  ;;  %v1305_v5 = vpop.f32.mrb[23].mxu0  ;;  %v1625_v6 = vpop.f32.mrb[23].mxu1 }
 0x146   : > { %v1909_v7 = vmax.f32 %v1302_v61, 0.0  ;;  %v2037_v8 = vmax.f32 %v1622_v62, 0.0  ;;  %v1306_v9 = vadd.f32 %v1305_v5, %v4166_v20  ;;  %v1626_v10 = vadd.f32 %v1625_v6, %v4166_v20 }
 0x147   : > { %v1910_v11 = vmax.f32 %v1304_v3, 0.0  ;;  %v2038_v12 = vmax.f32 %v1624_v4, 0.0 }
 0x148   : > { %v3466_v13 = vpack.c.bf16 %v1909_v7, %v1908_v1  ;;  %v3530_v14 = vpack.c.bf16 %v2037_v8, %v2036_v2  ;;  %v1911_v15 = vmax.f32 %v1306_v9, 0.0  ;;  %v2039_v16 = vmax.f32 %v1626_v10, 0.0 }
 0x14a   : > { %2922 = vst [vmem:[%s4185_s23 + $0x50] sm:$0xff] %v3466_v13  ;;  %2986 = vst [vmem:[%s4185_s23 + $0x250] sm:$0xff] %v3530_v14  ;;  %v3467_v17 = vpack.c.bf16 %v1911_v15, %v1910_v11  ;;  %v3531_v18 = vpack.c.bf16 %v2039_v16, %v2038_v12  ;;  %v1309_v21 = vpop.f32.mrb[24].mxu0  ;;  %v1629_v22 = vpop.f32.mrb[24].mxu1 }
 0x14b   : > { %v1310_v23 = vadd.f32 %v1309_v21, %v4164_v19  ;;  %v1630_v24 = vadd.f32 %v1629_v22, %v4164_v19  ;;  %v1311_v25 = vpop.f32.mrb[25].mxu0  ;;  %v1631_v26 = vpop.f32.mrb[25].mxu1 }
 0x14c   : > { %2923 = vst [vmem:[%s4185_s23 + $0x58] sm:$0xff] %v3467_v17  ;;  %2987 = vst [vmem:[%s4185_s23 + $0x258] sm:$0xff] %v3531_v18  ;;  %v1312_v27 = vadd.f32 %v1311_v25, %v4166_v20  ;;  %v1632_v28 = vadd.f32 %v1631_v26, %v4166_v20  ;;  %v1313_v29 = vpop.f32.mrb[26].mxu0  ;;  %v1633_v30 = vpop.f32.mrb[26].mxu1 }
 0x14d   : > { %v1912_v31 = vmax.f32 %v1310_v23, 0.0  ;;  %v2040_v32 = vmax.f32 %v1630_v24, 0.0  ;;  %v1314_v33 = vadd.f32 %v1313_v29, %v4164_v19  ;;  %v1634_v34 = vadd.f32 %v1633_v30, %v4164_v19  ;;  %v1315_v35 = vpop.f32.mrb[27].mxu0  ;;  %v1635_v36 = vpop.f32.mrb[27].mxu1 }
 0x14e   : > { %v1913_v37 = vmax.f32 %v1312_v27, 0.0  ;;  %v2041_v38 = vmax.f32 %v1632_v28, 0.0  ;;  %v1316_v39 = vadd.f32 %v1315_v35, %v4166_v20  ;;  %v1636_v40 = vadd.f32 %v1635_v36, %v4166_v20 }
 0x14f   : > { %v1914_v41 = vmax.f32 %v1314_v33, 0.0  ;;  %v2042_v42 = vmax.f32 %v1634_v34, 0.0 }
 0x150   : > { %v3468_v43 = vpack.c.bf16 %v1913_v37, %v1912_v31  ;;  %v3532_v44 = vpack.c.bf16 %v2041_v38, %v2040_v32  ;;  %v1915_v45 = vmax.f32 %v1316_v39, 0.0  ;;  %v2043_v46 = vmax.f32 %v1636_v40, 0.0 }
 0x152   : > { %2924 = vst [vmem:[%s4185_s23 + $0x60] sm:$0xff] %v3468_v43  ;;  %2988 = vst [vmem:[%s4185_s23 + $0x260] sm:$0xff] %v3532_v44  ;;  %v3469_v47 = vpack.c.bf16 %v1915_v45, %v1914_v41  ;;  %v3533_v48 = vpack.c.bf16 %v2043_v46, %v2042_v42  ;;  %v1319_v49 = vpop.f32.mrb[28].mxu0  ;;  %v1639_v50 = vpop.f32.mrb[28].mxu1 }
 0x153   : > { %v1320_v51 = vadd.f32 %v1319_v49, %v4164_v19  ;;  %v1640_v52 = vadd.f32 %v1639_v50, %v4164_v19  ;;  %v1321_v53 = vpop.f32.mrb[29].mxu0  ;;  %v1641_v54 = vpop.f32.mrb[29].mxu1 }
 0x154   : > { %2925 = vst [vmem:[%s4185_s23 + $0x68] sm:$0xff] %v3469_v47  ;;  %2989 = vst [vmem:[%s4185_s23 + $0x268] sm:$0xff] %v3533_v48  ;;  %v1322_v55 = vadd.f32 %v1321_v53, %v4166_v20  ;;  %v1642_v56 = vadd.f32 %v1641_v54, %v4166_v20  ;;  %v1323_v57 = vpop.f32.mrb[30].mxu0  ;;  %v1643_v58 = vpop.f32.mrb[30].mxu1 }
 0x155   : > { %v1916_v59 = vmax.f32 %v1320_v51, 0.0  ;;  %v2044_v60 = vmax.f32 %v1640_v52, 0.0  ;;  %v1324_v61 = vadd.f32 %v1323_v57, %v4164_v19  ;;  %v1644_v62 = vadd.f32 %v1643_v58, %v4164_v19  ;;  %v1325_v63 = vpop.f32.mrb[31].mxu0  ;;  %v1645_v0 = vpop.f32.mrb[31].mxu1 }
 0x156   : > { %v1917_v1 = vmax.f32 %v1322_v55, 0.0  ;;  %v2045_v2 = vmax.f32 %v1642_v56, 0.0  ;;  %v1326_v3 = vadd.f32 %v1325_v63, %v4166_v20  ;;  %v1646_v4 = vadd.f32 %v1645_v0, %v4166_v20 }
 0x157   : > { %v1918_v5 = vmax.f32 %v1324_v61, 0.0  ;;  %v2046_v6 = vmax.f32 %v1644_v62, 0.0 }
 0x158   : > { %v3470_v7 = vpack.c.bf16 %v1917_v1, %v1916_v59  ;;  %v3534_v8 = vpack.c.bf16 %v2045_v2, %v2044_v60  ;;  %v1919_v9 = vmax.f32 %v1326_v3, 0.0  ;;  %v2047_v10 = vmax.f32 %v1646_v4, 0.0 }
 0x15a   : > { %2926 = vst [vmem:[%s4185_s23 + $0x70] sm:$0xff] %v3470_v7  ;;  %2990 = vst [vmem:[%s4185_s23 + $0x270] sm:$0xff] %v3534_v8  ;;  %v3471_v11 = vpack.c.bf16 %v1919_v9, %v1918_v5  ;;  %v3535_v12 = vpack.c.bf16 %v2047_v10, %v2046_v6  ;;  %v1329_v13 = vpop.f32.mrb[32].mxu0  ;;  %v1649_v14 = vpop.f32.mrb[32].mxu1 }
 0x15b   : > { %v1330_v15 = vadd.f32 %v1329_v13, %v4164_v19  ;;  %v1650_v16 = vadd.f32 %v1649_v14, %v4164_v19  ;;  %v1331_v17 = vpop.f32.mrb[33].mxu0  ;;  %v1651_v18 = vpop.f32.mrb[33].mxu1 }
 0x15c   : > { %2927 = vst [vmem:[%s4185_s23 + $0x78] sm:$0xff] %v3471_v11  ;;  %2991 = vst [vmem:[%s4185_s23 + $0x278] sm:$0xff] %v3535_v12  ;;  %v1332_v21 = vadd.f32 %v1331_v17, %v4166_v20  ;;  %v1652_v22 = vadd.f32 %v1651_v18, %v4166_v20  ;;  %v1333_v23 = vpop.f32.mrb[34].mxu0  ;;  %v1653_v24 = vpop.f32.mrb[34].mxu1 }
 0x15d   : > { %v1920_v25 = vmax.f32 %v1330_v15, 0.0  ;;  %v2048_v26 = vmax.f32 %v1650_v16, 0.0  ;;  %v1334_v27 = vadd.f32 %v1333_v23, %v4164_v19  ;;  %v1654_v28 = vadd.f32 %v1653_v24, %v4164_v19  ;;  %v1335_v29 = vpop.f32.mrb[35].mxu0  ;;  %v1655_v30 = vpop.f32.mrb[35].mxu1 }
 0x15e   : > { %v1921_v31 = vmax.f32 %v1332_v21, 0.0  ;;  %v2049_v32 = vmax.f32 %v1652_v22, 0.0  ;;  %v1336_v33 = vadd.f32 %v1335_v29, %v4166_v20  ;;  %v1656_v34 = vadd.f32 %v1655_v30, %v4166_v20 }
 0x15f   : > { %v1922_v35 = vmax.f32 %v1334_v27, 0.0  ;;  %v2050_v36 = vmax.f32 %v1654_v28, 0.0 }
 0x160   : > { %v3472_v37 = vpack.c.bf16 %v1921_v31, %v1920_v25  ;;  %v3536_v38 = vpack.c.bf16 %v2049_v32, %v2048_v26  ;;  %v1923_v39 = vmax.f32 %v1336_v33, 0.0  ;;  %v2051_v40 = vmax.f32 %v1656_v34, 0.0 }
 0x162   : > { %2928 = vst [vmem:[%s4185_s23 + $0x80] sm:$0xff] %v3472_v37  ;;  %2992 = vst [vmem:[%s4185_s23 + $0x280] sm:$0xff] %v3536_v38  ;;  %v3473_v41 = vpack.c.bf16 %v1923_v39, %v1922_v35  ;;  %v3537_v42 = vpack.c.bf16 %v2051_v40, %v2050_v36  ;;  %v1339_v43 = vpop.f32.mrb[36].mxu0  ;;  %v1659_v44 = vpop.f32.mrb[36].mxu1 }
 0x163   : > { %v1340_v45 = vadd.f32 %v1339_v43, %v4164_v19  ;;  %v1660_v46 = vadd.f32 %v1659_v44, %v4164_v19  ;;  %v1341_v47 = vpop.f32.mrb[37].mxu0  ;;  %v1661_v48 = vpop.f32.mrb[37].mxu1 }
 0x164   : > { %2929 = vst [vmem:[%s4185_s23 + $0x88] sm:$0xff] %v3473_v41  ;;  %2993 = vst [vmem:[%s4185_s23 + $0x288] sm:$0xff] %v3537_v42  ;;  %v1342_v49 = vadd.f32 %v1341_v47, %v4166_v20  ;;  %v1662_v50 = vadd.f32 %v1661_v48, %v4166_v20  ;;  %v1343_v51 = vpop.f32.mrb[38].mxu0  ;;  %v1663_v52 = vpop.f32.mrb[38].mxu1 }
 0x165   : > { %v1924_v53 = vmax.f32 %v1340_v45, 0.0  ;;  %v2052_v54 = vmax.f32 %v1660_v46, 0.0  ;;  %v1344_v55 = vadd.f32 %v1343_v51, %v4164_v19  ;;  %v1664_v56 = vadd.f32 %v1663_v52, %v4164_v19  ;;  %v1345_v57 = vpop.f32.mrb[39].mxu0  ;;  %v1665_v58 = vpop.f32.mrb[39].mxu1 }
 0x166   : > { %v1925_v59 = vmax.f32 %v1342_v49, 0.0  ;;  %v2053_v60 = vmax.f32 %v1662_v50, 0.0  ;;  %v1346_v61 = vadd.f32 %v1345_v57, %v4166_v20  ;;  %v1666_v62 = vadd.f32 %v1665_v58, %v4166_v20 }
 0x167   : > { %v1926_v63 = vmax.f32 %v1344_v55, 0.0  ;;  %v2054_v0 = vmax.f32 %v1664_v56, 0.0 }
 0x168   : > { %v3474_v1 = vpack.c.bf16 %v1925_v59, %v1924_v53  ;;  %v3538_v2 = vpack.c.bf16 %v2053_v60, %v2052_v54  ;;  %v1927_v3 = vmax.f32 %v1346_v61, 0.0  ;;  %v2055_v4 = vmax.f32 %v1666_v62, 0.0 }
 0x16a   : > { %2930 = vst [vmem:[%s4185_s23 + $0x90] sm:$0xff] %v3474_v1  ;;  %2994 = vst [vmem:[%s4185_s23 + $0x290] sm:$0xff] %v3538_v2  ;;  %v3475_v5 = vpack.c.bf16 %v1927_v3, %v1926_v63  ;;  %v3539_v6 = vpack.c.bf16 %v2055_v4, %v2054_v0  ;;  %v1349_v7 = vpop.f32.mrb[40].mxu0  ;;  %v1669_v8 = vpop.f32.mrb[40].mxu1 }
 0x16b   : > { %v1350_v9 = vadd.f32 %v1349_v7, %v4164_v19  ;;  %v1670_v10 = vadd.f32 %v1669_v8, %v4164_v19  ;;  %v1351_v11 = vpop.f32.mrb[41].mxu0  ;;  %v1671_v12 = vpop.f32.mrb[41].mxu1 }
 0x16c   : > { %2931 = vst [vmem:[%s4185_s23 + $0x98] sm:$0xff] %v3475_v5  ;;  %2995 = vst [vmem:[%s4185_s23 + $0x298] sm:$0xff] %v3539_v6  ;;  %v1352_v13 = vadd.f32 %v1351_v11, %v4166_v20  ;;  %v1672_v14 = vadd.f32 %v1671_v12, %v4166_v20  ;;  %v1353_v15 = vpop.f32.mrb[42].mxu0  ;;  %v1673_v16 = vpop.f32.mrb[42].mxu1 }
 0x16d   : > { %v1928_v17 = vmax.f32 %v1350_v9, 0.0  ;;  %v2056_v18 = vmax.f32 %v1670_v10, 0.0  ;;  %v1354_v21 = vadd.f32 %v1353_v15, %v4164_v19  ;;  %v1674_v22 = vadd.f32 %v1673_v16, %v4164_v19  ;;  %v1355_v23 = vpop.f32.mrb[43].mxu0  ;;  %v1675_v24 = vpop.f32.mrb[43].mxu1 }
 0x16e   : > { %v1929_v25 = vmax.f32 %v1352_v13, 0.0  ;;  %v2057_v26 = vmax.f32 %v1672_v14, 0.0  ;;  %v1356_v27 = vadd.f32 %v1355_v23, %v4166_v20  ;;  %v1676_v28 = vadd.f32 %v1675_v24, %v4166_v20 }
 0x16f   : > { %v1930_v29 = vmax.f32 %v1354_v21, 0.0  ;;  %v2058_v30 = vmax.f32 %v1674_v22, 0.0 }
 0x170   : > { %v3476_v31 = vpack.c.bf16 %v1929_v25, %v1928_v17  ;;  %v3540_v32 = vpack.c.bf16 %v2057_v26, %v2056_v18  ;;  %v1931_v33 = vmax.f32 %v1356_v27, 0.0  ;;  %v2059_v34 = vmax.f32 %v1676_v28, 0.0 }
 0x172   : > { %2932 = vst [vmem:[%s4185_s23 + $0xa0] sm:$0xff] %v3476_v31  ;;  %2996 = vst [vmem:[%s4185_s23 + $0x2a0] sm:$0xff] %v3540_v32  ;;  %v3477_v35 = vpack.c.bf16 %v1931_v33, %v1930_v29  ;;  %v3541_v36 = vpack.c.bf16 %v2059_v34, %v2058_v30  ;;  %v1359_v37 = vpop.f32.mrb[44].mxu0  ;;  %v1679_v38 = vpop.f32.mrb[44].mxu1 }
 0x173   : > { %v1360_v39 = vadd.f32 %v1359_v37, %v4164_v19  ;;  %v1680_v40 = vadd.f32 %v1679_v38, %v4164_v19  ;;  %v1361_v41 = vpop.f32.mrb[45].mxu0  ;;  %v1681_v42 = vpop.f32.mrb[45].mxu1 }
 0x174   : > { %2933 = vst [vmem:[%s4185_s23 + $0xa8] sm:$0xff] %v3477_v35  ;;  %2997 = vst [vmem:[%s4185_s23 + $0x2a8] sm:$0xff] %v3541_v36  ;;  %v1362_v43 = vadd.f32 %v1361_v41, %v4166_v20  ;;  %v1682_v44 = vadd.f32 %v1681_v42, %v4166_v20  ;;  %v1363_v45 = vpop.f32.mrb[46].mxu0  ;;  %v1683_v46 = vpop.f32.mrb[46].mxu1 }
 0x175   : > { %v1932_v47 = vmax.f32 %v1360_v39, 0.0  ;;  %v2060_v48 = vmax.f32 %v1680_v40, 0.0  ;;  %v1364_v49 = vadd.f32 %v1363_v45, %v4164_v19  ;;  %v1684_v50 = vadd.f32 %v1683_v46, %v4164_v19  ;;  %v1365_v51 = vpop.f32.mrb[47].mxu0  ;;  %v1685_v52 = vpop.f32.mrb[47].mxu1 }
 0x176   : > { %v1933_v53 = vmax.f32 %v1362_v43, 0.0  ;;  %v2061_v54 = vmax.f32 %v1682_v44, 0.0  ;;  %v1366_v55 = vadd.f32 %v1365_v51, %v4166_v20  ;;  %v1686_v56 = vadd.f32 %v1685_v52, %v4166_v20 }
 0x177   : > { %v1934_v57 = vmax.f32 %v1364_v49, 0.0  ;;  %v2062_v58 = vmax.f32 %v1684_v50, 0.0 }
 0x178   : > { %v3478_v59 = vpack.c.bf16 %v1933_v53, %v1932_v47  ;;  %v3542_v60 = vpack.c.bf16 %v2061_v54, %v2060_v48  ;;  %v1935_v61 = vmax.f32 %v1366_v55, 0.0  ;;  %v2063_v62 = vmax.f32 %v1686_v56, 0.0 }
 0x17a   : > { %2934 = vst [vmem:[%s4185_s23 + $0xb0] sm:$0xff] %v3478_v59  ;;  %2998 = vst [vmem:[%s4185_s23 + $0x2b0] sm:$0xff] %v3542_v60  ;;  %v3479_v63 = vpack.c.bf16 %v1935_v61, %v1934_v57  ;;  %v3543_v0 = vpack.c.bf16 %v2063_v62, %v2062_v58  ;;  %v1369_v1 = vpop.f32.mrb[48].mxu0  ;;  %v1689_v2 = vpop.f32.mrb[48].mxu1 }
 0x17b   : > { %v1370_v3 = vadd.f32 %v1369_v1, %v4164_v19  ;;  %v1690_v4 = vadd.f32 %v1689_v2, %v4164_v19  ;;  %v1371_v5 = vpop.f32.mrb[49].mxu0  ;;  %v1691_v6 = vpop.f32.mrb[49].mxu1 }
 0x17c   : > { %2935 = vst [vmem:[%s4185_s23 + $0xb8] sm:$0xff] %v3479_v63  ;;  %2999 = vst [vmem:[%s4185_s23 + $0x2b8] sm:$0xff] %v3543_v0  ;;  %v1372_v7 = vadd.f32 %v1371_v5, %v4166_v20  ;;  %v1692_v8 = vadd.f32 %v1691_v6, %v4166_v20  ;;  %v1373_v9 = vpop.f32.mrb[50].mxu0  ;;  %v1693_v10 = vpop.f32.mrb[50].mxu1 }
 0x17d   : > { %v1936_v11 = vmax.f32 %v1370_v3, 0.0  ;;  %v2064_v12 = vmax.f32 %v1690_v4, 0.0  ;;  %v1374_v13 = vadd.f32 %v1373_v9, %v4164_v19  ;;  %v1694_v14 = vadd.f32 %v1693_v10, %v4164_v19  ;;  %v1375_v15 = vpop.f32.mrb[51].mxu0  ;;  %v1695_v16 = vpop.f32.mrb[51].mxu1 }
 0x17e   : > { %v1937_v17 = vmax.f32 %v1372_v7, 0.0  ;;  %v2065_v18 = vmax.f32 %v1692_v8, 0.0  ;;  %v1376_v21 = vadd.f32 %v1375_v15, %v4166_v20  ;;  %v1696_v22 = vadd.f32 %v1695_v16, %v4166_v20 }
 0x17f   : > { %v1938_v23 = vmax.f32 %v1374_v13, 0.0  ;;  %v2066_v24 = vmax.f32 %v1694_v14, 0.0 }
 0x180   : > { %v3480_v25 = vpack.c.bf16 %v1937_v17, %v1936_v11  ;;  %v3544_v26 = vpack.c.bf16 %v2065_v18, %v2064_v12  ;;  %v1939_v27 = vmax.f32 %v1376_v21, 0.0  ;;  %v2067_v28 = vmax.f32 %v1696_v22, 0.0 }
 0x182   : > { %2936 = vst [vmem:[%s4185_s23 + $0xc0] sm:$0xff] %v3480_v25  ;;  %3000 = vst [vmem:[%s4185_s23 + $0x2c0] sm:$0xff] %v3544_v26  ;;  %v3481_v29 = vpack.c.bf16 %v1939_v27, %v1938_v23  ;;  %v3545_v30 = vpack.c.bf16 %v2067_v28, %v2066_v24  ;;  %v1379_v31 = vpop.f32.mrb[52].mxu0  ;;  %v1699_v32 = vpop.f32.mrb[52].mxu1 }
 0x183   : > { %v1380_v33 = vadd.f32 %v1379_v31, %v4164_v19  ;;  %v1700_v34 = vadd.f32 %v1699_v32, %v4164_v19  ;;  %v1381_v35 = vpop.f32.mrb[53].mxu0  ;;  %v1701_v36 = vpop.f32.mrb[53].mxu1 }
 0x184   : > { %2937 = vst [vmem:[%s4185_s23 + $0xc8] sm:$0xff] %v3481_v29  ;;  %3001 = vst [vmem:[%s4185_s23 + $0x2c8] sm:$0xff] %v3545_v30  ;;  %v1382_v37 = vadd.f32 %v1381_v35, %v4166_v20  ;;  %v1702_v38 = vadd.f32 %v1701_v36, %v4166_v20  ;;  %v1383_v39 = vpop.f32.mrb[54].mxu0  ;;  %v1703_v40 = vpop.f32.mrb[54].mxu1 }
 0x185   : > { %v1940_v41 = vmax.f32 %v1380_v33, 0.0  ;;  %v2068_v42 = vmax.f32 %v1700_v34, 0.0  ;;  %v1384_v43 = vadd.f32 %v1383_v39, %v4164_v19  ;;  %v1704_v44 = vadd.f32 %v1703_v40, %v4164_v19  ;;  %v1385_v45 = vpop.f32.mrb[55].mxu0  ;;  %v1705_v46 = vpop.f32.mrb[55].mxu1 }
 0x186   : > { %v1941_v47 = vmax.f32 %v1382_v37, 0.0  ;;  %v2069_v48 = vmax.f32 %v1702_v38, 0.0  ;;  %v1386_v49 = vadd.f32 %v1385_v45, %v4166_v20  ;;  %v1706_v50 = vadd.f32 %v1705_v46, %v4166_v20 }
 0x187   : > { %v1942_v51 = vmax.f32 %v1384_v43, 0.0  ;;  %v2070_v52 = vmax.f32 %v1704_v44, 0.0 }
 0x188   : > { %v3482_v53 = vpack.c.bf16 %v1941_v47, %v1940_v41  ;;  %v3546_v54 = vpack.c.bf16 %v2069_v48, %v2068_v42  ;;  %v1943_v55 = vmax.f32 %v1386_v49, 0.0  ;;  %v2071_v56 = vmax.f32 %v1706_v50, 0.0 }
 0x18a   : > { %2938 = vst [vmem:[%s4185_s23 + $0xd0] sm:$0xff] %v3482_v53  ;;  %3002 = vst [vmem:[%s4185_s23 + $0x2d0] sm:$0xff] %v3546_v54  ;;  %v3483_v57 = vpack.c.bf16 %v1943_v55, %v1942_v51  ;;  %v3547_v58 = vpack.c.bf16 %v2071_v56, %v2070_v52  ;;  %v1389_v59 = vpop.f32.mrb[56].mxu0  ;;  %v1709_v60 = vpop.f32.mrb[56].mxu1 }
 0x18b   : > { %v1390_v61 = vadd.f32 %v1389_v59, %v4164_v19  ;;  %v1710_v62 = vadd.f32 %v1709_v60, %v4164_v19  ;;  %v1391_v63 = vpop.f32.mrb[57].mxu0  ;;  %v1711_v0 = vpop.f32.mrb[57].mxu1 }
 0x18c   : > { %2939 = vst [vmem:[%s4185_s23 + $0xd8] sm:$0xff] %v3483_v57  ;;  %3003 = vst [vmem:[%s4185_s23 + $0x2d8] sm:$0xff] %v3547_v58  ;;  %v1392_v1 = vadd.f32 %v1391_v63, %v4166_v20  ;;  %v1712_v2 = vadd.f32 %v1711_v0, %v4166_v20  ;;  %v1393_v3 = vpop.f32.mrb[58].mxu0  ;;  %v1713_v4 = vpop.f32.mrb[58].mxu1 }
 0x18d   : > { %v1944_v5 = vmax.f32 %v1390_v61, 0.0  ;;  %v2072_v6 = vmax.f32 %v1710_v62, 0.0  ;;  %v1394_v7 = vadd.f32 %v1393_v3, %v4164_v19  ;;  %v1714_v8 = vadd.f32 %v1713_v4, %v4164_v19  ;;  %v1395_v9 = vpop.f32.mrb[59].mxu0  ;;  %v1715_v10 = vpop.f32.mrb[59].mxu1 }
 0x18e   : > { %v1945_v11 = vmax.f32 %v1392_v1, 0.0  ;;  %v2073_v12 = vmax.f32 %v1712_v2, 0.0  ;;  %v1396_v13 = vadd.f32 %v1395_v9, %v4166_v20  ;;  %v1716_v14 = vadd.f32 %v1715_v10, %v4166_v20 }
 0x18f   : > { %v1946_v15 = vmax.f32 %v1394_v7, 0.0  ;;  %v2074_v16 = vmax.f32 %v1714_v8, 0.0 }
 0x190   : > { %v3484_v17 = vpack.c.bf16 %v1945_v11, %v1944_v5  ;;  %v3548_v18 = vpack.c.bf16 %v2073_v12, %v2072_v6  ;;  %v1947_v21 = vmax.f32 %v1396_v13, 0.0  ;;  %v2075_v22 = vmax.f32 %v1716_v14, 0.0 }
 0x192   : > { %2940 = vst [vmem:[%s4185_s23 + $0xe0] sm:$0xff] %v3484_v17  ;;  %3004 = vst [vmem:[%s4185_s23 + $0x2e0] sm:$0xff] %v3548_v18  ;;  %v3485_v23 = vpack.c.bf16 %v1947_v21, %v1946_v15  ;;  %v3549_v24 = vpack.c.bf16 %v2075_v22, %v2074_v16  ;;  %v1399_v25 = vpop.f32.mrb[60].mxu0  ;;  %v1719_v26 = vpop.f32.mrb[60].mxu1 }
 0x193   : > { %v1400_v27 = vadd.f32 %v1399_v25, %v4164_v19  ;;  %v1720_v28 = vadd.f32 %v1719_v26, %v4164_v19  ;;  %v1401_v29 = vpop.f32.mrb[61].mxu0  ;;  %v1721_v30 = vpop.f32.mrb[61].mxu1 }
 0x194   : > { %2941 = vst [vmem:[%s4185_s23 + $0xe8] sm:$0xff] %v3485_v23  ;;  %3005 = vst [vmem:[%s4185_s23 + $0x2e8] sm:$0xff] %v3549_v24  ;;  %v1402_v31 = vadd.f32 %v1401_v29, %v4166_v20  ;;  %v1722_v32 = vadd.f32 %v1721_v30, %v4166_v20  ;;  %v1403_v33 = vpop.f32.mrb[62].mxu0  ;;  %v1723_v34 = vpop.f32.mrb[62].mxu1 }
 0x195   : > { %v1948_v35 = vmax.f32 %v1400_v27, 0.0  ;;  %v2076_v36 = vmax.f32 %v1720_v28, 0.0  ;;  %v1404_v37 = vadd.f32 %v1403_v33, %v4164_v19  ;;  %v1724_v38 = vadd.f32 %v1723_v34, %v4164_v19  ;;  %v1405_v39 = vpop.f32.mrb[63].mxu0  ;;  %v1725_v40 = vpop.f32.mrb[63].mxu1 }
 0x196   : > { %v1949_v41 = vmax.f32 %v1402_v31, 0.0  ;;  %v2077_v42 = vmax.f32 %v1722_v32, 0.0  ;;  %v1406_v43 = vadd.f32 %v1405_v39, %v4166_v20  ;;  %v1726_v44 = vadd.f32 %v1725_v40, %v4166_v20 }
 0x197   : > { %v1950_v45 = vmax.f32 %v1404_v37, 0.0  ;;  %v2078_v46 = vmax.f32 %v1724_v38, 0.0 }
 0x198   : > { %v3486_v47 = vpack.c.bf16 %v1949_v41, %v1948_v35  ;;  %v3550_v48 = vpack.c.bf16 %v2077_v42, %v2076_v36  ;;  %v1951_v49 = vmax.f32 %v1406_v43, 0.0  ;;  %v2079_v50 = vmax.f32 %v1726_v44, 0.0 }
 0x19a   : > { %2942 = vst [vmem:[%s4185_s23 + $0xf0] sm:$0xff] %v3486_v47  ;;  %3006 = vst [vmem:[%s4185_s23 + $0x2f0] sm:$0xff] %v3550_v48  ;;  %v3487_v51 = vpack.c.bf16 %v1951_v49, %v1950_v45  ;;  %v3551_v52 = vpack.c.bf16 %v2079_v50, %v2078_v46  ;;  %v1409_v53 = vpop.f32.mrb[64].mxu0  ;;  %v1729_v54 = vpop.f32.mrb[64].mxu1 }
 0x19b   : > { %v1410_v55 = vadd.f32 %v1409_v53, %v4164_v19  ;;  %v1730_v56 = vadd.f32 %v1729_v54, %v4164_v19  ;;  %v1411_v57 = vpop.f32.mrb[65].mxu0  ;;  %v1731_v58 = vpop.f32.mrb[65].mxu1 }
 0x19c   : > { %2943 = vst [vmem:[%s4185_s23 + $0xf8] sm:$0xff] %v3487_v51  ;;  %3007 = vst [vmem:[%s4185_s23 + $0x2f8] sm:$0xff] %v3551_v52  ;;  %v1412_v59 = vadd.f32 %v1411_v57, %v4166_v20  ;;  %v1732_v60 = vadd.f32 %v1731_v58, %v4166_v20  ;;  %v1413_v61 = vpop.f32.mrb[66].mxu0  ;;  %v1733_v62 = vpop.f32.mrb[66].mxu1 }
 0x19d   : > { %v1952_v63 = vmax.f32 %v1410_v55, 0.0  ;;  %v2080_v0 = vmax.f32 %v1730_v56, 0.0  ;;  %v1414_v1 = vadd.f32 %v1413_v61, %v4164_v19  ;;  %v1734_v2 = vadd.f32 %v1733_v62, %v4164_v19  ;;  %v1415_v3 = vpop.f32.mrb[67].mxu0  ;;  %v1735_v4 = vpop.f32.mrb[67].mxu1 }
 0x19e   : > { %v1953_v5 = vmax.f32 %v1412_v59, 0.0  ;;  %v2081_v6 = vmax.f32 %v1732_v60, 0.0  ;;  %v1416_v7 = vadd.f32 %v1415_v3, %v4166_v20  ;;  %v1736_v8 = vadd.f32 %v1735_v4, %v4166_v20 }
 0x19f   : > { %v1954_v9 = vmax.f32 %v1414_v1, 0.0  ;;  %v2082_v10 = vmax.f32 %v1734_v2, 0.0 }
 0x1a0   : > { %v3488_v11 = vpack.c.bf16 %v1953_v5, %v1952_v63  ;;  %v3552_v12 = vpack.c.bf16 %v2081_v6, %v2080_v0  ;;  %v1955_v13 = vmax.f32 %v1416_v7, 0.0  ;;  %v2083_v14 = vmax.f32 %v1736_v8, 0.0 }
 0x1a2   : > { %2944 = vst [vmem:[%s4185_s23 + $0x100] sm:$0xff] %v3488_v11  ;;  %3008 = vst [vmem:[%s4185_s23 + $0x300] sm:$0xff] %v3552_v12  ;;  %v3489_v15 = vpack.c.bf16 %v1955_v13, %v1954_v9  ;;  %v3553_v16 = vpack.c.bf16 %v2083_v14, %v2082_v10  ;;  %v1419_v17 = vpop.f32.mrb[68].mxu0  ;;  %v1739_v18 = vpop.f32.mrb[68].mxu1 }
 0x1a3   : > { %v1420_v21 = vadd.f32 %v1419_v17, %v4164_v19  ;;  %v1740_v22 = vadd.f32 %v1739_v18, %v4164_v19  ;;  %v1421_v23 = vpop.f32.mrb[69].mxu0  ;;  %v1741_v24 = vpop.f32.mrb[69].mxu1 }
 0x1a4   : > { %2945 = vst [vmem:[%s4185_s23 + $0x108] sm:$0xff] %v3489_v15  ;;  %3009 = vst [vmem:[%s4185_s23 + $0x308] sm:$0xff] %v3553_v16  ;;  %v1422_v25 = vadd.f32 %v1421_v23, %v4166_v20  ;;  %v1742_v26 = vadd.f32 %v1741_v24, %v4166_v20  ;;  %v1423_v27 = vpop.f32.mrb[70].mxu0  ;;  %v1743_v28 = vpop.f32.mrb[70].mxu1 }
 0x1a5   : > { %v1956_v29 = vmax.f32 %v1420_v21, 0.0  ;;  %v2084_v30 = vmax.f32 %v1740_v22, 0.0  ;;  %v1424_v31 = vadd.f32 %v1423_v27, %v4164_v19  ;;  %v1744_v32 = vadd.f32 %v1743_v28, %v4164_v19  ;;  %v1425_v33 = vpop.f32.mrb[71].mxu0  ;;  %v1745_v34 = vpop.f32.mrb[71].mxu1 }
 0x1a6   : > { %v1957_v35 = vmax.f32 %v1422_v25, 0.0  ;;  %v2085_v36 = vmax.f32 %v1742_v26, 0.0  ;;  %v1426_v37 = vadd.f32 %v1425_v33, %v4166_v20  ;;  %v1746_v38 = vadd.f32 %v1745_v34, %v4166_v20 }
 0x1a7   : > { %v1958_v39 = vmax.f32 %v1424_v31, 0.0  ;;  %v2086_v40 = vmax.f32 %v1744_v32, 0.0 }
 0x1a8   : > { %v3490_v41 = vpack.c.bf16 %v1957_v35, %v1956_v29  ;;  %v3554_v42 = vpack.c.bf16 %v2085_v36, %v2084_v30  ;;  %v1959_v43 = vmax.f32 %v1426_v37, 0.0  ;;  %v2087_v44 = vmax.f32 %v1746_v38, 0.0 }
 0x1aa   : > { %2946 = vst [vmem:[%s4185_s23 + $0x110] sm:$0xff] %v3490_v41  ;;  %3010 = vst [vmem:[%s4185_s23 + $0x310] sm:$0xff] %v3554_v42  ;;  %v3491_v45 = vpack.c.bf16 %v1959_v43, %v1958_v39  ;;  %v3555_v46 = vpack.c.bf16 %v2087_v44, %v2086_v40  ;;  %v1429_v47 = vpop.f32.mrb[72].mxu0  ;;  %v1749_v48 = vpop.f32.mrb[72].mxu1 }
 0x1ab   : > { %v1430_v49 = vadd.f32 %v1429_v47, %v4164_v19  ;;  %v1750_v50 = vadd.f32 %v1749_v48, %v4164_v19  ;;  %v1431_v51 = vpop.f32.mrb[73].mxu0  ;;  %v1751_v52 = vpop.f32.mrb[73].mxu1 }
 0x1ac   : > { %2947 = vst [vmem:[%s4185_s23 + $0x118] sm:$0xff] %v3491_v45  ;;  %3011 = vst [vmem:[%s4185_s23 + $0x318] sm:$0xff] %v3555_v46  ;;  %v1432_v53 = vadd.f32 %v1431_v51, %v4166_v20  ;;  %v1752_v54 = vadd.f32 %v1751_v52, %v4166_v20  ;;  %v1433_v55 = vpop.f32.mrb[74].mxu0  ;;  %v1753_v56 = vpop.f32.mrb[74].mxu1 }
 0x1ad   : > { %v1960_v57 = vmax.f32 %v1430_v49, 0.0  ;;  %v2088_v58 = vmax.f32 %v1750_v50, 0.0  ;;  %v1434_v59 = vadd.f32 %v1433_v55, %v4164_v19  ;;  %v1754_v60 = vadd.f32 %v1753_v56, %v4164_v19  ;;  %v1435_v61 = vpop.f32.mrb[75].mxu0  ;;  %v1755_v62 = vpop.f32.mrb[75].mxu1 }
 0x1ae   : > { %v1961_v63 = vmax.f32 %v1432_v53, 0.0  ;;  %v2089_v0 = vmax.f32 %v1752_v54, 0.0  ;;  %v1436_v1 = vadd.f32 %v1435_v61, %v4166_v20  ;;  %v1756_v2 = vadd.f32 %v1755_v62, %v4166_v20 }
 0x1af   : > { %v1962_v3 = vmax.f32 %v1434_v59, 0.0  ;;  %v2090_v4 = vmax.f32 %v1754_v60, 0.0 }
 0x1b0   : > { %v3492_v5 = vpack.c.bf16 %v1961_v63, %v1960_v57  ;;  %v3556_v6 = vpack.c.bf16 %v2089_v0, %v2088_v58  ;;  %v1963_v7 = vmax.f32 %v1436_v1, 0.0  ;;  %v2091_v8 = vmax.f32 %v1756_v2, 0.0 }
 0x1b2   : > { %2948 = vst [vmem:[%s4185_s23 + $0x120] sm:$0xff] %v3492_v5  ;;  %3012 = vst [vmem:[%s4185_s23 + $0x320] sm:$0xff] %v3556_v6  ;;  %v3493_v9 = vpack.c.bf16 %v1963_v7, %v1962_v3  ;;  %v3557_v10 = vpack.c.bf16 %v2091_v8, %v2090_v4  ;;  %v1439_v11 = vpop.f32.mrb[76].mxu0  ;;  %v1759_v12 = vpop.f32.mrb[76].mxu1 }
 0x1b3   : > { %v1440_v13 = vadd.f32 %v1439_v11, %v4164_v19  ;;  %v1760_v14 = vadd.f32 %v1759_v12, %v4164_v19  ;;  %v1441_v15 = vpop.f32.mrb[77].mxu0  ;;  %v1761_v16 = vpop.f32.mrb[77].mxu1 }
 0x1b4   : > { %2949 = vst [vmem:[%s4185_s23 + $0x128] sm:$0xff] %v3493_v9  ;;  %3013 = vst [vmem:[%s4185_s23 + $0x328] sm:$0xff] %v3557_v10  ;;  %v1442_v17 = vadd.f32 %v1441_v15, %v4166_v20  ;;  %v1762_v18 = vadd.f32 %v1761_v16, %v4166_v20  ;;  %v1443_v21 = vpop.f32.mrb[78].mxu0  ;;  %v1763_v22 = vpop.f32.mrb[78].mxu1 }
 0x1b5   : > { %v1964_v23 = vmax.f32 %v1440_v13, 0.0  ;;  %v2092_v24 = vmax.f32 %v1760_v14, 0.0  ;;  %v1444_v25 = vadd.f32 %v1443_v21, %v4164_v19  ;;  %v1764_v26 = vadd.f32 %v1763_v22, %v4164_v19  ;;  %v1445_v27 = vpop.f32.mrb[79].mxu0  ;;  %v1765_v28 = vpop.f32.mrb[79].mxu1 }
 0x1b6   : > { %v1965_v29 = vmax.f32 %v1442_v17, 0.0  ;;  %v2093_v30 = vmax.f32 %v1762_v18, 0.0  ;;  %v1446_v31 = vadd.f32 %v1445_v27, %v4166_v20  ;;  %v1766_v32 = vadd.f32 %v1765_v28, %v4166_v20 }
 0x1b7   : > { %v1966_v33 = vmax.f32 %v1444_v25, 0.0  ;;  %v2094_v34 = vmax.f32 %v1764_v26, 0.0 }
 0x1b8   : > { %v3494_v35 = vpack.c.bf16 %v1965_v29, %v1964_v23  ;;  %v3558_v36 = vpack.c.bf16 %v2093_v30, %v2092_v24  ;;  %v1967_v37 = vmax.f32 %v1446_v31, 0.0  ;;  %v2095_v38 = vmax.f32 %v1766_v32, 0.0 }
 0x1ba   : > { %2950 = vst [vmem:[%s4185_s23 + $0x130] sm:$0xff] %v3494_v35  ;;  %3014 = vst [vmem:[%s4185_s23 + $0x330] sm:$0xff] %v3558_v36  ;;  %v3495_v39 = vpack.c.bf16 %v1967_v37, %v1966_v33  ;;  %v3559_v40 = vpack.c.bf16 %v2095_v38, %v2094_v34  ;;  %v1449_v41 = vpop.f32.mrb[80].mxu0  ;;  %v1769_v42 = vpop.f32.mrb[80].mxu1 }
 0x1bb   : > { %v1450_v43 = vadd.f32 %v1449_v41, %v4164_v19  ;;  %v1770_v44 = vadd.f32 %v1769_v42, %v4164_v19  ;;  %v1451_v45 = vpop.f32.mrb[81].mxu0  ;;  %v1771_v46 = vpop.f32.mrb[81].mxu1 }
 0x1bc   : > { %2951 = vst [vmem:[%s4185_s23 + $0x138] sm:$0xff] %v3495_v39  ;;  %3015 = vst [vmem:[%s4185_s23 + $0x338] sm:$0xff] %v3559_v40  ;;  %v1452_v47 = vadd.f32 %v1451_v45, %v4166_v20  ;;  %v1772_v48 = vadd.f32 %v1771_v46, %v4166_v20  ;;  %v1453_v49 = vpop.f32.mrb[82].mxu0  ;;  %v1773_v50 = vpop.f32.mrb[82].mxu1 }
 0x1bd   : > { %v1968_v51 = vmax.f32 %v1450_v43, 0.0  ;;  %v2096_v52 = vmax.f32 %v1770_v44, 0.0  ;;  %v1454_v53 = vadd.f32 %v1453_v49, %v4164_v19  ;;  %v1774_v54 = vadd.f32 %v1773_v50, %v4164_v19  ;;  %v1455_v55 = vpop.f32.mrb[83].mxu0  ;;  %v1775_v56 = vpop.f32.mrb[83].mxu1 }
 0x1be   : > { %v1969_v57 = vmax.f32 %v1452_v47, 0.0  ;;  %v2097_v58 = vmax.f32 %v1772_v48, 0.0  ;;  %v1456_v59 = vadd.f32 %v1455_v55, %v4166_v20  ;;  %v1776_v60 = vadd.f32 %v1775_v56, %v4166_v20 }
 0x1bf   : > { %v1970_v61 = vmax.f32 %v1454_v53, 0.0  ;;  %v2098_v62 = vmax.f32 %v1774_v54, 0.0 }
 0x1c0   : > { %v3496_v63 = vpack.c.bf16 %v1969_v57, %v1968_v51  ;;  %v3560_v0 = vpack.c.bf16 %v2097_v58, %v2096_v52  ;;  %v1971_v1 = vmax.f32 %v1456_v59, 0.0  ;;  %v2099_v2 = vmax.f32 %v1776_v60, 0.0 }
 0x1c2   : > { %2952 = vst [vmem:[%s4185_s23 + $0x140] sm:$0xff] %v3496_v63  ;;  %3016 = vst [vmem:[%s4185_s23 + $0x340] sm:$0xff] %v3560_v0  ;;  %v3497_v3 = vpack.c.bf16 %v1971_v1, %v1970_v61  ;;  %v3561_v4 = vpack.c.bf16 %v2099_v2, %v2098_v62  ;;  %v1459_v5 = vpop.f32.mrb[84].mxu0  ;;  %v1779_v6 = vpop.f32.mrb[84].mxu1 }
 0x1c3   : > { %v1460_v7 = vadd.f32 %v1459_v5, %v4164_v19  ;;  %v1780_v8 = vadd.f32 %v1779_v6, %v4164_v19  ;;  %v1461_v9 = vpop.f32.mrb[85].mxu0  ;;  %v1781_v10 = vpop.f32.mrb[85].mxu1 }
 0x1c4   : > { %2953 = vst [vmem:[%s4185_s23 + $0x148] sm:$0xff] %v3497_v3  ;;  %3017 = vst [vmem:[%s4185_s23 + $0x348] sm:$0xff] %v3561_v4  ;;  %v1462_v11 = vadd.f32 %v1461_v9, %v4166_v20  ;;  %v1782_v12 = vadd.f32 %v1781_v10, %v4166_v20  ;;  %v1463_v13 = vpop.f32.mrb[86].mxu0  ;;  %v1783_v14 = vpop.f32.mrb[86].mxu1 }
 0x1c5   : > { %v1972_v15 = vmax.f32 %v1460_v7, 0.0  ;;  %v2100_v16 = vmax.f32 %v1780_v8, 0.0  ;;  %v1464_v17 = vadd.f32 %v1463_v13, %v4164_v19  ;;  %v1784_v18 = vadd.f32 %v1783_v14, %v4164_v19  ;;  %v1465_v21 = vpop.f32.mrb[87].mxu0  ;;  %v1785_v22 = vpop.f32.mrb[87].mxu1 }
 0x1c6   : > { %v1973_v23 = vmax.f32 %v1462_v11, 0.0  ;;  %v2101_v24 = vmax.f32 %v1782_v12, 0.0  ;;  %v1466_v25 = vadd.f32 %v1465_v21, %v4166_v20  ;;  %v1786_v26 = vadd.f32 %v1785_v22, %v4166_v20 }
 0x1c7   : > { %v1974_v27 = vmax.f32 %v1464_v17, 0.0  ;;  %v2102_v28 = vmax.f32 %v1784_v18, 0.0 }
 0x1c8   : > { %v3498_v29 = vpack.c.bf16 %v1973_v23, %v1972_v15  ;;  %v3562_v30 = vpack.c.bf16 %v2101_v24, %v2100_v16  ;;  %v1975_v31 = vmax.f32 %v1466_v25, 0.0  ;;  %v2103_v32 = vmax.f32 %v1786_v26, 0.0 }
 0x1ca   : > { %2954 = vst [vmem:[%s4185_s23 + $0x150] sm:$0xff] %v3498_v29  ;;  %3018 = vst [vmem:[%s4185_s23 + $0x350] sm:$0xff] %v3562_v30  ;;  %v3499_v33 = vpack.c.bf16 %v1975_v31, %v1974_v27  ;;  %v3563_v34 = vpack.c.bf16 %v2103_v32, %v2102_v28  ;;  %v1469_v35 = vpop.f32.mrb[88].mxu0  ;;  %v1789_v36 = vpop.f32.mrb[88].mxu1 }
 0x1cb   : > { %v1470_v37 = vadd.f32 %v1469_v35, %v4164_v19  ;;  %v1790_v38 = vadd.f32 %v1789_v36, %v4164_v19  ;;  %v1471_v39 = vpop.f32.mrb[89].mxu0  ;;  %v1791_v40 = vpop.f32.mrb[89].mxu1 }
 0x1cc   : > { %2955 = vst [vmem:[%s4185_s23 + $0x158] sm:$0xff] %v3499_v33  ;;  %3019 = vst [vmem:[%s4185_s23 + $0x358] sm:$0xff] %v3563_v34  ;;  %v1472_v41 = vadd.f32 %v1471_v39, %v4166_v20  ;;  %v1792_v42 = vadd.f32 %v1791_v40, %v4166_v20  ;;  %v1473_v43 = vpop.f32.mrb[90].mxu0  ;;  %v1793_v44 = vpop.f32.mrb[90].mxu1 }
 0x1cd   : > { %v1976_v45 = vmax.f32 %v1470_v37, 0.0  ;;  %v2104_v46 = vmax.f32 %v1790_v38, 0.0  ;;  %v1474_v47 = vadd.f32 %v1473_v43, %v4164_v19  ;;  %v1794_v48 = vadd.f32 %v1793_v44, %v4164_v19  ;;  %v1475_v49 = vpop.f32.mrb[91].mxu0  ;;  %v1795_v50 = vpop.f32.mrb[91].mxu1 }
 0x1ce   : > { %v1977_v51 = vmax.f32 %v1472_v41, 0.0  ;;  %v2105_v52 = vmax.f32 %v1792_v42, 0.0  ;;  %v1476_v53 = vadd.f32 %v1475_v49, %v4166_v20  ;;  %v1796_v54 = vadd.f32 %v1795_v50, %v4166_v20 }
 0x1cf   : > { %v1978_v55 = vmax.f32 %v1474_v47, 0.0  ;;  %v2106_v56 = vmax.f32 %v1794_v48, 0.0 }
 0x1d0   : > { %v3500_v57 = vpack.c.bf16 %v1977_v51, %v1976_v45  ;;  %v3564_v58 = vpack.c.bf16 %v2105_v52, %v2104_v46  ;;  %v1979_v59 = vmax.f32 %v1476_v53, 0.0  ;;  %v2107_v60 = vmax.f32 %v1796_v54, 0.0 }
 0x1d2   : > { %2956 = vst [vmem:[%s4185_s23 + $0x160] sm:$0xff] %v3500_v57  ;;  %3020 = vst [vmem:[%s4185_s23 + $0x360] sm:$0xff] %v3564_v58  ;;  %v3501_v61 = vpack.c.bf16 %v1979_v59, %v1978_v55  ;;  %v3565_v62 = vpack.c.bf16 %v2107_v60, %v2106_v56  ;;  %v1479_v63 = vpop.f32.mrb[92].mxu0  ;;  %v1799_v0 = vpop.f32.mrb[92].mxu1 }
 0x1d3   : > { %v1480_v1 = vadd.f32 %v1479_v63, %v4164_v19  ;;  %v1800_v2 = vadd.f32 %v1799_v0, %v4164_v19  ;;  %v1481_v3 = vpop.f32.mrb[93].mxu0  ;;  %v1801_v4 = vpop.f32.mrb[93].mxu1 }
 0x1d4   : > { %2957 = vst [vmem:[%s4185_s23 + $0x168] sm:$0xff] %v3501_v61  ;;  %3021 = vst [vmem:[%s4185_s23 + $0x368] sm:$0xff] %v3565_v62  ;;  %v1482_v5 = vadd.f32 %v1481_v3, %v4166_v20  ;;  %v1802_v6 = vadd.f32 %v1801_v4, %v4166_v20  ;;  %v1483_v7 = vpop.f32.mrb[94].mxu0  ;;  %v1803_v8 = vpop.f32.mrb[94].mxu1 }
 0x1d5   : > { %v1980_v9 = vmax.f32 %v1480_v1, 0.0  ;;  %v2108_v10 = vmax.f32 %v1800_v2, 0.0  ;;  %v1484_v11 = vadd.f32 %v1483_v7, %v4164_v19  ;;  %v1804_v12 = vadd.f32 %v1803_v8, %v4164_v19  ;;  %v1485_v13 = vpop.f32.mrb[95].mxu0  ;;  %v1805_v14 = vpop.f32.mrb[95].mxu1 }
 0x1d6   : > { %v1981_v15 = vmax.f32 %v1482_v5, 0.0  ;;  %v2109_v16 = vmax.f32 %v1802_v6, 0.0  ;;  %v1486_v17 = vadd.f32 %v1485_v13, %v4166_v20  ;;  %v1806_v18 = vadd.f32 %v1805_v14, %v4166_v20 }
 0x1d7   : > { %v1982_v21 = vmax.f32 %v1484_v11, 0.0  ;;  %v2110_v22 = vmax.f32 %v1804_v12, 0.0 }
 0x1d8   : > { %v3502_v23 = vpack.c.bf16 %v1981_v15, %v1980_v9  ;;  %v3566_v24 = vpack.c.bf16 %v2109_v16, %v2108_v10  ;;  %v1983_v25 = vmax.f32 %v1486_v17, 0.0  ;;  %v2111_v26 = vmax.f32 %v1806_v18, 0.0 }
 0x1da   : > { %2958 = vst [vmem:[%s4185_s23 + $0x170] sm:$0xff] %v3502_v23  ;;  %3022 = vst [vmem:[%s4185_s23 + $0x370] sm:$0xff] %v3566_v24  ;;  %v3503_v27 = vpack.c.bf16 %v1983_v25, %v1982_v21  ;;  %v3567_v28 = vpack.c.bf16 %v2111_v26, %v2110_v22  ;;  %v1489_v29 = vpop.f32.mrb[96].mxu0  ;;  %v1809_v30 = vpop.f32.mrb[96].mxu1 }
 0x1db   : > { %v1490_v31 = vadd.f32 %v1489_v29, %v4164_v19  ;;  %v1810_v32 = vadd.f32 %v1809_v30, %v4164_v19  ;;  %v1491_v33 = vpop.f32.mrb[97].mxu0  ;;  %v1811_v34 = vpop.f32.mrb[97].mxu1 }
 0x1dc   : > { %2959 = vst [vmem:[%s4185_s23 + $0x178] sm:$0xff] %v3503_v27  ;;  %3023 = vst [vmem:[%s4185_s23 + $0x378] sm:$0xff] %v3567_v28  ;;  %v1492_v35 = vadd.f32 %v1491_v33, %v4166_v20  ;;  %v1812_v36 = vadd.f32 %v1811_v34, %v4166_v20  ;;  %v1493_v37 = vpop.f32.mrb[98].mxu0  ;;  %v1813_v38 = vpop.f32.mrb[98].mxu1 }
 0x1dd   : > { %v1984_v39 = vmax.f32 %v1490_v31, 0.0  ;;  %v2112_v40 = vmax.f32 %v1810_v32, 0.0  ;;  %v1494_v41 = vadd.f32 %v1493_v37, %v4164_v19  ;;  %v1814_v42 = vadd.f32 %v1813_v38, %v4164_v19  ;;  %v1495_v43 = vpop.f32.mrb[99].mxu0  ;;  %v1815_v44 = vpop.f32.mrb[99].mxu1 }
 0x1de   : > { %v1985_v45 = vmax.f32 %v1492_v35, 0.0  ;;  %v2113_v46 = vmax.f32 %v1812_v36, 0.0  ;;  %v1496_v47 = vadd.f32 %v1495_v43, %v4166_v20  ;;  %v1816_v48 = vadd.f32 %v1815_v44, %v4166_v20 }
 0x1df   : > { %v1986_v49 = vmax.f32 %v1494_v41, 0.0  ;;  %v2114_v50 = vmax.f32 %v1814_v42, 0.0 }
 0x1e0   : > { %v3504_v51 = vpack.c.bf16 %v1985_v45, %v1984_v39  ;;  %v3568_v52 = vpack.c.bf16 %v2113_v46, %v2112_v40  ;;  %v1987_v53 = vmax.f32 %v1496_v47, 0.0  ;;  %v2115_v54 = vmax.f32 %v1816_v48, 0.0 }
 0x1e2   : > { %2960 = vst [vmem:[%s4185_s23 + $0x180] sm:$0xff] %v3504_v51  ;;  %3024 = vst [vmem:[%s4185_s23 + $0x380] sm:$0xff] %v3568_v52  ;;  %v3505_v55 = vpack.c.bf16 %v1987_v53, %v1986_v49  ;;  %v3569_v56 = vpack.c.bf16 %v2115_v54, %v2114_v50  ;;  %v1499_v57 = vpop.f32.mrb[100].mxu0  ;;  %v1819_v58 = vpop.f32.mrb[100].mxu1 }
 0x1e3   : > { %v1500_v59 = vadd.f32 %v1499_v57, %v4164_v19  ;;  %v1820_v60 = vadd.f32 %v1819_v58, %v4164_v19  ;;  %v1501_v61 = vpop.f32.mrb[101].mxu0  ;;  %v1821_v62 = vpop.f32.mrb[101].mxu1 }
 0x1e4   : > { %2961 = vst [vmem:[%s4185_s23 + $0x188] sm:$0xff] %v3505_v55  ;;  %3025 = vst [vmem:[%s4185_s23 + $0x388] sm:$0xff] %v3569_v56  ;;  %v1502_v63 = vadd.f32 %v1501_v61, %v4166_v20  ;;  %v1822_v0 = vadd.f32 %v1821_v62, %v4166_v20  ;;  %v1503_v1 = vpop.f32.mrb[102].mxu0  ;;  %v1823_v2 = vpop.f32.mrb[102].mxu1 }
 0x1e5   : > { %v1988_v3 = vmax.f32 %v1500_v59, 0.0  ;;  %v2116_v4 = vmax.f32 %v1820_v60, 0.0  ;;  %v1504_v5 = vadd.f32 %v1503_v1, %v4164_v19  ;;  %v1824_v6 = vadd.f32 %v1823_v2, %v4164_v19  ;;  %v1505_v7 = vpop.f32.mrb[103].mxu0  ;;  %v1825_v8 = vpop.f32.mrb[103].mxu1 }
 0x1e6   : > { %v1989_v9 = vmax.f32 %v1502_v63, 0.0  ;;  %v2117_v10 = vmax.f32 %v1822_v0, 0.0  ;;  %v1506_v11 = vadd.f32 %v1505_v7, %v4166_v20  ;;  %v1826_v12 = vadd.f32 %v1825_v8, %v4166_v20 }
 0x1e7   : > { %v1990_v13 = vmax.f32 %v1504_v5, 0.0  ;;  %v2118_v14 = vmax.f32 %v1824_v6, 0.0 }
 0x1e8   : > { %v3506_v15 = vpack.c.bf16 %v1989_v9, %v1988_v3  ;;  %v3570_v16 = vpack.c.bf16 %v2117_v10, %v2116_v4  ;;  %v1991_v17 = vmax.f32 %v1506_v11, 0.0  ;;  %v2119_v18 = vmax.f32 %v1826_v12, 0.0 }
 0x1ea   : > { %2962 = vst [vmem:[%s4185_s23 + $0x190] sm:$0xff] %v3506_v15  ;;  %3026 = vst [vmem:[%s4185_s23 + $0x390] sm:$0xff] %v3570_v16  ;;  %v3507_v21 = vpack.c.bf16 %v1991_v17, %v1990_v13  ;;  %v3571_v22 = vpack.c.bf16 %v2119_v18, %v2118_v14  ;;  %v1509_v23 = vpop.f32.mrb[104].mxu0  ;;  %v1829_v24 = vpop.f32.mrb[104].mxu1 }
 0x1eb   : > { %v1510_v25 = vadd.f32 %v1509_v23, %v4164_v19  ;;  %v1830_v26 = vadd.f32 %v1829_v24, %v4164_v19  ;;  %v1511_v27 = vpop.f32.mrb[105].mxu0  ;;  %v1831_v28 = vpop.f32.mrb[105].mxu1 }
 0x1ec   : > { %2963 = vst [vmem:[%s4185_s23 + $0x198] sm:$0xff] %v3507_v21  ;;  %3027 = vst [vmem:[%s4185_s23 + $0x398] sm:$0xff] %v3571_v22  ;;  %v1512_v29 = vadd.f32 %v1511_v27, %v4166_v20  ;;  %v1832_v30 = vadd.f32 %v1831_v28, %v4166_v20  ;;  %v1513_v31 = vpop.f32.mrb[106].mxu0  ;;  %v1833_v32 = vpop.f32.mrb[106].mxu1 }
 0x1ed   : > { %v1992_v33 = vmax.f32 %v1510_v25, 0.0  ;;  %v2120_v34 = vmax.f32 %v1830_v26, 0.0  ;;  %v1514_v35 = vadd.f32 %v1513_v31, %v4164_v19  ;;  %v1834_v36 = vadd.f32 %v1833_v32, %v4164_v19  ;;  %v1515_v37 = vpop.f32.mrb[107].mxu0  ;;  %v1835_v38 = vpop.f32.mrb[107].mxu1 }
 0x1ee   : > { %v1993_v39 = vmax.f32 %v1512_v29, 0.0  ;;  %v2121_v40 = vmax.f32 %v1832_v30, 0.0  ;;  %v1516_v41 = vadd.f32 %v1515_v37, %v4166_v20  ;;  %v1836_v42 = vadd.f32 %v1835_v38, %v4166_v20 }
 0x1ef   : > { %v1994_v43 = vmax.f32 %v1514_v35, 0.0  ;;  %v2122_v44 = vmax.f32 %v1834_v36, 0.0 }
 0x1f0   : > { %v3508_v45 = vpack.c.bf16 %v1993_v39, %v1992_v33  ;;  %v3572_v46 = vpack.c.bf16 %v2121_v40, %v2120_v34  ;;  %v1995_v47 = vmax.f32 %v1516_v41, 0.0  ;;  %v2123_v48 = vmax.f32 %v1836_v42, 0.0 }
 0x1f2   : > { %2964 = vst [vmem:[%s4185_s23 + $0x1a0] sm:$0xff] %v3508_v45  ;;  %3028 = vst [vmem:[%s4185_s23 + $0x3a0] sm:$0xff] %v3572_v46  ;;  %v3509_v49 = vpack.c.bf16 %v1995_v47, %v1994_v43  ;;  %v3573_v50 = vpack.c.bf16 %v2123_v48, %v2122_v44  ;;  %v1519_v51 = vpop.f32.mrb[108].mxu0  ;;  %v1839_v52 = vpop.f32.mrb[108].mxu1 }
 0x1f3   : > { %v1520_v53 = vadd.f32 %v1519_v51, %v4164_v19  ;;  %v1840_v54 = vadd.f32 %v1839_v52, %v4164_v19  ;;  %v1521_v55 = vpop.f32.mrb[109].mxu0  ;;  %v1841_v56 = vpop.f32.mrb[109].mxu1 }
 0x1f4   : > { %2965 = vst [vmem:[%s4185_s23 + $0x1a8] sm:$0xff] %v3509_v49  ;;  %3029 = vst [vmem:[%s4185_s23 + $0x3a8] sm:$0xff] %v3573_v50  ;;  %v1522_v57 = vadd.f32 %v1521_v55, %v4166_v20  ;;  %v1842_v58 = vadd.f32 %v1841_v56, %v4166_v20  ;;  %v1523_v59 = vpop.f32.mrb[110].mxu0  ;;  %v1843_v60 = vpop.f32.mrb[110].mxu1 }
 0x1f5   : > { %v1996_v61 = vmax.f32 %v1520_v53, 0.0  ;;  %v2124_v62 = vmax.f32 %v1840_v54, 0.0  ;;  %v1524_v63 = vadd.f32 %v1523_v59, %v4164_v19  ;;  %v1844_v0 = vadd.f32 %v1843_v60, %v4164_v19  ;;  %v1525_v1 = vpop.f32.mrb[111].mxu0  ;;  %v1845_v2 = vpop.f32.mrb[111].mxu1 }
 0x1f6   : > { %v1997_v3 = vmax.f32 %v1522_v57, 0.0  ;;  %v2125_v4 = vmax.f32 %v1842_v58, 0.0  ;;  %v1526_v5 = vadd.f32 %v1525_v1, %v4166_v20  ;;  %v1846_v6 = vadd.f32 %v1845_v2, %v4166_v20 }
 0x1f7   : > { %v1998_v7 = vmax.f32 %v1524_v63, 0.0  ;;  %v2126_v8 = vmax.f32 %v1844_v0, 0.0 }
 0x1f8   : > { %v3510_v9 = vpack.c.bf16 %v1997_v3, %v1996_v61  ;;  %v3574_v10 = vpack.c.bf16 %v2125_v4, %v2124_v62  ;;  %v1999_v11 = vmax.f32 %v1526_v5, 0.0  ;;  %v2127_v12 = vmax.f32 %v1846_v6, 0.0 }
 0x1fa   : > { %2966 = vst [vmem:[%s4185_s23 + $0x1b0] sm:$0xff] %v3510_v9  ;;  %3030 = vst [vmem:[%s4185_s23 + $0x3b0] sm:$0xff] %v3574_v10  ;;  %v3511_v13 = vpack.c.bf16 %v1999_v11, %v1998_v7  ;;  %v3575_v14 = vpack.c.bf16 %v2127_v12, %v2126_v8  ;;  %v1529_v15 = vpop.f32.mrb[112].mxu0  ;;  %v1849_v16 = vpop.f32.mrb[112].mxu1 }
 0x1fb   : > { %v1530_v17 = vadd.f32 %v1529_v15, %v4164_v19  ;;  %v1850_v18 = vadd.f32 %v1849_v16, %v4164_v19  ;;  %v1531_v21 = vpop.f32.mrb[113].mxu0  ;;  %v1851_v22 = vpop.f32.mrb[113].mxu1 }
 0x1fc   : > { %2967 = vst [vmem:[%s4185_s23 + $0x1b8] sm:$0xff] %v3511_v13  ;;  %3031 = vst [vmem:[%s4185_s23 + $0x3b8] sm:$0xff] %v3575_v14  ;;  %v1532_v23 = vadd.f32 %v1531_v21, %v4166_v20  ;;  %v1852_v24 = vadd.f32 %v1851_v22, %v4166_v20  ;;  %v1533_v25 = vpop.f32.mrb[114].mxu0  ;;  %v1853_v26 = vpop.f32.mrb[114].mxu1 }
 0x1fd   : > { %v2000_v27 = vmax.f32 %v1530_v17, 0.0  ;;  %v2128_v28 = vmax.f32 %v1850_v18, 0.0  ;;  %v1534_v29 = vadd.f32 %v1533_v25, %v4164_v19  ;;  %v1854_v30 = vadd.f32 %v1853_v26, %v4164_v19  ;;  %v1535_v31 = vpop.f32.mrb[115].mxu0  ;;  %v1855_v32 = vpop.f32.mrb[115].mxu1 }
 0x1fe   : > { %v2001_v33 = vmax.f32 %v1532_v23, 0.0  ;;  %v2129_v34 = vmax.f32 %v1852_v24, 0.0  ;;  %v1536_v35 = vadd.f32 %v1535_v31, %v4166_v20  ;;  %v1856_v36 = vadd.f32 %v1855_v32, %v4166_v20 }
 0x1ff   : > { %v2002_v37 = vmax.f32 %v1534_v29, 0.0  ;;  %v2130_v38 = vmax.f32 %v1854_v30, 0.0 }
 0x200   : > { %v3512_v39 = vpack.c.bf16 %v2001_v33, %v2000_v27  ;;  %v3576_v40 = vpack.c.bf16 %v2129_v34, %v2128_v28  ;;  %v2003_v41 = vmax.f32 %v1536_v35, 0.0  ;;  %v2131_v42 = vmax.f32 %v1856_v36, 0.0 }
 0x202   : > { %2968 = vst [vmem:[%s4185_s23 + $0x1c0] sm:$0xff] %v3512_v39  ;;  %3032 = vst [vmem:[%s4185_s23 + $0x3c0] sm:$0xff] %v3576_v40  ;;  %v3513_v43 = vpack.c.bf16 %v2003_v41, %v2002_v37  ;;  %v3577_v44 = vpack.c.bf16 %v2131_v42, %v2130_v38  ;;  %v1539_v45 = vpop.f32.mrb[116].mxu0  ;;  %v1859_v46 = vpop.f32.mrb[116].mxu1 }
 0x203   : > { %v1540_v47 = vadd.f32 %v1539_v45, %v4164_v19  ;;  %v1860_v48 = vadd.f32 %v1859_v46, %v4164_v19  ;;  %v1541_v49 = vpop.f32.mrb[117].mxu0  ;;  %v1861_v50 = vpop.f32.mrb[117].mxu1 }
 0x204   : > { %2969 = vst [vmem:[%s4185_s23 + $0x1c8] sm:$0xff] %v3513_v43  ;;  %3033 = vst [vmem:[%s4185_s23 + $0x3c8] sm:$0xff] %v3577_v44  ;;  %v1542_v51 = vadd.f32 %v1541_v49, %v4166_v20  ;;  %v1862_v52 = vadd.f32 %v1861_v50, %v4166_v20  ;;  %v1543_v53 = vpop.f32.mrb[118].mxu0  ;;  %v1863_v54 = vpop.f32.mrb[118].mxu1 }
 0x205   : > { %v2004_v55 = vmax.f32 %v1540_v47, 0.0  ;;  %v2132_v56 = vmax.f32 %v1860_v48, 0.0  ;;  %v1544_v57 = vadd.f32 %v1543_v53, %v4164_v19  ;;  %v1864_v58 = vadd.f32 %v1863_v54, %v4164_v19  ;;  %v1545_v59 = vpop.f32.mrb[119].mxu0  ;;  %v1865_v60 = vpop.f32.mrb[119].mxu1 }
 0x206   : > { %v2005_v61 = vmax.f32 %v1542_v51, 0.0  ;;  %v2133_v62 = vmax.f32 %v1862_v52, 0.0  ;;  %v1546_v63 = vadd.f32 %v1545_v59, %v4166_v20  ;;  %v1866_v0 = vadd.f32 %v1865_v60, %v4166_v20 }
 0x207   : > { %v2006_v1 = vmax.f32 %v1544_v57, 0.0  ;;  %v2134_v2 = vmax.f32 %v1864_v58, 0.0 }
 0x208   : > { %v3514_v3 = vpack.c.bf16 %v2005_v61, %v2004_v55  ;;  %v3578_v4 = vpack.c.bf16 %v2133_v62, %v2132_v56  ;;  %v2007_v5 = vmax.f32 %v1546_v63, 0.0  ;;  %v2135_v6 = vmax.f32 %v1866_v0, 0.0 }
 0x20a   : > { %2970 = vst [vmem:[%s4185_s23 + $0x1d0] sm:$0xff] %v3514_v3  ;;  %3034 = vst [vmem:[%s4185_s23 + $0x3d0] sm:$0xff] %v3578_v4  ;;  %v3515_v7 = vpack.c.bf16 %v2007_v5, %v2006_v1  ;;  %v3579_v8 = vpack.c.bf16 %v2135_v6, %v2134_v2  ;;  %v1549_v9 = vpop.f32.mrb[120].mxu0  ;;  %v1869_v10 = vpop.f32.mrb[120].mxu1 }
 0x20b   : > { %v1550_v11 = vadd.f32 %v1549_v9, %v4164_v19  ;;  %v1870_v12 = vadd.f32 %v1869_v10, %v4164_v19  ;;  %v1551_v13 = vpop.f32.mrb[121].mxu0  ;;  %v1871_v14 = vpop.f32.mrb[121].mxu1 }
 0x20c   : > { %2971 = vst [vmem:[%s4185_s23 + $0x1d8] sm:$0xff] %v3515_v7  ;;  %3035 = vst [vmem:[%s4185_s23 + $0x3d8] sm:$0xff] %v3579_v8  ;;  %v1552_v15 = vadd.f32 %v1551_v13, %v4166_v20  ;;  %v1872_v16 = vadd.f32 %v1871_v14, %v4166_v20  ;;  %v1553_v17 = vpop.f32.mrb[122].mxu0  ;;  %v1873_v18 = vpop.f32.mrb[122].mxu1 }
 0x20d   : > { %v2008_v21 = vmax.f32 %v1550_v11, 0.0  ;;  %v2136_v22 = vmax.f32 %v1870_v12, 0.0  ;;  %v1554_v23 = vadd.f32 %v1553_v17, %v4164_v19  ;;  %v1874_v24 = vadd.f32 %v1873_v18, %v4164_v19  ;;  %v1555_v25 = vpop.f32.mrb[123].mxu0  ;;  %v1875_v26 = vpop.f32.mrb[123].mxu1 }
 0x20e   : > { %v2009_v27 = vmax.f32 %v1552_v15, 0.0  ;;  %v2137_v28 = vmax.f32 %v1872_v16, 0.0  ;;  %v1556_v29 = vadd.f32 %v1555_v25, %v4166_v20  ;;  %v1876_v30 = vadd.f32 %v1875_v26, %v4166_v20 }
 0x20f   : > { %v2010_v31 = vmax.f32 %v1554_v23, 0.0  ;;  %v2138_v32 = vmax.f32 %v1874_v24, 0.0 }
 0x210   : > { %v3516_v33 = vpack.c.bf16 %v2009_v27, %v2008_v21  ;;  %v3580_v34 = vpack.c.bf16 %v2137_v28, %v2136_v22  ;;  %v2011_v35 = vmax.f32 %v1556_v29, 0.0  ;;  %v2139_v36 = vmax.f32 %v1876_v30, 0.0 }
 0x212   : > { %2972 = vst [vmem:[%s4185_s23 + $0x1e0] sm:$0xff] %v3516_v33  ;;  %3036 = vst [vmem:[%s4185_s23 + $0x3e0] sm:$0xff] %v3580_v34  ;;  %v3517_v37 = vpack.c.bf16 %v2011_v35, %v2010_v31  ;;  %v3581_v38 = vpack.c.bf16 %v2139_v36, %v2138_v32  ;;  %v1559_v39 = vpop.f32.mrb[124].mxu0  ;;  %v1879_v40 = vpop.f32.mrb[124].mxu1 }
 0x213   : > { %v1560_v41 = vadd.f32 %v1559_v39, %v4164_v19  ;;  %v1880_v42 = vadd.f32 %v1879_v40, %v4164_v19  ;;  %v1561_v43 = vpop.f32.mrb[125].mxu0  ;;  %v1881_v44 = vpop.f32.mrb[125].mxu1 }
 0x214   : > { %2973 = vst [vmem:[%s4185_s23 + $0x1e8] sm:$0xff] %v3517_v37  ;;  %3037 = vst [vmem:[%s4185_s23 + $0x3e8] sm:$0xff] %v3581_v38  ;;  %v1562_v45 = vadd.f32 %v1561_v43, %v4166_v20  ;;  %v1882_v46 = vadd.f32 %v1881_v44, %v4166_v20  ;;  %v1563_v47 = vpop.f32.mrb[126].mxu0  ;;  %v1883_v48 = vpop.f32.mrb[126].mxu1 }
 0x215   : > { %v2012_v49 = vmax.f32 %v1560_v41, 0.0  ;;  %v2140_v50 = vmax.f32 %v1880_v42, 0.0  ;;  %v1564_v51 = vadd.f32 %v1563_v47, %v4164_v19  ;;  %v1884_v52 = vadd.f32 %v1883_v48, %v4164_v19  ;;  %v1565_v53 = vpop.f32.mrb[127].mxu0  ;;  %v1885_v54 = vpop.f32.mrb[127].mxu1 }
 0x216   : > { %v2013_v55 = vmax.f32 %v1562_v45, 0.0  ;;  %v2141_v56 = vmax.f32 %v1882_v46, 0.0  ;;  %v1566_v57 = vadd.f32 %v1565_v53, %v4166_v20  ;;  %v1886_v58 = vadd.f32 %v1885_v54, %v4166_v20 }
 0x217   : > { %v2014_v59 = vmax.f32 %v1564_v51, 0.0  ;;  %v2142_v60 = vmax.f32 %v1884_v52, 0.0 }
 0x218   : > { %v3518_v61 = vpack.c.bf16 %v2013_v55, %v2012_v49  ;;  %v3582_v62 = vpack.c.bf16 %v2141_v56, %v2140_v50  ;;  %v2015_v63 = vmax.f32 %v1566_v57, 0.0  ;;  %v2143_v0 = vmax.f32 %v1886_v58, 0.0 }
 0x21a   : > { %2974 = vst [vmem:[%s4185_s23 + $0x1f0] sm:$0xff] %v3518_v61  ;;  %3038 = vst [vmem:[%s4185_s23 + $0x3f0] sm:$0xff] %v3582_v62  ;;  %v3519_v1 = vpack.c.bf16 %v2015_v63, %v2014_v59  ;;  %v3583_v19 = vpack.c.bf16 %v2143_v0, %v2142_v60 }
 0x21c   : > { %2975 = vst [vmem:[%s4185_s23 + $0x1f8] sm:$0xff] %v3519_v1  ;;  %3039 = vst [vmem:[%s4185_s23 + $0x3f8] sm:$0xff] %v3583_v19 }
 0x21d PF: > { %s13_s14 = sadd.s32 1, %s3902_s14   ;;  %s4590_s12 = smov %s3898_s13 }
 0x21e   : > { %p10_p5 = scmp.ge.s32.totalorder %s13_s14, 6   ;;  %s4591_s13 = smov %s4593_s15 }
 0x220   :  { %12 = sbr.rel (!%p10_p5) target bundleno = 2 (0x2), region = 68 }

// kernel: decoder_forward.13
= control target key start
LH: loop header
LB: loop body
LE: loop exit
PB: predicated region body
PF: predicated region fallthrough
CT: control target
= control target key end

     0   :  { %s2175_s12 = smov 0   ;;  %s2177_s13 = smov 0   ;;  %s2617_s0 = inlined_call_operand.vmem [shape: bf16[12288,64], index: 0, kind: input, shape index: {}]   ;;  %s2618_s1 = inlined_call_operand.vmem [shape: bf16[64,128], index: 1, kind: input, shape index: {}]   ;;  %s2619_s2 = inlined_call_operand.vmem [shape: f32[1,128], index: 2, kind: input, shape index: {}]   ;;  %s2620_s3 = inlined_call_operand.vmem [shape: f32[12288,128], index: 3, kind: output, shape index: {}]  }
   0x1   :  { %s2179_s14 = smov 0  }
   0x2 LB: > { %s25_s15 = sadd.s32 1, %s2149_s13  ;;  %p1687_p0 = scmp.ge.s32.totalorder %s2153_s14, 1  ;;  %s2153_s14 = sphi %s2179_s14, %s13_s14   ;;  %s2149_s13 = sphi %s2177_s13, %s2622_s13   ;;  %s2145_s12 = sphi %s2175_s12, %s2621_s12  }
   0x3   : > { %p27_p1 = scmp.ge.s32.totalorder %s25_s15, 12  ;;  %p169_p2 = scmp.lt.s32.totalorder %s2153_s14, 13 }
   0x5   : > { %s2624_s15 = smov (%p27_p1, %s25_s15), 0  ;;  %p170_p3 = pnand %p1687_p0, %p169_p2 }
   0x6   : > { %v2063_v0 = vld [vmem:[%s2618_s1] sm:$0xff] (!%p170_p3)   ;;  %s1688_s18 = sshll.u32 (!%p170_p3), %s2145_s12, 7  ;;  %v2064_v1 = vld [vmem:[%s2618_s1 + $0x8] sm:$0xff] (!%p170_p3)   ;;  %v2065_v2 = vld [vmem:[%s2618_s1 + $0x10] sm:$0xff] (!%p170_p3)   ;;  %vm713_vm0 = vcmask (!%p170_p3), 523264  }
   0x7   : > { %173 = sbr.rel (%p170_p3) target bundleno = 361 (0x169), region = 32  ;;  %p204_p4 = scmp.lt.s32.totalorder (!%p170_p3), %s1688_s18, 1535  ;;  %1895 = vmatprep.subr.bf16.mxu0 (!%p170_p3), %v2063_v0  ;;  %2031 = vmatprep.subr.bf16.mxu1 (!%p170_p3), %v2063_v0  ;;  %v2066_v3 = vld [vmem:[%s2618_s1 + $0x18] sm:$0xff] (!%p170_p3)  }
   0x8   : > { %1896 = vmatpush3.bf16.msra.mxu0 (!%p170_p3), %v2063_v0  ;;  %2035 = vmatpush3.bf16.msra.mxu1 (!%p170_p3), %v2063_v0 }
   0x9   : > { %1897 = vmatprep.subr.bf16.mxu0 (!%p170_p3), %v2064_v1  ;;  %2032 = vmatprep.subr.bf16.mxu1 (!%p170_p3), %v2064_v1 }
   0xc   : > { %1898 = vmatpush3.bf16.msra.mxu0 (!%p170_p3), %v2064_v1  ;;  %2036 = vmatpush3.bf16.msra.mxu1 (!%p170_p3), %v2064_v1 }
   0xd   : > { %1899 = vmatprep.subr.bf16.mxu0 (!%p170_p3), %v2065_v2  ;;  %2033 = vmatprep.subr.bf16.mxu1 (!%p170_p3), %v2065_v2 }
   0xe   : > { %s2626_s18 = smov (!%p204_p4, %s1688_s18), 1535 }
   0xf   : > { %s1689_s23 = sshll.u32 %s2626_s18, 2  ;;  %s1691_s29 = sshll.u32 %s2626_s18, 3 }
  0x10   : > { %s2211_s28 = scalar_lea.vmem %s2617_s0, %s1689_s23  ;;  %1900 = vmatpush3.bf16.msra.mxu0 %v2065_v2  ;;  %2037 = vmatpush3.bf16.msra.mxu1 %v2065_v2  ;;  %s2350_s7 = scalar_lea.vmem %s2620_s3, %s1691_s29 }
  0x11   : > { %v2067_v4 = vld [vmem:[%s2211_s28] sm:$0xff]   ;;  %1901 = vmatprep.subr.bf16.mxu0 %v2066_v3  ;;  %2034 = vmatprep.subr.bf16.mxu1 %v2066_v3  ;;  %v2069_v6 = vld [vmem:[%s2211_s28 + $0x8] sm:$0xff]   ;;  %v2071_v8 = vld [vmem:[%s2211_s28 + $0x10] sm:$0xff]  }
  0x12   : > { %v2068_v5 = vld [vmem:[%s2211_s28 + $0x100] sm:$0xff]   ;;  %1903 = vmatprep.mubr.msk.bf16.mxu0 %vm713_vm0, %v2067_v4  ;;  %v2070_v7 = vld [vmem:[%s2211_s28 + $0x108] sm:$0xff]   ;;  %v2072_v9 = vld [vmem:[%s2211_s28 + $0x110] sm:$0xff]  }
  0x13   : > { %1967 = vmatprep.mubr.msk.bf16.mxu1 %vm713_vm0, %v2068_v5  ;;  %v2073_v10 = vld [vmem:[%s2211_s28 + $0x18] sm:$0xff]   ;;  %v2075_v12 = vld [vmem:[%s2211_s28 + $0x20] sm:$0xff]   ;;  %v2077_v14 = vld [vmem:[%s2211_s28 + $0x28] sm:$0xff]  }
  0x14   : > { %1902 = vmatpush3.bf16.msra.mxu0 %v2066_v3  ;;  %2038 = vmatpush3.bf16.msra.mxu1 %v2066_v3  ;;  %v2074_v11 = vld [vmem:[%s2211_s28 + $0x118] sm:$0xff]   ;;  %v2076_v13 = vld [vmem:[%s2211_s28 + $0x120] sm:$0xff]   ;;  %v2078_v15 = vld [vmem:[%s2211_s28 + $0x128] sm:$0xff]  }
  0x15   : > { %v2079_v16 = vld [vmem:[%s2211_s28 + $0x30] sm:$0xff]   ;;  %v2081_v18 = vld [vmem:[%s2211_s28 + $0x38] sm:$0xff]   ;;  %v2083_v20 = vld [vmem:[%s2211_s28 + $0x40] sm:$0xff]  }
  0x16   : > { %v2080_v17 = vld [vmem:[%s2211_s28 + $0x130] sm:$0xff]   ;;  %v2082_v19 = vld [vmem:[%s2211_s28 + $0x138] sm:$0xff]   ;;  %v2084_v21 = vld [vmem:[%s2211_s28 + $0x140] sm:$0xff]  }
  0x17   : > { %1904 = vmatmul.mubr.msk.bf16.vlgmr.msra.gmra.mrb[0].mxu0 %vm713_vm0, %v2069_v6  ;;  %1968 = vmatmul.mubr.msk.bf16.vlgmr.msra.gmra.mrb[0].mxu1 %vm713_vm0, %v2070_v7  ;;  %v2085_v22 = vld [vmem:[%s2211_s28 + $0x48] sm:$0xff]   ;;  %v2087_v24 = vld [vmem:[%s2211_s28 + $0x50] sm:$0xff]   ;;  %v2089_v26 = vld [vmem:[%s2211_s28 + $0x58] sm:$0xff]  }
  0x18   : > { %1907 = vmatprep.mubr.msk.bf16.mxu0 %vm713_vm0, %v2071_v8  ;;  %1971 = vmatprep.mubr.msk.bf16.mxu1 %vm713_vm0, %v2072_v9  ;;  %v2086_v23 = vld [vmem:[%s2211_s28 + $0x148] sm:$0xff]   ;;  %v2088_v25 = vld [vmem:[%s2211_s28 + $0x150] sm:$0xff]   ;;  %v2090_v27 = vld [vmem:[%s2211_s28 + $0x158] sm:$0xff]  }
  0x19   : > { %v2091_v28 = vld [vmem:[%s2211_s28 + $0x60] sm:$0xff]   ;;  %v2093_v30 = vld [vmem:[%s2211_s28 + $0x68] sm:$0xff]   ;;  %v2095_v32 = vld [vmem:[%s2211_s28 + $0x70] sm:$0xff]  }
  0x1a   : > { %v2092_v29 = vld [vmem:[%s2211_s28 + $0x160] sm:$0xff]   ;;  %v2094_v31 = vld [vmem:[%s2211_s28 + $0x168] sm:$0xff]   ;;  %v2096_v33 = vld [vmem:[%s2211_s28 + $0x170] sm:$0xff]  }
  0x1b   : > { %v2097_v34 = vld [vmem:[%s2211_s28 + $0x78] sm:$0xff]   ;;  %v2099_v36 = vld [vmem:[%s2211_s28 + $0x80] sm:$0xff]   ;;  %v2101_v38 = vld [vmem:[%s2211_s28 + $0x88] sm:$0xff]  }
  0x1c   : > { %v2098_v35 = vld [vmem:[%s2211_s28 + $0x178] sm:$0xff]   ;;  %v2100_v37 = vld [vmem:[%s2211_s28 + $0x180] sm:$0xff]   ;;  %v2102_v39 = vld [vmem:[%s2211_s28 + $0x188] sm:$0xff]  }
  0x1d   : > { %v2103_v40 = vld [vmem:[%s2211_s28 + $0x90] sm:$0xff]   ;;  %v2105_v42 = vld [vmem:[%s2211_s28 + $0x98] sm:$0xff]   ;;  %v2107_v44 = vld [vmem:[%s2211_s28 + $0xa0] sm:$0xff]  }
  0x1e   : > { %v2104_v41 = vld [vmem:[%s2211_s28 + $0x190] sm:$0xff]   ;;  %v2106_v43 = vld [vmem:[%s2211_s28 + $0x198] sm:$0xff]   ;;  %v2108_v45 = vld [vmem:[%s2211_s28 + $0x1a0] sm:$0xff]  }
  0x1f   : > { %1908 = vmatmul.mubr.msk.bf16.gmra.mrb[4].mxu0 %vm713_vm0, %v2073_v10  ;;  %1972 = vmatmul.mubr.msk.bf16.gmra.mrb[4].mxu1 %vm713_vm0, %v2074_v11  ;;  %v2109_v46 = vld [vmem:[%s2211_s28 + $0xa8] sm:$0xff]   ;;  %v2111_v48 = vld [vmem:[%s2211_s28 + $0xb0] sm:$0xff]   ;;  %v2113_v50 = vld [vmem:[%s2211_s28 + $0xb8] sm:$0xff]  }
  0x20   : > { %1911 = vmatprep.mubr.msk.bf16.mxu0 %vm713_vm0, %v2075_v12  ;;  %1975 = vmatprep.mubr.msk.bf16.mxu1 %vm713_vm0, %v2076_v13  ;;  %v2110_v47 = vld [vmem:[%s2211_s28 + $0x1a8] sm:$0xff]   ;;  %v2112_v49 = vld [vmem:[%s2211_s28 + $0x1b0] sm:$0xff]   ;;  %v2114_v51 = vld [vmem:[%s2211_s28 + $0x1b8] sm:$0xff]  }
  0x21   : > { %v2115_v52 = vld [vmem:[%s2211_s28 + $0xc0] sm:$0xff]   ;;  %v2117_v54 = vld [vmem:[%s2211_s28 + $0xc8] sm:$0xff]   ;;  %v2119_v56 = vld [vmem:[%s2211_s28 + $0xd0] sm:$0xff]  }
  0x22   : > { %v2116_v53 = vld [vmem:[%s2211_s28 + $0x1c0] sm:$0xff]   ;;  %v2118_v55 = vld [vmem:[%s2211_s28 + $0x1c8] sm:$0xff]   ;;  %v2120_v57 = vld [vmem:[%s2211_s28 + $0x1d0] sm:$0xff]  }
  0x23   : > { %v2121_v58 = vld [vmem:[%s2211_s28 + $0xd8] sm:$0xff]   ;;  %v2123_v60 = vld [vmem:[%s2211_s28 + $0xe0] sm:$0xff]   ;;  %v2125_v62 = vld [vmem:[%s2211_s28 + $0xe8] sm:$0xff]  }
  0x24   : > { %v2122_v59 = vld [vmem:[%s2211_s28 + $0x1d8] sm:$0xff]   ;;  %v2124_v61 = vld [vmem:[%s2211_s28 + $0x1e0] sm:$0xff]   ;;  %v2126_v63 = vld [vmem:[%s2211_s28 + $0x1e8] sm:$0xff]  }
  0x25   : > { %v2127_v0 = vld [vmem:[%s2211_s28 + $0xf0] sm:$0xff]   ;;  %v2129_v2 = vld [vmem:[%s2211_s28 + $0xf8] sm:$0xff]   ;;  %v2345_v4 = vld [vmem:[%s2619_s2] ss:$0 sm:$0xff] }
  0x26   : > { %v2128_v1 = vld [vmem:[%s2211_s28 + $0x1f0] sm:$0xff]   ;;  %v2130_v3 = vld [vmem:[%s2211_s28 + $0x1f8] sm:$0xff]  }
  0x27   : > { %1912 = vmatmul.mubr.msk.bf16.gmra.mrb[8].mxu0 %vm713_vm0, %v2077_v14  ;;  %1976 = vmatmul.mubr.msk.bf16.gmra.mrb[8].mxu1 %vm713_vm0, %v2078_v15 }
  0x28   : > { %1915 = vmatprep.mubr.msk.bf16.mxu0 %vm713_vm0, %v2079_v16  ;;  %1979 = vmatprep.mubr.msk.bf16.mxu1 %vm713_vm0, %v2080_v17 }
  0x2f   : > { %1916 = vmatmul.mubr.msk.bf16.gmra.mrb[12].mxu0 %vm713_vm0, %v2081_v18  ;;  %1980 = vmatmul.mubr.msk.bf16.gmra.mrb[12].mxu1 %vm713_vm0, %v2082_v19 }
  0x30   : > { %1919 = vmatprep.mubr.msk.bf16.mxu0 %vm713_vm0, %v2083_v20  ;;  %1983 = vmatprep.mubr.msk.bf16.mxu1 %vm713_vm0, %v2084_v21 }
  0x37   : > { %1920 = vmatmul.mubr.msk.bf16.gmra.mrb[16].mxu0 %vm713_vm0, %v2085_v22  ;;  %1984 = vmatmul.mubr.msk.bf16.gmra.mrb[16].mxu1 %vm713_vm0, %v2086_v23 }
  0x38   : > { %1923 = vmatprep.mubr.msk.bf16.mxu0 %vm713_vm0, %v2087_v24  ;;  %1987 = vmatprep.mubr.msk.bf16.mxu1 %vm713_vm0, %v2088_v25 }
  0x3f   : > { %1924 = vmatmul.mubr.msk.bf16.gmra.mrb[20].mxu0 %vm713_vm0, %v2089_v26  ;;  %1988 = vmatmul.mubr.msk.bf16.gmra.mrb[20].mxu1 %vm713_vm0, %v2090_v27 }
  0x40   : > { %1927 = vmatprep.mubr.msk.bf16.mxu0 %vm713_vm0, %v2091_v28  ;;  %1991 = vmatprep.mubr.msk.bf16.mxu1 %vm713_vm0, %v2092_v29 }
  0x47   : > { %1928 = vmatmul.mubr.msk.bf16.gmra.mrb[24].mxu0 %vm713_vm0, %v2093_v30  ;;  %1992 = vmatmul.mubr.msk.bf16.gmra.mrb[24].mxu1 %vm713_vm0, %v2094_v31 }
  0x48   : > { %1931 = vmatprep.mubr.msk.bf16.mxu0 %vm713_vm0, %v2095_v32  ;;  %1995 = vmatprep.mubr.msk.bf16.mxu1 %vm713_vm0, %v2096_v33 }
  0x4f   : > { %1932 = vmatmul.mubr.msk.bf16.gmra.mrb[28].mxu0 %vm713_vm0, %v2097_v34  ;;  %1996 = vmatmul.mubr.msk.bf16.gmra.mrb[28].mxu1 %vm713_vm0, %v2098_v35 }
  0x50   : > { %1935 = vmatprep.mubr.msk.bf16.mxu0 %vm713_vm0, %v2099_v36  ;;  %1999 = vmatprep.mubr.msk.bf16.mxu1 %vm713_vm0, %v2100_v37 }
  0x57   : > { %1936 = vmatmul.mubr.msk.bf16.gmra.mrb[32].mxu0 %vm713_vm0, %v2101_v38  ;;  %2000 = vmatmul.mubr.msk.bf16.gmra.mrb[32].mxu1 %vm713_vm0, %v2102_v39 }
  0x58   : > { %1939 = vmatprep.mubr.msk.bf16.mxu0 %vm713_vm0, %v2103_v40  ;;  %2003 = vmatprep.mubr.msk.bf16.mxu1 %vm713_vm0, %v2104_v41 }
  0x5f   : > { %1940 = vmatmul.mubr.msk.bf16.gmra.mrb[36].mxu0 %vm713_vm0, %v2105_v42  ;;  %2004 = vmatmul.mubr.msk.bf16.gmra.mrb[36].mxu1 %vm713_vm0, %v2106_v43 }
  0x60   : > { %1943 = vmatprep.mubr.msk.bf16.mxu0 %vm713_vm0, %v2107_v44  ;;  %2007 = vmatprep.mubr.msk.bf16.mxu1 %vm713_vm0, %v2108_v45 }
  0x67   : > { %1944 = vmatmul.mubr.msk.bf16.gmra.mrb[40].mxu0 %vm713_vm0, %v2109_v46  ;;  %2008 = vmatmul.mubr.msk.bf16.gmra.mrb[40].mxu1 %vm713_vm0, %v2110_v47 }
  0x68   : > { %1947 = vmatprep.mubr.msk.bf16.mxu0 %vm713_vm0, %v2111_v48  ;;  %2011 = vmatprep.mubr.msk.bf16.mxu1 %vm713_vm0, %v2112_v49 }
  0x6f   : > { %1948 = vmatmul.mubr.msk.bf16.gmra.mrb[44].mxu0 %vm713_vm0, %v2113_v50  ;;  %2012 = vmatmul.mubr.msk.bf16.gmra.mrb[44].mxu1 %vm713_vm0, %v2114_v51 }
  0x70   : > { %1951 = vmatprep.mubr.msk.bf16.mxu0 %vm713_vm0, %v2115_v52  ;;  %2015 = vmatprep.mubr.msk.bf16.mxu1 %vm713_vm0, %v2116_v53 }
  0x77   : > { %1952 = vmatmul.mubr.msk.bf16.gmra.mrb[48].mxu0 %vm713_vm0, %v2117_v54  ;;  %2016 = vmatmul.mubr.msk.bf16.gmra.mrb[48].mxu1 %vm713_vm0, %v2118_v55 }
  0x78   : > { %1955 = vmatprep.mubr.msk.bf16.mxu0 %vm713_vm0, %v2119_v56  ;;  %2019 = vmatprep.mubr.msk.bf16.mxu1 %vm713_vm0, %v2120_v57 }
  0x7f   : > { %1956 = vmatmul.mubr.msk.bf16.gmra.mrb[52].mxu0 %vm713_vm0, %v2121_v58  ;;  %2020 = vmatmul.mubr.msk.bf16.gmra.mrb[52].mxu1 %vm713_vm0, %v2122_v59 }
  0x80   : > { %1959 = vmatprep.mubr.msk.bf16.mxu0 %vm713_vm0, %v2123_v60  ;;  %2023 = vmatprep.mubr.msk.bf16.mxu1 %vm713_vm0, %v2124_v61 }
  0x87   : > { %1960 = vmatmul.mubr.msk.bf16.gmra.mrb[56].mxu0 %vm713_vm0, %v2125_v62  ;;  %2024 = vmatmul.mubr.msk.bf16.gmra.mrb[56].mxu1 %vm713_vm0, %v2126_v63 }
  0x88   : > { %1963 = vmatprep.mubr.msk.bf16.mxu0 %vm713_vm0, %v2127_v0  ;;  %2027 = vmatprep.mubr.msk.bf16.mxu1 %vm713_vm0, %v2128_v1 }
  0x8f   : > { %1964 = vmatmul.mubr.msk.bf16.gmra.mrb[60].mxu0 %vm713_vm0, %v2129_v2  ;;  %2028 = vmatmul.mubr.msk.bf16.gmra.mrb[60].mxu1 %vm713_vm0, %v2130_v3 }
  0xea   : > { %v1905_v5 = vpop.f32.mrb[0].mxu0  ;;  %v1969_v6 = vpop.f32.mrb[0].mxu1 }
  0xeb   : > { %v949_v7 = vadd.f32 %v1905_v5, %v2345_v4  ;;  %v1205_v8 = vadd.f32 %v1969_v6, %v2345_v4  ;;  %v940_v9 = vpop.f32.mrb[1].mxu0  ;;  %v1196_v10 = vpop.f32.mrb[1].mxu1 }
  0xec   : > { %v941_v11 = vadd.f32 %v2345_v4, %v940_v9  ;;  %v1197_v12 = vadd.f32 %v2345_v4, %v1196_v10  ;;  %v1906_v13 = vpop.f32.mrb[2].mxu0  ;;  %v1970_v14 = vpop.f32.mrb[2].mxu1 }
  0xed   : > { %1453 = vst [vmem:[%s2350_s7 + $0x10] sm:$0xff] %v949_v7  ;;  %1517 = vst [vmem:[%s2350_s7 + $0x210] sm:$0xff] %v1205_v8  ;;  %v952_v15 = vadd.f32 %v1906_v13, %v2345_v4  ;;  %v1208_v16 = vadd.f32 %v1970_v14, %v2345_v4  ;;  %v943_v17 = vpop.f32.mrb[3].mxu0  ;;  %v1199_v18 = vpop.f32.mrb[3].mxu1 }
  0xee   : > { %1451 = vst [vmem:[%s2350_s7] sm:$0xff] %v941_v11  ;;  %1515 = vst [vmem:[%s2350_s7 + $0x200] sm:$0xff] %v1197_v12  ;;  %v944_v19 = vadd.f32 %v2345_v4, %v943_v17  ;;  %v1200_v20 = vadd.f32 %v2345_v4, %v1199_v18 }
  0xef   : > { %1454 = vst [vmem:[%s2350_s7 + $0x18] sm:$0xff] %v952_v15  ;;  %1518 = vst [vmem:[%s2350_s7 + $0x218] sm:$0xff] %v1208_v16 }
  0xf0   : > { %1452 = vst [vmem:[%s2350_s7 + $0x8] sm:$0xff] %v944_v19  ;;  %1516 = vst [vmem:[%s2350_s7 + $0x208] sm:$0xff] %v1200_v20 }
  0xf2   : > { %v1909_v21 = vpop.f32.mrb[4].mxu0  ;;  %v1973_v22 = vpop.f32.mrb[4].mxu1 }
  0xf3   : > { %v965_v23 = vadd.f32 %v1909_v21, %v2345_v4  ;;  %v1221_v24 = vadd.f32 %v1973_v22, %v2345_v4  ;;  %v956_v25 = vpop.f32.mrb[5].mxu0  ;;  %v1212_v26 = vpop.f32.mrb[5].mxu1 }
  0xf4   : > { %v957_v27 = vadd.f32 %v2345_v4, %v956_v25  ;;  %v1213_v28 = vadd.f32 %v2345_v4, %v1212_v26  ;;  %v1910_v29 = vpop.f32.mrb[6].mxu0  ;;  %v1974_v30 = vpop.f32.mrb[6].mxu1 }
  0xf5   : > { %1457 = vst [vmem:[%s2350_s7 + $0x30] sm:$0xff] %v965_v23  ;;  %1521 = vst [vmem:[%s2350_s7 + $0x230] sm:$0xff] %v1221_v24  ;;  %v968_v31 = vadd.f32 %v1910_v29, %v2345_v4  ;;  %v1224_v32 = vadd.f32 %v1974_v30, %v2345_v4  ;;  %v959_v33 = vpop.f32.mrb[7].mxu0  ;;  %v1215_v34 = vpop.f32.mrb[7].mxu1 }
  0xf6   : > { %1455 = vst [vmem:[%s2350_s7 + $0x20] sm:$0xff] %v957_v27  ;;  %1519 = vst [vmem:[%s2350_s7 + $0x220] sm:$0xff] %v1213_v28  ;;  %v960_v35 = vadd.f32 %v2345_v4, %v959_v33  ;;  %v1216_v36 = vadd.f32 %v2345_v4, %v1215_v34 }
  0xf7   : > { %1458 = vst [vmem:[%s2350_s7 + $0x38] sm:$0xff] %v968_v31  ;;  %1522 = vst [vmem:[%s2350_s7 + $0x238] sm:$0xff] %v1224_v32 }
  0xf8   : > { %1456 = vst [vmem:[%s2350_s7 + $0x28] sm:$0xff] %v960_v35  ;;  %1520 = vst [vmem:[%s2350_s7 + $0x228] sm:$0xff] %v1216_v36 }
  0xfa   : > { %v1913_v37 = vpop.f32.mrb[8].mxu0  ;;  %v1977_v38 = vpop.f32.mrb[8].mxu1 }
  0xfb   : > { %v981_v39 = vadd.f32 %v1913_v37, %v2345_v4  ;;  %v1237_v40 = vadd.f32 %v1977_v38, %v2345_v4  ;;  %v972_v41 = vpop.f32.mrb[9].mxu0  ;;  %v1228_v42 = vpop.f32.mrb[9].mxu1 }
  0xfc   : > { %v973_v43 = vadd.f32 %v2345_v4, %v972_v41  ;;  %v1229_v44 = vadd.f32 %v2345_v4, %v1228_v42  ;;  %v1914_v45 = vpop.f32.mrb[10].mxu0  ;;  %v1978_v46 = vpop.f32.mrb[10].mxu1 }
  0xfd   : > { %1461 = vst [vmem:[%s2350_s7 + $0x50] sm:$0xff] %v981_v39  ;;  %1525 = vst [vmem:[%s2350_s7 + $0x250] sm:$0xff] %v1237_v40  ;;  %v984_v47 = vadd.f32 %v1914_v45, %v2345_v4  ;;  %v1240_v48 = vadd.f32 %v1978_v46, %v2345_v4  ;;  %v975_v49 = vpop.f32.mrb[11].mxu0  ;;  %v1231_v50 = vpop.f32.mrb[11].mxu1 }
  0xfe   : > { %1459 = vst [vmem:[%s2350_s7 + $0x40] sm:$0xff] %v973_v43  ;;  %1523 = vst [vmem:[%s2350_s7 + $0x240] sm:$0xff] %v1229_v44  ;;  %v976_v51 = vadd.f32 %v2345_v4, %v975_v49  ;;  %v1232_v52 = vadd.f32 %v2345_v4, %v1231_v50 }
  0xff   : > { %1462 = vst [vmem:[%s2350_s7 + $0x58] sm:$0xff] %v984_v47  ;;  %1526 = vst [vmem:[%s2350_s7 + $0x258] sm:$0xff] %v1240_v48 }
 0x100   : > { %1460 = vst [vmem:[%s2350_s7 + $0x48] sm:$0xff] %v976_v51  ;;  %1524 = vst [vmem:[%s2350_s7 + $0x248] sm:$0xff] %v1232_v52 }
 0x102   : > { %v1917_v53 = vpop.f32.mrb[12].mxu0  ;;  %v1981_v54 = vpop.f32.mrb[12].mxu1 }
 0x103   : > { %v997_v55 = vadd.f32 %v1917_v53, %v2345_v4  ;;  %v1253_v56 = vadd.f32 %v1981_v54, %v2345_v4  ;;  %v988_v57 = vpop.f32.mrb[13].mxu0  ;;  %v1244_v58 = vpop.f32.mrb[13].mxu1 }
 0x104   : > { %v989_v59 = vadd.f32 %v2345_v4, %v988_v57  ;;  %v1245_v60 = vadd.f32 %v2345_v4, %v1244_v58  ;;  %v1918_v61 = vpop.f32.mrb[14].mxu0  ;;  %v1982_v62 = vpop.f32.mrb[14].mxu1 }
 0x105   : > { %1465 = vst [vmem:[%s2350_s7 + $0x70] sm:$0xff] %v997_v55  ;;  %1529 = vst [vmem:[%s2350_s7 + $0x270] sm:$0xff] %v1253_v56  ;;  %v1000_v63 = vadd.f32 %v1918_v61, %v2345_v4  ;;  %v1256_v0 = vadd.f32 %v1982_v62, %v2345_v4  ;;  %v991_v1 = vpop.f32.mrb[15].mxu0  ;;  %v1247_v2 = vpop.f32.mrb[15].mxu1 }
 0x106   : > { %1463 = vst [vmem:[%s2350_s7 + $0x60] sm:$0xff] %v989_v59  ;;  %1527 = vst [vmem:[%s2350_s7 + $0x260] sm:$0xff] %v1245_v60  ;;  %v992_v3 = vadd.f32 %v2345_v4, %v991_v1  ;;  %v1248_v5 = vadd.f32 %v2345_v4, %v1247_v2 }
 0x107   : > { %1466 = vst [vmem:[%s2350_s7 + $0x78] sm:$0xff] %v1000_v63  ;;  %1530 = vst [vmem:[%s2350_s7 + $0x278] sm:$0xff] %v1256_v0 }
 0x108   : > { %1464 = vst [vmem:[%s2350_s7 + $0x68] sm:$0xff] %v992_v3  ;;  %1528 = vst [vmem:[%s2350_s7 + $0x268] sm:$0xff] %v1248_v5 }
 0x10a   : > { %v1921_v6 = vpop.f32.mrb[16].mxu0  ;;  %v1985_v7 = vpop.f32.mrb[16].mxu1 }
 0x10b   : > { %v1013_v8 = vadd.f32 %v1921_v6, %v2345_v4  ;;  %v1269_v9 = vadd.f32 %v1985_v7, %v2345_v4  ;;  %v1004_v10 = vpop.f32.mrb[17].mxu0  ;;  %v1260_v11 = vpop.f32.mrb[17].mxu1 }
 0x10c   : > { %v1005_v12 = vadd.f32 %v2345_v4, %v1004_v10  ;;  %v1261_v13 = vadd.f32 %v2345_v4, %v1260_v11  ;;  %v1922_v14 = vpop.f32.mrb[18].mxu0  ;;  %v1986_v15 = vpop.f32.mrb[18].mxu1 }
 0x10d   : > { %1469 = vst [vmem:[%s2350_s7 + $0x90] sm:$0xff] %v1013_v8  ;;  %1533 = vst [vmem:[%s2350_s7 + $0x290] sm:$0xff] %v1269_v9  ;;  %v1016_v16 = vadd.f32 %v1922_v14, %v2345_v4  ;;  %v1272_v17 = vadd.f32 %v1986_v15, %v2345_v4  ;;  %v1007_v18 = vpop.f32.mrb[19].mxu0  ;;  %v1263_v19 = vpop.f32.mrb[19].mxu1 }
 0x10e   : > { %1467 = vst [vmem:[%s2350_s7 + $0x80] sm:$0xff] %v1005_v12  ;;  %1531 = vst [vmem:[%s2350_s7 + $0x280] sm:$0xff] %v1261_v13  ;;  %v1008_v20 = vadd.f32 %v2345_v4, %v1007_v18  ;;  %v1264_v21 = vadd.f32 %v2345_v4, %v1263_v19 }
 0x10f   : > { %1470 = vst [vmem:[%s2350_s7 + $0x98] sm:$0xff] %v1016_v16  ;;  %1534 = vst [vmem:[%s2350_s7 + $0x298] sm:$0xff] %v1272_v17 }
 0x110   : > { %1468 = vst [vmem:[%s2350_s7 + $0x88] sm:$0xff] %v1008_v20  ;;  %1532 = vst [vmem:[%s2350_s7 + $0x288] sm:$0xff] %v1264_v21 }
 0x112   : > { %v1925_v22 = vpop.f32.mrb[20].mxu0  ;;  %v1989_v23 = vpop.f32.mrb[20].mxu1 }
 0x113   : > { %v1029_v24 = vadd.f32 %v1925_v22, %v2345_v4  ;;  %v1285_v25 = vadd.f32 %v1989_v23, %v2345_v4  ;;  %v1020_v26 = vpop.f32.mrb[21].mxu0  ;;  %v1276_v27 = vpop.f32.mrb[21].mxu1 }
 0x114   : > { %v1021_v28 = vadd.f32 %v2345_v4, %v1020_v26  ;;  %v1277_v29 = vadd.f32 %v2345_v4, %v1276_v27  ;;  %v1926_v30 = vpop.f32.mrb[22].mxu0  ;;  %v1990_v31 = vpop.f32.mrb[22].mxu1 }
 0x115   : > { %1473 = vst [vmem:[%s2350_s7 + $0xb0] sm:$0xff] %v1029_v24  ;;  %1537 = vst [vmem:[%s2350_s7 + $0x2b0] sm:$0xff] %v1285_v25  ;;  %v1032_v32 = vadd.f32 %v1926_v30, %v2345_v4  ;;  %v1288_v33 = vadd.f32 %v1990_v31, %v2345_v4  ;;  %v1023_v34 = vpop.f32.mrb[23].mxu0  ;;  %v1279_v35 = vpop.f32.mrb[23].mxu1 }
 0x116   : > { %1471 = vst [vmem:[%s2350_s7 + $0xa0] sm:$0xff] %v1021_v28  ;;  %1535 = vst [vmem:[%s2350_s7 + $0x2a0] sm:$0xff] %v1277_v29  ;;  %v1024_v36 = vadd.f32 %v2345_v4, %v1023_v34  ;;  %v1280_v37 = vadd.f32 %v2345_v4, %v1279_v35 }
 0x117   : > { %1474 = vst [vmem:[%s2350_s7 + $0xb8] sm:$0xff] %v1032_v32  ;;  %1538 = vst [vmem:[%s2350_s7 + $0x2b8] sm:$0xff] %v1288_v33 }
 0x118   : > { %1472 = vst [vmem:[%s2350_s7 + $0xa8] sm:$0xff] %v1024_v36  ;;  %1536 = vst [vmem:[%s2350_s7 + $0x2a8] sm:$0xff] %v1280_v37 }
 0x11a   : > { %v1929_v38 = vpop.f32.mrb[24].mxu0  ;;  %v1993_v39 = vpop.f32.mrb[24].mxu1 }
 0x11b   : > { %v1045_v40 = vadd.f32 %v1929_v38, %v2345_v4  ;;  %v1301_v41 = vadd.f32 %v1993_v39, %v2345_v4  ;;  %v1036_v42 = vpop.f32.mrb[25].mxu0  ;;  %v1292_v43 = vpop.f32.mrb[25].mxu1 }
 0x11c   : > { %v1037_v44 = vadd.f32 %v2345_v4, %v1036_v42  ;;  %v1293_v45 = vadd.f32 %v2345_v4, %v1292_v43  ;;  %v1930_v46 = vpop.f32.mrb[26].mxu0  ;;  %v1994_v47 = vpop.f32.mrb[26].mxu1 }
 0x11d   : > { %1477 = vst [vmem:[%s2350_s7 + $0xd0] sm:$0xff] %v1045_v40  ;;  %1541 = vst [vmem:[%s2350_s7 + $0x2d0] sm:$0xff] %v1301_v41  ;;  %v1048_v48 = vadd.f32 %v1930_v46, %v2345_v4  ;;  %v1304_v49 = vadd.f32 %v1994_v47, %v2345_v4  ;;  %v1039_v50 = vpop.f32.mrb[27].mxu0  ;;  %v1295_v51 = vpop.f32.mrb[27].mxu1 }
 0x11e   : > { %1475 = vst [vmem:[%s2350_s7 + $0xc0] sm:$0xff] %v1037_v44  ;;  %1539 = vst [vmem:[%s2350_s7 + $0x2c0] sm:$0xff] %v1293_v45  ;;  %v1040_v52 = vadd.f32 %v2345_v4, %v1039_v50  ;;  %v1296_v53 = vadd.f32 %v2345_v4, %v1295_v51 }
 0x11f   : > { %1478 = vst [vmem:[%s2350_s7 + $0xd8] sm:$0xff] %v1048_v48  ;;  %1542 = vst [vmem:[%s2350_s7 + $0x2d8] sm:$0xff] %v1304_v49 }
 0x120   : > { %1476 = vst [vmem:[%s2350_s7 + $0xc8] sm:$0xff] %v1040_v52  ;;  %1540 = vst [vmem:[%s2350_s7 + $0x2c8] sm:$0xff] %v1296_v53 }
 0x122   : > { %v1933_v54 = vpop.f32.mrb[28].mxu0  ;;  %v1997_v55 = vpop.f32.mrb[28].mxu1 }
 0x123   : > { %v1061_v56 = vadd.f32 %v1933_v54, %v2345_v4  ;;  %v1317_v57 = vadd.f32 %v1997_v55, %v2345_v4  ;;  %v1052_v58 = vpop.f32.mrb[29].mxu0  ;;  %v1308_v59 = vpop.f32.mrb[29].mxu1 }
 0x124   : > { %v1053_v60 = vadd.f32 %v2345_v4, %v1052_v58  ;;  %v1309_v61 = vadd.f32 %v2345_v4, %v1308_v59  ;;  %v1934_v62 = vpop.f32.mrb[30].mxu0  ;;  %v1998_v63 = vpop.f32.mrb[30].mxu1 }
 0x125   : > { %1481 = vst [vmem:[%s2350_s7 + $0xf0] sm:$0xff] %v1061_v56  ;;  %1545 = vst [vmem:[%s2350_s7 + $0x2f0] sm:$0xff] %v1317_v57  ;;  %v1064_v0 = vadd.f32 %v1934_v62, %v2345_v4  ;;  %v1320_v1 = vadd.f32 %v1998_v63, %v2345_v4  ;;  %v1055_v2 = vpop.f32.mrb[31].mxu0  ;;  %v1311_v3 = vpop.f32.mrb[31].mxu1 }
 0x126   : > { %1479 = vst [vmem:[%s2350_s7 + $0xe0] sm:$0xff] %v1053_v60  ;;  %1543 = vst [vmem:[%s2350_s7 + $0x2e0] sm:$0xff] %v1309_v61  ;;  %v1056_v5 = vadd.f32 %v2345_v4, %v1055_v2  ;;  %v1312_v6 = vadd.f32 %v2345_v4, %v1311_v3 }
 0x127   : > { %1482 = vst [vmem:[%s2350_s7 + $0xf8] sm:$0xff] %v1064_v0  ;;  %1546 = vst [vmem:[%s2350_s7 + $0x2f8] sm:$0xff] %v1320_v1 }
 0x128   : > { %1480 = vst [vmem:[%s2350_s7 + $0xe8] sm:$0xff] %v1056_v5  ;;  %1544 = vst [vmem:[%s2350_s7 + $0x2e8] sm:$0xff] %v1312_v6 }
 0x12a   : > { %v1937_v7 = vpop.f32.mrb[32].mxu0  ;;  %v2001_v8 = vpop.f32.mrb[32].mxu1 }
 0x12b   : > { %v1077_v9 = vadd.f32 %v1937_v7, %v2345_v4  ;;  %v1333_v10 = vadd.f32 %v2001_v8, %v2345_v4  ;;  %v1068_v11 = vpop.f32.mrb[33].mxu0  ;;  %v1324_v12 = vpop.f32.mrb[33].mxu1 }
 0x12c   : > { %v1069_v13 = vadd.f32 %v2345_v4, %v1068_v11  ;;  %v1325_v14 = vadd.f32 %v2345_v4, %v1324_v12  ;;  %v1938_v15 = vpop.f32.mrb[34].mxu0  ;;  %v2002_v16 = vpop.f32.mrb[34].mxu1 }
 0x12d   : > { %1485 = vst [vmem:[%s2350_s7 + $0x110] sm:$0xff] %v1077_v9  ;;  %1549 = vst [vmem:[%s2350_s7 + $0x310] sm:$0xff] %v1333_v10  ;;  %v1080_v17 = vadd.f32 %v1938_v15, %v2345_v4  ;;  %v1336_v18 = vadd.f32 %v2002_v16, %v2345_v4  ;;  %v1071_v19 = vpop.f32.mrb[35].mxu0  ;;  %v1327_v20 = vpop.f32.mrb[35].mxu1 }
 0x12e   : > { %1483 = vst [vmem:[%s2350_s7 + $0x100] sm:$0xff] %v1069_v13  ;;  %1547 = vst [vmem:[%s2350_s7 + $0x300] sm:$0xff] %v1325_v14  ;;  %v1072_v21 = vadd.f32 %v2345_v4, %v1071_v19  ;;  %v1328_v22 = vadd.f32 %v2345_v4, %v1327_v20 }
 0x12f   : > { %1486 = vst [vmem:[%s2350_s7 + $0x118] sm:$0xff] %v1080_v17  ;;  %1550 = vst [vmem:[%s2350_s7 + $0x318] sm:$0xff] %v1336_v18 }
 0x130   : > { %1484 = vst [vmem:[%s2350_s7 + $0x108] sm:$0xff] %v1072_v21  ;;  %1548 = vst [vmem:[%s2350_s7 + $0x308] sm:$0xff] %v1328_v22 }
 0x132   : > { %v1941_v23 = vpop.f32.mrb[36].mxu0  ;;  %v2005_v24 = vpop.f32.mrb[36].mxu1 }
 0x133   : > { %v1093_v25 = vadd.f32 %v1941_v23, %v2345_v4  ;;  %v1349_v26 = vadd.f32 %v2005_v24, %v2345_v4  ;;  %v1084_v27 = vpop.f32.mrb[37].mxu0  ;;  %v1340_v28 = vpop.f32.mrb[37].mxu1 }
 0x134   : > { %v1085_v29 = vadd.f32 %v2345_v4, %v1084_v27  ;;  %v1341_v30 = vadd.f32 %v2345_v4, %v1340_v28  ;;  %v1942_v31 = vpop.f32.mrb[38].mxu0  ;;  %v2006_v32 = vpop.f32.mrb[38].mxu1 }
 0x135   : > { %1489 = vst [vmem:[%s2350_s7 + $0x130] sm:$0xff] %v1093_v25  ;;  %1553 = vst [vmem:[%s2350_s7 + $0x330] sm:$0xff] %v1349_v26  ;;  %v1096_v33 = vadd.f32 %v1942_v31, %v2345_v4  ;;  %v1352_v34 = vadd.f32 %v2006_v32, %v2345_v4  ;;  %v1087_v35 = vpop.f32.mrb[39].mxu0  ;;  %v1343_v36 = vpop.f32.mrb[39].mxu1 }
 0x136   : > { %1487 = vst [vmem:[%s2350_s7 + $0x120] sm:$0xff] %v1085_v29  ;;  %1551 = vst [vmem:[%s2350_s7 + $0x320] sm:$0xff] %v1341_v30  ;;  %v1088_v37 = vadd.f32 %v2345_v4, %v1087_v35  ;;  %v1344_v38 = vadd.f32 %v2345_v4, %v1343_v36 }
 0x137   : > { %1490 = vst [vmem:[%s2350_s7 + $0x138] sm:$0xff] %v1096_v33  ;;  %1554 = vst [vmem:[%s2350_s7 + $0x338] sm:$0xff] %v1352_v34 }
 0x138   : > { %1488 = vst [vmem:[%s2350_s7 + $0x128] sm:$0xff] %v1088_v37  ;;  %1552 = vst [vmem:[%s2350_s7 + $0x328] sm:$0xff] %v1344_v38 }
 0x13a   : > { %v1945_v39 = vpop.f32.mrb[40].mxu0  ;;  %v2009_v40 = vpop.f32.mrb[40].mxu1 }
 0x13b   : > { %v1109_v41 = vadd.f32 %v1945_v39, %v2345_v4  ;;  %v1365_v42 = vadd.f32 %v2009_v40, %v2345_v4  ;;  %v1100_v43 = vpop.f32.mrb[41].mxu0  ;;  %v1356_v44 = vpop.f32.mrb[41].mxu1 }
 0x13c   : > { %v1101_v45 = vadd.f32 %v2345_v4, %v1100_v43  ;;  %v1357_v46 = vadd.f32 %v2345_v4, %v1356_v44  ;;  %v1946_v47 = vpop.f32.mrb[42].mxu0  ;;  %v2010_v48 = vpop.f32.mrb[42].mxu1 }
 0x13d   : > { %1493 = vst [vmem:[%s2350_s7 + $0x150] sm:$0xff] %v1109_v41  ;;  %1557 = vst [vmem:[%s2350_s7 + $0x350] sm:$0xff] %v1365_v42  ;;  %v1112_v49 = vadd.f32 %v1946_v47, %v2345_v4  ;;  %v1368_v50 = vadd.f32 %v2010_v48, %v2345_v4  ;;  %v1103_v51 = vpop.f32.mrb[43].mxu0  ;;  %v1359_v52 = vpop.f32.mrb[43].mxu1 }
 0x13e   : > { %1491 = vst [vmem:[%s2350_s7 + $0x140] sm:$0xff] %v1101_v45  ;;  %1555 = vst [vmem:[%s2350_s7 + $0x340] sm:$0xff] %v1357_v46  ;;  %v1104_v53 = vadd.f32 %v2345_v4, %v1103_v51  ;;  %v1360_v54 = vadd.f32 %v2345_v4, %v1359_v52 }
 0x13f   : > { %1494 = vst [vmem:[%s2350_s7 + $0x158] sm:$0xff] %v1112_v49  ;;  %1558 = vst [vmem:[%s2350_s7 + $0x358] sm:$0xff] %v1368_v50 }
 0x140   : > { %1492 = vst [vmem:[%s2350_s7 + $0x148] sm:$0xff] %v1104_v53  ;;  %1556 = vst [vmem:[%s2350_s7 + $0x348] sm:$0xff] %v1360_v54 }
 0x142   : > { %v1949_v55 = vpop.f32.mrb[44].mxu0  ;;  %v2013_v56 = vpop.f32.mrb[44].mxu1 }
 0x143   : > { %v1125_v57 = vadd.f32 %v1949_v55, %v2345_v4  ;;  %v1381_v58 = vadd.f32 %v2013_v56, %v2345_v4  ;;  %v1116_v59 = vpop.f32.mrb[45].mxu0  ;;  %v1372_v60 = vpop.f32.mrb[45].mxu1 }
 0x144   : > { %v1117_v61 = vadd.f32 %v2345_v4, %v1116_v59  ;;  %v1373_v62 = vadd.f32 %v2345_v4, %v1372_v60  ;;  %v1950_v63 = vpop.f32.mrb[46].mxu0  ;;  %v2014_v0 = vpop.f32.mrb[46].mxu1 }
 0x145   : > { %1497 = vst [vmem:[%s2350_s7 + $0x170] sm:$0xff] %v1125_v57  ;;  %1561 = vst [vmem:[%s2350_s7 + $0x370] sm:$0xff] %v1381_v58  ;;  %v1128_v1 = vadd.f32 %v1950_v63, %v2345_v4  ;;  %v1384_v2 = vadd.f32 %v2014_v0, %v2345_v4  ;;  %v1119_v3 = vpop.f32.mrb[47].mxu0  ;;  %v1375_v5 = vpop.f32.mrb[47].mxu1 }
 0x146   : > { %1495 = vst [vmem:[%s2350_s7 + $0x160] sm:$0xff] %v1117_v61  ;;  %1559 = vst [vmem:[%s2350_s7 + $0x360] sm:$0xff] %v1373_v62  ;;  %v1120_v6 = vadd.f32 %v2345_v4, %v1119_v3  ;;  %v1376_v7 = vadd.f32 %v2345_v4, %v1375_v5 }
 0x147   : > { %1498 = vst [vmem:[%s2350_s7 + $0x178] sm:$0xff] %v1128_v1  ;;  %1562 = vst [vmem:[%s2350_s7 + $0x378] sm:$0xff] %v1384_v2 }
 0x148   : > { %1496 = vst [vmem:[%s2350_s7 + $0x168] sm:$0xff] %v1120_v6  ;;  %1560 = vst [vmem:[%s2350_s7 + $0x368] sm:$0xff] %v1376_v7 }
 0x14a   : > { %v1953_v8 = vpop.f32.mrb[48].mxu0  ;;  %v2017_v9 = vpop.f32.mrb[48].mxu1 }
 0x14b   : > { %v1141_v10 = vadd.f32 %v1953_v8, %v2345_v4  ;;  %v1397_v11 = vadd.f32 %v2017_v9, %v2345_v4  ;;  %v1132_v12 = vpop.f32.mrb[49].mxu0  ;;  %v1388_v13 = vpop.f32.mrb[49].mxu1 }
 0x14c   : > { %v1133_v14 = vadd.f32 %v2345_v4, %v1132_v12  ;;  %v1389_v15 = vadd.f32 %v2345_v4, %v1388_v13  ;;  %v1954_v16 = vpop.f32.mrb[50].mxu0  ;;  %v2018_v17 = vpop.f32.mrb[50].mxu1 }
 0x14d   : > { %1501 = vst [vmem:[%s2350_s7 + $0x190] sm:$0xff] %v1141_v10  ;;  %1565 = vst [vmem:[%s2350_s7 + $0x390] sm:$0xff] %v1397_v11  ;;  %v1144_v18 = vadd.f32 %v1954_v16, %v2345_v4  ;;  %v1400_v19 = vadd.f32 %v2018_v17, %v2345_v4  ;;  %v1135_v20 = vpop.f32.mrb[51].mxu0  ;;  %v1391_v21 = vpop.f32.mrb[51].mxu1 }
 0x14e   : > { %1499 = vst [vmem:[%s2350_s7 + $0x180] sm:$0xff] %v1133_v14  ;;  %1563 = vst [vmem:[%s2350_s7 + $0x380] sm:$0xff] %v1389_v15  ;;  %v1136_v22 = vadd.f32 %v2345_v4, %v1135_v20  ;;  %v1392_v23 = vadd.f32 %v2345_v4, %v1391_v21 }
 0x14f   : > { %1502 = vst [vmem:[%s2350_s7 + $0x198] sm:$0xff] %v1144_v18  ;;  %1566 = vst [vmem:[%s2350_s7 + $0x398] sm:$0xff] %v1400_v19 }
 0x150   : > { %1500 = vst [vmem:[%s2350_s7 + $0x188] sm:$0xff] %v1136_v22  ;;  %1564 = vst [vmem:[%s2350_s7 + $0x388] sm:$0xff] %v1392_v23 }
 0x152   : > { %v1957_v24 = vpop.f32.mrb[52].mxu0  ;;  %v2021_v25 = vpop.f32.mrb[52].mxu1 }
 0x153   : > { %v1157_v26 = vadd.f32 %v1957_v24, %v2345_v4  ;;  %v1413_v27 = vadd.f32 %v2021_v25, %v2345_v4  ;;  %v1148_v28 = vpop.f32.mrb[53].mxu0  ;;  %v1404_v29 = vpop.f32.mrb[53].mxu1 }
 0x154   : > { %v1149_v30 = vadd.f32 %v2345_v4, %v1148_v28  ;;  %v1405_v31 = vadd.f32 %v2345_v4, %v1404_v29  ;;  %v1958_v32 = vpop.f32.mrb[54].mxu0  ;;  %v2022_v33 = vpop.f32.mrb[54].mxu1 }
 0x155   : > { %1505 = vst [vmem:[%s2350_s7 + $0x1b0] sm:$0xff] %v1157_v26  ;;  %1569 = vst [vmem:[%s2350_s7 + $0x3b0] sm:$0xff] %v1413_v27  ;;  %v1160_v34 = vadd.f32 %v1958_v32, %v2345_v4  ;;  %v1416_v35 = vadd.f32 %v2022_v33, %v2345_v4  ;;  %v1151_v36 = vpop.f32.mrb[55].mxu0  ;;  %v1407_v37 = vpop.f32.mrb[55].mxu1 }
 0x156   : > { %1503 = vst [vmem:[%s2350_s7 + $0x1a0] sm:$0xff] %v1149_v30  ;;  %1567 = vst [vmem:[%s2350_s7 + $0x3a0] sm:$0xff] %v1405_v31  ;;  %v1152_v38 = vadd.f32 %v2345_v4, %v1151_v36  ;;  %v1408_v39 = vadd.f32 %v2345_v4, %v1407_v37 }
 0x157   : > { %1506 = vst [vmem:[%s2350_s7 + $0x1b8] sm:$0xff] %v1160_v34  ;;  %1570 = vst [vmem:[%s2350_s7 + $0x3b8] sm:$0xff] %v1416_v35 }
 0x158   : > { %1504 = vst [vmem:[%s2350_s7 + $0x1a8] sm:$0xff] %v1152_v38  ;;  %1568 = vst [vmem:[%s2350_s7 + $0x3a8] sm:$0xff] %v1408_v39 }
 0x15a   : > { %v1961_v40 = vpop.f32.mrb[56].mxu0  ;;  %v2025_v41 = vpop.f32.mrb[56].mxu1 }
 0x15b   : > { %v1173_v42 = vadd.f32 %v1961_v40, %v2345_v4  ;;  %v1429_v43 = vadd.f32 %v2025_v41, %v2345_v4  ;;  %v1164_v44 = vpop.f32.mrb[57].mxu0  ;;  %v1420_v45 = vpop.f32.mrb[57].mxu1 }
 0x15c   : > { %v1165_v46 = vadd.f32 %v2345_v4, %v1164_v44  ;;  %v1421_v47 = vadd.f32 %v2345_v4, %v1420_v45  ;;  %v1962_v48 = vpop.f32.mrb[58].mxu0  ;;  %v2026_v49 = vpop.f32.mrb[58].mxu1 }
 0x15d   : > { %1509 = vst [vmem:[%s2350_s7 + $0x1d0] sm:$0xff] %v1173_v42  ;;  %1573 = vst [vmem:[%s2350_s7 + $0x3d0] sm:$0xff] %v1429_v43  ;;  %v1176_v50 = vadd.f32 %v1962_v48, %v2345_v4  ;;  %v1432_v51 = vadd.f32 %v2026_v49, %v2345_v4  ;;  %v1167_v52 = vpop.f32.mrb[59].mxu0  ;;  %v1423_v53 = vpop.f32.mrb[59].mxu1 }
 0x15e   : > { %1507 = vst [vmem:[%s2350_s7 + $0x1c0] sm:$0xff] %v1165_v46  ;;  %1571 = vst [vmem:[%s2350_s7 + $0x3c0] sm:$0xff] %v1421_v47  ;;  %v1168_v54 = vadd.f32 %v2345_v4, %v1167_v52  ;;  %v1424_v55 = vadd.f32 %v2345_v4, %v1423_v53 }
 0x15f   : > { %1510 = vst [vmem:[%s2350_s7 + $0x1d8] sm:$0xff] %v1176_v50  ;;  %1574 = vst [vmem:[%s2350_s7 + $0x3d8] sm:$0xff] %v1432_v51 }
 0x160   : > { %1508 = vst [vmem:[%s2350_s7 + $0x1c8] sm:$0xff] %v1168_v54  ;;  %1572 = vst [vmem:[%s2350_s7 + $0x3c8] sm:$0xff] %v1424_v55 }
 0x162   : > { %v1965_v56 = vpop.f32.mrb[60].mxu0  ;;  %v2029_v57 = vpop.f32.mrb[60].mxu1 }
 0x163   : > { %v1189_v58 = vadd.f32 %v1965_v56, %v2345_v4  ;;  %v1445_v59 = vadd.f32 %v2029_v57, %v2345_v4  ;;  %v1180_v60 = vpop.f32.mrb[61].mxu0  ;;  %v1436_v61 = vpop.f32.mrb[61].mxu1 }
 0x164   : > { %v1181_v62 = vadd.f32 %v2345_v4, %v1180_v60  ;;  %v1437_v63 = vadd.f32 %v2345_v4, %v1436_v61  ;;  %v1966_v0 = vpop.f32.mrb[62].mxu0  ;;  %v2030_v1 = vpop.f32.mrb[62].mxu1 }
 0x165   : > { %1513 = vst [vmem:[%s2350_s7 + $0x1f0] sm:$0xff] %v1189_v58  ;;  %1577 = vst [vmem:[%s2350_s7 + $0x3f0] sm:$0xff] %v1445_v59  ;;  %v1192_v2 = vadd.f32 %v1966_v0, %v2345_v4  ;;  %v1448_v3 = vadd.f32 %v2030_v1, %v2345_v4  ;;  %v1183_v5 = vpop.f32.mrb[63].mxu0  ;;  %v1439_v6 = vpop.f32.mrb[63].mxu1 }
 0x166   : > { %1511 = vst [vmem:[%s2350_s7 + $0x1e0] sm:$0xff] %v1181_v62  ;;  %1575 = vst [vmem:[%s2350_s7 + $0x3e0] sm:$0xff] %v1437_v63  ;;  %v1184_v7 = vadd.f32 %v2345_v4, %v1183_v5  ;;  %v1440_v8 = vadd.f32 %v2345_v4, %v1439_v6 }
 0x167   : > { %1514 = vst [vmem:[%s2350_s7 + $0x1f8] sm:$0xff] %v1192_v2  ;;  %1578 = vst [vmem:[%s2350_s7 + $0x3f8] sm:$0xff] %v1448_v3 }
 0x168   : > { %1512 = vst [vmem:[%s2350_s7 + $0x1e8] sm:$0xff] %v1184_v7  ;;  %1576 = vst [vmem:[%s2350_s7 + $0x3e8] sm:$0xff] %v1440_v8 }
 0x169 PF: > { %s13_s14 = sadd.s32 1, %s2153_s14   ;;  %s2621_s12 = smov %s2149_s13 }
 0x16a   : > { %p10_p5 = scmp.ge.s32.totalorder %s13_s14, 14   ;;  %s2622_s13 = smov %s2624_s15 }
 0x16c   :  { %12 = sbr.rel (!%p10_p5) target bundleno = 2 (0x2), region = 68 }

</bundles_post_ra>
